<compile_context>
chip_gen: v6e
topology: v6e:2x2x1
jax: 0.10.0
libtpu: 0.0.40
codegen_flags: <defaults>
</compile_context>

<pallas_src>
import functools

import jax
import jax.numpy as jnp
import numpy as np
from jax.experimental import pallas as pl
from jax.experimental.pallas import tpu as pltpu

LANES = 128
K5 = 5  # conv kernel size


# ---------------------------------------------------------------------------
# Pooling selection matrices (0/1), applied on the MXU inside the conv kernel.
# ---------------------------------------------------------------------------
def _pool_selectors(win, rows_per_tile):
    """Four (P, T) 0/1 matrices S_d so that (S_d @ Y)[p] picks the conv value at
    2x2-window offset d of pooled position p, where Y is a (T = rows_per_tile*win,
    128) tile of full-width conv rows (row-major (row, col) flattening)."""
    pw = win // 2
    pr = rows_per_tile // 2
    P, T = pr * pw, rows_per_tile * win
    sel = np.zeros((4, P, T), np.float32)
    for di, d in enumerate((0, 1, win, win + 1)):
        for r in range(pr):
            for q in range(pw):
                sel[di, r * pw + q, (2 * r) * win + 2 * q + d] = 1.0
    return jnp.asarray(sel)


# ---------------------------------------------------------------------------
# Fused conv (+bias +ReLU) + 2x2/2 max-pool kernel
# ---------------------------------------------------------------------------
def _conv_relu_pool_kernel(x_ref, w_ref, b_ref, sel_ref, o_ref, acc_ref, *,
                           offsets, tile):
    t = pl.program_id(1)
    base = t * tile
    # Shift-and-accumulate conv: acc[m] = sum_s x[base + m + off_s] @ w[s]
    for s, off in enumerate(offsets):
        xs = x_ref[0, pl.ds(base + off, tile), :]
        contrib = jnp.dot(xs, w_ref[s], preferred_element_type=jnp.float32)
        if s == 0:
            acc_ref[...] = contrib
        else:
            acc_ref[...] += contrib
    y = jnp.maximum(acc_ref[...] + b_ref[...], 0.0)
    # 2x2 max-pool via four selection matmuls (exact: rows are one-hot).
    p01 = jnp.maximum(jnp.dot(sel_ref[0], y, preferred_element_type=jnp.float32),
                      jnp.dot(sel_ref[1], y, preferred_element_type=jnp.float32))
    p23 = jnp.maximum(jnp.dot(sel_ref[2], y, preferred_element_type=jnp.float32),
                      jnp.dot(sel_ref[3], y, preferred_element_type=jnp.float32))
    o_ref[0] = jnp.maximum(p01, p23).astype(o_ref.dtype)


def conv_relu_pool(x, w, b, *, offsets, win, ohv, tile):
    """Fused valid conv (+bias, +ReLU) and 2x2/stride-2 max-pool.

    x: (B, L, Kin) spatially flattened input with layout width `win`; the conv
       output at flattened position m is sum_s x[m + offsets[s]] @ w[s].
    w: (S, Kin, 128) packed weights (zero-padded lanes), b: (1, 128).
    Returns (B, (ohv//2) * (win//2), 128), layout (ohv//2, win//2) row-major;
    columns >= valid_width//2 and lanes >= out_channels are zero/garbage filler.
    """
    B, L, kin = x.shape
    S = len(offsets)
    assert w.shape == (S, kin, LANES)
    assert tile % (2 * win) == 0 and (ohv * win) % tile == 0
    n_tiles = (ohv * win) // tile
    rows_per_tile = tile // win
    p_tile = (rows_per_tile // 2) * (win // 2)

    # Pad rows (zeros) so every shifted in-kernel read stays in bounds.
    need = ohv * win + max(offsets)
    need = ((need + 7) // 8) * 8
    if L < need:
        x = jnp.pad(x, ((0, 0), (0, need - L), (0, 0)))
    lp = max(L, need)

    sel = _pool_selectors(win, rows_per_tile)          # (4, p_tile, tile)
    kernel = functools.partial(_conv_relu_pool_kernel, offsets=tuple(offsets),
                               tile=tile)
    flops = 2 * B * n_tiles * (S * tile * kin * LANES + 4 * p_tile * tile * LANES)
    bytes_acc = 4 * (B * lp * kin + S * kin * LANES + B * n_tiles * p_tile * LANES)

    return pl.pallas_call(
        kernel,
        out_shape=jax.ShapeDtypeStruct((B, n_tiles * p_tile, LANES), jnp.float32),
        grid=(B, n_tiles),
        in_specs=[
            pl.BlockSpec((1, lp, kin), lambda bi, ti: (bi, 0, 0)),      # image
            pl.BlockSpec((S, kin, LANES), lambda bi, ti: (0, 0, 0)),    # weights
            pl.BlockSpec((1, LANES), lambda bi, ti: (0, 0)),            # bias
            pl.BlockSpec((4, p_tile, tile), lambda bi, ti: (0, 0, 0)),  # pool sel
        ],
        out_specs=pl.BlockSpec((1, p_tile, LANES), lambda bi, ti: (bi, ti, 0)),
        scratch_shapes=[pltpu.VMEM((tile, LANES), jnp.float32)],
        compiler_params=pltpu.CompilerParams(
            dimension_semantics=("parallel", "arbitrary"),
            vmem_limit_bytes=32 * 1024 * 1024),
        cost_estimate=pl.CostEstimate(flops=flops, transcendentals=0,
                                      bytes_accessed=bytes_acc),
    )(x, w, b, sel)


# ---------------------------------------------------------------------------
# Fused fc1+ReLU -> fc2+ReLU -> fc3 kernel
# ---------------------------------------------------------------------------
def _mlp_kernel(x_ref, w1_ref, b1_ref, w2_ref, b2_ref, w3_ref, b3_ref, o_ref):
    h = jnp.dot(x_ref[...], w1_ref[...], preferred_element_type=jnp.float32)
    h = jnp.maximum(h + b1_ref[...], 0.0)
    h = jnp.dot(h, w2_ref[...], preferred_element_type=jnp.float32)
    h = jnp.maximum(h + b2_ref[...], 0.0)
    o_ref[...] = (jnp.dot(h, w3_ref[...], preferred_element_type=jnp.float32)
                  + b3_ref[...]).astype(o_ref.dtype)


def mlp_head(x, w1, b1, w2, b2, w3, b3):
    B, kin = x.shape
    tile_b = 128 if B % 128 == 0 else B
    n_b = B // tile_b
    flops = 2 * B * (kin * LANES + LANES * LANES + LANES * LANES)
    bytes_acc = 4 * (B * kin + kin * LANES + 2 * LANES * LANES + B * LANES)
    return pl.pallas_call(
        _mlp_kernel,
        out_shape=jax.ShapeDtypeStruct((B, LANES), jnp.float32),
        grid=(n_b,),
        in_specs=[
            pl.BlockSpec((tile_b, kin), lambda i: (i, 0)),
            pl.BlockSpec(w1.shape, lambda i: (0, 0)),
            pl.BlockSpec(b1.shape, lambda i: (0, 0)),
            pl.BlockSpec(w2.shape, lambda i: (0, 0)),
            pl.BlockSpec(b2.shape, lambda i: (0, 0)),
            pl.BlockSpec(w3.shape, lambda i: (0, 0)),
            pl.BlockSpec(b3.shape, lambda i: (0, 0)),
        ],
        out_specs=pl.BlockSpec((tile_b, LANES), lambda i: (i, 0)),
        compiler_params=pltpu.CompilerParams(
            dimension_semantics=("parallel",),
            vmem_limit_bytes=32 * 1024 * 1024),
        cost_estimate=pl.CostEstimate(flops=flops, transcendentals=0,
                                      bytes_accessed=bytes_acc),
    )(x, w1, b1, w2, b2, w3, b3)


# ---------------------------------------------------------------------------
# Parameters (PyTorch layout) and one-time packing to TPU-friendly layout.
# ---------------------------------------------------------------------------
def init_params(key, num_classes=10):
    def u(k, shape, fan_in):
        bound = 1.0 / (fan_in ** 0.5)
        return jax.random.uniform(k, shape, jnp.float32, -bound, bound)

    ks = jax.random.split(key, 10)
    return {
        "conv1_w": u(ks[0], (6, 3, 5, 5), 3 * 5 * 5),
        "conv1_b": u(ks[1], (6,), 3 * 5 * 5),
        "conv2_w": u(ks[2], (16, 6, 5, 5), 6 * 5 * 5),
        "conv2_b": u(ks[3], (16,), 6 * 5 * 5),
        "fc1_w": u(ks[4], (16 * 5 * 5, 120), 16 * 5 * 5),   # rows in (c, h, w) order
        "fc1_b": u(ks[5], (120,), 16 * 5 * 5),
        "fc2_w": u(ks[6], (120, 84), 120),
        "fc2_b": u(ks[7], (84,), 120),
        "fc3_w": u(ks[8], (84, num_classes), 84),
        "fc3_b": u(ks[9], (num_classes,), 84),
    }


def pack_params(p):
    """Permute/pad weights once (outside the hot path) to the kernel layouts."""
    # conv1: kw taps packed into lanes -> (KH, KW*IC padded to 16, 128 out lanes).
    w1 = jnp.transpose(p["conv1_w"], (2, 3, 1, 0)).reshape(K5, K5 * 3, 6)
    w1 = jnp.pad(w1, ((0, 0), (0, 1), (0, LANES - 6)))           # (5, 16, 128)
    b1 = jnp.pad(p["conv1_b"], (0, LANES - 6)).reshape(1, LANES)
    # conv2: fully fused 25-tap; input lanes are the 128-lane pool1 output.
    w2 = jnp.transpose(p["conv2_w"], (2, 3, 1, 0))               # (5, 5, 6, 16)
    w2 = jnp.pad(w2, ((0, 0), (0, 0), (0, LANES - 6), (0, LANES - 16)))
    w2 = w2.reshape(K5 * K5, LANES, LANES)
    b2 = jnp.pad(p["conv2_b"], (0, LANES - 16)).reshape(1, LANES)
    # fc: pad output dims to 128 lanes; fc2/fc3 input dims to 128 rows (zeros).
    f1w = jnp.pad(p["fc1_w"], ((0, 0), (0, LANES - 120)))
    f1b = jnp.pad(p["fc1_b"], (0, LANES - 120)).reshape(1, LANES)
    f2w = jnp.pad(p["fc2_w"], ((0, LANES - 120), (0, LANES - 84)))
    f2b = jnp.pad(p["fc2_b"], (0, LANES - 84)).reshape(1, LANES)
    nc = p["fc3_b"].shape[0]
    f3w = jnp.pad(p["fc3_w"], ((0, LANES - 84), (0, LANES - nc)))
    f3b = jnp.pad(p["fc3_b"], (0, LANES - nc)).reshape(1, LANES)
    return dict(c1w=w1, c1b=b1, c2w=w2, c2b=b2,
                f1w=f1w, f1b=f1b, f2w=f2w, f2b=f2b, f3w=f3w, f3b=f3b)


# ---------------------------------------------------------------------------
# Forward pass (mirrors CNN.forward)
# ---------------------------------------------------------------------------
@functools.partial(jax.jit, static_argnames=("num_classes",))
def cnn_forward(pp, x, *, num_classes=10):
    B = x.shape[0]
    # NCHW -> NHWC, flatten spatial.
    x = jnp.transpose(x, (0, 2, 3, 1)).reshape(B, 32 * 32, 3)
    # Pack the 5 kw taps into lanes (tiny fused host concat), pad lanes to 16.
    x = jnp.pad(x, ((0, 0), (0, 4), (0, 0)))                     # (B, 1028, 3)
    x = jnp.concatenate([x[:, kw:kw + 1024, :] for kw in range(K5)], axis=-1)
    x = jnp.pad(x, ((0, 0), (0, 0), (0, 1)))                     # (B, 1024, 16)

    # conv1 + ReLU + pool  -> layout (14, 16) x 128 lanes (valid: 14x14 x 6 ch)
    h = conv_relu_pool(x, pp["c1w"], pp["c1b"],
                       offsets=tuple(kh * 32 for kh in range(K5)),
                       win=32, ohv=28, tile=128)                 # (B, 224, 128)
    # conv2 + ReLU + pool  -> layout (5, 8) x 128 lanes (valid: 5x5 x 16 ch)
    h = conv_relu_pool(h, pp["c2w"], pp["c2b"],
                       offsets=tuple(kh * 16 + kw
                                     for kh in range(K5) for kw in range(K5)),
                       win=16, ohv=10, tile=160)                 # (B, 40, 128)

    # Extract the valid (5, 5, 16) region and flatten in PyTorch (c, h, w) order.
    h = h.reshape(B, 5, 8, LANES)[:, :, :5, :16]
    h = jnp.transpose(h, (0, 3, 1, 2)).reshape(B, 16 * 5 * 5)

    out = mlp_head(h, pp["f1w"], pp["f1b"], pp["f2w"], pp["f2b"],
                   pp["f3w"], pp["f3b"])                          # (B, 128)
    return out[:, :num_classes]


# ---------------------------------------------------------------------------
# Pure-JAX reference (for a self-check) and main
# ---------------------------------------------------------------------------
def _reference_forward(params, x):
    def conv(h, w, b):
        y = jax.lax.conv_general_dilated(
            h, w, window_strides=(1, 1), padding="VALID",
            dimension_numbers=("NCHW", "OIHW", "NCHW"))
        return jax.nn.relu(y + b[None, :, None, None])

    def pool(h):
        return jax.lax.reduce_window(h, -jnp.inf, jax.lax.max,
                                     (1, 1, 2, 2), (1, 1, 2, 2), "VALID")

    h = pool(conv(x, params["conv1_w"], params["conv1_b"]))
    h = pool(conv(h, params["conv2_w"], params["conv2_b"]))
    h = h.reshape(h.shape[0], -1)
    h = jax.nn.relu(h @ params["fc1_w"] + params["fc1_b"])
    h = jax.nn.relu(h @ params["fc2_w"] + params["fc2_b"])
    return h @ params["fc3_w"] + params["fc3_b"]


if __name__ == "__main__":
    key = jax.random.PRNGKey(0)
    pkey, xkey = jax.random.split(key)
    params = init_params(pkey, num_classes=10)
    packed = pack_params(params)
    # fc1 expects 16*5*5 features, which forces 32x32 spatial input (CIFAR-like).
    x = jax.random.normal(xkey, (2, 3, 32, 32), dtype=jnp.float32)

    out = jax.block_until_ready(cnn_forward(packed, x))
    assert out.shape == (2, 10) and out.dtype == jnp.float32

    ref = jax.block_until_ready(_reference_forward(params, x))
    err = float(jnp.max(jnp.abs(out - ref)))
    assert err < 5e-2, f"kernel/reference mismatch: max abs err {err}"
    print("KERNEL_OK")
</pallas_src>

<mosaic_0001>
module attributes {stable_mosaic.version = 11 : i64} {
  func.func @_conv_relu_pool_kernel(%arg0: i32, %arg1: i32, %arg2: memref<1x1024x16xf32, #tpu.memory_space<vmem>>, %arg3: memref<5x16x128xf32, #tpu.memory_space<vmem>>, %arg4: memref<1x128xf32, #tpu.memory_space<vmem>>, %arg5: memref<4x32x128xf32, #tpu.memory_space<vmem>>, %arg6: memref<1x32x128xf32, #tpu.memory_space<vmem>>, %arg7: memref<128x128xf32, #tpu.memory_space<vmem>>) attributes {dimension_semantics = [#tpu.dimension_semantics<parallel>, #tpu.dimension_semantics<arbitrary>], iteration_bounds = array<i64: 2, 7>, scalar_prefetch = 0 : i64, scratch_operands = 1 : i64, tpu.core_type = #tpu.core_type<tc>, window_params = [{transform_indices = @transform_0, window_bounds = array<i64: 1, 1024, 16>}, {pipeline_mode = #tpu.pipeline_mode<synchronous>, transform_indices = @transform_1, window_bounds = array<i64: 5, 16, 128>}, {pipeline_mode = #tpu.pipeline_mode<synchronous>, transform_indices = @transform_2, window_bounds = array<i64: 1, 128>}, {pipeline_mode = #tpu.pipeline_mode<synchronous>, transform_indices = @transform_3, window_bounds = array<i64: 4, 32, 128>}, {transform_indices = @transform_4, window_bounds = array<i64: 1, 32, 128>}]} {
    %c128_i32 = arith.constant 128 : i32
    %0 = arith.muli %arg1, %c128_i32 : i32
    %c0_i32 = arith.constant 0 : i32
    %1 = arith.addi %0, %c0_i32 : i32
    %c0 = arith.constant 0 : index
    %2 = arith.index_cast %1 : i32 to index
    %c0_0 = arith.constant 0 : index
    %3 = vector.load %arg2[%c0, %2, %c0_0] : memref<1x1024x16xf32, #tpu.memory_space<vmem>>, vector<1x128x16xf32>
    %4 = vector.shape_cast %3 : vector<1x128x16xf32> to vector<128x16xf32>
    %c0_1 = arith.constant 0 : index
    %c0_2 = arith.constant 0 : index
    %c0_3 = arith.constant 0 : index
    %5 = vector.load %arg3[%c0_1, %c0_2, %c0_3] : memref<5x16x128xf32, #tpu.memory_space<vmem>>, vector<1x16x128xf32>
    %6 = vector.shape_cast %5 : vector<1x16x128xf32> to vector<16x128xf32>
    %cst = arith.constant dense<0.000000e+00> : vector<128x128xf32>
    %7 = tpu.matmul %4, %6, %cst {dimension_numbers = #tpu.dot_dimension_numbers<[1], [0], [0], [1], [0, 0, 1, 1], [], []>} : vector<128x16xf32>, vector<16x128xf32>, vector<128x128xf32> -> vector<128x128xf32>
    %c0_4 = arith.constant 0 : index
    %c0_5 = arith.constant 0 : index
    %8 = vector.load %arg7[%c0_4, %c0_5] : memref<128x128xf32, #tpu.memory_space<vmem>>, vector<128x128xf32>
    tpu.vector_store %arg7[%c0_4, %c0_5], %7 {strides = array<i32>} : memref<128x128xf32, #tpu.memory_space<vmem>>, vector<128x128xf32>,
    %c32_i32 = arith.constant 32 : i32
    %9 = arith.addi %0, %c32_i32 : i32
    %c0_6 = arith.constant 0 : index
    %10 = arith.index_cast %9 : i32 to index
    %c0_7 = arith.constant 0 : index
    %11 = vector.load %arg2[%c0_6, %10, %c0_7] : memref<1x1024x16xf32, #tpu.memory_space<vmem>>, vector<1x128x16xf32>
    %12 = vector.shape_cast %11 : vector<1x128x16xf32> to vector<128x16xf32>
    %c1 = arith.constant 1 : index
    %c0_8 = arith.constant 0 : index
    %c0_9 = arith.constant 0 : index
    %13 = vector.load %arg3[%c1, %c0_8, %c0_9] : memref<5x16x128xf32, #tpu.memory_space<vmem>>, vector<1x16x128xf32>
    %14 = vector.shape_cast %13 : vector<1x16x128xf32> to vector<16x128xf32>
    %cst_10 = arith.constant dense<0.000000e+00> : vector<128x128xf32>
    %15 = tpu.matmul %12, %14, %cst_10 {dimension_numbers = #tpu.dot_dimension_numbers<[1], [0], [0], [1], [0, 0, 1, 1], [], []>} : vector<128x16xf32>, vector<16x128xf32>, vector<128x128xf32> -> vector<128x128xf32>
    %c0_11 = arith.constant 0 : index
    %c0_12 = arith.constant 0 : index
    %16 = vector.load %arg7[%c0_11, %c0_12] : memref<128x128xf32, #tpu.memory_space<vmem>>, vector<128x128xf32>
    %17 = arith.addf %16, %15 : vector<128x128xf32>
    %c0_13 = arith.constant 0 : index
    %c0_14 = arith.constant 0 : index
    %18 = vector.load %arg7[%c0_13, %c0_14] : memref<128x128xf32, #tpu.memory_space<vmem>>, vector<128x128xf32>
    tpu.vector_store %arg7[%c0_13, %c0_14], %17 {strides = array<i32>} : memref<128x128xf32, #tpu.memory_space<vmem>>, vector<128x128xf32>,
    %c64_i32 = arith.constant 64 : i32
    %19 = arith.addi %0, %c64_i32 : i32
    %c0_15 = arith.constant 0 : index
    %20 = arith.index_cast %19 : i32 to index
    %c0_16 = arith.constant 0 : index
    %21 = vector.load %arg2[%c0_15, %20, %c0_16] : memref<1x1024x16xf32, #tpu.memory_space<vmem>>, vector<1x128x16xf32>
    %22 = vector.shape_cast %21 : vector<1x128x16xf32> to vector<128x16xf32>
    %c2 = arith.constant 2 : index
    %c0_17 = arith.constant 0 : index
    %c0_18 = arith.constant 0 : index
    %23 = vector.load %arg3[%c2, %c0_17, %c0_18] : memref<5x16x128xf32, #tpu.memory_space<vmem>>, vector<1x16x128xf32>
    %24 = vector.shape_cast %23 : vector<1x16x128xf32> to vector<16x128xf32>
    %cst_19 = arith.constant dense<0.000000e+00> : vector<128x128xf32>
    %25 = tpu.matmul %22, %24, %cst_19 {dimension_numbers = #tpu.dot_dimension_numbers<[1], [0], [0], [1], [0, 0, 1, 1], [], []>} : vector<128x16xf32>, vector<16x128xf32>, vector<128x128xf32> -> vector<128x128xf32>
    %c0_20 = arith.constant 0 : index
    %c0_21 = arith.constant 0 : index
    %26 = vector.load %arg7[%c0_20, %c0_21] : memref<128x128xf32, #tpu.memory_space<vmem>>, vector<128x128xf32>
    %27 = arith.addf %26, %25 : vector<128x128xf32>
    %c0_22 = arith.constant 0 : index
    %c0_23 = arith.constant 0 : index
    %28 = vector.load %arg7[%c0_22, %c0_23] : memref<128x128xf32, #tpu.memory_space<vmem>>, vector<128x128xf32>
    tpu.vector_store %arg7[%c0_22, %c0_23], %27 {strides = array<i32>} : memref<128x128xf32, #tpu.memory_space<vmem>>, vector<128x128xf32>,
    %c96_i32 = arith.constant 96 : i32
    %29 = arith.addi %0, %c96_i32 : i32
    %c0_24 = arith.constant 0 : index
    %30 = arith.index_cast %29 : i32 to index
    %c0_25 = arith.constant 0 : index
    %31 = vector.load %arg2[%c0_24, %30, %c0_25] : memref<1x1024x16xf32, #tpu.memory_space<vmem>>, vector<1x128x16xf32>
    %32 = vector.shape_cast %31 : vector<1x128x16xf32> to vector<128x16xf32>
    %c3 = arith.constant 3 : index
    %c0_26 = arith.constant 0 : index
    %c0_27 = arith.constant 0 : index
    %33 = vector.load %arg3[%c3, %c0_26, %c0_27] : memref<5x16x128xf32, #tpu.memory_space<vmem>>, vector<1x16x128xf32>
    %34 = vector.shape_cast %33 : vector<1x16x128xf32> to vector<16x128xf32>
    %cst_28 = arith.constant dense<0.000000e+00> : vector<128x128xf32>
    %35 = tpu.matmul %32, %34, %cst_28 {dimension_numbers = #tpu.dot_dimension_numbers<[1], [0], [0], [1], [0, 0, 1, 1], [], []>} : vector<128x16xf32>, vector<16x128xf32>, vector<128x128xf32> -> vector<128x128xf32>
    %c0_29 = arith.constant 0 : index
    %c0_30 = arith.constant 0 : index
    %36 = vector.load %arg7[%c0_29, %c0_30] : memref<128x128xf32, #tpu.memory_space<vmem>>, vector<128x128xf32>
    %37 = arith.addf %36, %35 : vector<128x128xf32>
    %c0_31 = arith.constant 0 : index
    %c0_32 = arith.constant 0 : index
    %38 = vector.load %arg7[%c0_31, %c0_32] : memref<128x128xf32, #tpu.memory_space<vmem>>, vector<128x128xf32>
    tpu.vector_store %arg7[%c0_31, %c0_32], %37 {strides = array<i32>} : memref<128x128xf32, #tpu.memory_space<vmem>>, vector<128x128xf32>,
    %c128_i32_33 = arith.constant 128 : i32
    %39 = arith.addi %0, %c128_i32_33 : i32
    %c0_34 = arith.constant 0 : index
    %40 = arith.index_cast %39 : i32 to index
    %c0_35 = arith.constant 0 : index
    %41 = vector.load %arg2[%c0_34, %40, %c0_35] : memref<1x1024x16xf32, #tpu.memory_space<vmem>>, vector<1x128x16xf32>
    %42 = vector.shape_cast %41 : vector<1x128x16xf32> to vector<128x16xf32>
    %c4 = arith.constant 4 : index
    %c0_36 = arith.constant 0 : index
    %c0_37 = arith.constant 0 : index
    %43 = vector.load %arg3[%c4, %c0_36, %c0_37] : memref<5x16x128xf32, #tpu.memory_space<vmem>>, vector<1x16x128xf32>
    %44 = vector.shape_cast %43 : vector<1x16x128xf32> to vector<16x128xf32>
    %cst_38 = arith.constant dense<0.000000e+00> : vector<128x128xf32>
    %45 = tpu.matmul %42, %44, %cst_38 {dimension_numbers = #tpu.dot_dimension_numbers<[1], [0], [0], [1], [0, 0, 1, 1], [], []>} : vector<128x16xf32>, vector<16x128xf32>, vector<128x128xf32> -> vector<128x128xf32>
    %c0_39 = arith.constant 0 : index
    %c0_40 = arith.constant 0 : index
    %46 = vector.load %arg7[%c0_39, %c0_40] : memref<128x128xf32, #tpu.memory_space<vmem>>, vector<128x128xf32>
    %47 = arith.addf %46, %45 : vector<128x128xf32>
    %c0_41 = arith.constant 0 : index
    %c0_42 = arith.constant 0 : index
    %48 = vector.load %arg7[%c0_41, %c0_42] : memref<128x128xf32, #tpu.memory_space<vmem>>, vector<128x128xf32>
    tpu.vector_store %arg7[%c0_41, %c0_42], %47 {strides = array<i32>} : memref<128x128xf32, #tpu.memory_space<vmem>>, vector<128x128xf32>,
    %c0_43 = arith.constant 0 : index
    %c0_44 = arith.constant 0 : index
    %49 = vector.load %arg7[%c0_43, %c0_44] : memref<128x128xf32, #tpu.memory_space<vmem>>, vector<128x128xf32>
    %c0_45 = arith.constant 0 : index
    %c0_46 = arith.constant 0 : index
    %50 = vector.load %arg4[%c0_45, %c0_46] : memref<1x128xf32, #tpu.memory_space<vmem>>, vector<1x128xf32>
    %51 = vector.broadcast %50 : vector<1x128xf32> to vector<128x128xf32>
    %52 = arith.addf %49, %51 : vector<128x128xf32>
    %cst_47 = arith.constant 0.000000e+00 : f32
    %53 = vector.broadcast %cst_47 : f32 to vector<128x128xf32>
    %54 = arith.maximumf %52, %53 : vector<128x128xf32>
    %c0_48 = arith.constant 0 : index
    %c0_49 = arith.constant 0 : index
    %c0_50 = arith.constant 0 : index
    %55 = vector.load %arg5[%c0_48, %c0_49, %c0_50] : memref<4x32x128xf32, #tpu.memory_space<vmem>>, vector<1x32x128xf32>
    %56 = vector.shape_cast %55 : vector<1x32x128xf32> to vector<32x128xf32>
    %cst_51 = arith.constant dense<0.000000e+00> : vector<32x128xf32>
    %57 = tpu.matmul %56, %54, %cst_51 {dimension_numbers = #tpu.dot_dimension_numbers<[1], [0], [0], [1], [0, 0, 1, 1], [], []>} : vector<32x128xf32>, vector<128x128xf32>, vector<32x128xf32> -> vector<32x128xf32>
    %c1_52 = arith.constant 1 : index
    %c0_53 = arith.constant 0 : index
    %c0_54 = arith.constant 0 : index
    %58 = vector.load %arg5[%c1_52, %c0_53, %c0_54] : memref<4x32x128xf32, #tpu.memory_space<vmem>>, vector<1x32x128xf32>
    %59 = vector.shape_cast %58 : vector<1x32x128xf32> to vector<32x128xf32>
    %cst_55 = arith.constant dense<0.000000e+00> : vector<32x128xf32>
    %60 = tpu.matmul %59, %54, %cst_55 {dimension_numbers = #tpu.dot_dimension_numbers<[1], [0], [0], [1], [0, 0, 1, 1], [], []>} : vector<32x128xf32>, vector<128x128xf32>, vector<32x128xf32> -> vector<32x128xf32>
    %61 = arith.maximumf %57, %60 : vector<32x128xf32>
    %c2_56 = arith.constant 2 : index
    %c0_57 = arith.constant 0 : index
    %c0_58 = arith.constant 0 : index
    %62 = vector.load %arg5[%c2_56, %c0_57, %c0_58] : memref<4x32x128xf32, #tpu.memory_space<vmem>>, vector<1x32x128xf32>
    %63 = vector.shape_cast %62 : vector<1x32x128xf32> to vector<32x128xf32>
    %cst_59 = arith.constant dense<0.000000e+00> : vector<32x128xf32>
    %64 = tpu.matmul %63, %54, %cst_59 {dimension_numbers = #tpu.dot_dimension_numbers<[1], [0], [0], [1], [0, 0, 1, 1], [], []>} : vector<32x128xf32>, vector<128x128xf32>, vector<32x128xf32> -> vector<32x128xf32>
    %c3_60 = arith.constant 3 : index
    %c0_61 = arith.constant 0 : index
    %c0_62 = arith.constant 0 : index
    %65 = vector.load %arg5[%c3_60, %c0_61, %c0_62] : memref<4x32x128xf32, #tpu.memory_space<vmem>>, vector<1x32x128xf32>
    %66 = vector.shape_cast %65 : vector<1x32x128xf32> to vector<32x128xf32>
    %cst_63 = arith.constant dense<0.000000e+00> : vector<32x128xf32>
    %67 = tpu.matmul %66, %54, %cst_63 {dimension_numbers = #tpu.dot_dimension_numbers<[1], [0], [0], [1], [0, 0, 1, 1], [], []>} : vector<32x128xf32>, vector<128x128xf32>, vector<32x128xf32> -> vector<32x128xf32>
    %68 = arith.maximumf %64, %67 : vector<32x128xf32>
    %69 = arith.maximumf %61, %68 : vector<32x128xf32>
    %c0_64 = arith.constant 0 : index
    %c0_65 = arith.constant 0 : index
    %c0_66 = arith.constant 0 : index
    %70 = vector.load %arg6[%c0_64, %c0_65, %c0_66] : memref<1x32x128xf32, #tpu.memory_space<vmem>>, vector<1x32x128xf32>
    %71 = vector.shape_cast %70 : vector<1x32x128xf32> to vector<32x128xf32>
    %72 = vector.shape_cast %69 : vector<32x128xf32> to vector<1x32x128xf32>
    tpu.vector_store %arg6[%c0_64, %c0_65, %c0_66], %72 {strides = array<i32>} : memref<1x32x128xf32, #tpu.memory_space<vmem>>, vector<1x32x128xf32>,
    return
  }
  func.func @transform_0(%arg0: i32, %arg1: i32) -> (i32, i32, i32) {
    %c0_i32 = arith.constant 0 : i32
    %c0_i32_0 = arith.constant 0 : i32
    %c0_i32_1 = arith.constant 0 : i32
    return %arg0, %c0_i32, %c0_i32_0 : i32, i32, i32
  }
  func.func @transform_1(%arg0: i32, %arg1: i32) -> (i32, i32, i32) {
    %c0_i32 = arith.constant 0 : i32
    %c0_i32_0 = arith.constant 0 : i32
    %c0_i32_1 = arith.constant 0 : i32
    %c0_i32_2 = arith.constant 0 : i32
    return %c0_i32, %c0_i32_0, %c0_i32_1 : i32, i32, i32
  }
  func.func @transform_2(%arg0: i32, %arg1: i32) -> (i32, i32) {
    %c0_i32 = arith.constant 0 : i32
    %c0_i32_0 = arith.constant 0 : i32
    %c0_i32_1 = arith.constant 0 : i32
    return %c0_i32, %c0_i32_0 : i32, i32
  }
  func.func @transform_3(%arg0: i32, %arg1: i32) -> (i32, i32, i32) {
    %c0_i32 = arith.constant 0 : i32
    %c0_i32_0 = arith.constant 0 : i32
    %c0_i32_1 = arith.constant 0 : i32
    %c0_i32_2 = arith.constant 0 : i32
    return %c0_i32, %c0_i32_0, %c0_i32_1 : i32, i32, i32
  }
  func.func @transform_4(%arg0: i32, %arg1: i32) -> (i32, i32, i32) {
    %c0_i32 = arith.constant 0 : i32
    %c0_i32_0 = arith.constant 0 : i32
    return %arg0, %arg1, %c0_i32 : i32, i32, i32
  }
}

module attributes {stable_mosaic.version = 11 : i64} {
  func.func @_conv_relu_pool_kernel(%arg0: i32, %arg1: i32, %arg2: memref<1x232x128xf32, #tpu.memory_space<vmem>>, %arg3: memref<25x128x128xf32, #tpu.memory_space<vmem>>, %arg4: memref<1x128xf32, #tpu.memory_space<vmem>>, %arg5: memref<4x40x160xf32, #tpu.memory_space<vmem>>, %arg6: memref<1x40x128xf32, #tpu.memory_space<vmem>>, %arg7: memref<160x128xf32, #tpu.memory_space<vmem>>) attributes {dimension_semantics = [#tpu.dimension_semantics<parallel>, #tpu.dimension_semantics<arbitrary>], iteration_bounds = array<i64: 2, 1>, scalar_prefetch = 0 : i64, scratch_operands = 1 : i64, tpu.core_type = #tpu.core_type<tc>, window_params = [{transform_indices = @transform_0, window_bounds = array<i64: 1, 232, 128>}, {pipeline_mode = #tpu.pipeline_mode<synchronous>, transform_indices = @transform_1, window_bounds = array<i64: 25, 128, 128>}, {pipeline_mode = #tpu.pipeline_mode<synchronous>, transform_indices = @transform_2, window_bounds = array<i64: 1, 128>}, {pipeline_mode = #tpu.pipeline_mode<synchronous>, transform_indices = @transform_3, window_bounds = array<i64: 4, 40, 160>}, {transform_indices = @transform_4, window_bounds = array<i64: 1, 40, 128>}]} {
    %c160_i32 = arith.constant 160 : i32
    %0 = arith.muli %arg1, %c160_i32 : i32
    %c0_i32 = arith.constant 0 : i32
    %1 = arith.addi %0, %c0_i32 : i32
    %c0 = arith.constant 0 : index
    %2 = arith.index_cast %1 : i32 to index
    %c0_0 = arith.constant 0 : index
    %3 = vector.load %arg2[%c0, %2, %c0_0] : memref<1x232x128xf32, #tpu.memory_space<vmem>>, vector<1x160x128xf32>
    %4 = vector.shape_cast %3 : vector<1x160x128xf32> to vector<160x128xf32>
    %c0_1 = arith.constant 0 : index
    %c0_2 = arith.constant 0 : index
    %c0_3 = arith.constant 0 : index
    %5 = vector.load %arg3[%c0_1, %c0_2, %c0_3] : memref<25x128x128xf32, #tpu.memory_space<vmem>>, vector<1x128x128xf32>
    %6 = vector.shape_cast %5 : vector<1x128x128xf32> to vector<128x128xf32>
    %cst = arith.constant dense<0.000000e+00> : vector<160x128xf32>
    %7 = tpu.matmul %4, %6, %cst {dimension_numbers = #tpu.dot_dimension_numbers<[1], [0], [0], [1], [0, 0, 1, 1], [], []>} : vector<160x128xf32>, vector<128x128xf32>, vector<160x128xf32> -> vector<160x128xf32>
    %c0_4 = arith.constant 0 : index
    %c0_5 = arith.constant 0 : index
    %8 = vector.load %arg7[%c0_4, %c0_5] : memref<160x128xf32, #tpu.memory_space<vmem>>, vector<160x128xf32>
    tpu.vector_store %arg7[%c0_4, %c0_5], %7 {strides = array<i32>} : memref<160x128xf32, #tpu.memory_space<vmem>>, vector<160x128xf32>,
    %c1_i32 = arith.constant 1 : i32
    %9 = arith.addi %0, %c1_i32 : i32
    %c0_6 = arith.constant 0 : index
    %10 = arith.index_cast %9 : i32 to index
    %c0_7 = arith.constant 0 : index
    %11 = vector.load %arg2[%c0_6, %10, %c0_7] : memref<1x232x128xf32, #tpu.memory_space<vmem>>, vector<1x160x128xf32>
    %12 = vector.shape_cast %11 : vector<1x160x128xf32> to vector<160x128xf32>
    %c1 = arith.constant 1 : index
    %c0_8 = arith.constant 0 : index
    %c0_9 = arith.constant 0 : index
    %13 = vector.load %arg3[%c1, %c0_8, %c0_9] : memref<25x128x128xf32, #tpu.memory_space<vmem>>, vector<1x128x128xf32>
    %14 = vector.shape_cast %13 : vector<1x128x128xf32> to vector<128x128xf32>
    %cst_10 = arith.constant dense<0.000000e+00> : vector<160x128xf32>
    %15 = tpu.matmul %12, %14, %cst_10 {dimension_numbers = #tpu.dot_dimension_numbers<[1], [0], [0], [1], [0, 0, 1, 1], [], []>} : vector<160x128xf32>, vector<128x128xf32>, vector<160x128xf32> -> vector<160x128xf32>
    %c0_11 = arith.constant 0 : index
    %c0_12 = arith.constant 0 : index
    %16 = vector.load %arg7[%c0_11, %c0_12] : memref<160x128xf32, #tpu.memory_space<vmem>>, vector<160x128xf32>
    %17 = arith.addf %16, %15 : vector<160x128xf32>
    %c0_13 = arith.constant 0 : index
    %c0_14 = arith.constant 0 : index
    %18 = vector.load %arg7[%c0_13, %c0_14] : memref<160x128xf32, #tpu.memory_space<vmem>>, vector<160x128xf32>
    tpu.vector_store %arg7[%c0_13, %c0_14], %17 {strides = array<i32>} : memref<160x128xf32, #tpu.memory_space<vmem>>, vector<160x128xf32>,
    %c2_i32 = arith.constant 2 : i32
    %19 = arith.addi %0, %c2_i32 : i32
    %c0_15 = arith.constant 0 : index
    %20 = arith.index_cast %19 : i32 to index
    %c0_16 = arith.constant 0 : index
    %21 = vector.load %arg2[%c0_15, %20, %c0_16] : memref<1x232x128xf32, #tpu.memory_space<vmem>>, vector<1x160x128xf32>
    %22 = vector.shape_cast %21 : vector<1x160x128xf32> to vector<160x128xf32>
    %c2 = arith.constant 2 : index
    %c0_17 = arith.constant 0 : index
    %c0_18 = arith.constant 0 : index
    %23 = vector.load %arg3[%c2, %c0_17, %c0_18] : memref<25x128x128xf32, #tpu.memory_space<vmem>>, vector<1x128x128xf32>
    %24 = vector.shape_cast %23 : vector<1x128x128xf32> to vector<128x128xf32>
    %cst_19 = arith.constant dense<0.000000e+00> : vector<160x128xf32>
    %25 = tpu.matmul %22, %24, %cst_19 {dimension_numbers = #tpu.dot_dimension_numbers<[1], [0], [0], [1], [0, 0, 1, 1], [], []>} : vector<160x128xf32>, vector<128x128xf32>, vector<160x128xf32> -> vector<160x128xf32>
    %c0_20 = arith.constant 0 : index
    %c0_21 = arith.constant 0 : index
    %26 = vector.load %arg7[%c0_20, %c0_21] : memref<160x128xf32, #tpu.memory_space<vmem>>, vector<160x128xf32>
    %27 = arith.addf %26, %25 : vector<160x128xf32>
    %c0_22 = arith.constant 0 : index
    %c0_23 = arith.constant 0 : index
    %28 = vector.load %arg7[%c0_22, %c0_23] : memref<160x128xf32, #tpu.memory_space<vmem>>, vector<160x128xf32>
    tpu.vector_store %arg7[%c0_22, %c0_23], %27 {strides = array<i32>} : memref<160x128xf32, #tpu.memory_space<vmem>>, vector<160x128xf32>,
    %c3_i32 = arith.constant 3 : i32
    %29 = arith.addi %0, %c3_i32 : i32
    %c0_24 = arith.constant 0 : index
    %30 = arith.index_cast %29 : i32 to index
    %c0_25 = arith.constant 0 : index
    %31 = vector.load %arg2[%c0_24, %30, %c0_25] : memref<1x232x128xf32, #tpu.memory_space<vmem>>, vector<1x160x128xf32>
    %32 = vector.shape_cast %31 : vector<1x160x128xf32> to vector<160x128xf32>
    %c3 = arith.constant 3 : index
    %c0_26 = arith.constant 0 : index
    %c0_27 = arith.constant 0 : index
    %33 = vector.load %arg3[%c3, %c0_26, %c0_27] : memref<25x128x128xf32, #tpu.memory_space<vmem>>, vector<1x128x128xf32>
    %34 = vector.shape_cast %33 : vector<1x128x128xf32> to vector<128x128xf32>
    %cst_28 = arith.constant dense<0.000000e+00> : vector<160x128xf32>
    %35 = tpu.matmul %32, %34, %cst_28 {dimension_numbers = #tpu.dot_dimension_numbers<[1], [0], [0], [1], [0, 0, 1, 1], [], []>} : vector<160x128xf32>, vector<128x128xf32>, vector<160x128xf32> -> vector<160x128xf32>
    %c0_29 = arith.constant 0 : index
    %c0_30 = arith.constant 0 : index
    %36 = vector.load %arg7[%c0_29, %c0_30] : memref<160x128xf32, #tpu.memory_space<vmem>>, vector<160x128xf32>
    %37 = arith.addf %36, %35 : vector<160x128xf32>
    %c0_31 = arith.constant 0 : index
    %c0_32 = arith.constant 0 : index
    %38 = vector.load %arg7[%c0_31, %c0_32] : memref<160x128xf32, #tpu.memory_space<vmem>>, vector<160x128xf32>
    tpu.vector_store %arg7[%c0_31, %c0_32], %37 {strides = array<i32>} : memref<160x128xf32, #tpu.memory_space<vmem>>, vector<160x128xf32>,
    %c4_i32 = arith.constant 4 : i32
    %39 = arith.addi %0, %c4_i32 : i32
    %c0_33 = arith.constant 0 : index
    %40 = arith.index_cast %39 : i32 to index
    %c0_34 = arith.constant 0 : index
    %41 = vector.load %arg2[%c0_33, %40, %c0_34] : memref<1x232x128xf32, #tpu.memory_space<vmem>>, vector<1x160x128xf32>
    %42 = vector.shape_cast %41 : vector<1x160x128xf32> to vector<160x128xf32>
    %c4 = arith.constant 4 : index
    %c0_35 = arith.constant 0 : index
    %c0_36 = arith.constant 0 : index
    %43 = vector.load %arg3[%c4, %c0_35, %c0_36] : memref<25x128x128xf32, #tpu.memory_space<vmem>>, vector<1x128x128xf32>
    %44 = vector.shape_cast %43 : vector<1x128x128xf32> to vector<128x128xf32>
    %cst_37 = arith.constant dense<0.000000e+00> : vector<160x128xf32>
    %45 = tpu.matmul %42, %44, %cst_37 {dimension_numbers = #tpu.dot_dimension_numbers<[1], [0], [0], [1], [0, 0, 1, 1], [], []>} : vector<160x128xf32>, vector<128x128xf32>, vector<160x128xf32> -> vector<160x128xf32>
    %c0_38 = arith.constant 0 : index
    %c0_39 = arith.constant 0 : index
    %46 = vector.load %arg7[%c0_38, %c0_39] : memref<160x128xf32, #tpu.memory_space<vmem>>, vector<160x128xf32>
    %47 = arith.addf %46, %45 : vector<160x128xf32>
    %c0_40 = arith.constant 0 : index
    %c0_41 = arith.constant 0 : index
    %48 = vector.load %arg7[%c0_40, %c0_41] : memref<160x128xf32, #tpu.memory_space<vmem>>, vector<160x128xf32>
    tpu.vector_store %arg7[%c0_40, %c0_41], %47 {strides = array<i32>} : memref<160x128xf32, #tpu.memory_space<vmem>>, vector<160x128xf32>,
    %c16_i32 = arith.constant 16 : i32
    %49 = arith.addi %0, %c16_i32 : i32
    %c0_42 = arith.constant 0 : index
    %50 = arith.index_cast %49 : i32 to index
    %c0_43 = arith.constant 0 : index
    %51 = vector.load %arg2[%c0_42, %50, %c0_43] : memref<1x232x128xf32, #tpu.memory_space<vmem>>, vector<1x160x128xf32>
    %52 = vector.shape_cast %51 : vector<1x160x128xf32> to vector<160x128xf32>
    %c5 = arith.constant 5 : index
    %c0_44 = arith.constant 0 : index
    %c0_45 = arith.constant 0 : index
    %53 = vector.load %arg3[%c5, %c0_44, %c0_45] : memref<25x128x128xf32, #tpu.memory_space<vmem>>, vector<1x128x128xf32>
    %54 = vector.shape_cast %53 : vector<1x128x128xf32> to vector<128x128xf32>
    %cst_46 = arith.constant dense<0.000000e+00> : vector<160x128xf32>
    %55 = tpu.matmul %52, %54, %cst_46 {dimension_numbers = #tpu.dot_dimension_numbers<[1], [0], [0], [1], [0, 0, 1, 1], [], []>} : vector<160x128xf32>, vector<128x128xf32>, vector<160x128xf32> -> vector<160x128xf32>
    %c0_47 = arith.constant 0 : index
    %c0_48 = arith.constant 0 : index
    %56 = vector.load %arg7[%c0_47, %c0_48] : memref<160x128xf32, #tpu.memory_space<vmem>>, vector<160x128xf32>
    %57 = arith.addf %56, %55 : vector<160x128xf32>
    %c0_49 = arith.constant 0 : index
    %c0_50 = arith.constant 0 : index
    %58 = vector.load %arg7[%c0_49, %c0_50] : memref<160x128xf32, #tpu.memory_space<vmem>>, vector<160x128xf32>
    tpu.vector_store %arg7[%c0_49, %c0_50], %57 {strides = array<i32>} : memref<160x128xf32, #tpu.memory_space<vmem>>, vector<160x128xf32>,
    %c17_i32 = arith.constant 17 : i32
    %59 = arith.addi %0, %c17_i32 : i32
    %c0_51 = arith.constant 0 : index
    %60 = arith.index_cast %59 : i32 to index
    %c0_52 = arith.constant 0 : index
    %61 = vector.load %arg2[%c0_51, %60, %c0_52] : memref<1x232x128xf32, #tpu.memory_space<vmem>>, vector<1x160x128xf32>
    %62 = vector.shape_cast %61 : vector<1x160x128xf32> to vector<160x128xf32>
    %c6 = arith.constant 6 : index
    %c0_53 = arith.constant 0 : index
    %c0_54 = arith.constant 0 : index
    %63 = vector.load %arg3[%c6, %c0_53, %c0_54] : memref<25x128x128xf32, #tpu.memory_space<vmem>>, vector<1x128x128xf32>
    %64 = vector.shape_cast %63 : vector<1x128x128xf32> to vector<128x128xf32>
    %cst_55 = arith.constant dense<0.000000e+00> : vector<160x128xf32>
    %65 = tpu.matmul %62, %64, %cst_55 {dimension_numbers = #tpu.dot_dimension_numbers<[1], [0], [0], [1], [0, 0, 1, 1], [], []>} : vector<160x128xf32>, vector<128x128xf32>, vector<160x128xf32> -> vector<160x128xf32>
    %c0_56 = arith.constant 0 : index
    %c0_57 = arith.constant 0 : index
    %66 = vector.load %arg7[%c0_56, %c0_57] : memref<160x128xf32, #tpu.memory_space<vmem>>, vector<160x128xf32>
    %67 = arith.addf %66, %65 : vector<160x128xf32>
    %c0_58 = arith.constant 0 : index
    %c0_59 = arith.constant 0 : index
    %68 = vector.load %arg7[%c0_58, %c0_59] : memref<160x128xf32, #tpu.memory_space<vmem>>, vector<160x128xf32>
    tpu.vector_store %arg7[%c0_58, %c0_59], %67 {strides = array<i32>} : memref<160x128xf32, #tpu.memory_space<vmem>>, vector<160x128xf32>,
    %c18_i32 = arith.constant 18 : i32
    %69 = arith.addi %0, %c18_i32 : i32
    %c0_60 = arith.constant 0 : index
    %70 = arith.index_cast %69 : i32 to index
    %c0_61 = arith.constant 0 : index
    %71 = vector.load %arg2[%c0_60, %70, %c0_61] : memref<1x232x128xf32, #tpu.memory_space<vmem>>, vector<1x160x128xf32>
    %72 = vector.shape_cast %71 : vector<1x160x128xf32> to vector<160x128xf32>
    %c7 = arith.constant 7 : index
    %c0_62 = arith.constant 0 : index
    %c0_63 = arith.constant 0 : index
    %73 = vector.load %arg3[%c7, %c0_62, %c0_63] : memref<25x128x128xf32, #tpu.memory_space<vmem>>, vector<1x128x128xf32>
    %74 = vector.shape_cast %73 : vector<1x128x128xf32> to vector<128x128xf32>
    %cst_64 = arith.constant dense<0.000000e+00> : vector<160x128xf32>
    %75 = tpu.matmul %72, %74, %cst_64 {dimension_numbers = #tpu.dot_dimension_numbers<[1], [0], [0], [1], [0, 0, 1, 1], [], []>} : vector<160x128xf32>, vector<128x128xf32>, vector<160x128xf32> -> vector<160x128xf32>
    %c0_65 = arith.constant 0 : index
    %c0_66 = arith.constant 0 : index
    %76 = vector.load %arg7[%c0_65, %c0_66] : memref<160x128xf32, #tpu.memory_space<vmem>>, vector<160x128xf32>
    %77 = arith.addf %76, %75 : vector<160x128xf32>
    %c0_67 = arith.constant 0 : index
    %c0_68 = arith.constant 0 : index
    %78 = vector.load %arg7[%c0_67, %c0_68] : memref<160x128xf32, #tpu.memory_space<vmem>>, vector<160x128xf32>
    tpu.vector_store %arg7[%c0_67, %c0_68], %77 {strides = array<i32>} : memref<160x128xf32, #tpu.memory_space<vmem>>, vector<160x128xf32>,
    %c19_i32 = arith.constant 19 : i32
    %79 = arith.addi %0, %c19_i32 : i32
    %c0_69 = arith.constant 0 : index
    %80 = arith.index_cast %79 : i32 to index
    %c0_70 = arith.constant 0 : index
    %81 = vector.load %arg2[%c0_69, %80, %c0_70] : memref<1x232x128xf32, #tpu.memory_space<vmem>>, vector<1x160x128xf32>
    %82 = vector.shape_cast %81 : vector<1x160x128xf32> to vector<160x128xf32>
    %c8 = arith.constant 8 : index
    %c0_71 = arith.constant 0 : index
    %c0_72 = arith.constant 0 : index
    %83 = vector.load %arg3[%c8, %c0_71, %c0_72] : memref<25x128x128xf32, #tpu.memory_space<vmem>>, vector<1x128x128xf32>
    %84 = vector.shape_cast %83 : vector<1x128x128xf32> to vector<128x128xf32>
    %cst_73 = arith.constant dense<0.000000e+00> : vector<160x128xf32>
    %85 = tpu.matmul %82, %84, %cst_73 {dimension_numbers = #tpu.dot_dimension_numbers<[1], [0], [0], [1], [0, 0, 1, 1], [], []>} : vector<160x128xf32>, vector<128x128xf32>, vector<160x128xf32> -> vector<160x128xf32>
    %c0_74 = arith.constant 0 : index
    %c0_75 = arith.constant 0 : index
    %86 = vector.load %arg7[%c0_74, %c0_75] : memref<160x128xf32, #tpu.memory_space<vmem>>, vector<160x128xf32>
    %87 = arith.addf %86, %85 : vector<160x128xf32>
    %c0_76 = arith.constant 0 : index
    %c0_77 = arith.constant 0 : index
    %88 = vector.load %arg7[%c0_76, %c0_77] : memref<160x128xf32, #tpu.memory_space<vmem>>, vector<160x128xf32>
    tpu.vector_store %arg7[%c0_76, %c0_77], %87 {strides = array<i32>} : memref<160x128xf32, #tpu.memory_space<vmem>>, vector<160x128xf32>,
    %c20_i32 = arith.constant 20 : i32
    %89 = arith.addi %0, %c20_i32 : i32
    %c0_78 = arith.constant 0 : index
    %90 = arith.index_cast %89 : i32 to index
    %c0_79 = arith.constant 0 : index
    %91 = vector.load %arg2[%c0_78, %90, %c0_79] : memref<1x232x128xf32, #tpu.memory_space<vmem>>, vector<1x160x128xf32>
    %92 = vector.shape_cast %91 : vector<1x160x128xf32> to vector<160x128xf32>
    %c9 = arith.constant 9 : index
    %c0_80 = arith.constant 0 : index
    %c0_81 = arith.constant 0 : index
    %93 = vector.load %arg3[%c9, %c0_80, %c0_81] : memref<25x128x128xf32, #tpu.memory_space<vmem>>, vector<1x128x128xf32>
    %94 = vector.shape_cast %93 : vector<1x128x128xf32> to vector<128x128xf32>
    %cst_82 = arith.constant dense<0.000000e+00> : vector<160x128xf32>
    %95 = tpu.matmul %92, %94, %cst_82 {dimension_numbers = #tpu.dot_dimension_numbers<[1], [0], [0], [1], [0, 0, 1, 1], [], []>} : vector<160x128xf32>, vector<128x128xf32>, vector<160x128xf32> -> vector<160x128xf32>
    %c0_83 = arith.constant 0 : index
    %c0_84 = arith.constant 0 : index
    %96 = vector.load %arg7[%c0_83, %c0_84] : memref<160x128xf32, #tpu.memory_space<vmem>>, vector<160x128xf32>
    %97 = arith.addf %96, %95 : vector<160x128xf32>
    %c0_85 = arith.constant 0 : index
    %c0_86 = arith.constant 0 : index
    %98 = vector.load %arg7[%c0_85, %c0_86] : memref<160x128xf32, #tpu.memory_space<vmem>>, vector<160x128xf32>
    tpu.vector_store %arg7[%c0_85, %c0_86], %97 {strides = array<i32>} : memref<160x128xf32, #tpu.memory_space<vmem>>, vector<160x128xf32>,
    %c32_i32 = arith.constant 32 : i32
    %99 = arith.addi %0, %c32_i32 : i32
    %c0_87 = arith.constant 0 : index
    %100 = arith.index_cast %99 : i32 to index
    %c0_88 = arith.constant 0 : index
    %101 = vector.load %arg2[%c0_87, %100, %c0_88] : memref<1x232x128xf32, #tpu.memory_space<vmem>>, vector<1x160x128xf32>
    %102 = vector.shape_cast %101 : vector<1x160x128xf32> to vector<160x128xf32>
    %c10 = arith.constant 10 : index
    %c0_89 = arith.constant 0 : index
    %c0_90 = arith.constant 0 : index
    %103 = vector.load %arg3[%c10, %c0_89, %c0_90] : memref<25x128x128xf32, #tpu.memory_space<vmem>>, vector<1x128x128xf32>
    %104 = vector.shape_cast %103 : vector<1x128x128xf32> to vector<128x128xf32>
    %cst_91 = arith.constant dense<0.000000e+00> : vector<160x128xf32>
    %105 = tpu.matmul %102, %104, %cst_91 {dimension_numbers = #tpu.dot_dimension_numbers<[1], [0], [0], [1], [0, 0, 1, 1], [], []>} : vector<160x128xf32>, vector<128x128xf32>, vector<160x128xf32> -> vector<160x128xf32>
    %c0_92 = arith.constant 0 : index
    %c0_93 = arith.constant 0 : index
    %106 = vector.load %arg7[%c0_92, %c0_93] : memref<160x128xf32, #tpu.memory_space<vmem>>, vector<160x128xf32>
    %107 = arith.addf %106, %105 : vector<160x128xf32>
    %c0_94 = arith.constant 0 : index
    %c0_95 = arith.constant 0 : index
    %108 = vector.load %arg7[%c0_94, %c0_95] : memref<160x128xf32, #tpu.memory_space<vmem>>, vector<160x128xf32>
    tpu.vector_store %arg7[%c0_94, %c0_95], %107 {strides = array<i32>} : memref<160x128xf32, #tpu.memory_space<vmem>>, vector<160x128xf32>,
    %c33_i32 = arith.constant 33 : i32
    %109 = arith.addi %0, %c33_i32 : i32
    %c0_96 = arith.constant 0 : index
    %110 = arith.index_cast %109 : i32 to index
    %c0_97 = arith.constant 0 : index
    %111 = vector.load %arg2[%c0_96, %110, %c0_97] : memref<1x232x128xf32, #tpu.memory_space<vmem>>, vector<1x160x128xf32>
    %112 = vector.shape_cast %111 : vector<1x160x128xf32> to vector<160x128xf32>
    %c11 = arith.constant 11 : index
    %c0_98 = arith.constant 0 : index
    %c0_99 = arith.constant 0 : index
    %113 = vector.load %arg3[%c11, %c0_98, %c0_99] : memref<25x128x128xf32, #tpu.memory_space<vmem>>, vector<1x128x128xf32>
    %114 = vector.shape_cast %113 : vector<1x128x128xf32> to vector<128x128xf32>
    %cst_100 = arith.constant dense<0.000000e+00> : vector<160x128xf32>
    %115 = tpu.matmul %112, %114, %cst_100 {dimension_numbers = #tpu.dot_dimension_numbers<[1], [0], [0], [1], [0, 0, 1, 1], [], []>} : vector<160x128xf32>, vector<128x128xf32>, vector<160x128xf32> -> vector<160x128xf32>
    %c0_101 = arith.constant 0 : index
    %c0_102 = arith.constant 0 : index
    %116 = vector.load %arg7[%c0_101, %c0_102] : memref<160x128xf32, #tpu.memory_space<vmem>>, vector<160x128xf32>
    %117 = arith.addf %116, %115 : vector<160x128xf32>
    %c0_103 = arith.constant 0 : index
    %c0_104 = arith.constant 0 : index
    %118 = vector.load %arg7[%c0_103, %c0_104] : memref<160x128xf32, #tpu.memory_space<vmem>>, vector<160x128xf32>
    tpu.vector_store %arg7[%c0_103, %c0_104], %117 {strides = array<i32>} : memref<160x128xf32, #tpu.memory_space<vmem>>, vector<160x128xf32>,
    %c34_i32 = arith.constant 34 : i32
    %119 = arith.addi %0, %c34_i32 : i32
    %c0_105 = arith.constant 0 : index
    %120 = arith.index_cast %119 : i32 to index
    %c0_106 = arith.constant 0 : index
    %121 = vector.load %arg2[%c0_105, %120, %c0_106] : memref<1x232x128xf32, #tpu.memory_space<vmem>>, vector<1x160x128xf32>
    %122 = vector.shape_cast %121 : vector<1x160x128xf32> to vector<160x128xf32>
    %c12 = arith.constant 12 : index
    %c0_107 = arith.constant 0 : index
    %c0_108 = arith.constant 0 : index
    %123 = vector.load %arg3[%c12, %c0_107, %c0_108] : memref<25x128x128xf32, #tpu.memory_space<vmem>>, vector<1x128x128xf32>
    %124 = vector.shape_cast %123 : vector<1x128x128xf32> to vector<128x128xf32>
    %cst_109 = arith.constant dense<0.000000e+00> : vector<160x128xf32>
    %125 = tpu.matmul %122, %124, %cst_109 {dimension_numbers = #tpu.dot_dimension_numbers<[1], [0], [0], [1], [0, 0, 1, 1], [], []>} : vector<160x128xf32>, vector<128x128xf32>, vector<160x128xf32> -> vector<160x128xf32>
    %c0_110 = arith.constant 0 : index
    %c0_111 = arith.constant 0 : index
    %126 = vector.load %arg7[%c0_110, %c0_111] : memref<160x128xf32, #tpu.memory_space<vmem>>, vector<160x128xf32>
    %127 = arith.addf %126, %125 : vector<160x128xf32>
    %c0_112 = arith.constant 0 : index
    %c0_113 = arith.constant 0 : index
    %128 = vector.load %arg7[%c0_112, %c0_113] : memref<160x128xf32, #tpu.memory_space<vmem>>, vector<160x128xf32>
    tpu.vector_store %arg7[%c0_112, %c0_113], %127 {strides = array<i32>} : memref<160x128xf32, #tpu.memory_space<vmem>>, vector<160x128xf32>,
    %c35_i32 = arith.constant 35 : i32
    %129 = arith.addi %0, %c35_i32 : i32
    %c0_114 = arith.constant 0 : index
    %130 = arith.index_cast %129 : i32 to index
    %c0_115 = arith.constant 0 : index
    %131 = vector.load %arg2[%c0_114, %130, %c0_115] : memref<1x232x128xf32, #tpu.memory_space<vmem>>, vector<1x160x128xf32>
    %132 = vector.shape_cast %131 : vector<1x160x128xf32> to vector<160x128xf32>
    %c13 = arith.constant 13 : index
    %c0_116 = arith.constant 0 : index
    %c0_117 = arith.constant 0 : index
    %133 = vector.load %arg3[%c13, %c0_116, %c0_117] : memref<25x128x128xf32, #tpu.memory_space<vmem>>, vector<1x128x128xf32>
    %134 = vector.shape_cast %133 : vector<1x128x128xf32> to vector<128x128xf32>
    %cst_118 = arith.constant dense<0.000000e+00> : vector<160x128xf32>
    %135 = tpu.matmul %132, %134, %cst_118 {dimension_numbers = #tpu.dot_dimension_numbers<[1], [0], [0], [1], [0, 0, 1, 1], [], []>} : vector<160x128xf32>, vector<128x128xf32>, vector<160x128xf32> -> vector<160x128xf32>
    %c0_119 = arith.constant 0 : index
    %c0_120 = arith.constant 0 : index
    %136 = vector.load %arg7[%c0_119, %c0_120] : memref<160x128xf32, #tpu.memory_space<vmem>>, vector<160x128xf32>
    %137 = arith.addf %136, %135 : vector<160x128xf32>
    %c0_121 = arith.constant 0 : index
    %c0_122 = arith.constant 0 : index
    %138 = vector.load %arg7[%c0_121, %c0_122] : memref<160x128xf32, #tpu.memory_space<vmem>>, vector<160x128xf32>
    tpu.vector_store %arg7[%c0_121, %c0_122], %137 {strides = array<i32>} : memref<160x128xf32, #tpu.memory_space<vmem>>, vector<160x128xf32>,
    %c36_i32 = arith.constant 36 : i32
    %139 = arith.addi %0, %c36_i32 : i32
    %c0_123 = arith.constant 0 : index
    %140 = arith.index_cast %139 : i32 to index
    %c0_124 = arith.constant 0 : index
    %141 = vector.load %arg2[%c0_123, %140, %c0_124] : memref<1x232x128xf32, #tpu.memory_space<vmem>>, vector<1x160x128xf32>
    %142 = vector.shape_cast %141 : vector<1x160x128xf32> to vector<160x128xf32>
    %c14 = arith.constant 14 : index
    %c0_125 = arith.constant 0 : index
    %c0_126 = arith.constant 0 : index
    %143 = vector.load %arg3[%c14, %c0_125, %c0_126] : memref<25x128x128xf32, #tpu.memory_space<vmem>>, vector<1x128x128xf32>
    %144 = vector.shape_cast %143 : vector<1x128x128xf32> to vector<128x128xf32>
    %cst_127 = arith.constant dense<0.000000e+00> : vector<160x128xf32>
    %145 = tpu.matmul %142, %144, %cst_127 {dimension_numbers = #tpu.dot_dimension_numbers<[1], [0], [0], [1], [0, 0, 1, 1], [], []>} : vector<160x128xf32>, vector<128x128xf32>, vector<160x128xf32> -> vector<160x128xf32>
    %c0_128 = arith.constant 0 : index
    %c0_129 = arith.constant 0 : index
    %146 = vector.load %arg7[%c0_128, %c0_129] : memref<160x128xf32, #tpu.memory_space<vmem>>, vector<160x128xf32>
    %147 = arith.addf %146, %145 : vector<160x128xf32>
    %c0_130 = arith.constant 0 : index
    %c0_131 = arith.constant 0 : index
    %148 = vector.load %arg7[%c0_130, %c0_131] : memref<160x128xf32, #tpu.memory_space<vmem>>, vector<160x128xf32>
    tpu.vector_store %arg7[%c0_130, %c0_131], %147 {strides = array<i32>} : memref<160x128xf32, #tpu.memory_space<vmem>>, vector<160x128xf32>,
    %c48_i32 = arith.constant 48 : i32
    %149 = arith.addi %0, %c48_i32 : i32
    %c0_132 = arith.constant 0 : index
    %150 = arith.index_cast %149 : i32 to index
    %c0_133 = arith.constant 0 : index
    %151 = vector.load %arg2[%c0_132, %150, %c0_133] : memref<1x232x128xf32, #tpu.memory_space<vmem>>, vector<1x160x128xf32>
    %152 = vector.shape_cast %151 : vector<1x160x128xf32> to vector<160x128xf32>
    %c15 = arith.constant 15 : index
    %c0_134 = arith.constant 0 : index
    %c0_135 = arith.constant 0 : index
    %153 = vector.load %arg3[%c15, %c0_134, %c0_135] : memref<25x128x128xf32, #tpu.memory_space<vmem>>, vector<1x128x128xf32>
    %154 = vector.shape_cast %153 : vector<1x128x128xf32> to vector<128x128xf32>
    %cst_136 = arith.constant dense<0.000000e+00> : vector<160x128xf32>
    %155 = tpu.matmul %152, %154, %cst_136 {dimension_numbers = #tpu.dot_dimension_numbers<[1], [0], [0], [1], [0, 0, 1, 1], [], []>} : vector<160x128xf32>, vector<128x128xf32>, vector<160x128xf32> -> vector<160x128xf32>
    %c0_137 = arith.constant 0 : index
    %c0_138 = arith.constant 0 : index
    %156 = vector.load %arg7[%c0_137, %c0_138] : memref<160x128xf32, #tpu.memory_space<vmem>>, vector<160x128xf32>
    %157 = arith.addf %156, %155 : vector<160x128xf32>
    %c0_139 = arith.constant 0 : index
    %c0_140 = arith.constant 0 : index
    %158 = vector.load %arg7[%c0_139, %c0_140] : memref<160x128xf32, #tpu.memory_space<vmem>>, vector<160x128xf32>
    tpu.vector_store %arg7[%c0_139, %c0_140], %157 {strides = array<i32>} : memref<160x128xf32, #tpu.memory_space<vmem>>, vector<160x128xf32>,
    %c49_i32 = arith.constant 49 : i32
    %159 = arith.addi %0, %c49_i32 : i32
    %c0_141 = arith.constant 0 : index
    %160 = arith.index_cast %159 : i32 to index
    %c0_142 = arith.constant 0 : index
    %161 = vector.load %arg2[%c0_141, %160, %c0_142] : memref<1x232x128xf32, #tpu.memory_space<vmem>>, vector<1x160x128xf32>
    %162 = vector.shape_cast %161 : vector<1x160x128xf32> to vector<160x128xf32>
    %c16 = arith.constant 16 : index
    %c0_143 = arith.constant 0 : index
    %c0_144 = arith.constant 0 : index
    %163 = vector.load %arg3[%c16, %c0_143, %c0_144] : memref<25x128x128xf32, #tpu.memory_space<vmem>>, vector<1x128x128xf32>
    %164 = vector.shape_cast %163 : vector<1x128x128xf32> to vector<128x128xf32>
    %cst_145 = arith.constant dense<0.000000e+00> : vector<160x128xf32>
    %165 = tpu.matmul %162, %164, %cst_145 {dimension_numbers = #tpu.dot_dimension_numbers<[1], [0], [0], [1], [0, 0, 1, 1], [], []>} : vector<160x128xf32>, vector<128x128xf32>, vector<160x128xf32> -> vector<160x128xf32>
    %c0_146 = arith.constant 0 : index
    %c0_147 = arith.constant 0 : index
    %166 = vector.load %arg7[%c0_146, %c0_147] : memref<160x128xf32, #tpu.memory_space<vmem>>, vector<160x128xf32>
    %167 = arith.addf %166, %165 : vector<160x128xf32>
    %c0_148 = arith.constant 0 : index
    %c0_149 = arith.constant 0 : index
    %168 = vector.load %arg7[%c0_148, %c0_149] : memref<160x128xf32, #tpu.memory_space<vmem>>, vector<160x128xf32>
    tpu.vector_store %arg7[%c0_148, %c0_149], %167 {strides = array<i32>} : memref<160x128xf32, #tpu.memory_space<vmem>>, vector<160x128xf32>,
    %c50_i32 = arith.constant 50 : i32
    %169 = arith.addi %0, %c50_i32 : i32
    %c0_150 = arith.constant 0 : index
    %170 = arith.index_cast %169 : i32 to index
    %c0_151 = arith.constant 0 : index
    %171 = vector.load %arg2[%c0_150, %170, %c0_151] : memref<1x232x128xf32, #tpu.memory_space<vmem>>, vector<1x160x128xf32>
    %172 = vector.shape_cast %171 : vector<1x160x128xf32> to vector<160x128xf32>
    %c17 = arith.constant 17 : index
    %c0_152 = arith.constant 0 : index
    %c0_153 = arith.constant 0 : index
    %173 = vector.load %arg3[%c17, %c0_152, %c0_153] : memref<25x128x128xf32, #tpu.memory_space<vmem>>, vector<1x128x128xf32>
    %174 = vector.shape_cast %173 : vector<1x128x128xf32> to vector<128x128xf32>
    %cst_154 = arith.constant dense<0.000000e+00> : vector<160x128xf32>
    %175 = tpu.matmul %172, %174, %cst_154 {dimension_numbers = #tpu.dot_dimension_numbers<[1], [0], [0], [1], [0, 0, 1, 1], [], []>} : vector<160x128xf32>, vector<128x128xf32>, vector<160x128xf32> -> vector<160x128xf32>
    %c0_155 = arith.constant 0 : index
    %c0_156 = arith.constant 0 : index
    %176 = vector.load %arg7[%c0_155, %c0_156] : memref<160x128xf32, #tpu.memory_space<vmem>>, vector<160x128xf32>
    %177 = arith.addf %176, %175 : vector<160x128xf32>
    %c0_157 = arith.constant 0 : index
    %c0_158 = arith.constant 0 : index
    %178 = vector.load %arg7[%c0_157, %c0_158] : memref<160x128xf32, #tpu.memory_space<vmem>>, vector<160x128xf32>
    tpu.vector_store %arg7[%c0_157, %c0_158], %177 {strides = array<i32>} : memref<160x128xf32, #tpu.memory_space<vmem>>, vector<160x128xf32>,
    %c51_i32 = arith.constant 51 : i32
    %179 = arith.addi %0, %c51_i32 : i32
    %c0_159 = arith.constant 0 : index
    %180 = arith.index_cast %179 : i32 to index
    %c0_160 = arith.constant 0 : index
    %181 = vector.load %arg2[%c0_159, %180, %c0_160] : memref<1x232x128xf32, #tpu.memory_space<vmem>>, vector<1x160x128xf32>
    %182 = vector.shape_cast %181 : vector<1x160x128xf32> to vector<160x128xf32>
    %c18 = arith.constant 18 : index
    %c0_161 = arith.constant 0 : index
    %c0_162 = arith.constant 0 : index
    %183 = vector.load %arg3[%c18, %c0_161, %c0_162] : memref<25x128x128xf32, #tpu.memory_space<vmem>>, vector<1x128x128xf32>
    %184 = vector.shape_cast %183 : vector<1x128x128xf32> to vector<128x128xf32>
    %cst_163 = arith.constant dense<0.000000e+00> : vector<160x128xf32>
    %185 = tpu.matmul %182, %184, %cst_163 {dimension_numbers = #tpu.dot_dimension_numbers<[1], [0], [0], [1], [0, 0, 1, 1], [], []>} : vector<160x128xf32>, vector<128x128xf32>, vector<160x128xf32> -> vector<160x128xf32>
    %c0_164 = arith.constant 0 : index
    %c0_165 = arith.constant 0 : index
    %186 = vector.load %arg7[%c0_164, %c0_165] : memref<160x128xf32, #tpu.memory_space<vmem>>, vector<160x128xf32>
    %187 = arith.addf %186, %185 : vector<160x128xf32>
    %c0_166 = arith.constant 0 : index
    %c0_167 = arith.constant 0 : index
    %188 = vector.load %arg7[%c0_166, %c0_167] : memref<160x128xf32, #tpu.memory_space<vmem>>, vector<160x128xf32>
    tpu.vector_store %arg7[%c0_166, %c0_167], %187 {strides = array<i32>} : memref<160x128xf32, #tpu.memory_space<vmem>>, vector<160x128xf32>,
    %c52_i32 = arith.constant 52 : i32
    %189 = arith.addi %0, %c52_i32 : i32
    %c0_168 = arith.constant 0 : index
    %190 = arith.index_cast %189 : i32 to index
    %c0_169 = arith.constant 0 : index
    %191 = vector.load %arg2[%c0_168, %190, %c0_169] : memref<1x232x128xf32, #tpu.memory_space<vmem>>, vector<1x160x128xf32>
    %192 = vector.shape_cast %191 : vector<1x160x128xf32> to vector<160x128xf32>
    %c19 = arith.constant 19 : index
    %c0_170 = arith.constant 0 : index
    %c0_171 = arith.constant 0 : index
    %193 = vector.load %arg3[%c19, %c0_170, %c0_171] : memref<25x128x128xf32, #tpu.memory_space<vmem>>, vector<1x128x128xf32>
    %194 = vector.shape_cast %193 : vector<1x128x128xf32> to vector<128x128xf32>
    %cst_172 = arith.constant dense<0.000000e+00> : vector<160x128xf32>
    %195 = tpu.matmul %192, %194, %cst_172 {dimension_numbers = #tpu.dot_dimension_numbers<[1], [0], [0], [1], [0, 0, 1, 1], [], []>} : vector<160x128xf32>, vector<128x128xf32>, vector<160x128xf32> -> vector<160x128xf32>
    %c0_173 = arith.constant 0 : index
    %c0_174 = arith.constant 0 : index
    %196 = vector.load %arg7[%c0_173, %c0_174] : memref<160x128xf32, #tpu.memory_space<vmem>>, vector<160x128xf32>
    %197 = arith.addf %196, %195 : vector<160x128xf32>
    %c0_175 = arith.constant 0 : index
    %c0_176 = arith.constant 0 : index
    %198 = vector.load %arg7[%c0_175, %c0_176] : memref<160x128xf32, #tpu.memory_space<vmem>>, vector<160x128xf32>
    tpu.vector_store %arg7[%c0_175, %c0_176], %197 {strides = array<i32>} : memref<160x128xf32, #tpu.memory_space<vmem>>, vector<160x128xf32>,
    %c64_i32 = arith.constant 64 : i32
    %199 = arith.addi %0, %c64_i32 : i32
    %c0_177 = arith.constant 0 : index
    %200 = arith.index_cast %199 : i32 to index
    %c0_178 = arith.constant 0 : index
    %201 = vector.load %arg2[%c0_177, %200, %c0_178] : memref<1x232x128xf32, #tpu.memory_space<vmem>>, vector<1x160x128xf32>
    %202 = vector.shape_cast %201 : vector<1x160x128xf32> to vector<160x128xf32>
    %c20 = arith.constant 20 : index
    %c0_179 = arith.constant 0 : index
    %c0_180 = arith.constant 0 : index
    %203 = vector.load %arg3[%c20, %c0_179, %c0_180] : memref<25x128x128xf32, #tpu.memory_space<vmem>>, vector<1x128x128xf32>
    %204 = vector.shape_cast %203 : vector<1x128x128xf32> to vector<128x128xf32>
    %cst_181 = arith.constant dense<0.000000e+00> : vector<160x128xf32>
    %205 = tpu.matmul %202, %204, %cst_181 {dimension_numbers = #tpu.dot_dimension_numbers<[1], [0], [0], [1], [0, 0, 1, 1], [], []>} : vector<160x128xf32>, vector<128x128xf32>, vector<160x128xf32> -> vector<160x128xf32>
    %c0_182 = arith.constant 0 : index
    %c0_183 = arith.constant 0 : index
    %206 = vector.load %arg7[%c0_182, %c0_183] : memref<160x128xf32, #tpu.memory_space<vmem>>, vector<160x128xf32>
    %207 = arith.addf %206, %205 : vector<160x128xf32>
    %c0_184 = arith.constant 0 : index
    %c0_185 = arith.constant 0 : index
    %208 = vector.load %arg7[%c0_184, %c0_185] : memref<160x128xf32, #tpu.memory_space<vmem>>, vector<160x128xf32>
    tpu.vector_store %arg7[%c0_184, %c0_185], %207 {strides = array<i32>} : memref<160x128xf32, #tpu.memory_space<vmem>>, vector<160x128xf32>,
    %c65_i32 = arith.constant 65 : i32
    %209 = arith.addi %0, %c65_i32 : i32
    %c0_186 = arith.constant 0 : index
    %210 = arith.index_cast %209 : i32 to index
    %c0_187 = arith.constant 0 : index
    %211 = vector.load %arg2[%c0_186, %210, %c0_187] : memref<1x232x128xf32, #tpu.memory_space<vmem>>, vector<1x160x128xf32>
    %212 = vector.shape_cast %211 : vector<1x160x128xf32> to vector<160x128xf32>
    %c21 = arith.constant 21 : index
    %c0_188 = arith.constant 0 : index
    %c0_189 = arith.constant 0 : index
    %213 = vector.load %arg3[%c21, %c0_188, %c0_189] : memref<25x128x128xf32, #tpu.memory_space<vmem>>, vector<1x128x128xf32>
    %214 = vector.shape_cast %213 : vector<1x128x128xf32> to vector<128x128xf32>
    %cst_190 = arith.constant dense<0.000000e+00> : vector<160x128xf32>
    %215 = tpu.matmul %212, %214, %cst_190 {dimension_numbers = #tpu.dot_dimension_numbers<[1], [0], [0], [1], [0, 0, 1, 1], [], []>} : vector<160x128xf32>, vector<128x128xf32>, vector<160x128xf32> -> vector<160x128xf32>
    %c0_191 = arith.constant 0 : index
    %c0_192 = arith.constant 0 : index
    %216 = vector.load %arg7[%c0_191, %c0_192] : memref<160x128xf32, #tpu.memory_space<vmem>>, vector<160x128xf32>
    %217 = arith.addf %216, %215 : vector<160x128xf32>
    %c0_193 = arith.constant 0 : index
    %c0_194 = arith.constant 0 : index
    %218 = vector.load %arg7[%c0_193, %c0_194] : memref<160x128xf32, #tpu.memory_space<vmem>>, vector<160x128xf32>
    tpu.vector_store %arg7[%c0_193, %c0_194], %217 {strides = array<i32>} : memref<160x128xf32, #tpu.memory_space<vmem>>, vector<160x128xf32>,
    %c66_i32 = arith.constant 66 : i32
    %219 = arith.addi %0, %c66_i32 : i32
    %c0_195 = arith.constant 0 : index
    %220 = arith.index_cast %219 : i32 to index
    %c0_196 = arith.constant 0 : index
    %221 = vector.load %arg2[%c0_195, %220, %c0_196] : memref<1x232x128xf32, #tpu.memory_space<vmem>>, vector<1x160x128xf32>
    %222 = vector.shape_cast %221 : vector<1x160x128xf32> to vector<160x128xf32>
    %c22 = arith.constant 22 : index
    %c0_197 = arith.constant 0 : index
    %c0_198 = arith.constant 0 : index
    %223 = vector.load %arg3[%c22, %c0_197, %c0_198] : memref<25x128x128xf32, #tpu.memory_space<vmem>>, vector<1x128x128xf32>
    %224 = vector.shape_cast %223 : vector<1x128x128xf32> to vector<128x128xf32>
    %cst_199 = arith.constant dense<0.000000e+00> : vector<160x128xf32>
    %225 = tpu.matmul %222, %224, %cst_199 {dimension_numbers = #tpu.dot_dimension_numbers<[1], [0], [0], [1], [0, 0, 1, 1], [], []>} : vector<160x128xf32>, vector<128x128xf32>, vector<160x128xf32> -> vector<160x128xf32>
    %c0_200 = arith.constant 0 : index
    %c0_201 = arith.constant 0 : index
    %226 = vector.load %arg7[%c0_200, %c0_201] : memref<160x128xf32, #tpu.memory_space<vmem>>, vector<160x128xf32>
    %227 = arith.addf %226, %225 : vector<160x128xf32>
    %c0_202 = arith.constant 0 : index
    %c0_203 = arith.constant 0 : index
    %228 = vector.load %arg7[%c0_202, %c0_203] : memref<160x128xf32, #tpu.memory_space<vmem>>, vector<160x128xf32>
    tpu.vector_store %arg7[%c0_202, %c0_203], %227 {strides = array<i32>} : memref<160x128xf32, #tpu.memory_space<vmem>>, vector<160x128xf32>,
    %c67_i32 = arith.constant 67 : i32
    %229 = arith.addi %0, %c67_i32 : i32
    %c0_204 = arith.constant 0 : index
    %230 = arith.index_cast %229 : i32 to index
    %c0_205 = arith.constant 0 : index
    %231 = vector.load %arg2[%c0_204, %230, %c0_205] : memref<1x232x128xf32, #tpu.memory_space<vmem>>, vector<1x160x128xf32>
    %232 = vector.shape_cast %231 : vector<1x160x128xf32> to vector<160x128xf32>
    %c23 = arith.constant 23 : index
    %c0_206 = arith.constant 0 : index
    %c0_207 = arith.constant 0 : index
    %233 = vector.load %arg3[%c23, %c0_206, %c0_207] : memref<25x128x128xf32, #tpu.memory_space<vmem>>, vector<1x128x128xf32>
    %234 = vector.shape_cast %233 : vector<1x128x128xf32> to vector<128x128xf32>
    %cst_208 = arith.constant dense<0.000000e+00> : vector<160x128xf32>
    %235 = tpu.matmul %232, %234, %cst_208 {dimension_numbers = #tpu.dot_dimension_numbers<[1], [0], [0], [1], [0, 0, 1, 1], [], []>} : vector<160x128xf32>, vector<128x128xf32>, vector<160x128xf32> -> vector<160x128xf32>
    %c0_209 = arith.constant 0 : index
    %c0_210 = arith.constant 0 : index
    %236 = vector.load %arg7[%c0_209, %c0_210] : memref<160x128xf32, #tpu.memory_space<vmem>>, vector<160x128xf32>
    %237 = arith.addf %236, %235 : vector<160x128xf32>
    %c0_211 = arith.constant 0 : index
    %c0_212 = arith.constant 0 : index
    %238 = vector.load %arg7[%c0_211, %c0_212] : memref<160x128xf32, #tpu.memory_space<vmem>>, vector<160x128xf32>
    tpu.vector_store %arg7[%c0_211, %c0_212], %237 {strides = array<i32>} : memref<160x128xf32, #tpu.memory_space<vmem>>, vector<160x128xf32>,
    %c68_i32 = arith.constant 68 : i32
    %239 = arith.addi %0, %c68_i32 : i32
    %c0_213 = arith.constant 0 : index
    %240 = arith.index_cast %239 : i32 to index
    %c0_214 = arith.constant 0 : index
    %241 = vector.load %arg2[%c0_213, %240, %c0_214] : memref<1x232x128xf32, #tpu.memory_space<vmem>>, vector<1x160x128xf32>
    %242 = vector.shape_cast %241 : vector<1x160x128xf32> to vector<160x128xf32>
    %c24 = arith.constant 24 : index
    %c0_215 = arith.constant 0 : index
    %c0_216 = arith.constant 0 : index
    %243 = vector.load %arg3[%c24, %c0_215, %c0_216] : memref<25x128x128xf32, #tpu.memory_space<vmem>>, vector<1x128x128xf32>
    %244 = vector.shape_cast %243 : vector<1x128x128xf32> to vector<128x128xf32>
    %cst_217 = arith.constant dense<0.000000e+00> : vector<160x128xf32>
    %245 = tpu.matmul %242, %244, %cst_217 {dimension_numbers = #tpu.dot_dimension_numbers<[1], [0], [0], [1], [0, 0, 1, 1], [], []>} : vector<160x128xf32>, vector<128x128xf32>, vector<160x128xf32> -> vector<160x128xf32>
    %c0_218 = arith.constant 0 : index
    %c0_219 = arith.constant 0 : index
    %246 = vector.load %arg7[%c0_218, %c0_219] : memref<160x128xf32, #tpu.memory_space<vmem>>, vector<160x128xf32>
    %247 = arith.addf %246, %245 : vector<160x128xf32>
    %c0_220 = arith.constant 0 : index
    %c0_221 = arith.constant 0 : index
    %248 = vector.load %arg7[%c0_220, %c0_221] : memref<160x128xf32, #tpu.memory_space<vmem>>, vector<160x128xf32>
    tpu.vector_store %arg7[%c0_220, %c0_221], %247 {strides = array<i32>} : memref<160x128xf32, #tpu.memory_space<vmem>>, vector<160x128xf32>,
    %c0_222 = arith.constant 0 : index
    %c0_223 = arith.constant 0 : index
    %249 = vector.load %arg7[%c0_222, %c0_223] : memref<160x128xf32, #tpu.memory_space<vmem>>, vector<160x128xf32>
    %c0_224 = arith.constant 0 : index
    %c0_225 = arith.constant 0 : index
    %250 = vector.load %arg4[%c0_224, %c0_225] : memref<1x128xf32, #tpu.memory_space<vmem>>, vector<1x128xf32>
    %251 = vector.broadcast %250 : vector<1x128xf32> to vector<160x128xf32>
    %252 = arith.addf %249, %251 : vector<160x128xf32>
    %cst_226 = arith.constant 0.000000e+00 : f32
    %253 = vector.broadcast %cst_226 : f32 to vector<160x128xf32>
    %254 = arith.maximumf %252, %253 : vector<160x128xf32>
    %c0_227 = arith.constant 0 : index
    %c0_228 = arith.constant 0 : index
    %c0_229 = arith.constant 0 : index
    %255 = vector.load %arg5[%c0_227, %c0_228, %c0_229] : memref<4x40x160xf32, #tpu.memory_space<vmem>>, vector<1x40x160xf32>
    %256 = vector.shape_cast %255 : vector<1x40x160xf32> to vector<40x160xf32>
    %cst_230 = arith.constant dense<0.000000e+00> : vector<40x128xf32>
    %257 = tpu.matmul %256, %254, %cst_230 {dimension_numbers = #tpu.dot_dimension_numbers<[1], [0], [0], [1], [0, 0, 1, 1], [], []>} : vector<40x160xf32>, vector<160x128xf32>, vector<40x128xf32> -> vector<40x128xf32>
    %c1_231 = arith.constant 1 : index
    %c0_232 = arith.constant 0 : index
    %c0_233 = arith.constant 0 : index
    %258 = vector.load %arg5[%c1_231, %c0_232, %c0_233] : memref<4x40x160xf32, #tpu.memory_space<vmem>>, vector<1x40x160xf32>
    %259 = vector.shape_cast %258 : vector<1x40x160xf32> to vector<40x160xf32>
    %cst_234 = arith.constant dense<0.000000e+00> : vector<40x128xf32>
    %260 = tpu.matmul %259, %254, %cst_234 {dimension_numbers = #tpu.dot_dimension_numbers<[1], [0], [0], [1], [0, 0, 1, 1], [], []>} : vector<40x160xf32>, vector<160x128xf32>, vector<40x128xf32> -> vector<40x128xf32>
    %261 = arith.maximumf %257, %260 : vector<40x128xf32>
    %c2_235 = arith.constant 2 : index
    %c0_236 = arith.constant 0 : index
    %c0_237 = arith.constant 0 : index
    %262 = vector.load %arg5[%c2_235, %c0_236, %c0_237] : memref<4x40x160xf32, #tpu.memory_space<vmem>>, vector<1x40x160xf32>
    %263 = vector.shape_cast %262 : vector<1x40x160xf32> to vector<40x160xf32>
    %cst_238 = arith.constant dense<0.000000e+00> : vector<40x128xf32>
    %264 = tpu.matmul %263, %254, %cst_238 {dimension_numbers = #tpu.dot_dimension_numbers<[1], [0], [0], [1], [0, 0, 1, 1], [], []>} : vector<40x160xf32>, vector<160x128xf32>, vector<40x128xf32> -> vector<40x128xf32>
    %c3_239 = arith.constant 3 : index
    %c0_240 = arith.constant 0 : index
    %c0_241 = arith.constant 0 : index
    %265 = vector.load %arg5[%c3_239, %c0_240, %c0_241] : memref<4x40x160xf32, #tpu.memory_space<vmem>>, vector<1x40x160xf32>
    %266 = vector.shape_cast %265 : vector<1x40x160xf32> to vector<40x160xf32>
    %cst_242 = arith.constant dense<0.000000e+00> : vector<40x128xf32>
    %267 = tpu.matmul %266, %254, %cst_242 {dimension_numbers = #tpu.dot_dimension_numbers<[1], [0], [0], [1], [0, 0, 1, 1], [], []>} : vector<40x160xf32>, vector<160x128xf32>, vector<40x128xf32> -> vector<40x128xf32>
    %268 = arith.maximumf %264, %267 : vector<40x128xf32>
    %269 = arith.maximumf %261, %268 : vector<40x128xf32>
    %c0_243 = arith.constant 0 : index
    %c0_244 = arith.constant 0 : index
    %c0_245 = arith.constant 0 : index
    %270 = vector.load %arg6[%c0_243, %c0_244, %c0_245] : memref<1x40x128xf32, #tpu.memory_space<vmem>>, vector<1x40x128xf32>
    %271 = vector.shape_cast %270 : vector<1x40x128xf32> to vector<40x128xf32>
    %272 = vector.shape_cast %269 : vector<40x128xf32> to vector<1x40x128xf32>
    tpu.vector_store %arg6[%c0_243, %c0_244, %c0_245], %272 {strides = array<i32>} : memref<1x40x128xf32, #tpu.memory_space<vmem>>, vector<1x40x128xf32>,
    return
  }
  func.func @transform_0(%arg0: i32, %arg1: i32) -> (i32, i32, i32) {
    %c0_i32 = arith.constant 0 : i32
    %c0_i32_0 = arith.constant 0 : i32
    %c0_i32_1 = arith.constant 0 : i32
    return %arg0, %c0_i32, %c0_i32_0 : i32, i32, i32
  }
  func.func @transform_1(%arg0: i32, %arg1: i32) -> (i32, i32, i32) {
    %c0_i32 = arith.constant 0 : i32
    %c0_i32_0 = arith.constant 0 : i32
    %c0_i32_1 = arith.constant 0 : i32
    %c0_i32_2 = arith.constant 0 : i32
    return %c0_i32, %c0_i32_0, %c0_i32_1 : i32, i32, i32
  }
  func.func @transform_2(%arg0: i32, %arg1: i32) -> (i32, i32) {
    %c0_i32 = arith.constant 0 : i32
    %c0_i32_0 = arith.constant 0 : i32
    %c0_i32_1 = arith.constant 0 : i32
    return %c0_i32, %c0_i32_0 : i32, i32
  }
  func.func @transform_3(%arg0: i32, %arg1: i32) -> (i32, i32, i32) {
    %c0_i32 = arith.constant 0 : i32
    %c0_i32_0 = arith.constant 0 : i32
    %c0_i32_1 = arith.constant 0 : i32
    %c0_i32_2 = arith.constant 0 : i32
    return %c0_i32, %c0_i32_0, %c0_i32_1 : i32, i32, i32
  }
  func.func @transform_4(%arg0: i32, %arg1: i32) -> (i32, i32, i32) {
    %c0_i32 = arith.constant 0 : i32
    %c0_i32_0 = arith.constant 0 : i32
    return %arg0, %arg1, %c0_i32 : i32, i32, i32
  }
}

module attributes {stable_mosaic.version = 11 : i64} {
  func.func @_mlp_kernel(%arg0: i32, %arg1: memref<2x400xf32, #tpu.memory_space<vmem>>, %arg2: memref<400x128xf32, #tpu.memory_space<vmem>>, %arg3: memref<1x128xf32, #tpu.memory_space<vmem>>, %arg4: memref<128x128xf32, #tpu.memory_space<vmem>>, %arg5: memref<1x128xf32, #tpu.memory_space<vmem>>, %arg6: memref<128x128xf32, #tpu.memory_space<vmem>>, %arg7: memref<1x128xf32, #tpu.memory_space<vmem>>, %arg8: memref<2x128xf32, #tpu.memory_space<vmem>>) attributes {dimension_semantics = [#tpu.dimension_semantics<parallel>], iteration_bounds = array<i64: 1>, scalar_prefetch = 0 : i64, scratch_operands = 0 : i64, tpu.core_type = #tpu.core_type<tc>, window_params = [{transform_indices = @transform_0, window_bounds = array<i64: 2, 400>}, {pipeline_mode = #tpu.pipeline_mode<synchronous>, transform_indices = @transform_1, window_bounds = array<i64: 400, 128>}, {pipeline_mode = #tpu.pipeline_mode<synchronous>, transform_indices = @transform_2, window_bounds = array<i64: 1, 128>}, {pipeline_mode = #tpu.pipeline_mode<synchronous>, transform_indices = @transform_3, window_bounds = array<i64: 128, 128>}, {pipeline_mode = #tpu.pipeline_mode<synchronous>, transform_indices = @transform_4, window_bounds = array<i64: 1, 128>}, {pipeline_mode = #tpu.pipeline_mode<synchronous>, transform_indices = @transform_5, window_bounds = array<i64: 128, 128>}, {pipeline_mode = #tpu.pipeline_mode<synchronous>, transform_indices = @transform_6, window_bounds = array<i64: 1, 128>}, {transform_indices = @transform_7, window_bounds = array<i64: 2, 128>}]} {
    %c0 = arith.constant 0 : index
    %c0_0 = arith.constant 0 : index
    %0 = vector.load %arg1[%c0, %c0_0] : memref<2x400xf32, #tpu.memory_space<vmem>>, vector<2x400xf32>
    %c0_1 = arith.constant 0 : index
    %c0_2 = arith.constant 0 : index
    %1 = vector.load %arg2[%c0_1, %c0_2] : memref<400x128xf32, #tpu.memory_space<vmem>>, vector<400x128xf32>
    %cst = arith.constant dense<0.000000e+00> : vector<2x128xf32>
    %2 = tpu.matmul %0, %1, %cst {dimension_numbers = #tpu.dot_dimension_numbers<[1], [0], [0], [1], [0, 0, 1, 1], [], []>} : vector<2x400xf32>, vector<400x128xf32>, vector<2x128xf32> -> vector<2x128xf32>
    %c0_3 = arith.constant 0 : index
    %c0_4 = arith.constant 0 : index
    %3 = vector.load %arg3[%c0_3, %c0_4] : memref<1x128xf32, #tpu.memory_space<vmem>>, vector<1x128xf32>
    %4 = vector.broadcast %3 : vector<1x128xf32> to vector<2x128xf32>
    %5 = arith.addf %2, %4 : vector<2x128xf32>
    %cst_5 = arith.constant 0.000000e+00 : f32
    %6 = vector.broadcast %cst_5 : f32 to vector<2x128xf32>
    %7 = arith.maximumf %5, %6 : vector<2x128xf32>
    %c0_6 = arith.constant 0 : index
    %c0_7 = arith.constant 0 : index
    %8 = vector.load %arg4[%c0_6, %c0_7] : memref<128x128xf32, #tpu.memory_space<vmem>>, vector<128x128xf32>
    %cst_8 = arith.constant dense<0.000000e+00> : vector<2x128xf32>
    %9 = tpu.matmul %7, %8, %cst_8 {dimension_numbers = #tpu.dot_dimension_numbers<[1], [0], [0], [1], [0, 0, 1, 1], [], []>} : vector<2x128xf32>, vector<128x128xf32>, vector<2x128xf32> -> vector<2x128xf32>
    %c0_9 = arith.constant 0 : index
    %c0_10 = arith.constant 0 : index
    %10 = vector.load %arg5[%c0_9, %c0_10] : memref<1x128xf32, #tpu.memory_space<vmem>>, vector<1x128xf32>
    %11 = vector.broadcast %10 : vector<1x128xf32> to vector<2x128xf32>
    %12 = arith.addf %9, %11 : vector<2x128xf32>
    %cst_11 = arith.constant 0.000000e+00 : f32
    %13 = vector.broadcast %cst_11 : f32 to vector<2x128xf32>
    %14 = arith.maximumf %12, %13 : vector<2x128xf32>
    %c0_12 = arith.constant 0 : index
    %c0_13 = arith.constant 0 : index
    %15 = vector.load %arg6[%c0_12, %c0_13] : memref<128x128xf32, #tpu.memory_space<vmem>>, vector<128x128xf32>
    %cst_14 = arith.constant dense<0.000000e+00> : vector<2x128xf32>
    %16 = tpu.matmul %14, %15, %cst_14 {dimension_numbers = #tpu.dot_dimension_numbers<[1], [0], [0], [1], [0, 0, 1, 1], [], []>} : vector<2x128xf32>, vector<128x128xf32>, vector<2x128xf32> -> vector<2x128xf32>
    %c0_15 = arith.constant 0 : index
    %c0_16 = arith.constant 0 : index
    %17 = vector.load %arg7[%c0_15, %c0_16] : memref<1x128xf32, #tpu.memory_space<vmem>>, vector<1x128xf32>
    %18 = vector.broadcast %17 : vector<1x128xf32> to vector<2x128xf32>
    %19 = arith.addf %16, %18 : vector<2x128xf32>
    %c0_17 = arith.constant 0 : index
    %c0_18 = arith.constant 0 : index
    %20 = vector.load %arg8[%c0_17, %c0_18] : memref<2x128xf32, #tpu.memory_space<vmem>>, vector<2x128xf32>
    tpu.vector_store %arg8[%c0_17, %c0_18], %19 {strides = array<i32>} : memref<2x128xf32, #tpu.memory_space<vmem>>, vector<2x128xf32>,
    return
  }
  func.func @transform_0(%arg0: i32) -> (i32, i32) {
    %c0_i32 = arith.constant 0 : i32
    %c0_i32_0 = arith.constant 0 : i32
    return %arg0, %c0_i32 : i32, i32
  }
  func.func @transform_1(%arg0: i32) -> (i32, i32) {
    %c0_i32 = arith.constant 0 : i32
    %c0_i32_0 = arith.constant 0 : i32
    %c0_i32_1 = arith.constant 0 : i32
    return %c0_i32, %c0_i32_0 : i32, i32
  }
  func.func @transform_2(%arg0: i32) -> (i32, i32) {
    %c0_i32 = arith.constant 0 : i32
    %c0_i32_0 = arith.constant 0 : i32
    %c0_i32_1 = arith.constant 0 : i32
    return %c0_i32, %c0_i32_0 : i32, i32
  }
  func.func @transform_3(%arg0: i32) -> (i32, i32) {
    %c0_i32 = arith.constant 0 : i32
    %c0_i32_0 = arith.constant 0 : i32
    %c0_i32_1 = arith.constant 0 : i32
    return %c0_i32, %c0_i32_0 : i32, i32
  }
  func.func @transform_4(%arg0: i32) -> (i32, i32) {
    %c0_i32 = arith.constant 0 : i32
    %c0_i32_0 = arith.constant 0 : i32
    %c0_i32_1 = arith.constant 0 : i32
    return %c0_i32, %c0_i32_0 : i32, i32
  }
  func.func @transform_5(%arg0: i32) -> (i32, i32) {
    %c0_i32 = arith.constant 0 : i32
    %c0_i32_0 = arith.constant 0 : i32
    %c0_i32_1 = arith.constant 0 : i32
    return %c0_i32, %c0_i32_0 : i32, i32
  }
  func.func @transform_6(%arg0: i32) -> (i32, i32) {
    %c0_i32 = arith.constant 0 : i32
    %c0_i32_0 = arith.constant 0 : i32
    %c0_i32_1 = arith.constant 0 : i32
    return %c0_i32, %c0_i32_0 : i32, i32
  }
  func.func @transform_7(%arg0: i32) -> (i32, i32) {
    %c0_i32 = arith.constant 0 : i32
    %c0_i32_0 = arith.constant 0 : i32
    return %arg0, %c0_i32 : i32, i32
  }
}

</mosaic_0001>

<bundles_post_ra>
// kernel: cnn_forward.5
= control target key start
LH: loop header
LB: loop body
LE: loop exit
PB: predicated region body
PF: predicated region fallthrough
CT: control target
= control target key end

     0   :  { %v622_v3 = vmov 0.0   ;;  %v623_v23 = vmov 1983009808   ;;  %v90_v25 = vlaneseq  ;;  %s979_s0 = inlined_call_operand.vmem [shape: f32[2,400], index: 0, kind: input, shape index: {}]   ;;  %s980_s1 = inlined_call_operand.vmem [shape: f32[400,128], index: 1, kind: input, shape index: {}]   ;;  %s981_s2 = inlined_call_operand.vmem [shape: f32[1,128], index: 2, kind: input, shape index: {}]   ;;  %s982_s3 = inlined_call_operand.vmem [shape: f32[128,128], index: 3, kind: input, shape index: {}]   ;;  %s983_s4 = inlined_call_operand.vmem [shape: f32[1,128], index: 4, kind: input, shape index: {}]   ;;  %s984_s5 = inlined_call_operand.vmem [shape: f32[128,128], index: 5, kind: input, shape index: {}]   ;;  %s985_s6 = inlined_call_operand.vmem [shape: f32[1,128], index: 6, kind: input, shape index: {}]   ;;  %s986_s7 = inlined_call_operand.hbm [shape: f32[2,128], index: 7, kind: output, shape index: {}]  }
   0x1   :  { %v59_v0 = vld [vmem:[%s980_s1 + $0xf8] sm:$0xff]  ;;  %179 = vmatprep.subr.mxu1 %v622_v3  ;;  %v58_v4 = vld [vmem:[%s980_s1 + $0xf0] sm:$0xff]  ;;  %v57_v7 = vld [vmem:[%s980_s1 + $0xe8] sm:$0xff]  ;;  %v88_v24 = vunpack.c.l.s4 %v623_v23 }
   0x2   :  { %v43_v1 = vld [vmem:[%s980_s1 + $0x78] sm:$0xff]  ;;  %456 = vmatprep.subr.mxu0 %v59_v0  ;;  %v42_v5 = vld [vmem:[%s980_s1 + $0x70] sm:$0xff]  ;;  %v41_v8 = vld [vmem:[%s980_s1 + $0x68] sm:$0xff]  ;;  %v91_v33 = vshrl.u32 %v90_v25, 7 }
   0x3   :  { %v75_v2 = vld [vmem:[%s980_s1 + $0x178] sm:$0xff]  ;;  %v74_v6 = vld [vmem:[%s980_s1 + $0x170] sm:$0xff]  ;;  %457 = vmatpush3.msra.mxu0 %v43_v1  ;;  %v73_v9 = vld [vmem:[%s980_s1 + $0x168] sm:$0xff]  ;;  %v89_v32 = vunpack.c.0.s8 %v88_v24 }
   0x4   :  { %180 = vmatpush1.msra.mxu1 %v75_v2  ;;  %458 = vmatprep.subr.mxu0 %v58_v4  ;;  %v56_v10 = vld [vmem:[%s980_s1 + $0xe0] sm:$0xff]  ;;  %v55_v13 = vld [vmem:[%s980_s1 + $0xd8] sm:$0xff]  ;;  %v54_v16 = vld [vmem:[%s980_s1 + $0xd0] sm:$0xff] }
   0x5   :  { %181 = vmatprep.subr.mxu1 %v622_v3  ;;  %459 = vmatpush3.msra.mxu0 %v42_v5  ;;  %v40_v11 = vld [vmem:[%s980_s1 + $0x60] sm:$0xff]  ;;  %v39_v14 = vld [vmem:[%s980_s1 + $0x58] sm:$0xff]  ;;  %v38_v17 = vld [vmem:[%s980_s1 + $0x50] sm:$0xff]  ;;  %v92_v40 = vsub.s32 %v89_v32, %v91_v33 }
   0x6   :  { %182 = vmatpush1.msra.mxu1 %v74_v6  ;;  %460 = vmatprep.subr.mxu0 %v57_v7  ;;  %v72_v12 = vld [vmem:[%s980_s1 + $0x160] sm:$0xff]  ;;  %v71_v15 = vld [vmem:[%s980_s1 + $0x158] sm:$0xff]  ;;  %v70_v18 = vld [vmem:[%s980_s1 + $0x150] sm:$0xff] }
   0x7   :  { %183 = vmatprep.subr.mxu1 %v622_v3  ;;  %461 = vmatpush3.msra.mxu0 %v41_v8  ;;  %v53_v19 = vld [vmem:[%s980_s1 + $0xc8] sm:$0xff]  ;;  %v52_v22 = vld [vmem:[%s980_s1 + $0xc0] sm:$0xff]  ;;  %v51_v28 = vld [vmem:[%s980_s1 + $0xb8] sm:$0xff] }
   0x8   :  { %184 = vmatpush1.msra.mxu1 %v73_v9  ;;  %462 = vmatprep.subr.mxu0 %v56_v10  ;;  %v37_v20 = vld [vmem:[%s980_s1 + $0x48] sm:$0xff]  ;;  %v36_v26 = vld [vmem:[%s980_s1 + $0x40] sm:$0xff]  ;;  %v35_v29 = vld [vmem:[%s980_s1 + $0x38] sm:$0xff] }
   0x9   :  { %185 = vmatprep.subr.mxu1 %v622_v3  ;;  %463 = vmatpush3.msra.mxu0 %v40_v11  ;;  %v69_v21 = vld [vmem:[%s980_s1 + $0x148] sm:$0xff]  ;;  %v68_v27 = vld [vmem:[%s980_s1 + $0x140] sm:$0xff]  ;;  %v67_v30 = vld [vmem:[%s980_s1 + $0x138] sm:$0xff] }
   0xa   :  { %186 = vmatpush1.msra.mxu1 %v72_v12  ;;  %464 = vmatprep.subr.mxu0 %v55_v13  ;;  %v50_v31 = vld [vmem:[%s980_s1 + $0xb0] sm:$0xff]  ;;  %v49_v36 = vld [vmem:[%s980_s1 + $0xa8] sm:$0xff]  ;;  %v48_v39 = vld [vmem:[%s980_s1 + $0xa0] sm:$0xff] }
   0xb   :  { %187 = vmatprep.subr.mxu1 %v622_v3  ;;  %465 = vmatpush3.msra.mxu0 %v39_v14  ;;  %v34_v34 = vld [vmem:[%s980_s1 + $0x30] sm:$0xff]  ;;  %v33_v37 = vld [vmem:[%s980_s1 + $0x28] sm:$0xff] }
   0xc   :  { %188 = vmatpush1.msra.mxu1 %v71_v15  ;;  %466 = vmatprep.subr.mxu0 %v54_v16  ;;  %v66_v35 = vld [vmem:[%s980_s1 + $0x130] sm:$0xff]  ;;  %v65_v38 = vld [vmem:[%s980_s1 + $0x128] sm:$0xff] }
   0xd   :  { %189 = vmatprep.subr.mxu1 %v622_v3  ;;  %467 = vmatpush3.msra.mxu0 %v38_v17 }
   0xe   :  { %190 = vmatpush1.msra.mxu1 %v70_v18  ;;  %468 = vmatprep.subr.mxu0 %v53_v19 }
   0xf   :  { %191 = vmatprep.subr.mxu1 %v622_v3  ;;  %469 = vmatpush3.msra.mxu0 %v37_v20 }
  0x10   :  { %192 = vmatpush1.msra.mxu1 %v69_v21  ;;  %470 = vmatprep.subr.mxu0 %v52_v22 }
  0x11   :  { %193 = vmatprep.subr.mxu1 %v622_v3  ;;  %471 = vmatpush3.msra.mxu0 %v36_v26 }
  0x12   :  { %194 = vmatpush1.msra.mxu1 %v68_v27  ;;  %472 = vmatprep.subr.mxu0 %v51_v28 }
  0x13   :  { %195 = vmatprep.subr.mxu1 %v622_v3  ;;  %473 = vmatpush3.msra.mxu0 %v35_v29 }
  0x14   :  { %196 = vmatpush1.msra.mxu1 %v67_v30  ;;  %474 = vmatprep.subr.mxu0 %v50_v31 }
  0x15   :  { %197 = vmatprep.subr.mxu1 %v622_v3  ;;  %475 = vmatpush3.msra.mxu0 %v34_v34 }
  0x16   :  { %198 = vmatpush1.msra.mxu1 %v66_v35 }
  0x17   :  { %12 = vsyncpa [#allocation3], 0  ;;  %476 = vmatprep.subr.mxu0 %v49_v36  ;;  %199 = vmatprep.subr.mxu1 %v622_v3  ;;  %v32_v41 = vld [vmem:[%s980_s1 + $0x20] sm:$0xff]  ;;  %v47_v44 = vld [vmem:[%s980_s1 + $0x98] sm:$0xff]  ;;  %vm106_vm0 = vcmask 130048   ;;  %vm624_vm1 = vmmov 0  }
  0x18   :  { %v64_v42 = vld [vmem:[%s980_s1 + $0x120] sm:$0xff]  ;;  %477 = vmatpush3.msra.mxu0 %v33_v37  ;;  %200 = vmatpush1.msra.mxu1 %v65_v38  ;;  %v31_v46 = vld [vmem:[%s980_s1 + $0x18] sm:$0xff]  ;;  %v46_v48 = vld [vmem:[%s980_s1 + $0x90] sm:$0xff]  ;;  %s625_s25 = smov [#allocation2]  }
  0x19   :  { %v27_v43 = vld [vmem:[%s979_s0] sm:$0xff]  ;;  %478 = vmatprep.subr.mxu0 %v48_v39  ;;  %201 = vmatprep.subr.mxu1 %v622_v3  ;;  %v63_v47 = vld [vmem:[%s980_s1 + $0x118] sm:$0xff]  ;;  %v30_v50 = vld [vmem:[%s980_s1 + $0x10] sm:$0xff]  ;;  %s444_s26 = sshll.u32 %s625_s25, 4  ;;  %s445_s26 = int_to_ptr.vmem [resolvable:$true] %s444_s26 }
  0x1a   :  { %v86_v45 = vcombine.high %v27_v43, %v27_v43  ;;  %479 = vmatpush3.msra.mxu0 %v32_v41  ;;  %202 = vmatpush1.msra.mxu1 %v64_v42  ;;  %v93_v49 = vrot.slane %v27_v43, %v92_v40  ;;  %v62_v51 = vld [vmem:[%s980_s1 + $0x110] sm:$0xff]  ;;  %v45_v52 = vld [vmem:[%s980_s1 + $0x88] sm:$0xff]  ;;  %v44_v56 = vld [vmem:[%s980_s1 + $0x80] sm:$0xff]  ;;  %p605_p1 = scmp.lt.s32.totalorder %s445_s26, %s445_s26 }
  0x1b   :  { %480 = vmatprep.subr.mxu0 %v47_v44  ;;  %203 = vmatprep.subr.mxu1 %v622_v3  ;;  %v29_v54 = vld [vmem:[%s980_s1 + $0x8] sm:$0xff]  ;;  %v28_v58 = vld [vmem:[%s980_s1] sm:$0xff]  ;;  %v265_v62 = vld [vmem:[%s982_s3 + $0x78] sm:$0xff] }
  0x1c   :  { %481 = vmatpush3.msra.mxu0 %v31_v46  ;;  %204 = vmatpush1.msra.mxu1 %v63_v47  ;;  %v100_v53 = vrot.slane %v86_v45, %v92_v40  ;;  %v61_v55 = vld [vmem:[%s980_s1 + $0x108] sm:$0xff]  ;;  %v101_v57 = vcombine.high %v93_v49, %v93_v49  ;;  %v60_v59 = vld [vmem:[%s980_s1 + $0x100] sm:$0xff]  ;;  %v264_v0 = vld [vmem:[%s982_s3 + $0x70] sm:$0xff] }
  0x1d   :  { %482 = vmatprep.subr.mxu0 %v46_v48  ;;  %205 = vmatprep.subr.mxu1 %v622_v3  ;;  %v77_v61 = vld [vmem:[%s980_s1 + $0x188] sm:$0xff]  ;;  %v76_v63 = vld [vmem:[%s980_s1 + $0x180] sm:$0xff]  ;;  %v261_v4 = vld [vmem:[%s982_s3 + $0x58] sm:$0xff] }
  0x1e   :  { %483 = vmatpush3.msra.mxu0 %v30_v50  ;;  %206 = vmatpush1.msra.mxu1 %v62_v51  ;;  %v102_v60 = vcombine.high %v100_v53, %v100_v53  ;;  %v263_v1 = vld [vmem:[%s982_s3 + $0x68] sm:$0xff]  ;;  %v262_v2 = vld [vmem:[%s982_s3 + $0x60] sm:$0xff]  ;;  %v260_v5 = vld [vmem:[%s982_s3 + $0x50] sm:$0xff] }
  0x1f   :  { %484 = vmatprep.subr.mxu0 %v45_v52  ;;  %207 = vmatprep.subr.mxu1 %v622_v3  ;;  %v259_v6 = vld [vmem:[%s982_s3 + $0x48] sm:$0xff]  ;;  %v258_v7 = vld [vmem:[%s982_s3 + $0x40] sm:$0xff]  ;;  %v257_v8 = vld [vmem:[%s982_s3 + $0x38] sm:$0xff] }
  0x20   :  { %485 = vmatpush3.msra.mxu0 %v29_v54  ;;  %208 = vmatpush1.msra.mxu1 %v61_v55  ;;  %v256_v9 = vld [vmem:[%s982_s3 + $0x30] sm:$0xff]  ;;  %v255_v10 = vld [vmem:[%s982_s3 + $0x28] sm:$0xff]  ;;  %v254_v11 = vld [vmem:[%s982_s3 + $0x20] sm:$0xff] }
  0x21   :  { %486 = vmatprep.subr.mxu0 %v44_v56  ;;  %209 = vmatprep.subr.mxu1 %v622_v3  ;;  %v253_v12 = vld [vmem:[%s982_s3 + $0x18] sm:$0xff]  ;;  %v252_v13 = vld [vmem:[%s982_s3 + $0x10] sm:$0xff]  ;;  %v251_v14 = vld [vmem:[%s982_s3 + $0x8] sm:$0xff] }
  0x22   :  { %487 = vmatpush3.msra.mxu0 %v28_v58  ;;  %173 = vmatprep.mubr.f32.mxu0 %v101_v57  ;;  %v250_v15 = vld [vmem:[%s982_s3] sm:$0xff]  ;;  %v359_v16 = vld [vmem:[%s984_s5 + $0x78] sm:$0xff]  ;;  %v358_v17 = vld [vmem:[%s984_s5 + $0x70] sm:$0xff] }
  0x23   :  { %210 = vmatpush1.msra.mxu1 %v60_v59  ;;  %174 = vmatmul.mubr.f32.vlgmr.msra.gmra.mxu0 %v93_v49  ;;  %v357_v18 = vld [vmem:[%s984_s5 + $0x68] sm:$0xff]  ;;  %v356_v19 = vld [vmem:[%s984_s5 + $0x60] sm:$0xff]  ;;  %v355_v20 = vld [vmem:[%s984_s5 + $0x58] sm:$0xff] }
  0x24   :  { %239 = vmatprep.subr.mxu1 %v622_v3  ;;  %453 = vmatprep.mubr.msk.f32.mxu1 %vm106_vm0, %v102_v60  ;;  %v354_v21 = vld [vmem:[%s984_s5 + $0x50] sm:$0xff]  ;;  %v353_v22 = vld [vmem:[%s984_s5 + $0x48] sm:$0xff]  ;;  %v352_v23 = vld [vmem:[%s984_s5 + $0x40] sm:$0xff] }
  0x25   :  { %240 = vmatpush2.msra.mxu1 %v77_v61  ;;  %525 = vmatprep.subr.mxu0 %v622_v3  ;;  %v351_v24 = vld [vmem:[%s984_s5 + $0x38] sm:$0xff]  ;;  %v350_v25 = vld [vmem:[%s984_s5 + $0x30] sm:$0xff]  ;;  %v349_v26 = vld [vmem:[%s984_s5 + $0x28] sm:$0xff] }
  0x26   :  { %241 = vmatprep.subr.mxu1 %v622_v3  ;;  %526 = vmatpush3.msra.mxu0 %v265_v62  ;;  %v348_v27 = vld [vmem:[%s984_s5 + $0x20] sm:$0xff]  ;;  %v347_v28 = vld [vmem:[%s984_s5 + $0x18] sm:$0xff]  ;;  %v346_v38 = vld [vmem:[%s984_s5 + $0x10] sm:$0xff] }
  0x27   :  { %242 = vmatpush2.msra.mxu1 %v76_v63  ;;  %527 = vmatprep.subr.mxu0 %v622_v3  ;;  %v452_v31 = vld [vmem:[%s981_s2] ss:$0 sm:$0xff]  ;;  %v345_v39 = vld [vmem:[%s984_s5 + $0x8] sm:$0xff] }
  0x28   :  { %244 = vmatmul.mubr.f32.vlgmr.msra.gmra.mxu1 %v100_v53  ;;  %528 = vmatpush3.msra.mxu0 %v264_v0  ;;  %v344_v40 = vld [vmem:[%s984_s5] sm:$0xff]  ;;  %s600_s5 = scalar_lea.vmem %s445_s26, 32 }
  0x29   :  { %529 = vmatprep.subr.mxu0 %v622_v3  ;;  %560 = vmatprep.subr.mxu1 %v622_v3  ;;  %v454_v41 = vld [vmem:[%s983_s4] ss:$0 sm:$0xff]  ;;  %p601_p0 = scmp.ne.s32.totalorder %s445_s26, %s600_s5  ;;  %p606_p2 = scmp.lt.s32.totalorder %s600_s5, %s600_s5 }
  0x2a   :  { %530 = vmatpush3.msra.mxu0 %v263_v1  ;;  %557 = vmatprep.mubr.msk.f32.mxu0 %vm624_vm1, %v622_v3  ;;  %v455_v46 = vld [vmem:[%s985_s6] ss:$0 sm:$0xff] }
  0x2b   :  { %531 = vmatprep.subr.mxu0 %v622_v3  ;;  %592 = vmatprep.mubr.msk.f32.mxu1 %vm624_vm1, %v622_v3  ;;  %p607_p3 = por %p606_p2, %p605_p1 }
  0x2c   :  { %532 = vmatpush3.msra.mxu0 %v262_v2  ;;  %561 = vmatpush3.msra.mxu1 %v359_v16 }
  0x2d   :  { %533 = vmatprep.subr.mxu0 %v622_v3  ;;  %562 = vmatprep.subr.mxu1 %v622_v3  ;;  %p608_p4 = pnand %p607_p3, %p601_p0 }
  0x2e   :  { %534 = vmatpush3.msra.mxu0 %v261_v4  ;;  %563 = vmatpush3.msra.mxu1 %v358_v17 }
  0x2f   :  { %535 = vmatprep.subr.mxu0 %v622_v3  ;;  %564 = vmatprep.subr.mxu1 %v622_v3 }
  0x30   :  { %536 = vmatpush3.msra.mxu0 %v260_v5  ;;  %565 = vmatpush3.msra.mxu1 %v357_v18 }
  0x31   :  { %537 = vmatprep.subr.mxu0 %v622_v3  ;;  %566 = vmatprep.subr.mxu1 %v622_v3 }
  0x32   :  { %538 = vmatpush3.msra.mxu0 %v259_v6  ;;  %567 = vmatpush3.msra.mxu1 %v356_v19 }
  0x33   :  { %539 = vmatprep.subr.mxu0 %v622_v3  ;;  %568 = vmatprep.subr.mxu1 %v622_v3 }
  0x34   :  { %540 = vmatpush3.msra.mxu0 %v258_v7  ;;  %569 = vmatpush3.msra.mxu1 %v355_v20 }
  0x35   :  { %541 = vmatprep.subr.mxu0 %v622_v3  ;;  %570 = vmatprep.subr.mxu1 %v622_v3 }
  0x36   :  { %542 = vmatpush3.msra.mxu0 %v257_v8  ;;  %571 = vmatpush3.msra.mxu1 %v354_v21 }
  0x37   :  { %543 = vmatprep.subr.mxu0 %v622_v3  ;;  %572 = vmatprep.subr.mxu1 %v622_v3 }
  0x38   :  { %544 = vmatpush3.msra.mxu0 %v256_v9  ;;  %573 = vmatpush3.msra.mxu1 %v353_v22 }
  0x39   :  { %545 = vmatprep.subr.mxu0 %v622_v3  ;;  %574 = vmatprep.subr.mxu1 %v622_v3 }
  0x3a   :  { %546 = vmatpush3.msra.mxu0 %v255_v10  ;;  %575 = vmatpush3.msra.mxu1 %v352_v23 }
  0x3b   :  { %547 = vmatprep.subr.mxu0 %v622_v3  ;;  %576 = vmatprep.subr.mxu1 %v622_v3 }
  0x3c   :  { %548 = vmatpush3.msra.mxu0 %v254_v11  ;;  %577 = vmatpush3.msra.mxu1 %v351_v24 }
  0x3d   :  { %549 = vmatprep.subr.mxu0 %v622_v3  ;;  %578 = vmatprep.subr.mxu1 %v622_v3 }
  0x3e   :  { %550 = vmatpush3.msra.mxu0 %v253_v12  ;;  %579 = vmatpush3.msra.mxu1 %v350_v25 }
  0x3f   :  { %551 = vmatprep.subr.mxu0 %v622_v3  ;;  %580 = vmatprep.subr.mxu1 %v622_v3 }
  0x40   :  { %552 = vmatpush3.msra.mxu0 %v252_v13  ;;  %581 = vmatpush3.msra.mxu1 %v349_v26 }
  0x41   :  { %553 = vmatprep.subr.mxu0 %v622_v3  ;;  %582 = vmatprep.subr.mxu1 %v622_v3 }
  0x42   :  { %554 = vmatpush3.msra.mxu0 %v251_v14  ;;  %583 = vmatpush3.msra.mxu1 %v348_v27 }
  0x43   :  { %555 = vmatprep.subr.mxu0 %v622_v3  ;;  %584 = vmatprep.subr.mxu1 %v622_v3 }
  0x44   :  { %556 = vmatpush3.msra.mxu0 %v250_v15  ;;  %585 = vmatpush3.msra.mxu1 %v347_v28 }
  0x45   :  { %586 = vmatprep.subr.mxu1 %v622_v3 }
  0x46   :  { %587 = vmatpush3.msra.mxu1 %v346_v38 }
  0x47   :  { %588 = vmatprep.subr.mxu1 %v622_v3 }
  0x48   :  { %589 = vmatpush3.msra.mxu1 %v345_v39 }
  0x49   :  { %590 = vmatprep.subr.mxu1 %v622_v3 }
  0x4a   :  { %591 = vmatpush3.msra.mxu1 %v344_v40 }
  0xe3   :  { %v488_v29 = vpop.f32.mrf.mxu0 }
  0xe5   :  { %v489_v30 = vpop.f32.mrf.mxu0 }
  0xe6   :  { %v490_v32 = vadd.f32 %v489_v30, %v488_v29 }
  0xe8   :  { %v176_v33 = vadd.f32 %v490_v32, %v452_v31  ;;  %v245_v34 = vpop.f32.mrf.mxu1 }
  0xea   :  { %v246_v35 = vadd.f32 %v245_v34, %v176_v33  ;;  %v247_v36 = vpop.f32.mrf.mxu1 }
  0xec   :  { %v249_v37 = vmax.f32 %v246_v35, 0.0 }
  0xee   :  { %558 = vmatmul.mubr.f32.vlgmr.msra.gmra.mxu0 %v249_v37 }
 0x1ae   :  { %v339_v42 = vpop.f32.mrf.mxu0 }
 0x1af   :  { %v340_v43 = vadd.f32 %v454_v41, %v339_v42 }
 0x1b0   :  { %v559_v44 = vpop.f32.mrf.mxu0 }
 0x1b1   :  { %v343_v45 = vmax.f32 %v340_v43, 0.0 }
 0x1b3   :  { %593 = vmatmul.mubr.f32.vlgmr.msra.gmra.mxu1 %v343_v45 }
 0x273   :  { %v433_v47 = vpop.f32.mrf.mxu1 }
 0x274   :  { %v434_v48 = vadd.f32 %v455_v46, %v433_v47 }
 0x275   :  { %v594_v3 = vpop.f32.mrf.mxu1 }
 0x276   :  { %437 = vst [vmem:[#allocation2] sm:$0x3] %v434_v48 }
 0x277   :  { %611 = shalt.err (!%p608_p4)
}
 0x278   :  { %447 = dma.vmem_to_hbm [thread:$0]  %s445_s26, 32, %s986_s7, [#allocation3]  }
 0x279   :  { %620 = dma.done.wait [#allocation3], 32  }
 0x27a   :  { %621 = vsyncadd [#allocation3], 4294967264 }
 0x27b   :  { %451 = vsyncpa [#allocation3], 1 }

// kernel: cnn_forward.3
= control target key start
LH: loop header
LB: loop body
LE: loop exit
PB: predicated region body
PF: predicated region fallthrough
CT: control target
= control target key end

     0   :  { %s2781_s15 = smov 0   ;;  %s2783_s16 = smov 0   ;;  %s3348_s0 = inlined_call_operand.vmem [shape: f32[2,1024,16], index: 0, kind: input, shape index: {}]   ;;  %s3349_s1 = inlined_call_operand.vmem [shape: f32[5,16,128], index: 1, kind: input, shape index: {}]   ;;  %s3350_s2 = inlined_call_operand.vmem [shape: f32[1,128], index: 2, kind: input, shape index: {}]   ;;  %s3351_s3 = inlined_call_operand.vmem [shape: f32[4,32,128], index: 3, kind: input, shape index: {}]   ;;  %s3352_s4 = inlined_call_operand.vmem [shape: f32[2,224,128], index: 4, kind: output, shape index: {}]  }
   0x1   :  { %s2785_s17 = smov 0   ;;  %s2787_s18 = smov 0  }
   0x2   :  { %s2789_s19 = smov 0  }
   0x3 LB: > { %s23_s20 = sadd.s32 1, %s2746_s17  ;;  %s26_s21 = sadd.s32 1, %s2750_s18  ;;  %s2754_s19 = sphi %s2789_s19, %s14_s19   ;;  %s2750_s18 = sphi %s2787_s18, %s3378_s18   ;;  %s2746_s17 = sphi %s2785_s17, %s3377_s17   ;;  %s2742_s16 = sphi %s2783_s16, %s3376_s16   ;;  %s2738_s15 = sphi %s2781_s15, %s3375_s15  }
   0x4   : > { %p24_p0 = scmp.ge.s32.totalorder %s23_s20, 7  ;;  %p2031_p1 = scmp.ge.s32.totalorder %s2754_s19, 1 }
   0x5   : > { %p176_p2 = scmp.lt.s32.totalorder %s2754_s19, 15 }
   0x6   : > { %s3380_s20 = smov (%p24_p0, %s23_s20), 0  ;;  %s3382_s21 = smov (!%p24_p0, %s26_s21), %s2750_s18 }
   0x7   : > { %p177_p3 = pnand %p2031_p1, %p176_p2  ;;  %p28_p4 = scmp.ge.s32.totalorder %s3382_s21, 2 }
   0x9   : > { %s3384_s21 = smov (%p28_p4, %s3382_s21), 0  ;;  %180 = sbr.rel (%p177_p3) target bundleno = 572 (0x23c), region = 36 }
   0xe   : > { %v240_v0 = vld [vmem:[%s3349_s1 + $0x8] sm:$0xff]  ;;  %v239_v1 = vld [vmem:[%s3349_s1] sm:$0xff]  ;;  %p206_p5 = scmp.lt.s32.totalorder %s2742_s16, 1  ;;  %v2071_v2 = vld [vmem:[%s3349_s1 + $0x18] sm:$0xff]  ;;  %s2036_s30 = sshll.u32 %s2738_s15, 7  ;;  %vm241_vm0 = vcmask 130048  }
   0xf   : > { %2671 = vmatprep.subr.mxu1 %v240_v0  ;;  %2379 = vmatprep.subr.mxu0 %v240_v0  ;;  %v2106_v3 = vld [vmem:[%s3349_s1 + $0x28] sm:$0xff]  ;;  %v2070_v10 = vld [vmem:[%s3349_s1 + $0x10] sm:$0xff]  ;;  %v2105_v11 = vld [vmem:[%s3349_s1 + $0x20] sm:$0xff]  ;;  %s2034_s25 = sshll.u32 %s2738_s15, 2 }
  0x10   : > { %2673 = vmatpush3.msra.mxu1 %v240_v0  ;;  %2380 = vmatpush3.msra.mxu0 %v240_v0  ;;  %s3386_s16 = smov (!%p206_p5, %s2742_s16), 1  ;;  %v2141_v16 = vld [vmem:[%s3349_s1 + $0x38] sm:$0xff]  ;;  %v2176_v17 = vld [vmem:[%s3349_s1 + $0x48] sm:$0xff]  ;;  %v2140_v24 = vld [vmem:[%s3349_s1 + $0x30] sm:$0xff]  ;;  %p214_p6 = scmp.lt.s32.totalorder %s2034_s25, 27 }
  0x11   : > { %2672 = vmatprep.subr.mxu1 %v239_v1  ;;  %2381 = vmatprep.subr.mxu0 %v239_v1  ;;  %s2208_s5 = sshll.u32 %s3386_s16, 10  ;;  %v2175_v25 = vld [vmem:[%s3349_s1 + $0x40] sm:$0xff]  ;;  %s2675_s26 = smul.u32 28, %s3386_s16 }
  0x12   : > { %2674 = vmatpush3.msra.mxu1 %v239_v1  ;;  %2382 = vmatpush3.msra.mxu0 %v239_v1  ;;  %s210_s8 = scalar_lea.vmem %s3348_s0, %s2208_s5  ;;  %v1554_v42 = vld [vmem:[%s3351_s3] sm:$0xff]  ;;  %s3388_s25 = smov (!%p214_p6, %s2034_s25), 27 }
  0x13   : > { %2407 = vmatprep.subr.mxu1 %v2071_v2  ;;  %2435 = vmatprep.subr.mxu0 %v2106_v3  ;;  %s2832_s9 = scalar_lea.vmem %s210_s8, %s2036_s30  ;;  %v2194_v43 = vld [vmem:[%s3351_s3 + $0x20] sm:$0xff]  ;;  %s217_s27 = sadd.s32 %s2675_s26, %s3388_s25 }
  0x14   : > { %v223_v4 = vld [vmem:[%s2832_s9] sm:$0xff]  ;;  %v224_v6 = vld [vmem:[%s2832_s9 + $0x8] sm:$0xff]  ;;  %v225_v8 = vld [vmem:[%s2832_s9 + $0x10] sm:$0xff]  ;;  %s2035_s28 = sshll.u32 %s217_s27, 3 }
  0x15   : > { %v231_v5 = vld [vmem:[%s2832_s9 + $0x40] sm:$0xff]  ;;  %2383 = vmatprep.mubr.msk.f32.mxu0 %vm241_vm0, %v223_v4  ;;  %v232_v7 = vld [vmem:[%s2832_s9 + $0x48] sm:$0xff]  ;;  %v233_v9 = vld [vmem:[%s2832_s9 + $0x50] sm:$0xff]  ;;  %s219_s15 = scalar_lea.vmem %s3352_s4, %s2035_s28 }
  0x16   : > { %2395 = vmatprep.mubr.msk.f32.mxu1 %vm241_vm0, %v231_v5  ;;  %2384 = vmatmul.mubr.msk.f32.vlgmr.msra.gmra.mxu0 %vm241_vm0, %v224_v6  ;;  %v226_v12 = vld [vmem:[%s2832_s9 + $0x18] sm:$0xff]  ;;  %v227_v14 = vld [vmem:[%s2832_s9 + $0x20] sm:$0xff]  ;;  %v228_v18 = vld [vmem:[%s2832_s9 + $0x28] sm:$0xff] }
  0x17   : > { %2396 = vmatmul.mubr.msk.f32.vlgmr.msra.gmra.mxu1 %vm241_vm0, %v232_v7  ;;  %2436 = vmatpush3.msra.mxu0 %v2106_v3  ;;  %v234_v13 = vld [vmem:[%s2832_s9 + $0x58] sm:$0xff]  ;;  %v2856_v15 = vld [vmem:[%s2832_s9 + $0x60] sm:$0xff]  ;;  %v2871_v19 = vld [vmem:[%s2832_s9 + $0x68] sm:$0xff] }
  0x18   : > { %2408 = vmatpush3.msra.mxu1 %v2071_v2  ;;  %2386 = vmatprep.mubr.msk.f32.mxu0 %vm241_vm0, %v225_v8  ;;  %v229_v20 = vld [vmem:[%s2832_s9 + $0x30] sm:$0xff]  ;;  %v230_v22 = vld [vmem:[%s2832_s9 + $0x38] sm:$0xff]  ;;  %v2097_v26 = vld [vmem:[%s2832_s9 + $0x80] sm:$0xff] }
  0x19   : > { %2398 = vmatprep.mubr.msk.f32.mxu1 %vm241_vm0, %v233_v9  ;;  %2409 = vmatprep.subr.mxu1 %v2070_v10  ;;  %v2875_v21 = vld [vmem:[%s2832_s9 + $0x70] sm:$0xff]  ;;  %v238_v23 = vld [vmem:[%s2832_s9 + $0x78] sm:$0xff]  ;;  %v2098_v27 = vld [vmem:[%s2832_s9 + $0x88] sm:$0xff] }
  0x1a   : > { %2437 = vmatprep.subr.mxu0 %v2105_v11  ;;  %2387 = vmatmul.mubr.msk.f32.gmra.mxu0 %vm241_vm0, %v226_v12  ;;  %v2099_v28 = vld [vmem:[%s2832_s9 + $0x90] sm:$0xff]  ;;  %v2100_v29 = vld [vmem:[%s2832_s9 + $0x98] sm:$0xff]  ;;  %v2101_v30 = vld [vmem:[%s2832_s9 + $0xa0] sm:$0xff] }
  0x1b   : > { %2399 = vmatmul.mubr.msk.f32.gmra.mxu1 %vm241_vm0, %v234_v13  ;;  %2389 = vmatprep.mubr.msk.f32.mxu0 %vm241_vm0, %v227_v14  ;;  %v2102_v31 = vld [vmem:[%s2832_s9 + $0xa8] sm:$0xff]  ;;  %v2103_v32 = vld [vmem:[%s2832_s9 + $0xb0] sm:$0xff]  ;;  %v2104_v33 = vld [vmem:[%s2832_s9 + $0xb8] sm:$0xff] }
  0x1c   : > { %2401 = vmatprep.mubr.msk.f32.mxu1 %vm241_vm0, %v2856_v15  ;;  %2410 = vmatpush3.msra.mxu1 %v2070_v10  ;;  %v2167_v34 = vld [vmem:[%s2832_s9 + $0xc0] sm:$0xff]  ;;  %v2168_v35 = vld [vmem:[%s2832_s9 + $0xc8] sm:$0xff]  ;;  %v2169_v36 = vld [vmem:[%s2832_s9 + $0xd0] sm:$0xff] }
  0x1d   : > { %2438 = vmatpush3.msra.mxu0 %v2105_v11  ;;  %2463 = vmatprep.subr.mxu1 %v2141_v16  ;;  %v2170_v37 = vld [vmem:[%s2832_s9 + $0xd8] sm:$0xff]  ;;  %v2171_v38 = vld [vmem:[%s2832_s9 + $0xe0] sm:$0xff]  ;;  %v2172_v39 = vld [vmem:[%s2832_s9 + $0xe8] sm:$0xff] }
  0x1e   : > { %2491 = vmatprep.subr.mxu0 %v2176_v17  ;;  %2390 = vmatmul.mubr.msk.f32.gmra.mxu0 %vm241_vm0, %v228_v18  ;;  %v2173_v40 = vld [vmem:[%s2832_s9 + $0xf0] sm:$0xff]  ;;  %v2174_v41 = vld [vmem:[%s2832_s9 + $0xf8] sm:$0xff] }
  0x1f   : > { %2402 = vmatmul.mubr.msk.f32.gmra.mxu1 %vm241_vm0, %v2871_v19  ;;  %2392 = vmatprep.mubr.msk.f32.mxu0 %vm241_vm0, %v229_v20 }
  0x20   : > { %2404 = vmatprep.mubr.msk.f32.mxu1 %vm241_vm0, %v2875_v21 }
  0x22   : > { %2393 = vmatmul.mubr.msk.f32.gmra.mxu0 %vm241_vm0, %v230_v22 }
  0x23   : > { %2405 = vmatmul.mubr.msk.f32.gmra.mxu1 %vm241_vm0, %v238_v23  ;;  %2439 = vmatprep.mubr.msk.f32.mxu0 %vm241_vm0, %v231_v5 }
  0x24   : > { %2411 = vmatprep.mubr.msk.f32.mxu1 %vm241_vm0, %v227_v14 }
  0x26   : > { %2440 = vmatmul.mubr.msk.f32.vlgmr.msra.gmra.mxu0 %vm241_vm0, %v232_v7 }
  0x27   : > { %2412 = vmatmul.mubr.msk.f32.vlgmr.msra.gmra.mxu1 %vm241_vm0, %v228_v18  ;;  %2492 = vmatpush3.msra.mxu0 %v2176_v17 }
  0x28   : > { %2464 = vmatpush3.msra.mxu1 %v2141_v16  ;;  %2414 = vmatprep.mubr.msk.f32.mxu1 %vm241_vm0, %v229_v20 }
  0x29   : > { %2442 = vmatprep.mubr.msk.f32.mxu0 %vm241_vm0, %v233_v9  ;;  %2465 = vmatprep.subr.mxu1 %v2140_v24 }
  0x2a   : > { %2493 = vmatprep.subr.mxu0 %v2175_v25  ;;  %2443 = vmatmul.mubr.msk.f32.gmra.mxu0 %vm241_vm0, %v234_v13 }
  0x2b   : > { %2415 = vmatmul.mubr.msk.f32.gmra.mxu1 %vm241_vm0, %v230_v22  ;;  %2445 = vmatprep.mubr.msk.f32.mxu0 %vm241_vm0, %v2856_v15 }
  0x2c   : > { %2417 = vmatprep.mubr.msk.f32.mxu1 %vm241_vm0, %v231_v5  ;;  %2466 = vmatpush3.msra.mxu1 %v2140_v24 }
  0x2d   : > { %2494 = vmatpush3.msra.mxu0 %v2175_v25 }
  0x2e   : > { %2446 = vmatmul.mubr.msk.f32.gmra.mxu0 %vm241_vm0, %v2871_v19 }
  0x2f   : > { %2418 = vmatmul.mubr.msk.f32.gmra.mxu1 %vm241_vm0, %v232_v7  ;;  %2448 = vmatprep.mubr.msk.f32.mxu0 %vm241_vm0, %v2875_v21 }
  0x30   : > { %2420 = vmatprep.mubr.msk.f32.mxu1 %vm241_vm0, %v233_v9 }
  0x32   : > { %2449 = vmatmul.mubr.msk.f32.gmra.mxu0 %vm241_vm0, %v238_v23 }
  0x33   : > { %2421 = vmatmul.mubr.msk.f32.gmra.mxu1 %vm241_vm0, %v234_v13  ;;  %2451 = vmatprep.mubr.msk.f32.mxu0 %vm241_vm0, %v2097_v26 }
  0x34   : > { %2423 = vmatprep.mubr.msk.f32.mxu1 %vm241_vm0, %v2856_v15 }
  0x36   : > { %2452 = vmatmul.mubr.msk.f32.gmra.mxu0 %vm241_vm0, %v2098_v27 }
  0x37   : > { %2424 = vmatmul.mubr.msk.f32.gmra.mxu1 %vm241_vm0, %v2871_v19  ;;  %2454 = vmatprep.mubr.msk.f32.mxu0 %vm241_vm0, %v2099_v28 }
  0x38   : > { %2426 = vmatprep.mubr.msk.f32.mxu1 %vm241_vm0, %v2875_v21 }
  0x3a   : > { %2455 = vmatmul.mubr.msk.f32.gmra.mxu0 %vm241_vm0, %v2100_v29 }
  0x3b   : > { %2427 = vmatmul.mubr.msk.f32.gmra.mxu1 %vm241_vm0, %v238_v23  ;;  %2457 = vmatprep.mubr.msk.f32.mxu0 %vm241_vm0, %v2101_v30 }
  0x3c   : > { %2429 = vmatprep.mubr.msk.f32.mxu1 %vm241_vm0, %v2097_v26 }
  0x3e   : > { %2458 = vmatmul.mubr.msk.f32.gmra.mxu0 %vm241_vm0, %v2102_v31 }
  0x3f   : > { %2430 = vmatmul.mubr.msk.f32.gmra.mxu1 %vm241_vm0, %v2098_v27  ;;  %2460 = vmatprep.mubr.msk.f32.mxu0 %vm241_vm0, %v2103_v32 }
  0x40   : > { %2432 = vmatprep.mubr.msk.f32.mxu1 %vm241_vm0, %v2099_v28 }
  0x42   : > { %2461 = vmatmul.mubr.msk.f32.gmra.mxu0 %vm241_vm0, %v2104_v33 }
  0x43   : > { %2433 = vmatmul.mubr.msk.f32.gmra.mxu1 %vm241_vm0, %v2100_v29  ;;  %2495 = vmatprep.mubr.msk.f32.mxu0 %vm241_vm0, %v2097_v26 }
  0x44   : > { %2467 = vmatprep.mubr.msk.f32.mxu1 %vm241_vm0, %v2856_v15 }
  0x46   : > { %2496 = vmatmul.mubr.msk.f32.vlgmr.msra.gmra.mxu0 %vm241_vm0, %v2098_v27 }
  0x47   : > { %2468 = vmatmul.mubr.msk.f32.vlgmr.msra.gmra.mxu1 %vm241_vm0, %v2871_v19  ;;  %2498 = vmatprep.mubr.msk.f32.mxu0 %vm241_vm0, %v2099_v28 }
  0x48   : > { %2470 = vmatprep.mubr.msk.f32.mxu1 %vm241_vm0, %v2875_v21 }
  0x4a   : > { %2499 = vmatmul.mubr.msk.f32.gmra.mxu0 %vm241_vm0, %v2100_v29 }
  0x4b   : > { %2471 = vmatmul.mubr.msk.f32.gmra.mxu1 %vm241_vm0, %v238_v23  ;;  %2501 = vmatprep.mubr.msk.f32.mxu0 %vm241_vm0, %v2101_v30 }
  0x4c   : > { %2473 = vmatprep.mubr.msk.f32.mxu1 %vm241_vm0, %v2097_v26 }
  0x4e   : > { %2502 = vmatmul.mubr.msk.f32.gmra.mxu0 %vm241_vm0, %v2102_v31 }
  0x4f   : > { %2474 = vmatmul.mubr.msk.f32.gmra.mxu1 %vm241_vm0, %v2098_v27  ;;  %2504 = vmatprep.mubr.msk.f32.mxu0 %vm241_vm0, %v2103_v32 }
  0x50   : > { %2476 = vmatprep.mubr.msk.f32.mxu1 %vm241_vm0, %v2099_v28 }
  0x52   : > { %2505 = vmatmul.mubr.msk.f32.gmra.mxu0 %vm241_vm0, %v2104_v33 }
  0x53   : > { %2477 = vmatmul.mubr.msk.f32.gmra.mxu1 %vm241_vm0, %v2100_v29  ;;  %2507 = vmatprep.mubr.msk.f32.mxu0 %vm241_vm0, %v2167_v34 }
  0x54   : > { %2479 = vmatprep.mubr.msk.f32.mxu1 %vm241_vm0, %v2101_v30 }
  0x56   : > { %2508 = vmatmul.mubr.msk.f32.gmra.mxu0 %vm241_vm0, %v2168_v35 }
  0x57   : > { %2480 = vmatmul.mubr.msk.f32.gmra.mxu1 %vm241_vm0, %v2102_v31  ;;  %2510 = vmatprep.mubr.msk.f32.mxu0 %vm241_vm0, %v2169_v36 }
  0x58   : > { %2482 = vmatprep.mubr.msk.f32.mxu1 %vm241_vm0, %v2103_v32 }
  0x5a   : > { %2511 = vmatmul.mubr.msk.f32.gmra.mxu0 %vm241_vm0, %v2170_v37 }
  0x5b   : > { %2483 = vmatmul.mubr.msk.f32.gmra.mxu1 %vm241_vm0, %v2104_v33  ;;  %2513 = vmatprep.mubr.msk.f32.mxu0 %vm241_vm0, %v2171_v38 }
  0x5c   : > { %2485 = vmatprep.mubr.msk.f32.mxu1 %vm241_vm0, %v2167_v34 }
  0x5e   : > { %2514 = vmatmul.mubr.msk.f32.gmra.mxu0 %vm241_vm0, %v2172_v39 }
  0x5f   : > { %2486 = vmatmul.mubr.msk.f32.gmra.mxu1 %vm241_vm0, %v2168_v35  ;;  %2516 = vmatprep.mubr.msk.f32.mxu0 %vm241_vm0, %v2173_v40 }
  0x60   : > { %2488 = vmatprep.mubr.msk.f32.mxu1 %vm241_vm0, %v2169_v36 }
  0x62   : > { %2517 = vmatmul.mubr.msk.f32.gmra.mxu0 %vm241_vm0, %v2174_v41 }
  0x63   : > { %2489 = vmatmul.mubr.msk.f32.gmra.mxu1 %vm241_vm0, %v2170_v37  ;;  %2589 = vmatprep.mubr.f32.mxu0 %v2194_v43 }
  0x64   : > { %2551 = vmatprep.mubr.f32.mxu1 %v1554_v42 }
  0xd6   : > { %v2385_v44 = vpop.f32.mrf.mxu0 }
  0xd7   : > { %v2988_v45 = vpop.f32.mrf.mxu1 }
  0xd8   : > { %v356_v46 = vpop.f32.mrf.mxu0 }
  0xd9   : > { %v2990_v47 = vpop.f32.mrf.mxu1 }
  0xda   : > { %v2388_v48 = vpop.f32.mrf.mxu0 }
  0xdb   : > { %v2992_v49 = vpop.f32.mrf.mxu1 }
  0xdc   : > { %v366_v50 = vpop.f32.mrf.mxu0 }
  0xdd   : > { %v2994_v51 = vpop.f32.mrf.mxu1 }
  0xde   : > { %v2391_v52 = vpop.f32.mrf.mxu0 }
  0xdf   : > { %v2996_v53 = vpop.f32.mrf.mxu1 }
  0xe0   : > { %v376_v54 = vpop.f32.mrf.mxu0 }
  0xe1   : > { %v2998_v55 = vpop.f32.mrf.mxu1 }
  0xe2   : > { %v3000_v56 = vpop.f32.mrf.mxu0 }
  0xe3   : > { %v3002_v57 = vpop.f32.mrf.mxu1 }
  0xe4   : > { %v3004_v58 = vpop.f32.mrf.mxu0 }
  0xe5   : > { %v3006_v59 = vpop.f32.mrf.mxu1 }
  0xe6   : > { %v2441_v61 = vpop.f32.mrf.mxu0 }
  0xe7   : > { %v2413_v60 = vpop.f32.mrf.mxu1 }
  0xe8   : > { %v682_v62 = vadd.f32 %v2413_v60, %v2385_v44  ;;  %v848_v0 = vpop.f32.mrf.mxu0 }
  0xe9   : > { %v586_v63 = vpop.f32.mrf.mxu1 }
  0xea   : > { %v3008_v1 = vadd.f32 %v2441_v61, %v682_v62  ;;  %v681_v2 = vadd.f32 %v586_v63, %v356_v46  ;;  %v2444_v4 = vpop.f32.mrf.mxu0 }
  0xeb   : > { %v2416_v3 = vpop.f32.mrf.mxu1 }
  0xec   : > { %3353 = vst [vmem:[#allocation3_spill] sm:$0xff] %v3008_v1  ;;  %v3010_v5 = vadd.f32 %v848_v0, %v681_v2  ;;  %v684_v6 = vadd.f32 %v2416_v3, %v2388_v48  ;;  %v858_v8 = vpop.f32.mrf.mxu0 }
  0xed   : > { %v596_v7 = vpop.f32.mrf.mxu1 }
  0xee   : > { %3354 = vst [vmem:[#allocation4_spill] sm:$0xff] %v3010_v5  ;;  %v3012_v9 = vadd.f32 %v2444_v4, %v684_v6  ;;  %v683_v10 = vadd.f32 %v596_v7, %v366_v50  ;;  %v2447_v12 = vpop.f32.mrf.mxu0 }
  0xef   : > { %v2419_v11 = vpop.f32.mrf.mxu1 }
  0xf0   : > { %v3014_v13 = vadd.f32 %v858_v8, %v683_v10  ;;  %v686_v14 = vadd.f32 %v2419_v11, %v2391_v52  ;;  %v868_v16 = vpop.f32.mrf.mxu0 }
  0xf1   : > { %v606_v15 = vpop.f32.mrf.mxu1 }
  0xf2   : > { %3355 = vst [vmem:[#allocation5_spill] sm:$0xff] %v3014_v13  ;;  %v3016_v17 = vadd.f32 %v2447_v12, %v686_v14  ;;  %v685_v18 = vadd.f32 %v606_v15, %v376_v54  ;;  %v3020_v20 = vpop.f32.mrf.mxu0 }
  0xf3   : > { %v3018_v19 = vpop.f32.mrf.mxu1 }
  0xf4   : > { %v3022_v21 = vadd.f32 %v868_v16, %v685_v18  ;;  %v3026_v23 = vpop.f32.mrf.mxu0 }
  0xf5   : > { %v3024_v22 = vpop.f32.mrf.mxu1 }
  0xf6   : > { %v3028_v25 = vpop.f32.mrf.mxu0 }
  0xf7   : > { %v2425_v24 = vpop.f32.mrf.mxu1 }
  0xf8   : > { %v3030_v27 = vpop.f32.mrf.mxu0 }
  0xf9   : > { %v626_v26 = vpop.f32.mrf.mxu1 }
  0xfa   : > { %v2456_v29 = vpop.f32.mrf.mxu0 }
  0xfb   : > { %v2428_v28 = vpop.f32.mrf.mxu1 }
  0xfc   : > { %v898_v31 = vpop.f32.mrf.mxu0 }
  0xfd   : > { %v636_v30 = vpop.f32.mrf.mxu1 }
  0xfe   : > { %v2459_v33 = vpop.f32.mrf.mxu0  ;;  %v691_v5 = vadd.f32 %v636_v30, %v2994_v51 }
  0xff   : > { %v2431_v32 = vpop.f32.mrf.mxu1 }
 0x100   : > { %v908_v35 = vpop.f32.mrf.mxu0  ;;  %v694_v11 = vadd.f32 %v2431_v32, %v2996_v53  ;;  %v690_v32 = vadd.f32 %v2425_v24, %v2988_v45  ;;  %v3080_v45 = vld [vmem:[%s3350_s2] ss:$0 sm:$0xff] }
 0x101   : > { %v646_v34 = vpop.f32.mrf.mxu1 }
 0x102   : > { %v2462_v37 = vpop.f32.mrf.mxu0  ;;  %v693_v15 = vadd.f32 %v646_v34, %v2998_v55 }
 0x103   : > { %v2434_v36 = vpop.f32.mrf.mxu1 }
 0x104   : > { %v918_v39 = vpop.f32.mrf.mxu0  ;;  %v696_v16 = vadd.f32 %v2434_v36, %v3002_v57  ;;  %v955_v1 = vadd.f32 %v908_v35, %v693_v15  ;;  %v688_v35 = vadd.f32 %v3018_v19, %v3000_v56 }
 0x105   : > { %v656_v38 = vpop.f32.mrf.mxu1 }
 0x106   : > { %v3034_v41 = vpop.f32.mrf.mxu0 }
 0x107   : > { %v3032_v40 = vpop.f32.mrf.mxu1  ;;  %3357 = vst [vmem:[#allocation7_spill] sm:$0xff] %v3034_v41  ;;  %v692_v41 = vadd.f32 %v2428_v28, %v2992_v49  ;;  %v689_v49 = vadd.f32 %v626_v26, %v2990_v47  ;;  %v953_v28 = vadd.f32 %v898_v31, %v691_v5 }
 0x108   : > { %3356 = vst [vmem:[#allocation6_spill] sm:$0xff] %v3032_v40  ;;  %v3038_v43 = vpop.f32.mrf.mxu0 }
 0x109   : > { %v3036_v42 = vpop.f32.mrf.mxu1  ;;  %3359 = vst [vmem:[#allocation9_spill] sm:$0xff] %v3038_v43  ;;  %v954_v34 = vadd.f32 %v2456_v29, %v692_v41  ;;  %v951_v26 = vadd.f32 %v3030_v27, %v689_v49  ;;  %v950_v41 = vadd.f32 %v3020_v20, %v688_v35 }
 0x10a   : > { %3358 = vst [vmem:[#allocation8_spill] sm:$0xff] %v3036_v42  ;;  %v3042_v46 = vpop.f32.mrf.mxu0  ;;  %v695_v42 = vadd.f32 %v656_v38, %v3006_v59 }
 0x10b   : > { %v3040_v44 = vpop.f32.mrf.mxu1  ;;  %3360 = vst [vmem:[#allocation10_spill] sm:$0xff] %v3042_v46 }
 0x10c   : > { %v3046_v50 = vpop.f32.mrf.mxu0  ;;  %v957_v57 = vadd.f32 %v918_v39, %v695_v42 }
 0x10d   : > { %v3044_v48 = vpop.f32.mrf.mxu1  ;;  %3362 = vst [vmem:[#allocation12_spill] sm:$0xff] %v3046_v50  ;;  %v956_v50 = vadd.f32 %v2459_v33, %v694_v11 }
 0x10e   : > { %3361 = vst [vmem:[#allocation11_spill] sm:$0xff] %v3044_v48  ;;  %v3050_v54 = vpop.f32.mrf.mxu0 }
 0x10f   : > { %v3048_v52 = vpop.f32.mrf.mxu1 }
 0x110   : > { %v3054_v61 = vpop.f32.mrf.mxu0 }
 0x111   : > { %v3052_v60 = vpop.f32.mrf.mxu1  ;;  %3363 = vst [vmem:[#allocation13_spill] sm:$0xff] %v3054_v61  ;;  %v958_v61 = vadd.f32 %v2462_v37, %v696_v16  ;;  %v952_v37 = vadd.f32 %v3028_v25, %v690_v32  ;;  %v3368_v16 = vld [vmem:[#allocation6_spill] sm:$0xff] }
 0x112   : > { %v3058_v63 = vpop.f32.mrf.mxu0 }
 0x113   : > { %v3056_v62 = vpop.f32.mrf.mxu1 }
 0x114   : > { %v3062_v2 = vpop.f32.mrf.mxu0 }
 0x115   : > { %v3060_v0 = vpop.f32.mrf.mxu1  ;;  %v3365_v11 = vld [vmem:[#allocation11_spill] sm:$0xff] }
 0x116   : > { %v2509_v4 = vpop.f32.mrf.mxu0 }
 0x117   : > { %v2481_v3 = vpop.f32.mrf.mxu1 }
 0x118   : > { %v3064_v7 = vpop.f32.mrf.mxu0  ;;  %v1214_v31 = vadd.f32 %v2481_v3, %v952_v37  ;;  %v1210_v3 = vadd.f32 %v3048_v52, %v3016_v17 }
 0x119   : > { %v1150_v6 = vpop.f32.mrf.mxu1 }
 0x11a   : > { %v2512_v10 = vpop.f32.mrf.mxu0  ;;  %v1213_v42 = vadd.f32 %v1150_v6, %v951_v26  ;;  %v1476_v27 = vadd.f32 %v2509_v4, %v1214_v31 }
 0x11b   : > { %v2484_v8 = vpop.f32.mrf.mxu1 }
 0x11c   : > { %v1422_v14 = vpop.f32.mrf.mxu0  ;;  %v1216_v59 = vadd.f32 %v2484_v8, %v954_v34 }
 0x11d   : > { %v1160_v12 = vpop.f32.mrf.mxu1 }
 0x11e   : > { %v2515_v43 = vpop.f32.mrf.mxu0  ;;  %v1215_v24 = vadd.f32 %v1160_v12, %v953_v28  ;;  %v1478_v56 = vadd.f32 %v2512_v10, %v1216_v59  ;;  %v1472_v10 = vadd.f32 %v3050_v54, %v1210_v3  ;;  %v3367_v54 = vld [vmem:[#allocation3_spill] sm:$0xff]  ;;  %v3372_v28 = vld [vmem:[#allocation12_spill] sm:$0xff] }
 0x11f   : > { %v2487_v18 = vpop.f32.mrf.mxu1 }
 0x120   : > { %v1432_v40 = vpop.f32.mrf.mxu0  ;;  %v1218_v53 = vadd.f32 %v2487_v18, %v956_v50  ;;  %v1533_v20 = vadd.f32 %v3080_v45, %v1478_v56  ;;  %v1475_v50 = vadd.f32 %v3064_v7, %v1213_v42  ;;  %v1209_v7 = vadd.f32 %v3052_v60, %v3022_v21  ;;  %v1557_v42 = vld [vmem:[%s3351_s3 + $0x18] sm:$0xff] }
 0x121   : > { %v1170_v46 = vpop.f32.mrf.mxu1  ;;  %v1206_v18 = vadd.f32 %v3368_v16, %v3367_v54 }
 0x122   : > { %v2518_v55 = vpop.f32.mrf.mxu0  ;;  %v1217_v36 = vadd.f32 %v1170_v46, %v955_v1  ;;  %v1480_v38 = vadd.f32 %v2515_v43, %v1218_v53  ;;  %v3120_v6 = vmax.f32 %v1533_v20, 0.0  ;;  %v1530_v17 = vadd.f32 %v3080_v45, %v1475_v50  ;;  %v3369_v53 = vld [vmem:[#allocation10_spill] sm:$0xff]  ;;  %v2204_v20 = vld [vmem:[%s3351_s3 + $0x70] sm:$0xff] }
 0x123   : > { %v2490_v48 = vpop.f32.mrf.mxu1 }
 0x124   : > { %v1220_v13 = vadd.f32 %v2490_v48, %v958_v61  ;;  %v1442_v1 = vpop.f32.mrf.mxu0  ;;  %v1479_v29 = vadd.f32 %v1432_v40, %v1217_v36  ;;  %v1535_v19 = vadd.f32 %v3080_v45, %v1480_v38  ;;  %v1477_v40 = vadd.f32 %v1422_v14, %v1215_v24  ;;  %v3366_v14 = vld [vmem:[#allocation13_spill] sm:$0xff]  ;;  %v3371_v36 = vld [vmem:[#allocation8_spill] sm:$0xff] }
 0x125   : > { %v1180_v33 = vpop.f32.mrf.mxu1  ;;  %v1471_v15 = vadd.f32 %v3366_v14, %v1209_v7 }
 0x126   : > { %v1482_v51 = vadd.f32 %v2518_v55, %v1220_v13  ;;  %v1219_v30 = vadd.f32 %v1180_v33, %v957_v57  ;;  %v687_v13 = vadd.f32 %v3024_v22, %v3004_v58  ;;  %v1534_v43 = vadd.f32 %v3080_v45, %v1479_v29  ;;  %v3370_v57 = vld [vmem:[#allocation4_spill] sm:$0xff] }
 0x127   : > { %v1212_v22 = vadd.f32 %v3056_v62, %v950_v41  ;;  %v3101_v48 = vmax.f32 %v1535_v19, 0.0  ;;  %v1532_v61 = vadd.f32 %v3080_v45, %v1477_v40  ;;  %v1527_v55 = vadd.f32 %v3080_v45, %v1472_v10  ;;  %v1555_v19 = vld [vmem:[%s3351_s3 + $0x8] sm:$0xff]  ;;  %v2196_v41 = vld [vmem:[%s3351_s3 + $0x30] sm:$0xff]  ;;  %v2197_v40 = vld [vmem:[%s3351_s3 + $0x38] sm:$0xff] }
 0x128   : > { %v1537_v47 = vadd.f32 %v3080_v45, %v1482_v51  ;;  %v1481_v5 = vadd.f32 %v1442_v1, %v1219_v30  ;;  %v949_v58 = vadd.f32 %v3026_v23, %v687_v13  ;;  %v3110_v62 = vmax.f32 %v1534_v43, 0.0  ;;  %v3373_v51 = vld [vmem:[#allocation7_spill] sm:$0xff]  ;;  %v3374_v1 = vld [vmem:[#allocation9_spill] sm:$0xff] }
 0x129   : > { %v1474_v4 = vadd.f32 %v3058_v63, %v1212_v22  ;;  %v3130_v52 = vmax.f32 %v1532_v61, 0.0  ;;  %v1208_v63 = vadd.f32 %v3040_v44, %v3012_v9  ;;  %v3150_v44 = vmax.f32 %v1530_v17, 0.0  ;;  %v2198_v43 = vld [vmem:[%s3351_s3 + $0x40] sm:$0xff]  ;;  %v2203_v22 = vld [vmem:[%s3351_s3 + $0x68] sm:$0xff] }
 0x12a   : > { %v3087_v25 = vmax.f32 %v1537_v47, 0.0  ;;  %v1536_v39 = vadd.f32 %v3080_v45, %v1481_v5  ;;  %v1211_v23 = vadd.f32 %v3060_v0, %v949_v58  ;;  %v1531_v0 = vadd.f32 %v3080_v45, %v1476_v27  ;;  %v2199_v58 = vld [vmem:[%s3351_s3 + $0x48] sm:$0xff]  ;;  %v2200_v27 = vld [vmem:[%s3351_s3 + $0x50] sm:$0xff] }
 0x12b   : > { %v1529_v21 = vadd.f32 %v3080_v45, %v1474_v4  ;;  %v1470_v32 = vadd.f32 %v3369_v53, %v1208_v63  ;;  %v1205_v49 = vadd.f32 %v3371_v36, %v3370_v57  ;;  %v1526_v59 = vadd.f32 %v3080_v45, %v1471_v15 }
 0x12c   : > { %v3092_v46 = vmax.f32 %v1536_v39, 0.0  ;;  %2519 = vmatprep.subr.mxu1 %v3087_v25  ;;  %2557 = vmatprep.subr.mxu0 %v3087_v25  ;;  %v1473_v8 = vadd.f32 %v3062_v2, %v1211_v23  ;;  %v3140_v60 = vmax.f32 %v1531_v0, 0.0  ;;  %v3364_v2 = vld [vmem:[#allocation5_spill] sm:$0xff]  ;;  %v1468_v30 = vadd.f32 %v3373_v51, %v1206_v18  ;;  %v2195_v39 = vld [vmem:[%s3351_s3 + $0x28] sm:$0xff]  ;;  %v2205_v23 = vld [vmem:[%s3351_s3 + $0x78] sm:$0xff] }
 0x12d   : > { %2520 = vmatpush3.msra.mxu1 %v3087_v25  ;;  %2558 = vmatpush3.msra.mxu0 %v3087_v25  ;;  %v1207_v12 = vadd.f32 %v3365_v11, %v3364_v2  ;;  %v3160_v34 = vmax.f32 %v1529_v21, 0.0  ;;  %v1525_v35 = vadd.f32 %v3080_v45, %v1470_v32  ;;  %v3178_v37 = vmax.f32 %v1527_v55, 0.0 }
 0x12e   : > { %2521 = vmatprep.subr.mxu1 %v3092_v46  ;;  %2559 = vmatprep.subr.mxu0 %v3092_v46  ;;  %v1528_v9 = vadd.f32 %v3080_v45, %v1473_v8  ;;  %v1467_v24 = vadd.f32 %v3374_v1, %v1205_v49  ;;  %v3186_v47 = vmax.f32 %v1526_v59, 0.0  ;;  %v1523_v5 = vadd.f32 %v3080_v45, %v1468_v30 }
 0x12f   : > { %2522 = vmatpush3.msra.mxu1 %v3092_v46  ;;  %2560 = vmatpush3.msra.mxu0 %v3092_v46  ;;  %v1469_v33 = vadd.f32 %v3372_v28, %v1207_v12  ;;  %v3193_v13 = vmax.f32 %v1525_v35, 0.0 }
 0x130   : > { %2523 = vmatprep.subr.mxu1 %v3101_v48  ;;  %2561 = vmatprep.subr.mxu0 %v3101_v48  ;;  %v3170_v38 = vmax.f32 %v1528_v9, 0.0  ;;  %v1522_v26 = vadd.f32 %v3080_v45, %v1467_v24  ;;  %v3206_v56 = vmax.f32 %v1523_v5, 0.0 }
 0x131   : > { %2524 = vmatpush3.msra.mxu1 %v3101_v48  ;;  %2562 = vmatpush3.msra.mxu0 %v3101_v48  ;;  %v1524_v29 = vadd.f32 %v3080_v45, %v1469_v33 }
 0x132   : > { %2525 = vmatprep.subr.mxu1 %v3110_v62  ;;  %2563 = vmatprep.subr.mxu0 %v3110_v62  ;;  %v3212_v45 = vmax.f32 %v1522_v26, 0.0 }
 0x133   : > { %2526 = vmatpush3.msra.mxu1 %v3110_v62  ;;  %2564 = vmatpush3.msra.mxu0 %v3110_v62  ;;  %v3200_v31 = vmax.f32 %v1524_v29, 0.0 }
 0x134   : > { %2527 = vmatprep.subr.mxu1 %v3120_v6  ;;  %2565 = vmatprep.subr.mxu0 %v3120_v6 }
 0x135   : > { %2528 = vmatpush3.msra.mxu1 %v3120_v6  ;;  %2566 = vmatpush3.msra.mxu0 %v3120_v6 }
 0x136   : > { %2529 = vmatprep.subr.mxu1 %v3130_v52  ;;  %2567 = vmatprep.subr.mxu0 %v3130_v52 }
 0x137   : > { %2530 = vmatpush3.msra.mxu1 %v3130_v52  ;;  %2568 = vmatpush3.msra.mxu0 %v3130_v52 }
 0x138   : > { %2531 = vmatprep.subr.mxu1 %v3140_v60  ;;  %2569 = vmatprep.subr.mxu0 %v3140_v60 }
 0x139   : > { %2532 = vmatpush3.msra.mxu1 %v3140_v60  ;;  %2570 = vmatpush3.msra.mxu0 %v3140_v60 }
 0x13a   : > { %2533 = vmatprep.subr.mxu1 %v3150_v44  ;;  %2571 = vmatprep.subr.mxu0 %v3150_v44 }
 0x13b   : > { %2534 = vmatpush3.msra.mxu1 %v3150_v44  ;;  %2572 = vmatpush3.msra.mxu0 %v3150_v44 }
 0x13c   : > { %2535 = vmatprep.subr.mxu1 %v3160_v34  ;;  %2573 = vmatprep.subr.mxu0 %v3160_v34 }
 0x13d   : > { %2536 = vmatpush3.msra.mxu1 %v3160_v34  ;;  %2574 = vmatpush3.msra.mxu0 %v3160_v34 }
 0x13e   : > { %2537 = vmatprep.subr.mxu1 %v3170_v38  ;;  %2575 = vmatprep.subr.mxu0 %v3170_v38 }
 0x13f   : > { %2538 = vmatpush3.msra.mxu1 %v3170_v38  ;;  %2576 = vmatpush3.msra.mxu0 %v3170_v38 }
 0x140   : > { %2539 = vmatprep.subr.mxu1 %v3178_v37  ;;  %2577 = vmatprep.subr.mxu0 %v3178_v37 }
 0x141   : > { %2540 = vmatpush3.msra.mxu1 %v3178_v37  ;;  %2578 = vmatpush3.msra.mxu0 %v3178_v37 }
 0x142   : > { %2541 = vmatprep.subr.mxu1 %v3186_v47  ;;  %2579 = vmatprep.subr.mxu0 %v3186_v47 }
 0x143   : > { %2542 = vmatpush3.msra.mxu1 %v3186_v47  ;;  %2580 = vmatpush3.msra.mxu0 %v3186_v47 }
 0x144   : > { %2543 = vmatprep.subr.mxu1 %v3193_v13  ;;  %2581 = vmatprep.subr.mxu0 %v3193_v13 }
 0x145   : > { %2544 = vmatpush3.msra.mxu1 %v3193_v13  ;;  %2582 = vmatpush3.msra.mxu0 %v3193_v13 }
 0x146   : > { %2545 = vmatprep.subr.mxu1 %v3200_v31  ;;  %2583 = vmatprep.subr.mxu0 %v3200_v31 }
 0x147   : > { %2546 = vmatpush3.msra.mxu1 %v3200_v31  ;;  %2584 = vmatpush3.msra.mxu0 %v3200_v31 }
 0x148   : > { %2547 = vmatprep.subr.mxu1 %v3206_v56  ;;  %2585 = vmatprep.subr.mxu0 %v3206_v56 }
 0x149   : > { %2548 = vmatpush3.msra.mxu1 %v3206_v56  ;;  %2586 = vmatpush3.msra.mxu0 %v3206_v56 }
 0x14a   : > { %2549 = vmatprep.subr.mxu1 %v3212_v45  ;;  %2587 = vmatprep.subr.mxu0 %v3212_v45 }
 0x14b   : > { %2550 = vmatpush3.msra.mxu1 %v3212_v45  ;;  %2588 = vmatpush3.msra.mxu0 %v3212_v45 }
 0x14c   : > { %2552 = vmatmul.mubr.f32.vlgmr.msra.gmra.mxu1 %v1555_v19  ;;  %2590 = vmatmul.mubr.f32.vlgmr.msra.gmra.mxu0 %v2195_v39 }
 0x14d   : > { %2595 = vmatprep.subr.mxu1 %v3087_v25  ;;  %2633 = vmatprep.subr.mxu0 %v3087_v25 }
 0x14e   : > { %2596 = vmatpush3.msra.mxu1 %v3087_v25  ;;  %2634 = vmatpush3.msra.mxu0 %v3087_v25  ;;  %v1556_v25 = vld [vmem:[%s3351_s3 + $0x10] sm:$0xff] }
 0x14f   : > { %2597 = vmatprep.subr.mxu1 %v3092_v46  ;;  %2635 = vmatprep.subr.mxu0 %v3092_v46 }
 0x150   : > { %2598 = vmatpush3.msra.mxu1 %v3092_v46  ;;  %2636 = vmatpush3.msra.mxu0 %v3092_v46  ;;  %v2202_v46 = vld [vmem:[%s3351_s3 + $0x60] sm:$0xff] }
 0x151   : > { %2599 = vmatprep.subr.mxu1 %v3101_v48  ;;  %2637 = vmatprep.subr.mxu0 %v3101_v48 }
 0x152   : > { %2600 = vmatpush3.msra.mxu1 %v3101_v48  ;;  %2638 = vmatpush3.msra.mxu0 %v3101_v48  ;;  %v2201_v48 = vld [vmem:[%s3351_s3 + $0x58] sm:$0xff] }
 0x153   : > { %2601 = vmatprep.subr.mxu1 %v3110_v62  ;;  %2639 = vmatprep.subr.mxu0 %v3110_v62 }
 0x154   : > { %2602 = vmatpush3.msra.mxu1 %v3110_v62  ;;  %2640 = vmatpush3.msra.mxu0 %v3110_v62 }
 0x155   : > { %2603 = vmatprep.subr.mxu1 %v3120_v6  ;;  %2641 = vmatprep.subr.mxu0 %v3120_v6 }
 0x156   : > { %2604 = vmatpush3.msra.mxu1 %v3120_v6  ;;  %2642 = vmatpush3.msra.mxu0 %v3120_v6 }
 0x157   : > { %2605 = vmatprep.subr.mxu1 %v3130_v52  ;;  %2643 = vmatprep.subr.mxu0 %v3130_v52 }
 0x158   : > { %2606 = vmatpush3.msra.mxu1 %v3130_v52  ;;  %2644 = vmatpush3.msra.mxu0 %v3130_v52 }
 0x159   : > { %2607 = vmatprep.subr.mxu1 %v3140_v60  ;;  %2645 = vmatprep.subr.mxu0 %v3140_v60 }
 0x15a   : > { %2608 = vmatpush3.msra.mxu1 %v3140_v60  ;;  %2646 = vmatpush3.msra.mxu0 %v3140_v60 }
 0x15b   : > { %2609 = vmatprep.subr.mxu1 %v3150_v44  ;;  %2647 = vmatprep.subr.mxu0 %v3150_v44 }
 0x15c   : > { %2610 = vmatpush3.msra.mxu1 %v3150_v44  ;;  %2648 = vmatpush3.msra.mxu0 %v3150_v44 }
 0x15d   : > { %2611 = vmatprep.subr.mxu1 %v3160_v34  ;;  %2649 = vmatprep.subr.mxu0 %v3160_v34 }
 0x15e   : > { %2612 = vmatpush3.msra.mxu1 %v3160_v34  ;;  %2650 = vmatpush3.msra.mxu0 %v3160_v34 }
 0x15f   : > { %2613 = vmatprep.subr.mxu1 %v3170_v38  ;;  %2651 = vmatprep.subr.mxu0 %v3170_v38 }
 0x160   : > { %2614 = vmatpush3.msra.mxu1 %v3170_v38  ;;  %2652 = vmatpush3.msra.mxu0 %v3170_v38 }
 0x161   : > { %2615 = vmatprep.subr.mxu1 %v3178_v37  ;;  %2653 = vmatprep.subr.mxu0 %v3178_v37 }
 0x162   : > { %2616 = vmatpush3.msra.mxu1 %v3178_v37  ;;  %2654 = vmatpush3.msra.mxu0 %v3178_v37 }
 0x163   : > { %2617 = vmatprep.subr.mxu1 %v3186_v47  ;;  %2655 = vmatprep.subr.mxu0 %v3186_v47 }
 0x164   : > { %2618 = vmatpush3.msra.mxu1 %v3186_v47  ;;  %2656 = vmatpush3.msra.mxu0 %v3186_v47 }
 0x165   : > { %2619 = vmatprep.subr.mxu1 %v3193_v13  ;;  %2657 = vmatprep.subr.mxu0 %v3193_v13 }
 0x166   : > { %2554 = vmatprep.mubr.f32.mxu1 %v1556_v25  ;;  %2592 = vmatprep.mubr.f32.mxu0 %v2196_v41 }
 0x167   : > { %2620 = vmatpush3.msra.mxu1 %v3193_v13  ;;  %2658 = vmatpush3.msra.mxu0 %v3193_v13 }
 0x168   : > { %2555 = vmatmul.mubr.f32.gmra.mxu1 %v1557_v42  ;;  %2593 = vmatmul.mubr.f32.gmra.mxu0 %v2197_v40 }
 0x169   : > { %2621 = vmatprep.subr.mxu1 %v3200_v31  ;;  %2659 = vmatprep.subr.mxu0 %v3200_v31 }
 0x16a   : > { %2622 = vmatpush3.msra.mxu1 %v3200_v31  ;;  %2660 = vmatpush3.msra.mxu0 %v3200_v31 }
 0x16b   : > { %2623 = vmatprep.subr.mxu1 %v3206_v56  ;;  %2661 = vmatprep.subr.mxu0 %v3206_v56 }
 0x16c   : > { %2624 = vmatpush3.msra.mxu1 %v3206_v56  ;;  %2662 = vmatpush3.msra.mxu0 %v3206_v56 }
 0x16d   : > { %2625 = vmatprep.subr.mxu1 %v3212_v45  ;;  %2663 = vmatprep.subr.mxu0 %v3212_v45 }
 0x16e   : > { %2626 = vmatpush3.msra.mxu1 %v3212_v45  ;;  %2627 = vmatprep.mubr.f32.mxu1 %v2198_v43 }
 0x16f   : > { %2664 = vmatpush3.msra.mxu0 %v3212_v45  ;;  %2665 = vmatprep.mubr.f32.mxu0 %v2202_v46 }
 0x170   : > { %2628 = vmatmul.mubr.f32.vlgmr.msra.gmra.mxu1 %v2199_v58  ;;  %2666 = vmatmul.mubr.f32.vlgmr.msra.gmra.mxu0 %v2203_v22 }
 0x171   : > { %2630 = vmatprep.mubr.f32.mxu1 %v2200_v27  ;;  %2668 = vmatprep.mubr.f32.mxu0 %v2204_v20 }
 0x174   : > { %2631 = vmatmul.mubr.f32.gmra.mxu1 %v2201_v48  ;;  %2669 = vmatmul.mubr.f32.gmra.mxu0 %v2205_v23 }
 0x20c   : > { %v2553_v50 = vpop.f32.mrf.mxu1  ;;  %v2591_v61 = vpop.f32.mrf.mxu0 }
 0x20d   : > { %v1734_v52 = vmax.f32 %v2553_v50, %v2591_v61 }
 0x20e   : > { %v1624_v62 = vpop.f32.mrf.mxu1  ;;  %v1714_v3 = vpop.f32.mrf.mxu0 }
 0x20f   : > { %v1733_v60 = vmax.f32 %v1624_v62, %v1714_v3 }
 0x228   : > { %v2556_v4 = vpop.f32.mrf.mxu1  ;;  %v2594_v0 = vpop.f32.mrf.mxu0 }
 0x229   : > { %v1736_v15 = vmax.f32 %v2556_v4, %v2594_v0 }
 0x22a   : > { %v1634_v6 = vpop.f32.mrf.mxu1  ;;  %v1724_v7 = vpop.f32.mrf.mxu0 }
 0x22b   : > { %v1735_v18 = vmax.f32 %v1634_v6, %v1724_v7 }
 0x230   : > { %v2629_v8 = vpop.f32.mrf.mxu1  ;;  %v2667_v17 = vpop.f32.mrf.mxu0 }
 0x231   : > { %v1918_v63 = vmax.f32 %v2629_v8, %v2667_v17 }
 0x232   : > { %v1808_v10 = vpop.f32.mrf.mxu1  ;;  %v1898_v21 = vpop.f32.mrf.mxu0 }
 0x233   : > { %v1922_v2 = vmax.f32 %v1734_v52, %v1918_v63  ;;  %v1917_v11 = vmax.f32 %v1808_v10, %v1898_v21 }
 0x234   : > { %v2632_v12 = vpop.f32.mrf.mxu1  ;;  %v2670_v14 = vpop.f32.mrf.mxu0 }
 0x235   : > { %1926 = vst [vmem:[%s219_s15 + $0x8] sm:$0xff] %v1922_v2  ;;  %v1921_v9 = vmax.f32 %v1733_v60, %v1917_v11  ;;  %v1920_v44 = vmax.f32 %v2632_v12, %v2670_v14 }
 0x236   : > { %v1818_v54 = vpop.f32.mrf.mxu1  ;;  %v1908_v16 = vpop.f32.mrf.mxu0 }
 0x237   : > { %1925 = vst [vmem:[%s219_s15] sm:$0xff] %v1921_v9  ;;  %v1924_v53 = vmax.f32 %v1736_v15, %v1920_v44  ;;  %v1919_v32 = vmax.f32 %v1818_v54, %v1908_v16 }
 0x239   : > { %1928 = vst [vmem:[%s219_s15 + $0x18] sm:$0xff] %v1924_v53  ;;  %v1923_v55 = vmax.f32 %v1735_v18, %v1919_v32 }
 0x23b   : > { %1927 = vst [vmem:[%s219_s15 + $0x10] sm:$0xff] %v1923_v55 }
 0x23c PF: > { %s14_s19 = sadd.s32 1, %s2754_s19   ;;  %s3375_s15 = smov %s2746_s17 }
 0x23d   : > { %p11_p7 = scmp.ge.s32.totalorder %s14_s19, 16   ;;  %s3376_s16 = smov %s2750_s18 }
 0x23e   : > { %s3377_s17 = smov %s3380_s20  ;;  %s3378_s18 = smov %s3384_s21 }
 0x23f   :  { %13 = sbr.rel (!%p11_p7) target bundleno = 3 (0x3), region = 78 }

// kernel: cnn_forward.4
= control target key start
LH: loop header
LB: loop body
LE: loop exit
PB: predicated region body
PF: predicated region fallthrough
CT: control target
= control target key end

     0   :  { %s10969_s15 = smov 0   ;;  %s10971_s16 = smov 0   ;;  %s14644_s0 = inlined_call_operand.vmem [shape: f32[2,232,128], index: 0, kind: input, shape index: {}]   ;;  %s14645_s1 = inlined_call_operand.vmem [shape: f32[25,128,128], index: 1, kind: input, shape index: {}]   ;;  %s14646_s2 = inlined_call_operand.vmem [shape: f32[1,128], index: 2, kind: input, shape index: {}]   ;;  %s14647_s3 = inlined_call_operand.vmem [shape: f32[4,40,160], index: 3, kind: input, shape index: {}]   ;;  %s14648_s4 = inlined_call_operand.vmem [shape: f32[2,40,128], index: 4, kind: output, shape index: {}]  }
   0x1   :  { %s10973_s17 = smov 0  }
   0x2 LB: > { %s26_s18 = sadd.s32 1, %s10937_s16  ;;  %p7490_p0 = scmp.ge.s32.totalorder %s10941_s17, 1  ;;  %s10941_s17 = sphi %s10973_s17, %s14_s17   ;;  %s10937_s16 = sphi %s10971_s16, %s15036_s16   ;;  %s10933_s15 = sphi %s10969_s15, %s15035_s15  }
   0x3   : > { %p28_p1 = scmp.ge.s32.totalorder %s26_s18, 2  ;;  %p176_p2 = scmp.lt.s32.totalorder %s10941_s17, 3 }
   0x5   : > { %s15038_s18 = smov (%p28_p1, %s26_s18), 0  ;;  %p177_p3 = pnand %p7490_p0, %p176_p2 }
   0x7   : > { %180 = sbr.rel (%p177_p3) target bundleno = 1194 (0x4aa), region = 36 }
   0xc   : > { %v258_v0 = vld [vmem:[%s14645_s1 + $0x78] sm:$0xff]  ;;  %v257_v1 = vld [vmem:[%s14645_s1 + $0x70] sm:$0xff]  ;;  %v256_v2 = vld [vmem:[%s14645_s1 + $0x68] sm:$0xff]  ;;  %p206_p4 = scmp.lt.s32.totalorder %s10933_s15, 1  ;;  %vm6857_vm0 = vcmask 261120  }
   0xd   : > { %10860 = vmatprep.subr.mxu1 %v258_v0  ;;  %9310 = vmatprep.subr.mxu0 %v258_v0  ;;  %v255_v3 = vld [vmem:[%s14645_s1 + $0x60] sm:$0xff]  ;;  %v254_v4 = vld [vmem:[%s14645_s1 + $0x58] sm:$0xff]  ;;  %v253_v5 = vld [vmem:[%s14645_s1 + $0x50] sm:$0xff] }
   0xe   : > { %10876 = vmatpush3.msra.mxu1 %v258_v0  ;;  %9311 = vmatpush3.msra.mxu0 %v258_v0  ;;  %v252_v6 = vld [vmem:[%s14645_s1 + $0x48] sm:$0xff]  ;;  %v251_v7 = vld [vmem:[%s14645_s1 + $0x40] sm:$0xff]  ;;  %v250_v8 = vld [vmem:[%s14645_s1 + $0x38] sm:$0xff]  ;;  %s15040_s15 = smov (!%p206_p4, %s10933_s15), 1 }
   0xf   : > { %10861 = vmatprep.subr.mxu1 %v257_v1  ;;  %9312 = vmatprep.subr.mxu0 %v257_v1  ;;  %v249_v9 = vld [vmem:[%s14645_s1 + $0x30] sm:$0xff]  ;;  %v248_v10 = vld [vmem:[%s14645_s1 + $0x28] sm:$0xff]  ;;  %v247_v11 = vld [vmem:[%s14645_s1 + $0x20] sm:$0xff]  ;;  %s10892_s23 = smul.u32 232, %s15040_s15 }
  0x10   : > { %10877 = vmatpush3.msra.mxu1 %v257_v1  ;;  %9313 = vmatpush3.msra.mxu0 %v257_v1  ;;  %v246_v12 = vld [vmem:[%s14645_s1 + $0x18] sm:$0xff]  ;;  %v245_v13 = vld [vmem:[%s14645_s1 + $0x10] sm:$0xff]  ;;  %v244_v14 = vld [vmem:[%s14645_s1 + $0x8] sm:$0xff]  ;;  %s10893_s13 = smul.u32 40, %s15040_s15 }
  0x11   : > { %10862 = vmatprep.subr.mxu1 %v256_v2  ;;  %9314 = vmatprep.subr.mxu0 %v256_v2  ;;  %s11042_s30 = scalar_lea.vmem %s14644_s0, %s10892_s23  ;;  %v243_v15 = vld [vmem:[%s14645_s1] sm:$0xff]  ;;  %v7528_v19 = vld [vmem:[%s14645_s1 + $0xf8] sm:$0xff]  ;;  %v7527_v22 = vld [vmem:[%s14645_s1 + $0xf0] sm:$0xff] }
  0x12   : > { %10878 = vmatpush3.msra.mxu1 %v256_v2  ;;  %9315 = vmatpush3.msra.mxu0 %v256_v2  ;;  %v239_v16 = vld [vmem:[%s11042_s30 + $0x80] sm:$0xff]  ;;  %v240_v18 = vld [vmem:[%s11042_s30 + $0x88] sm:$0xff]  ;;  %v7564_v21 = vld [vmem:[%s14645_s1 + $0x178] sm:$0xff]  ;;  %s14628_s20 = scalar_lea.vmem %s14648_s4, %s10893_s13 }
  0x13   : > { %10863 = vmatprep.subr.mxu1 %v255_v3  ;;  %9316 = vmatprep.subr.mxu0 %v255_v3  ;;  %v223_v17 = vld [vmem:[%s11042_s30] sm:$0xff]  ;;  %v224_v20 = vld [vmem:[%s11042_s30 + $0x8] sm:$0xff]  ;;  %v7563_v23 = vld [vmem:[%s14645_s1 + $0x170] sm:$0xff] }
  0x14   : > { %10879 = vmatpush3.msra.mxu1 %v255_v3  ;;  %9317 = vmatpush3.msra.mxu0 %v255_v3  ;;  %v11064_v24 = vld [vmem:[%s11042_s30 + $0x10] sm:$0xff]  ;;  %v7526_v25 = vld [vmem:[%s14645_s1 + $0xe8] sm:$0xff]  ;;  %v11070_v26 = vld [vmem:[%s11042_s30 + $0x18] sm:$0xff] }
  0x15   : > { %10864 = vmatprep.subr.mxu1 %v254_v4  ;;  %9318 = vmatprep.subr.mxu0 %v254_v4  ;;  %v7562_v27 = vld [vmem:[%s14645_s1 + $0x168] sm:$0xff]  ;;  %v7525_v28 = vld [vmem:[%s14645_s1 + $0xe0] sm:$0xff]  ;;  %v7524_v31 = vld [vmem:[%s14645_s1 + $0xd8] sm:$0xff] }
  0x16   : > { %10880 = vmatpush3.msra.mxu1 %v254_v4  ;;  %9319 = vmatpush3.msra.mxu0 %v254_v4  ;;  %v7561_v29 = vld [vmem:[%s14645_s1 + $0x160] sm:$0xff]  ;;  %v11090_v32 = vld [vmem:[%s11042_s30 + $0x28] sm:$0xff]  ;;  %v7560_v33 = vld [vmem:[%s14645_s1 + $0x158] sm:$0xff] }
  0x17   : > { %10865 = vmatprep.subr.mxu1 %v253_v5  ;;  %9320 = vmatprep.subr.mxu0 %v253_v5  ;;  %v11084_v30 = vld [vmem:[%s11042_s30 + $0x20] sm:$0xff]  ;;  %v7523_v34 = vld [vmem:[%s14645_s1 + $0xd0] sm:$0xff]  ;;  %v7522_v37 = vld [vmem:[%s14645_s1 + $0xc8] sm:$0xff] }
  0x18   : > { %10881 = vmatpush3.msra.mxu1 %v253_v5  ;;  %9321 = vmatpush3.msra.mxu0 %v253_v5  ;;  %v7559_v35 = vld [vmem:[%s14645_s1 + $0x150] sm:$0xff]  ;;  %v11110_v38 = vld [vmem:[%s11042_s30 + $0x38] sm:$0xff]  ;;  %v7558_v39 = vld [vmem:[%s14645_s1 + $0x148] sm:$0xff] }
  0x19   : > { %10866 = vmatprep.subr.mxu1 %v252_v6  ;;  %9322 = vmatprep.subr.mxu0 %v252_v6  ;;  %v11104_v36 = vld [vmem:[%s11042_s30 + $0x30] sm:$0xff]  ;;  %v7521_v40 = vld [vmem:[%s14645_s1 + $0xc0] sm:$0xff]  ;;  %v7520_v43 = vld [vmem:[%s14645_s1 + $0xb8] sm:$0xff] }
  0x1a   : > { %10882 = vmatpush3.msra.mxu1 %v252_v6  ;;  %9323 = vmatpush3.msra.mxu0 %v252_v6  ;;  %v7557_v41 = vld [vmem:[%s14645_s1 + $0x140] sm:$0xff]  ;;  %v11130_v44 = vld [vmem:[%s11042_s30 + $0x48] sm:$0xff]  ;;  %v7556_v45 = vld [vmem:[%s14645_s1 + $0x138] sm:$0xff] }
  0x1b   : > { %10867 = vmatprep.subr.mxu1 %v251_v7  ;;  %9324 = vmatprep.subr.mxu0 %v251_v7  ;;  %v11124_v42 = vld [vmem:[%s11042_s30 + $0x40] sm:$0xff]  ;;  %v7519_v46 = vld [vmem:[%s14645_s1 + $0xb0] sm:$0xff]  ;;  %v7518_v49 = vld [vmem:[%s14645_s1 + $0xa8] sm:$0xff] }
  0x1c   : > { %10883 = vmatpush3.msra.mxu1 %v251_v7  ;;  %9325 = vmatpush3.msra.mxu0 %v251_v7  ;;  %v7555_v47 = vld [vmem:[%s14645_s1 + $0x130] sm:$0xff]  ;;  %v11150_v50 = vld [vmem:[%s11042_s30 + $0x58] sm:$0xff]  ;;  %v7554_v51 = vld [vmem:[%s14645_s1 + $0x128] sm:$0xff] }
  0x1d   : > { %10868 = vmatprep.subr.mxu1 %v250_v8  ;;  %9326 = vmatprep.subr.mxu0 %v250_v8  ;;  %v11144_v48 = vld [vmem:[%s11042_s30 + $0x50] sm:$0xff]  ;;  %v7517_v52 = vld [vmem:[%s14645_s1 + $0xa0] sm:$0xff]  ;;  %v7516_v55 = vld [vmem:[%s14645_s1 + $0x98] sm:$0xff] }
  0x1e   : > { %10884 = vmatpush3.msra.mxu1 %v250_v8  ;;  %9327 = vmatpush3.msra.mxu0 %v250_v8  ;;  %v7553_v53 = vld [vmem:[%s14645_s1 + $0x120] sm:$0xff]  ;;  %v11170_v56 = vld [vmem:[%s11042_s30 + $0x68] sm:$0xff]  ;;  %v7552_v57 = vld [vmem:[%s14645_s1 + $0x118] sm:$0xff] }
  0x1f   : > { %10869 = vmatprep.subr.mxu1 %v249_v9  ;;  %9328 = vmatprep.subr.mxu0 %v249_v9  ;;  %v11164_v54 = vld [vmem:[%s11042_s30 + $0x60] sm:$0xff]  ;;  %v241_v58 = vld [vmem:[%s11042_s30 + $0x90] sm:$0xff]  ;;  %v242_v60 = vld [vmem:[%s11042_s30 + $0x98] sm:$0xff] }
  0x20   : > { %10885 = vmatpush3.msra.mxu1 %v249_v9  ;;  %9329 = vmatpush3.msra.mxu0 %v249_v9  ;;  %v7515_v59 = vld [vmem:[%s14645_s1 + $0x90] sm:$0xff]  ;;  %v7514_v63 = vld [vmem:[%s14645_s1 + $0x88] sm:$0xff]  ;;  %v11192_v0 = vld [vmem:[%s11042_s30 + $0x78] sm:$0xff] }
  0x21   : > { %10870 = vmatprep.subr.mxu1 %v248_v10  ;;  %9330 = vmatprep.subr.mxu0 %v248_v10  ;;  %v7551_v61 = vld [vmem:[%s14645_s1 + $0x110] sm:$0xff]  ;;  %v7550_v1 = vld [vmem:[%s14645_s1 + $0x108] sm:$0xff]  ;;  %v7513_v2 = vld [vmem:[%s14645_s1 + $0x80] sm:$0xff] }
  0x22   : > { %10886 = vmatpush3.msra.mxu1 %v248_v10  ;;  %9331 = vmatpush3.msra.mxu0 %v248_v10  ;;  %v11186_v62 = vld [vmem:[%s11042_s30 + $0x70] sm:$0xff]  ;;  %v7493_v3 = vld [vmem:[%s11042_s30 + $0x1] sm:$0xff]  ;;  %v7600_v7 = vld [vmem:[%s14645_s1 + $0x1f8] sm:$0xff] }
  0x23   : > { %10871 = vmatprep.subr.mxu1 %v247_v11  ;;  %9332 = vmatprep.subr.mxu0 %v247_v11  ;;  %v7549_v4 = vld [vmem:[%s14645_s1 + $0x100] sm:$0xff]  ;;  %v7494_v5 = vld [vmem:[%s11042_s30 + $0x9] sm:$0xff]  ;;  %v7636_v9 = vld [vmem:[%s14645_s1 + $0x278] sm:$0xff] }
  0x24   : > { %10887 = vmatpush3.msra.mxu1 %v247_v11  ;;  %9333 = vmatpush3.msra.mxu0 %v247_v11  ;;  %v7529_v6 = vld [vmem:[%s11042_s30 + $0x2] sm:$0xff]  ;;  %v7530_v8 = vld [vmem:[%s11042_s30 + $0xa] sm:$0xff] }
  0x25   : > { %10872 = vmatprep.subr.mxu1 %v246_v12  ;;  %9334 = vmatprep.subr.mxu0 %v246_v12  ;;  %v11216_v10 = vld [vmem:[%s11042_s30 + $0x11] sm:$0xff] }
  0x26   : > { %10888 = vmatpush3.msra.mxu1 %v246_v12  ;;  %9335 = vmatpush3.msra.mxu0 %v246_v12  ;;  %v7599_v11 = vld [vmem:[%s14645_s1 + $0x1f0] sm:$0xff]  ;;  %v11222_v12 = vld [vmem:[%s11042_s30 + $0x19] sm:$0xff] }
  0x27   : > { %10873 = vmatprep.subr.mxu1 %v245_v13  ;;  %9336 = vmatprep.subr.mxu0 %v245_v13 }
  0x28   : > { %10889 = vmatpush3.msra.mxu1 %v245_v13  ;;  %9337 = vmatpush3.msra.mxu0 %v245_v13  ;;  %v11225_v13 = vld [vmem:[%s11042_s30 + $0x12] sm:$0xff] }
  0x29   : > { %10874 = vmatprep.subr.mxu1 %v244_v14  ;;  %9338 = vmatprep.subr.mxu0 %v244_v14 }
  0x2a   : > { %10890 = vmatpush3.msra.mxu1 %v244_v14  ;;  %9339 = vmatpush3.msra.mxu0 %v244_v14  ;;  %v11229_v14 = vld [vmem:[%s11042_s30 + $0x1a] sm:$0xff] }
  0x2b   : > { %10875 = vmatprep.subr.mxu1 %v243_v15  ;;  %9340 = vmatprep.subr.mxu0 %v243_v15 }
  0x2c   : > { %10891 = vmatpush3.msra.mxu1 %v243_v15  ;;  %9366 = vmatprep.mubr.f32.mxu1 %v239_v16  ;;  %v7635_v16 = vld [vmem:[%s14645_s1 + $0x270] sm:$0xff] }
  0x2d   : > { %9341 = vmatpush3.msra.mxu0 %v243_v15  ;;  %9342 = vmatprep.mubr.f32.mxu0 %v223_v17  ;;  %v7598_v15 = vld [vmem:[%s14645_s1 + $0x1e8] sm:$0xff] }
  0x2e   : > { %9367 = vmatmul.mubr.f32.vlgmr.msra.gmra.mxu1 %v240_v18  ;;  %9372 = vmatprep.subr.mxu1 %v7528_v19  ;;  %v11241_v17 = vld [vmem:[%s11042_s30 + $0x21] sm:$0xff] }
  0x2f   : > { %9343 = vmatmul.mubr.f32.vlgmr.msra.gmra.mxu0 %v224_v20  ;;  %9373 = vmatpush3.msra.mxu1 %v7528_v19  ;;  %v7634_v18 = vld [vmem:[%s14645_s1 + $0x268] sm:$0xff] }
  0x30   : > { %9434 = vmatprep.subr.mxu0 %v7564_v21  ;;  %9374 = vmatprep.subr.mxu1 %v7527_v22  ;;  %v11247_v19 = vld [vmem:[%s11042_s30 + $0x29] sm:$0xff] }
  0x31   : > { %9435 = vmatpush3.msra.mxu0 %v7564_v21  ;;  %9375 = vmatpush3.msra.mxu1 %v7527_v22  ;;  %v11250_v20 = vld [vmem:[%s11042_s30 + $0x22] sm:$0xff]  ;;  %v11257_v22 = vld [vmem:[%s11042_s30 + $0x2a] sm:$0xff] }
  0x32   : > { %9436 = vmatprep.subr.mxu0 %v7563_v23  ;;  %9345 = vmatprep.mubr.f32.mxu0 %v11064_v24  ;;  %v7597_v21 = vld [vmem:[%s14645_s1 + $0x1e0] sm:$0xff] }
  0x33   : > { %9376 = vmatprep.subr.mxu1 %v7526_v25  ;;  %9437 = vmatpush3.msra.mxu0 %v7563_v23  ;;  %v7596_v23 = vld [vmem:[%s14645_s1 + $0x1d8] sm:$0xff] }
  0x34   : > { %9346 = vmatmul.mubr.f32.gmra.mxu0 %v11070_v26  ;;  %9377 = vmatpush3.msra.mxu1 %v7526_v25  ;;  %v7633_v25 = vld [vmem:[%s14645_s1 + $0x260] sm:$0xff] }
  0x35   : > { %9438 = vmatprep.subr.mxu0 %v7562_v27  ;;  %9378 = vmatprep.subr.mxu1 %v7525_v28 }
  0x36   : > { %9439 = vmatpush3.msra.mxu0 %v7562_v27  ;;  %9379 = vmatpush3.msra.mxu1 %v7525_v28  ;;  %v11268_v27 = vld [vmem:[%s11042_s30 + $0x31] sm:$0xff]  ;;  %v11272_v28 = vld [vmem:[%s11042_s30 + $0x39] sm:$0xff] }
  0x37   : > { %9440 = vmatprep.subr.mxu0 %v7561_v29  ;;  %9348 = vmatprep.mubr.f32.mxu0 %v11084_v30 }
  0x38   : > { %9380 = vmatprep.subr.mxu1 %v7524_v31  ;;  %9441 = vmatpush3.msra.mxu0 %v7561_v29  ;;  %v11275_v29 = vld [vmem:[%s11042_s30 + $0x32] sm:$0xff] }
  0x39   : > { %9349 = vmatmul.mubr.f32.gmra.mxu0 %v11090_v32  ;;  %9381 = vmatpush3.msra.mxu1 %v7524_v31  ;;  %v7632_v31 = vld [vmem:[%s14645_s1 + $0x258] sm:$0xff] }
  0x3a   : > { %9442 = vmatprep.subr.mxu0 %v7560_v33  ;;  %9382 = vmatprep.subr.mxu1 %v7523_v34 }
  0x3b   : > { %9443 = vmatpush3.msra.mxu0 %v7560_v33  ;;  %9383 = vmatpush3.msra.mxu1 %v7523_v34  ;;  %v11282_v33 = vld [vmem:[%s11042_s30 + $0x3a] sm:$0xff]  ;;  %v7595_v34 = vld [vmem:[%s14645_s1 + $0x1d0] sm:$0xff] }
  0x3c   : > { %9444 = vmatprep.subr.mxu0 %v7559_v35  ;;  %9351 = vmatprep.mubr.f32.mxu0 %v11104_v36 }
  0x3d   : > { %9384 = vmatprep.subr.mxu1 %v7522_v37  ;;  %9445 = vmatpush3.msra.mxu0 %v7559_v35  ;;  %v11290_v35 = vld [vmem:[%s11042_s30 + $0x41] sm:$0xff] }
  0x3e   : > { %9352 = vmatmul.mubr.f32.gmra.mxu0 %v11110_v38  ;;  %9385 = vmatpush3.msra.mxu1 %v7522_v37  ;;  %v7594_v37 = vld [vmem:[%s14645_s1 + $0x1c8] sm:$0xff] }
  0x3f   : > { %9446 = vmatprep.subr.mxu0 %v7558_v39  ;;  %9386 = vmatprep.subr.mxu1 %v7521_v40 }
  0x40   : > { %9447 = vmatpush3.msra.mxu0 %v7558_v39  ;;  %9387 = vmatpush3.msra.mxu1 %v7521_v40  ;;  %v7631_v39 = vld [vmem:[%s14645_s1 + $0x250] sm:$0xff] }
  0x41   : > { %9448 = vmatprep.subr.mxu0 %v7557_v41  ;;  %9354 = vmatprep.mubr.f32.mxu0 %v11124_v42  ;;  %v11300_v40 = vld [vmem:[%s11042_s30 + $0x49] sm:$0xff] }
  0x42   : > { %9388 = vmatprep.subr.mxu1 %v7520_v43  ;;  %9449 = vmatpush3.msra.mxu0 %v7557_v41  ;;  %v11303_v41 = vld [vmem:[%s11042_s30 + $0x42] sm:$0xff] }
  0x43   : > { %9355 = vmatmul.mubr.f32.gmra.mxu0 %v11130_v44  ;;  %9389 = vmatpush3.msra.mxu1 %v7520_v43  ;;  %v7593_v43 = vld [vmem:[%s14645_s1 + $0x1c0] sm:$0xff] }
  0x44   : > { %9450 = vmatprep.subr.mxu0 %v7556_v45  ;;  %9390 = vmatprep.subr.mxu1 %v7519_v46 }
  0x45   : > { %9451 = vmatpush3.msra.mxu0 %v7556_v45  ;;  %9391 = vmatpush3.msra.mxu1 %v7519_v46  ;;  %v11311_v45 = vld [vmem:[%s11042_s30 + $0x4a] sm:$0xff] }
  0x46   : > { %9452 = vmatprep.subr.mxu0 %v7555_v47  ;;  %9357 = vmatprep.mubr.f32.mxu0 %v11144_v48  ;;  %v7630_v46 = vld [vmem:[%s14645_s1 + $0x248] sm:$0xff] }
  0x47   : > { %9392 = vmatprep.subr.mxu1 %v7518_v49  ;;  %9453 = vmatpush3.msra.mxu0 %v7555_v47  ;;  %v11318_v47 = vld [vmem:[%s11042_s30 + $0x51] sm:$0xff] }
  0x48   : > { %9358 = vmatmul.mubr.f32.gmra.mxu0 %v11150_v50  ;;  %9393 = vmatpush3.msra.mxu1 %v7518_v49  ;;  %v11321_v49 = vld [vmem:[%s11042_s30 + $0x52] sm:$0xff] }
  0x49   : > { %9454 = vmatprep.subr.mxu0 %v7554_v51  ;;  %9394 = vmatprep.subr.mxu1 %v7517_v52 }
  0x4a   : > { %9455 = vmatpush3.msra.mxu0 %v7554_v51  ;;  %9395 = vmatpush3.msra.mxu1 %v7517_v52  ;;  %v11325_v51 = vld [vmem:[%s11042_s30 + $0x59] sm:$0xff] }
  0x4b   : > { %9456 = vmatprep.subr.mxu0 %v7553_v53  ;;  %9360 = vmatprep.mubr.f32.mxu0 %v11164_v54  ;;  %v7592_v52 = vld [vmem:[%s14645_s1 + $0x1b8] sm:$0xff] }
  0x4c   : > { %9396 = vmatprep.subr.mxu1 %v7516_v55  ;;  %9457 = vmatpush3.msra.mxu0 %v7553_v53  ;;  %v7629_v53 = vld [vmem:[%s14645_s1 + $0x240] sm:$0xff] }
  0x4d   : > { %9361 = vmatmul.mubr.f32.gmra.mxu0 %v11170_v56  ;;  %9397 = vmatpush3.msra.mxu1 %v7516_v55  ;;  %v11335_v55 = vld [vmem:[%s11042_s30 + $0x5a] sm:$0xff] }
  0x4e   : > { %9458 = vmatprep.subr.mxu0 %v7552_v57  ;;  %9369 = vmatprep.mubr.f32.mxu1 %v241_v58  ;;  %v11343_v58 = vld [vmem:[%s11042_s30 + $0x61] sm:$0xff] }
  0x4f   : > { %9398 = vmatprep.subr.mxu1 %v7515_v59  ;;  %9459 = vmatpush3.msra.mxu0 %v7552_v57  ;;  %v7628_v57 = vld [vmem:[%s14645_s1 + $0x238] sm:$0xff] }
  0x50   : > { %9370 = vmatmul.mubr.f32.gmra.mxu1 %v242_v60  ;;  %9460 = vmatprep.subr.mxu0 %v7551_v61  ;;  %v11350_v60 = vld [vmem:[%s11042_s30 + $0x69] sm:$0xff] }
  0x51   : > { %9399 = vmatpush3.msra.mxu1 %v7515_v59  ;;  %9363 = vmatprep.mubr.f32.mxu0 %v11186_v62  ;;  %v7591_v59 = vld [vmem:[%s14645_s1 + $0x1b0] sm:$0xff] }
  0x52   : > { %9400 = vmatprep.subr.mxu1 %v7514_v63  ;;  %9461 = vmatpush3.msra.mxu0 %v7551_v61  ;;  %v11353_v61 = vld [vmem:[%s11042_s30 + $0x62] sm:$0xff] }
  0x53   : > { %9364 = vmatmul.mubr.f32.gmra.mxu0 %v11192_v0  ;;  %9401 = vmatpush3.msra.mxu1 %v7514_v63  ;;  %v11357_v63 = vld [vmem:[%s11042_s30 + $0x6a] sm:$0xff] }
  0x54   : > { %9462 = vmatprep.subr.mxu0 %v7550_v1  ;;  %9402 = vmatprep.subr.mxu1 %v7513_v2  ;;  %14682 = vst [vmem:[#allocation3_spill] sm:$0xff] %v11357_v63 }
  0x55   : > { %9463 = vmatpush3.msra.mxu0 %v7550_v1  ;;  %9403 = vmatpush3.msra.mxu1 %v7513_v2  ;;  %v7590_v1 = vld [vmem:[%s14645_s1 + $0x1a8] sm:$0xff]  ;;  %v7627_v2 = vld [vmem:[%s14645_s1 + $0x230] sm:$0xff] }
  0x56   : > { %9404 = vmatprep.mubr.f32.mxu1 %v7493_v3  ;;  %9464 = vmatprep.subr.mxu0 %v7549_v4  ;;  %v11369_v3 = vld [vmem:[%s11042_s30 + $0x71] sm:$0xff] }
  0x57   : > { %9405 = vmatmul.mubr.f32.vlgmr.msra.gmra.mxu1 %v7494_v5  ;;  %9465 = vmatpush3.msra.mxu0 %v7549_v4  ;;  %v7626_v4 = vld [vmem:[%s14645_s1 + $0x228] sm:$0xff]  ;;  %v11375_v5 = vld [vmem:[%s11042_s30 + $0x79] sm:$0xff] }
  0x58   : > { %9466 = vmatprep.mubr.f32.mxu0 %v7529_v6  ;;  %9496 = vmatprep.subr.mxu1 %v7600_v7  ;;  %v11378_v6 = vld [vmem:[%s11042_s30 + $0x72] sm:$0xff] }
  0x59   : > { %9467 = vmatmul.mubr.f32.vlgmr.msra.gmra.mxu0 %v7530_v8  ;;  %9497 = vmatpush3.msra.mxu1 %v7600_v7  ;;  %14683 = vst [vmem:[#allocation4_spill] sm:$0xff] %v11378_v6  ;;  %v7589_v7 = vld [vmem:[%s14645_s1 + $0x1a0] sm:$0xff] }
  0x5a   : > { %9558 = vmatprep.subr.mxu0 %v7636_v9  ;;  %9407 = vmatprep.mubr.f32.mxu1 %v11216_v10  ;;  %v11385_v8 = vld [vmem:[%s11042_s30 + $0x7a] sm:$0xff] }
  0x5b   : > { %9498 = vmatprep.subr.mxu1 %v7599_v11  ;;  %9559 = vmatpush3.msra.mxu0 %v7636_v9  ;;  %14684 = vst [vmem:[#allocation5_spill] sm:$0xff] %v11385_v8  ;;  %v7588_v9 = vld [vmem:[%s14645_s1 + $0x198] sm:$0xff] }
  0x5c   : > { %9408 = vmatmul.mubr.f32.gmra.mxu1 %v11222_v12  ;;  %9469 = vmatprep.mubr.f32.mxu0 %v11225_v13 }
  0x5d   : > { %9499 = vmatpush3.msra.mxu1 %v7599_v11  ;;  %9470 = vmatmul.mubr.f32.gmra.mxu0 %v11229_v14  ;;  %v7625_v11 = vld [vmem:[%s14645_s1 + $0x220] sm:$0xff] }
  0x5e   : > { %9500 = vmatprep.subr.mxu1 %v7598_v15  ;;  %9560 = vmatprep.subr.mxu0 %v7635_v16 }
  0x5f   : > { %9501 = vmatpush3.msra.mxu1 %v7598_v15  ;;  %9561 = vmatpush3.msra.mxu0 %v7635_v16  ;;  %v11396_v15 = vld [vmem:[%s11042_s30 + $0x81] sm:$0xff]  ;;  %v11400_v16 = vld [vmem:[%s11042_s30 + $0x89] sm:$0xff] }
  0x60   : > { %9410 = vmatprep.mubr.f32.mxu1 %v11241_v17  ;;  %9562 = vmatprep.subr.mxu0 %v7634_v18 }
  0x61   : > { %9411 = vmatmul.mubr.f32.gmra.mxu1 %v11247_v19  ;;  %9472 = vmatprep.mubr.f32.mxu0 %v11250_v20 }
  0x62   : > { %9502 = vmatprep.subr.mxu1 %v7597_v21  ;;  %9563 = vmatpush3.msra.mxu0 %v7634_v18  ;;  %v11403_v18 = vld [vmem:[%s11042_s30 + $0x82] sm:$0xff] }
  0x63   : > { %9473 = vmatmul.mubr.f32.gmra.mxu0 %v11257_v22  ;;  %9503 = vmatpush3.msra.mxu1 %v7597_v21  ;;  %14685 = vst [vmem:[#allocation6_spill] sm:$0xff] %v11403_v18  ;;  %v7624_v21 = vld [vmem:[%s14645_s1 + $0x218] sm:$0xff] }
  0x64   : > { %9504 = vmatprep.subr.mxu1 %v7596_v23  ;;  %9564 = vmatprep.subr.mxu0 %v7633_v25 }
  0x65   : > { %9413 = vmatprep.mubr.f32.mxu1 %v11268_v27  ;;  %9505 = vmatpush3.msra.mxu1 %v7596_v23  ;;  %v11410_v23 = vld [vmem:[%s11042_s30 + $0x8a] sm:$0xff] }
  0x66   : > { %9565 = vmatpush3.msra.mxu0 %v7633_v25  ;;  %9414 = vmatmul.mubr.f32.gmra.mxu1 %v11272_v28  ;;  %14686 = vst [vmem:[#allocation7_spill] sm:$0xff] %v11410_v23  ;;  %v7587_v25 = vld [vmem:[%s14645_s1 + $0x190] sm:$0xff] }
  0x67   : > { %9475 = vmatprep.mubr.f32.mxu0 %v11275_v29  ;;  %9566 = vmatprep.subr.mxu0 %v7632_v31 }
  0x68   : > { %9476 = vmatmul.mubr.f32.gmra.mxu0 %v11282_v33  ;;  %9506 = vmatprep.subr.mxu1 %v7595_v34 }
  0x69   : > { %9567 = vmatpush3.msra.mxu0 %v7632_v31  ;;  %9507 = vmatpush3.msra.mxu1 %v7595_v34  ;;  %v11418_v31 = vld [vmem:[%s11042_s30 + $0x91] sm:$0xff]  ;;  %v7586_v34 = vld [vmem:[%s14645_s1 + $0x188] sm:$0xff] }
  0x6a   : > { %9416 = vmatprep.mubr.f32.mxu1 %v11290_v35  ;;  %9508 = vmatprep.subr.mxu1 %v7594_v37 }
  0x6b   : > { %9568 = vmatprep.subr.mxu0 %v7631_v39  ;;  %9417 = vmatmul.mubr.f32.gmra.mxu1 %v11300_v40 }
  0x6c   : > { %9478 = vmatprep.mubr.f32.mxu0 %v11303_v41  ;;  %9509 = vmatpush3.msra.mxu1 %v7594_v37  ;;  %v7623_v37 = vld [vmem:[%s14645_s1 + $0x210] sm:$0xff] }
  0x6d   : > { %9569 = vmatpush3.msra.mxu0 %v7631_v39  ;;  %9510 = vmatprep.subr.mxu1 %v7593_v43  ;;  %v11428_v39 = vld [vmem:[%s11042_s30 + $0x99] sm:$0xff] }
  0x6e   : > { %9479 = vmatmul.mubr.f32.gmra.mxu0 %v11311_v45  ;;  %9570 = vmatprep.subr.mxu0 %v7630_v46 }
  0x6f   : > { %9571 = vmatpush3.msra.mxu0 %v7630_v46  ;;  %9419 = vmatprep.mubr.f32.mxu1 %v11318_v47  ;;  %v7585_v46 = vld [vmem:[%s14645_s1 + $0x180] sm:$0xff] }
  0x70   : > { %9511 = vmatpush3.msra.mxu1 %v7593_v43  ;;  %9481 = vmatprep.mubr.f32.mxu0 %v11321_v49  ;;  %v11431_v43 = vld [vmem:[%s11042_s30 + $0x92] sm:$0xff] }
  0x71   : > { %9420 = vmatmul.mubr.f32.gmra.mxu1 %v11325_v51  ;;  %9512 = vmatprep.subr.mxu1 %v7592_v52  ;;  %14687 = vst [vmem:[#allocation8_spill] sm:$0xff] %v11431_v43 }
  0x72   : > { %9572 = vmatprep.subr.mxu0 %v7629_v53  ;;  %9482 = vmatmul.mubr.f32.gmra.mxu0 %v11335_v55 }
  0x73   : > { %9513 = vmatpush3.msra.mxu1 %v7592_v52  ;;  %9573 = vmatpush3.msra.mxu0 %v7629_v53  ;;  %v11439_v52 = vld [vmem:[%s11042_s30 + $0x9a] sm:$0xff]  ;;  %v7622_v53 = vld [vmem:[%s14645_s1 + $0x208] sm:$0xff] }
  0x74   : > { %9574 = vmatprep.subr.mxu0 %v7628_v57  ;;  %9422 = vmatprep.mubr.f32.mxu1 %v11343_v58  ;;  %14688 = vst [vmem:[#allocation9_spill] sm:$0xff] %v11439_v52 }
  0x75   : > { %9514 = vmatprep.subr.mxu1 %v7591_v59  ;;  %9575 = vmatpush3.msra.mxu0 %v7628_v57  ;;  %v7565_v57 = vld [vmem:[%s11042_s30 + $0x3] sm:$0xff] }
  0x76   : > { %9423 = vmatmul.mubr.f32.gmra.mxu1 %v11350_v60  ;;  %9484 = vmatprep.mubr.f32.mxu0 %v11353_v61 }
  0x77   : > { %9515 = vmatpush3.msra.mxu1 %v7591_v59  ;;  %9485 = vmatmul.mubr.f32.gmra.mxu0 %v11357_v63  ;;  %v7621_v59 = vld [vmem:[%s14645_s1 + $0x200] sm:$0xff]  ;;  %v7615_v63 = vld [vmem:[%s11042_s30 + $0x74] sm:$0xff] }
  0x78   : > { %9516 = vmatprep.subr.mxu1 %v7590_v1  ;;  %9576 = vmatprep.subr.mxu0 %v7627_v2 }
  0x79   : > { %9517 = vmatpush3.msra.mxu1 %v7590_v1  ;;  %9577 = vmatpush3.msra.mxu0 %v7627_v2  ;;  %v7566_v1 = vld [vmem:[%s11042_s30 + $0xb] sm:$0xff] }
  0x7a   : > { %9425 = vmatprep.mubr.f32.mxu1 %v11369_v3  ;;  %9578 = vmatprep.subr.mxu0 %v7626_v4  ;;  %v7601_v2 = vld [vmem:[%s11042_s30 + $0x4] sm:$0xff] }
  0x7b   : > { %9426 = vmatmul.mubr.f32.gmra.mxu1 %v11375_v5  ;;  %9487 = vmatprep.mubr.f32.mxu0 %v11378_v6  ;;  %v11607_v6 = vld [vmem:[%s11042_s30 + $0x7b] sm:$0xff] }
  0x7c   : > { %9518 = vmatprep.subr.mxu1 %v7589_v7  ;;  %9579 = vmatpush3.msra.mxu0 %v7626_v4  ;;  %v7672_v4 = vld [vmem:[%s14645_s1 + $0x2f8] sm:$0xff]  ;;  %14699 = vst [vmem:[#allocation20_spill] sm:$0xff] %v11607_v6 }
  0x7d   : > { %9488 = vmatmul.mubr.f32.gmra.mxu0 %v11385_v8  ;;  %9519 = vmatpush3.msra.mxu1 %v7589_v7  ;;  %v7602_v7 = vld [vmem:[%s11042_s30 + $0xc] sm:$0xff] }
  0x7e   : > { %9520 = vmatprep.subr.mxu1 %v7588_v9  ;;  %9580 = vmatprep.subr.mxu0 %v7625_v11  ;;  %v7614_v8 = vld [vmem:[%s11042_s30 + $0x6c] sm:$0xff] }
  0x7f   : > { %9428 = vmatprep.mubr.f32.mxu1 %v11396_v15  ;;  %9521 = vmatpush3.msra.mxu1 %v7588_v9  ;;  %v7708_v9 = vld [vmem:[%s14645_s1 + $0x378] sm:$0xff] }
  0x80   : > { %9581 = vmatpush3.msra.mxu0 %v7625_v11  ;;  %9429 = vmatmul.mubr.f32.gmra.mxu1 %v11400_v16  ;;  %v11460_v11 = vld [vmem:[%s11042_s30 + $0x13] sm:$0xff] }
  0x81   : > { %9490 = vmatprep.mubr.f32.mxu0 %v11403_v18  ;;  %9582 = vmatprep.subr.mxu0 %v7624_v21  ;;  %v7664_v18 = vld [vmem:[%s14645_s1 + $0x2b8] sm:$0xff] }
  0x82   : > { %9491 = vmatmul.mubr.f32.gmra.mxu0 %v11410_v23  ;;  %9522 = vmatprep.subr.mxu1 %v7587_v25  ;;  %v11567_v23 = vld [vmem:[%s11042_s30 + $0x5b] sm:$0xff] }
  0x83   : > { %9583 = vmatpush3.msra.mxu0 %v7624_v21  ;;  %9523 = vmatpush3.msra.mxu1 %v7587_v25  ;;  %v7671_v21 = vld [vmem:[%s14645_s1 + $0x2f0] sm:$0xff]  ;;  %v11466_v25 = vld [vmem:[%s11042_s30 + $0x1b] sm:$0xff] }
  0x84   : > { %9431 = vmatprep.mubr.f32.mxu1 %v11418_v31  ;;  %9524 = vmatprep.subr.mxu1 %v7586_v34 }
  0x85   : > { %9584 = vmatprep.subr.mxu0 %v7623_v37  ;;  %9432 = vmatmul.mubr.f32.gmra.mxu1 %v11428_v39 }
  0x86   : > { %9493 = vmatprep.mubr.f32.mxu0 %v11431_v43  ;;  %9525 = vmatpush3.msra.mxu1 %v7586_v34  ;;  %v11469_v34 = vld [vmem:[%s11042_s30 + $0x14] sm:$0xff] }
  0x87   : > { %9585 = vmatpush3.msra.mxu0 %v7623_v37  ;;  %9526 = vmatprep.subr.mxu1 %v7585_v46  ;;  %14689 = vst [vmem:[#allocation10_spill] sm:$0xff] %v11469_v34  ;;  %v11473_v37 = vld [vmem:[%s11042_s30 + $0x1c] sm:$0xff]  ;;  %v7611_v43 = vld [vmem:[%s11042_s30 + $0x54] sm:$0xff] }
  0x88   : > { %9494 = vmatmul.mubr.f32.gmra.mxu0 %v11439_v52  ;;  %9586 = vmatprep.subr.mxu0 %v7622_v53  ;;  %14690 = vst [vmem:[#allocation11_spill] sm:$0xff] %v11473_v37  ;;  %v11555_v52 = vld [vmem:[%s11042_s30 + $0x4c] sm:$0xff] }
  0x89   : > { %9587 = vmatpush3.msra.mxu0 %v7622_v53  ;;  %9527 = vmatpush3.msra.mxu1 %v7585_v46  ;;  %v7670_v46 = vld [vmem:[%s14645_s1 + $0x2e8] sm:$0xff]  ;;  %v7707_v53 = vld [vmem:[%s14645_s1 + $0x370] sm:$0xff]  ;;  %14696 = vst [vmem:[#allocation17_spill] sm:$0xff] %v11555_v52 }
  0x8a   : > { %9528 = vmatprep.mubr.f32.mxu1 %v7565_v57  ;;  %9588 = vmatprep.subr.mxu0 %v7621_v59  ;;  %v11485_v57 = vld [vmem:[%s11042_s30 + $0x23] sm:$0xff] }
  0x8b   : > { %9529 = vmatmul.mubr.f32.vlgmr.msra.gmra.mxu1 %v7566_v1  ;;  %9589 = vmatpush3.msra.mxu0 %v7621_v59  ;;  %v7706_v59 = vld [vmem:[%s14645_s1 + $0x368] sm:$0xff] }
  0x8c   : > { %9590 = vmatprep.mubr.f32.mxu0 %v7601_v2  ;;  %9620 = vmatprep.subr.mxu1 %v7672_v4  ;;  %v11491_v1 = vld [vmem:[%s11042_s30 + $0x2b] sm:$0xff] }
  0x8d   : > { %9591 = vmatmul.mubr.f32.vlgmr.msra.gmra.mxu0 %v7602_v7  ;;  %9621 = vmatpush3.msra.mxu1 %v7672_v4  ;;  %v11494_v2 = vld [vmem:[%s11042_s30 + $0x24] sm:$0xff]  ;;  %v11501_v7 = vld [vmem:[%s11042_s30 + $0x2c] sm:$0xff] }
  0x8e   : > { %9682 = vmatprep.subr.mxu0 %v7708_v9  ;;  %9531 = vmatprep.mubr.f32.mxu1 %v11460_v11  ;;  %14691 = vst [vmem:[#allocation12_spill] sm:$0xff] %v11494_v2  ;;  %v7669_v4 = vld [vmem:[%s14645_s1 + $0x2e0] sm:$0xff]  ;;  %14692 = vst [vmem:[#allocation13_spill] sm:$0xff] %v11501_v7 }
  0x8f   : > { %9622 = vmatprep.subr.mxu1 %v7671_v21  ;;  %9683 = vmatpush3.msra.mxu0 %v7708_v9  ;;  %v7668_v9 = vld [vmem:[%s14645_s1 + $0x2d8] sm:$0xff] }
  0x90   : > { %9532 = vmatmul.mubr.f32.gmra.mxu1 %v11466_v25  ;;  %9593 = vmatprep.mubr.f32.mxu0 %v11469_v34  ;;  %v7666_v34 = vld [vmem:[%s14645_s1 + $0x2c8] sm:$0xff] }
  0x91   : > { %9623 = vmatpush3.msra.mxu1 %v7671_v21  ;;  %9594 = vmatmul.mubr.f32.gmra.mxu0 %v11473_v37  ;;  %v7705_v21 = vld [vmem:[%s14645_s1 + $0x360] sm:$0xff]  ;;  %v7704_v37 = vld [vmem:[%s14645_s1 + $0x358] sm:$0xff] }
  0x92   : > { %9624 = vmatprep.subr.mxu1 %v7670_v46  ;;  %9684 = vmatprep.subr.mxu0 %v7707_v53 }
  0x93   : > { %9625 = vmatpush3.msra.mxu1 %v7670_v46  ;;  %9685 = vmatpush3.msra.mxu0 %v7707_v53  ;;  %v11512_v46 = vld [vmem:[%s11042_s30 + $0x33] sm:$0xff]  ;;  %v11516_v53 = vld [vmem:[%s11042_s30 + $0x3b] sm:$0xff] }
  0x94   : > { %9534 = vmatprep.mubr.f32.mxu1 %v11485_v57  ;;  %9686 = vmatprep.subr.mxu0 %v7706_v59 }
  0x95   : > { %9535 = vmatmul.mubr.f32.gmra.mxu1 %v11491_v1  ;;  %9596 = vmatprep.mubr.f32.mxu0 %v11494_v2  ;;  %v11519_v2 = vld [vmem:[%s11042_s30 + $0x34] sm:$0xff] }
  0x96   : > { %9626 = vmatprep.subr.mxu1 %v7669_v4  ;;  %9687 = vmatpush3.msra.mxu0 %v7706_v59  ;;  %14693 = vst [vmem:[#allocation14_spill] sm:$0xff] %v11519_v2  ;;  %v11526_v59 = vld [vmem:[%s11042_s30 + $0x3c] sm:$0xff] }
  0x97   : > { %9597 = vmatmul.mubr.f32.gmra.mxu0 %v11501_v7  ;;  %9627 = vmatpush3.msra.mxu1 %v7669_v4  ;;  %14694 = vst [vmem:[#allocation15_spill] sm:$0xff] %v11526_v59  ;;  %v7667_v4 = vld [vmem:[%s14645_s1 + $0x2d0] sm:$0xff]  ;;  %v11534_v7 = vld [vmem:[%s11042_s30 + $0x43] sm:$0xff] }
  0x98   : > { %9628 = vmatprep.subr.mxu1 %v7668_v9  ;;  %9688 = vmatprep.subr.mxu0 %v7705_v21 }
  0x99   : > { %9537 = vmatprep.mubr.f32.mxu1 %v11512_v46  ;;  %9629 = vmatpush3.msra.mxu1 %v7668_v9  ;;  %v7703_v9 = vld [vmem:[%s14645_s1 + $0x350] sm:$0xff] }
  0x9a   : > { %9689 = vmatpush3.msra.mxu0 %v7705_v21  ;;  %9538 = vmatmul.mubr.f32.gmra.mxu1 %v11516_v53  ;;  %v11544_v21 = vld [vmem:[%s11042_s30 + $0x4b] sm:$0xff] }
  0x9b   : > { %9599 = vmatprep.mubr.f32.mxu0 %v11519_v2  ;;  %9690 = vmatprep.subr.mxu0 %v7704_v37  ;;  %v11547_v2 = vld [vmem:[%s11042_s30 + $0x44] sm:$0xff] }
  0x9c   : > { %9600 = vmatmul.mubr.f32.gmra.mxu0 %v11526_v59  ;;  %9630 = vmatprep.subr.mxu1 %v7667_v4  ;;  %14695 = vst [vmem:[#allocation16_spill] sm:$0xff] %v11547_v2  ;;  %v7665_v59 = vld [vmem:[%s14645_s1 + $0x2c0] sm:$0xff] }
  0x9d   : > { %9691 = vmatpush3.msra.mxu0 %v7704_v37  ;;  %9631 = vmatpush3.msra.mxu1 %v7667_v4  ;;  %v7702_v37 = vld [vmem:[%s14645_s1 + $0x348] sm:$0xff]  ;;  %v11562_v4 = vld [vmem:[%s11042_s30 + $0x53] sm:$0xff] }
  0x9e   : > { %9540 = vmatprep.mubr.f32.mxu1 %v11534_v7  ;;  %9632 = vmatprep.subr.mxu1 %v7666_v34 }
  0x9f   : > { %9692 = vmatprep.subr.mxu0 %v7703_v9  ;;  %9541 = vmatmul.mubr.f32.gmra.mxu1 %v11544_v21 }
  0xa0   : > { %9602 = vmatprep.mubr.f32.mxu0 %v11547_v2  ;;  %9633 = vmatpush3.msra.mxu1 %v7666_v34  ;;  %v7701_v34 = vld [vmem:[%s14645_s1 + $0x340] sm:$0xff] }
  0xa1   : > { %9693 = vmatpush3.msra.mxu0 %v7703_v9  ;;  %9634 = vmatprep.subr.mxu1 %v7665_v59  ;;  %v7612_v9 = vld [vmem:[%s11042_s30 + $0x5c] sm:$0xff] }
  0xa2   : > { %9603 = vmatmul.mubr.f32.gmra.mxu0 %v11555_v52  ;;  %9694 = vmatprep.subr.mxu0 %v7702_v37  ;;  %v7700_v52 = vld [vmem:[%s14645_s1 + $0x338] sm:$0xff]  ;;  %v11582_v2 = vld [vmem:[%s11042_s30 + $0x63] sm:$0xff] }
  0xa3   : > { %9695 = vmatpush3.msra.mxu0 %v7702_v37  ;;  %9543 = vmatprep.mubr.f32.mxu1 %v11562_v4  ;;  %v7663_v37 = vld [vmem:[%s14645_s1 + $0x2b0] sm:$0xff] }
  0xa4   : > { %9635 = vmatpush3.msra.mxu1 %v7665_v59  ;;  %9605 = vmatprep.mubr.f32.mxu0 %v7611_v43  ;;  %v11588_v59 = vld [vmem:[%s11042_s30 + $0x6b] sm:$0xff] }
  0xa5   : > { %9544 = vmatmul.mubr.f32.gmra.mxu1 %v11567_v23  ;;  %9636 = vmatprep.subr.mxu1 %v7664_v18  ;;  %14697 = vst [vmem:[#allocation18_spill] sm:$0xff] %v11588_v59  ;;  %v7613_v43 = vld [vmem:[%s11042_s30 + $0x64] sm:$0xff] }
  0xa6   : > { %9696 = vmatprep.subr.mxu0 %v7701_v34  ;;  %9606 = vmatmul.mubr.f32.gmra.mxu0 %v7612_v9  ;;  %v7662_v9 = vld [vmem:[%s14645_s1 + $0x2a8] sm:$0xff] }
  0xa7   : > { %9637 = vmatpush3.msra.mxu1 %v7664_v18  ;;  %9697 = vmatpush3.msra.mxu0 %v7701_v34  ;;  %v7699_v18 = vld [vmem:[%s14645_s1 + $0x330] sm:$0xff] }
  0xa8   : > { %9698 = vmatprep.subr.mxu0 %v7700_v52  ;;  %9546 = vmatprep.mubr.f32.mxu1 %v11582_v2  ;;  %v11601_v34 = vld [vmem:[%s11042_s30 + $0x73] sm:$0xff] }
  0xa9   : > { %9638 = vmatprep.subr.mxu1 %v7663_v37  ;;  %9699 = vmatpush3.msra.mxu0 %v7700_v52  ;;  %14698 = vst [vmem:[#allocation19_spill] sm:$0xff] %v11601_v34  ;;  %v7698_v52 = vld [vmem:[%s14645_s1 + $0x328] sm:$0xff] }
  0xaa   : > { %9547 = vmatmul.mubr.f32.gmra.mxu1 %v11588_v59  ;;  %9608 = vmatprep.mubr.f32.mxu0 %v7613_v43  ;;  %v7660_v43 = vld [vmem:[%s14645_s1 + $0x298] sm:$0xff]  ;;  %v7658_v59 = vld [vmem:[%s14645_s1 + $0x288] sm:$0xff] }
  0xab   : > { %9639 = vmatpush3.msra.mxu1 %v7663_v37  ;;  %9609 = vmatmul.mubr.f32.gmra.mxu0 %v7614_v8  ;;  %v7661_v37 = vld [vmem:[%s14645_s1 + $0x2a0] sm:$0xff] }
  0xac   : > { %9640 = vmatprep.subr.mxu1 %v7662_v9  ;;  %9700 = vmatprep.subr.mxu0 %v7699_v18  ;;  %v7616_v8 = vld [vmem:[%s11042_s30 + $0x7c] sm:$0xff] }
  0xad   : > { %9641 = vmatpush3.msra.mxu1 %v7662_v9  ;;  %9701 = vmatpush3.msra.mxu0 %v7699_v18  ;;  %v7697_v9 = vld [vmem:[%s14645_s1 + $0x320] sm:$0xff] }
  0xae   : > { %9549 = vmatprep.mubr.f32.mxu1 %v11601_v34  ;;  %9702 = vmatprep.subr.mxu0 %v7698_v52  ;;  %v11623_v18 = vld [vmem:[%s11042_s30 + $0x83] sm:$0xff]  ;;  %v11626_v34 = vld [vmem:[%s11042_s30 + $0x8b] sm:$0xff] }
  0xaf   : > { %9550 = vmatmul.mubr.f32.gmra.mxu1 %v11607_v6  ;;  %9611 = vmatprep.mubr.f32.mxu0 %v7615_v63  ;;  %14700 = vst [vmem:[#allocation21_spill] sm:$0xff] %v11623_v18  ;;  %14701 = vst [vmem:[#allocation22_spill] sm:$0xff] %v11626_v34  ;;  %v7617_v63 = vld [vmem:[%s11042_s30 + $0x84] sm:$0xff]  ;;  %v7696_v6 = vld [vmem:[%s14645_s1 + $0x318] sm:$0xff] }
  0xb0   : > { %9642 = vmatprep.subr.mxu1 %v7661_v37  ;;  %9703 = vmatpush3.msra.mxu0 %v7698_v52  ;;  %v7618_v52 = vld [vmem:[%s11042_s30 + $0x8c] sm:$0xff] }
  0xb1   : > { %9612 = vmatmul.mubr.f32.gmra.mxu0 %v7616_v8  ;;  %9643 = vmatpush3.msra.mxu1 %v7661_v37  ;;  %v7659_v8 = vld [vmem:[%s14645_s1 + $0x290] sm:$0xff] }
  0xb2   : > { %9644 = vmatprep.subr.mxu1 %v7660_v43  ;;  %9704 = vmatprep.subr.mxu0 %v7697_v9  ;;  %v11639_v37 = vld [vmem:[%s11042_s30 + $0x93] sm:$0xff] }
  0xb3   : > { %9552 = vmatprep.mubr.f32.mxu1 %v11623_v18  ;;  %9645 = vmatpush3.msra.mxu1 %v7660_v43  ;;  %v7695_v43 = vld [vmem:[%s14645_s1 + $0x310] sm:$0xff]  ;;  %v11648_v18 = vld [vmem:[%s11042_s30 + $0x9b] sm:$0xff] }
  0xb4   : > { %9705 = vmatpush3.msra.mxu0 %v7697_v9  ;;  %9553 = vmatmul.mubr.f32.gmra.mxu1 %v11626_v34  ;;  %v7619_v9 = vld [vmem:[%s11042_s30 + $0x94] sm:$0xff]  ;;  %v7694_v34 = vld [vmem:[%s14645_s1 + $0x308] sm:$0xff] }
  0xb5   : > { %9614 = vmatprep.mubr.f32.mxu0 %v7617_v63  ;;  %9706 = vmatprep.subr.mxu0 %v7696_v6  ;;  %v7657_v63 = vld [vmem:[%s14645_s1 + $0x280] sm:$0xff] }
  0xb6   : > { %9615 = vmatmul.mubr.f32.gmra.mxu0 %v7618_v52  ;;  %9646 = vmatprep.subr.mxu1 %v7659_v8  ;;  %v7620_v52 = vld [vmem:[%s11042_s30 + $0x9c] sm:$0xff] }
  0xb7   : > { %9707 = vmatpush3.msra.mxu0 %v7696_v6  ;;  %9647 = vmatpush3.msra.mxu1 %v7659_v8  ;;  %v7693_v6 = vld [vmem:[%s14645_s1 + $0x300] sm:$0xff]  ;;  %v7744_v8 = vld [vmem:[%s14645_s1 + $0x3f8] sm:$0xff] }
  0xb8   : > { %9555 = vmatprep.mubr.f32.mxu1 %v11639_v37  ;;  %9648 = vmatprep.subr.mxu1 %v7658_v59 }
  0xb9   : > { %9708 = vmatprep.subr.mxu0 %v7695_v43  ;;  %9556 = vmatmul.mubr.f32.gmra.mxu1 %v11648_v18 }
  0xba   : > { %9617 = vmatprep.mubr.f32.mxu0 %v7619_v9  ;;  %9649 = vmatpush3.msra.mxu1 %v7658_v59  ;;  %v7780_v59 = vld [vmem:[%s14645_s1 + $0x478] sm:$0xff]  ;;  %v11802_v9 = vld [vmem:[%s11042_s30 + $0xa8] sm:$0xff] }
  0xbb   : > { %9709 = vmatpush3.msra.mxu0 %v7695_v43  ;;  %9650 = vmatprep.subr.mxu1 %v7657_v63  ;;  %v7767_v43 = vld [vmem:[%s14645_s1 + $0x410] sm:$0xff] }
  0xbc   : > { %9618 = vmatmul.mubr.f32.gmra.mxu0 %v7620_v52  ;;  %9710 = vmatprep.subr.mxu0 %v7694_v34  ;;  %v7766_v52 = vld [vmem:[%s14645_s1 + $0x408] sm:$0xff] }
  0xbd   : > { %9711 = vmatpush3.msra.mxu0 %v7694_v34  ;;  %9651 = vmatpush3.msra.mxu1 %v7657_v63  ;;  %v7743_v34 = vld [vmem:[%s14645_s1 + $0x3f0] sm:$0xff]  ;;  %v7729_v63 = vld [vmem:[%s14645_s1 + $0x380] sm:$0xff] }
  0xbe   : > { %9652 = vmatprep.mubr.f32.mxu1 %v11064_v24  ;;  %9712 = vmatprep.subr.mxu0 %v7693_v6  ;;  %v7742_v24 = vld [vmem:[%s14645_s1 + $0x3e8] sm:$0xff] }
  0xbf   : > { %9653 = vmatmul.mubr.f32.vlgmr.msra.gmra.mxu1 %v11070_v26  ;;  %9713 = vmatpush3.msra.mxu0 %v7693_v6  ;;  %v7779_v26 = vld [vmem:[%s14645_s1 + $0x470] sm:$0xff]  ;;  %v7765_v6 = vld [vmem:[%s14645_s1 + $0x400] sm:$0xff] }
  0xc0   : > { %9714 = vmatprep.mubr.f32.mxu0 %v11216_v10  ;;  %9744 = vmatprep.subr.mxu1 %v7744_v8  ;;  %v7741_v10 = vld [vmem:[%s14645_s1 + $0x3e0] sm:$0xff] }
  0xc1   : > { %9715 = vmatmul.mubr.f32.vlgmr.msra.gmra.mxu0 %v11222_v12  ;;  %9745 = vmatpush3.msra.mxu1 %v7744_v8  ;;  %v7777_v12 = vld [vmem:[%s14645_s1 + $0x460] sm:$0xff] }
  0xc2   : > { %9806 = vmatprep.subr.mxu0 %v7780_v59  ;;  %9655 = vmatprep.mubr.f32.mxu1 %v11084_v30  ;;  %v7778_v30 = vld [vmem:[%s14645_s1 + $0x468] sm:$0xff] }
  0xc3   : > { %9746 = vmatprep.subr.mxu1 %v7743_v34  ;;  %9807 = vmatpush3.msra.mxu0 %v7780_v59  ;;  %v7816_v59 = vld [vmem:[%s14645_s1 + $0x4f8] sm:$0xff] }
  0xc4   : > { %9656 = vmatmul.mubr.f32.gmra.mxu1 %v11090_v32  ;;  %9717 = vmatprep.mubr.f32.mxu0 %v11241_v17  ;;  %v7740_v32 = vld [vmem:[%s14645_s1 + $0x3d8] sm:$0xff]  ;;  %v7738_v17 = vld [vmem:[%s14645_s1 + $0x3c8] sm:$0xff] }
  0xc5   : > { %9747 = vmatpush3.msra.mxu1 %v7743_v34  ;;  %9718 = vmatmul.mubr.f32.gmra.mxu0 %v11247_v19  ;;  %v7774_v19 = vld [vmem:[%s14645_s1 + $0x448] sm:$0xff] }
  0xc6   : > { %9748 = vmatprep.subr.mxu1 %v7742_v24  ;;  %9808 = vmatprep.subr.mxu0 %v7779_v26 }
  0xc7   : > { %9749 = vmatpush3.msra.mxu1 %v7742_v24  ;;  %9809 = vmatpush3.msra.mxu0 %v7779_v26  ;;  %v7852_v24 = vld [vmem:[%s14645_s1 + $0x578] sm:$0xff]  ;;  %v7815_v26 = vld [vmem:[%s14645_s1 + $0x4f0] sm:$0xff] }
  0xc8   : > { %9658 = vmatprep.mubr.f32.mxu1 %v11104_v36  ;;  %9810 = vmatprep.subr.mxu0 %v7778_v30  ;;  %v7776_v36 = vld [vmem:[%s14645_s1 + $0x458] sm:$0xff] }
  0xc9   : > { %9659 = vmatmul.mubr.f32.gmra.mxu1 %v11110_v38  ;;  %9720 = vmatprep.mubr.f32.mxu0 %v11268_v27  ;;  %v7739_v38 = vld [vmem:[%s14645_s1 + $0x3d0] sm:$0xff]  ;;  %v7772_v27 = vld [vmem:[%s14645_s1 + $0x438] sm:$0xff] }
  0xca   : > { %9750 = vmatprep.subr.mxu1 %v7741_v10  ;;  %9811 = vmatpush3.msra.mxu0 %v7778_v30 }
  0xcb   : > { %9721 = vmatmul.mubr.f32.gmra.mxu0 %v11272_v28  ;;  %9751 = vmatpush3.msra.mxu1 %v7741_v10  ;;  %v7771_v28 = vld [vmem:[%s14645_s1 + $0x430] sm:$0xff]  ;;  %v7813_v10 = vld [vmem:[%s14645_s1 + $0x4e0] sm:$0xff] }
  0xcc   : > { %9752 = vmatprep.subr.mxu1 %v7740_v32  ;;  %9812 = vmatprep.subr.mxu0 %v7777_v12 }
  0xcd   : > { %9661 = vmatprep.mubr.f32.mxu1 %v11124_v42  ;;  %9753 = vmatpush3.msra.mxu1 %v7740_v32  ;;  %v7775_v42 = vld [vmem:[%s14645_s1 + $0x450] sm:$0xff] }
  0xce   : > { %9813 = vmatpush3.msra.mxu0 %v7777_v12  ;;  %9662 = vmatmul.mubr.f32.gmra.mxu1 %v11130_v44  ;;  %v7737_v44 = vld [vmem:[%s14645_s1 + $0x3c0] sm:$0xff] }
  0xcf   : > { %9723 = vmatprep.mubr.f32.mxu0 %v11290_v35  ;;  %9814 = vmatprep.subr.mxu0 %v7776_v36  ;;  %v11755_v35 = vld [vmem:[%s11042_s30 + $0x80] sm:$0xff] }
  0xd0   : > { %9724 = vmatmul.mubr.f32.gmra.mxu0 %v11300_v40  ;;  %9754 = vmatprep.subr.mxu1 %v7739_v38  ;;  %v11761_v40 = vld [vmem:[%s11042_s30 + $0x88] sm:$0xff] }
  0xd1   : > { %9815 = vmatpush3.msra.mxu0 %v7776_v36  ;;  %9755 = vmatpush3.msra.mxu1 %v7739_v38 }
  0xd2   : > { %9664 = vmatprep.mubr.f32.mxu1 %v11144_v48  ;;  %9756 = vmatprep.subr.mxu1 %v7738_v17  ;;  %v7736_v48 = vld [vmem:[%s14645_s1 + $0x3b8] sm:$0xff] }
  0xd3   : > { %9816 = vmatprep.subr.mxu0 %v7775_v42  ;;  %9665 = vmatmul.mubr.f32.gmra.mxu1 %v11150_v50  ;;  %v7773_v50 = vld [vmem:[%s14645_s1 + $0x440] sm:$0xff] }
  0xd4   : > { %9726 = vmatprep.mubr.f32.mxu0 %v11318_v47  ;;  %9757 = vmatpush3.msra.mxu1 %v7738_v17  ;;  %v7732_v47 = vld [vmem:[%s14645_s1 + $0x398] sm:$0xff] }
  0xd5   : > { %9817 = vmatpush3.msra.mxu0 %v7775_v42  ;;  %9758 = vmatprep.subr.mxu1 %v7737_v44  ;;  %v7844_v17 = vld [vmem:[%s14645_s1 + $0x538] sm:$0xff] }
  0xd6   : > { %9727 = vmatmul.mubr.f32.gmra.mxu0 %v11325_v51  ;;  %9818 = vmatprep.subr.mxu0 %v7774_v19  ;;  %v7769_v51 = vld [vmem:[%s14645_s1 + $0x420] sm:$0xff] }
  0xd7   : > { %9819 = vmatpush3.msra.mxu0 %v7774_v19  ;;  %9667 = vmatprep.mubr.f32.mxu1 %v11164_v54  ;;  %v7735_v54 = vld [vmem:[%s14645_s1 + $0x3b0] sm:$0xff] }
  0xd8   : > { %9759 = vmatpush3.msra.mxu1 %v7737_v44  ;;  %9729 = vmatprep.mubr.f32.mxu0 %v11343_v58  ;;  %v11776_v58 = vld [vmem:[%s11042_s30 + $0x90] sm:$0xff] }
  0xd9   : > { %9668 = vmatmul.mubr.f32.gmra.mxu1 %v11170_v56  ;;  %9760 = vmatprep.subr.mxu1 %v7736_v48  ;;  %v7734_v56 = vld [vmem:[%s14645_s1 + $0x3a8] sm:$0xff]  ;;  %v7807_v44 = vld [vmem:[%s14645_s1 + $0x4b0] sm:$0xff] }
  0xda   : > { %9820 = vmatprep.subr.mxu0 %v7773_v50  ;;  %9730 = vmatmul.mubr.f32.gmra.mxu0 %v11350_v60  ;;  %v11780_v60 = vld [vmem:[%s11042_s30 + $0x98] sm:$0xff] }
  0xdb   : > { %9761 = vmatpush3.msra.mxu1 %v7736_v48  ;;  %9821 = vmatpush3.msra.mxu0 %v7773_v50  ;;  %v14710_v48 = vld [vmem:[#allocation4_spill] sm:$0xff] }
  0xdc   : > { %9822 = vmatprep.subr.mxu0 %v7772_v27  ;;  %9670 = vmatprep.mubr.f32.mxu1 %v11186_v62  ;;  %v7770_v62 = vld [vmem:[%s14645_s1 + $0x428] sm:$0xff] }
  0xdd   : > { %9762 = vmatprep.subr.mxu1 %v7735_v54  ;;  %9823 = vmatpush3.msra.mxu0 %v7772_v27  ;;  %v7806_v50 = vld [vmem:[%s14645_s1 + $0x4a8] sm:$0xff]  ;;  %v7843_v27 = vld [vmem:[%s14645_s1 + $0x530] sm:$0xff] }
  0xde   : > { %9671 = vmatmul.mubr.f32.gmra.mxu1 %v11192_v0  ;;  %9732 = vmatprep.mubr.f32.mxu0 %v11369_v3  ;;  %v7733_v0 = vld [vmem:[%s14645_s1 + $0x3a0] sm:$0xff]  ;;  %v7768_v3 = vld [vmem:[%s14645_s1 + $0x418] sm:$0xff] }
  0xdf   : > { %9763 = vmatpush3.msra.mxu1 %v7735_v54  ;;  %9733 = vmatmul.mubr.f32.gmra.mxu0 %v11375_v5  ;;  %v7731_v5 = vld [vmem:[%s14645_s1 + $0x390] sm:$0xff] }
  0xe0   : > { %9764 = vmatprep.subr.mxu1 %v7734_v56  ;;  %9824 = vmatprep.subr.mxu0 %v7771_v28 }
  0xe1   : > { %9765 = vmatpush3.msra.mxu1 %v7734_v56  ;;  %9825 = vmatpush3.msra.mxu0 %v7771_v28  ;;  %v14711_v56 = vld [vmem:[#allocation5_spill] sm:$0xff]  ;;  %v14712_v28 = vld [vmem:[#allocation19_spill] sm:$0xff] }
  0xe2   : > { %9673 = vmatprep.mubr.f32.mxu1 %v11755_v35  ;;  %9826 = vmatprep.subr.mxu0 %v7770_v62 }
  0xe3   : > { %9674 = vmatmul.mubr.f32.gmra.mxu1 %v11761_v40  ;;  %9735 = vmatprep.mubr.f32.mxu0 %v11396_v15  ;;  %v11792_v15 = vld [vmem:[%s11042_s30 + $0xa0] sm:$0xff] }
  0xe4   : > { %9766 = vmatprep.subr.mxu1 %v7733_v0  ;;  %9827 = vmatpush3.msra.mxu0 %v7770_v62  ;;  %v14713_v62 = vld [vmem:[#allocation20_spill] sm:$0xff] }
  0xe5   : > { %9736 = vmatmul.mubr.f32.gmra.mxu0 %v11400_v16  ;;  %9767 = vmatpush3.msra.mxu1 %v7733_v0  ;;  %v7730_v16 = vld [vmem:[%s14645_s1 + $0x388] sm:$0xff] }
  0xe6   : > { %9768 = vmatprep.subr.mxu1 %v7732_v47  ;;  %9828 = vmatprep.subr.mxu0 %v7769_v51  ;;  %v7842_v0 = vld [vmem:[%s14645_s1 + $0x528] sm:$0xff] }
  0xe7   : > { %9676 = vmatprep.mubr.f32.mxu1 %v11776_v58  ;;  %9769 = vmatpush3.msra.mxu1 %v7732_v47 }
  0xe8   : > { %9829 = vmatpush3.msra.mxu0 %v7769_v51  ;;  %9677 = vmatmul.mubr.f32.gmra.mxu1 %v11780_v60  ;;  %v7805_v51 = vld [vmem:[%s14645_s1 + $0x4a0] sm:$0xff] }
  0xe9   : > { %9738 = vmatprep.mubr.f32.mxu0 %v11418_v31  ;;  %9830 = vmatprep.subr.mxu0 %v7768_v3  ;;  %v7691_v31 = vld [vmem:[%s11042_s30 + $0xa1] sm:$0xff] }
  0xea   : > { %9739 = vmatmul.mubr.f32.gmra.mxu0 %v11428_v39  ;;  %9770 = vmatprep.subr.mxu1 %v7731_v5  ;;  %v7692_v39 = vld [vmem:[%s11042_s30 + $0xa9] sm:$0xff] }
  0xeb   : > { %9831 = vmatpush3.msra.mxu0 %v7768_v3  ;;  %9771 = vmatpush3.msra.mxu1 %v7731_v5 }
  0xec   : > { %9679 = vmatprep.mubr.f32.mxu1 %v11792_v15  ;;  %9772 = vmatprep.subr.mxu1 %v7730_v16 }
  0xed   : > { %9832 = vmatprep.subr.mxu0 %v7767_v43  ;;  %9680 = vmatmul.mubr.f32.gmra.mxu1 %v11802_v9 }
  0xee   : > { %9741 = vmatprep.mubr.f32.mxu0 %v7691_v31  ;;  %9773 = vmatpush3.msra.mxu1 %v7730_v16  ;;  %v14716_v16 = vld [vmem:[#allocation6_spill] sm:$0xff]  ;;  %v14718_v31 = vld [vmem:[#allocation21_spill] sm:$0xff] }
  0xef   : > { %9833 = vmatpush3.msra.mxu0 %v7767_v43  ;;  %9774 = vmatprep.subr.mxu1 %v7729_v63  ;;  %v11817_v8 = vpop.f32.mrf.mxu0  ;;  %v14717_v43 = vld [vmem:[#allocation7_spill] sm:$0xff] }
  0xf0   : > { %9742 = vmatmul.mubr.f32.gmra.mxu0 %v7692_v39  ;;  %9834 = vmatprep.subr.mxu0 %v7766_v52  ;;  %v7841_v39 = vld [vmem:[%s14645_s1 + $0x520] sm:$0xff] }
  0xf1   : > { %9835 = vmatpush3.msra.mxu0 %v7766_v52  ;;  %9775 = vmatpush3.msra.mxu1 %v7729_v63  ;;  %v11822_v34 = vpop.f32.mrf.mxu0  ;;  %v7804_v63 = vld [vmem:[%s14645_s1 + $0x498] sm:$0xff] }
  0xf2   : > { %14702 = vst [vmem:[#allocation23_spill] sm:$0xff] %v11822_v34  ;;  %9776 = vmatprep.mubr.f32.mxu1 %v11225_v13  ;;  %9836 = vmatprep.subr.mxu0 %v7765_v6 }
  0xf3   : > { %9777 = vmatmul.mubr.f32.vlgmr.msra.gmra.mxu1 %v11229_v14  ;;  %9837 = vmatpush3.msra.mxu0 %v7765_v6  ;;  %v7814_v14 = vld [vmem:[%s14645_s1 + $0x4e8] sm:$0xff] }
  0xf4   : > { %9838 = vmatprep.mubr.f32.mxu0 %v11460_v11  ;;  %9868 = vmatprep.subr.mxu1 %v7816_v59  ;;  %v11833_v30 = vpop.f32.mrf.mxu0  ;;  %v7851_v11 = vld [vmem:[%s14645_s1 + $0x570] sm:$0xff] }
  0xf5   : > { %9839 = vmatmul.mubr.f32.vlgmr.msra.gmra.mxu0 %v11466_v25  ;;  %9869 = vmatpush3.msra.mxu1 %v7816_v59  ;;  %v14719_v59 = vld [vmem:[#allocation22_spill] sm:$0xff] }
  0xf6   : > { %9930 = vmatprep.subr.mxu0 %v7852_v24  ;;  %9779 = vmatprep.mubr.f32.mxu1 %v11250_v20  ;;  %v11837_v13 = vpop.f32.mrf.mxu0  ;;  %v7850_v20 = vld [vmem:[%s14645_s1 + $0x568] sm:$0xff] }
  0xf7   : > { %14703 = vst [vmem:[#allocation24_spill] sm:$0xff] %v11837_v13  ;;  %9870 = vmatprep.subr.mxu1 %v7815_v26  ;;  %9931 = vmatpush3.msra.mxu0 %v7852_v24  ;;  %v12361_v13 = vld [vmem:[%s11042_s30 + $0x69] sm:$0xff] }
  0xf8   : > { %9780 = vmatmul.mubr.f32.gmra.mxu1 %v11257_v22  ;;  %9841 = vmatprep.mubr.f32.mxu0 %v11485_v57  ;;  %v7812_v57 = vld [vmem:[%s14645_s1 + $0x4d8] sm:$0xff] }
  0xf9   : > { %9871 = vmatpush3.msra.mxu1 %v7815_v26  ;;  %9842 = vmatmul.mubr.f32.gmra.mxu0 %v11491_v1  ;;  %v11851_v25 = vpop.f32.mrf.mxu0  ;;  %v7849_v1 = vld [vmem:[%s14645_s1 + $0x560] sm:$0xff] }
  0xfa   : > { %9872 = vmatprep.subr.mxu1 %v7814_v14  ;;  %9932 = vmatprep.subr.mxu0 %v7851_v11 }
  0xfb   : > { %9873 = vmatpush3.msra.mxu1 %v7814_v14  ;;  %9933 = vmatpush3.msra.mxu0 %v7851_v11  ;;  %v11856_v22 = vpop.f32.mrf.mxu0  ;;  %v7840_v14 = vld [vmem:[%s14645_s1 + $0x518] sm:$0xff] }
  0xfc   : > { %14704 = vst [vmem:[#allocation25_spill] sm:$0xff] %v11856_v22  ;;  %9782 = vmatprep.mubr.f32.mxu1 %v11275_v29  ;;  %9934 = vmatprep.subr.mxu0 %v7850_v20  ;;  %v7848_v29 = vld [vmem:[%s14645_s1 + $0x558] sm:$0xff] }
  0xfd   : > { %9783 = vmatmul.mubr.f32.gmra.mxu1 %v11282_v33  ;;  %9844 = vmatprep.mubr.f32.mxu0 %v11512_v46  ;;  %v7811_v46 = vld [vmem:[%s14645_s1 + $0x4d0] sm:$0xff] }
  0xfe   : > { %9874 = vmatprep.subr.mxu1 %v7813_v10  ;;  %9935 = vmatpush3.msra.mxu0 %v7850_v20  ;;  %v11867_v32 = vpop.f32.mrf.mxu0  ;;  %v14721_v20 = vld [vmem:[#allocation8_spill] sm:$0xff] }
  0xff   : > { %9845 = vmatmul.mubr.f32.gmra.mxu0 %v11516_v53  ;;  %9875 = vmatpush3.msra.mxu1 %v7813_v10  ;;  %v7810_v53 = vld [vmem:[%s14645_s1 + $0x4c8] sm:$0xff] }
 0x100   : > { %9876 = vmatprep.subr.mxu1 %v7812_v57  ;;  %9936 = vmatprep.subr.mxu0 %v7849_v1  ;;  %v11873_v33 = vpop.f32.mrf.mxu0 }
 0x101   : > { %14705 = vst [vmem:[#allocation26_spill] sm:$0xff] %v11873_v33  ;;  %9785 = vmatprep.mubr.f32.mxu1 %v11303_v41  ;;  %9877 = vmatpush3.msra.mxu1 %v7812_v57  ;;  %v7847_v41 = vld [vmem:[%s14645_s1 + $0x550] sm:$0xff] }
 0x102   : > { %9937 = vmatpush3.msra.mxu0 %v7849_v1  ;;  %9786 = vmatmul.mubr.f32.gmra.mxu1 %v11311_v45  ;;  %v7809_v45 = vld [vmem:[%s14645_s1 + $0x4c0] sm:$0xff]  ;;  %v14723_v57 = vld [vmem:[#allocation9_spill] sm:$0xff] }
 0x103   : > { %9847 = vmatprep.mubr.f32.mxu0 %v11534_v7  ;;  %9938 = vmatprep.subr.mxu0 %v7848_v29  ;;  %v11884_v12 = vpop.f32.mrf.mxu0  ;;  %v7846_v7 = vld [vmem:[%s14645_s1 + $0x548] sm:$0xff] }
 0x104   : > { %9848 = vmatmul.mubr.f32.gmra.mxu0 %v11544_v21  ;;  %9878 = vmatprep.subr.mxu1 %v7811_v46 }
 0x105   : > { %9939 = vmatpush3.msra.mxu0 %v7848_v29  ;;  %9879 = vmatpush3.msra.mxu1 %v7811_v46  ;;  %v11890_v36 = vpop.f32.mrf.mxu0  ;;  %v11981_v29 = vld [vmem:[%s11042_s30 + $0xa2] sm:$0xff] }
 0x106   : > { %9788 = vmatprep.mubr.f32.mxu1 %v11321_v49  ;;  %9880 = vmatprep.subr.mxu1 %v7810_v53  ;;  %v7808_v49 = vld [vmem:[%s14645_s1 + $0x4b8] sm:$0xff]  ;;  %v7802_v46 = vld [vmem:[%s14645_s1 + $0x488] sm:$0xff] }
 0x107   : > { %9940 = vmatprep.subr.mxu0 %v7847_v41  ;;  %9789 = vmatmul.mubr.f32.gmra.mxu1 %v11335_v55  ;;  %v7845_v55 = vld [vmem:[%s14645_s1 + $0x540] sm:$0xff] }
 0x108   : > { %9850 = vmatprep.mubr.f32.mxu0 %v11562_v4  ;;  %9881 = vmatpush3.msra.mxu1 %v7810_v53  ;;  %v11901_v21 = vpop.f32.mrf.mxu0  ;;  %v11913_v4 = vpop.f32.mrf.mxu1 }
 0x109   : > { %9941 = vmatpush3.msra.mxu0 %v7847_v41  ;;  %9882 = vmatprep.subr.mxu1 %v7809_v45 }
 0x10a   : > { %9851 = vmatmul.mubr.f32.gmra.mxu0 %v11567_v23  ;;  %9942 = vmatprep.subr.mxu0 %v7846_v7  ;;  %v11907_v38 = vpop.f32.mrf.mxu0  ;;  %v14706_v23 = vld [vmem:[#allocation3_spill] sm:$0xff]  ;;  %v11926_v19 = vpop.f32.mrf.mxu1 }
 0x10b   : > { %9943 = vmatpush3.msra.mxu0 %v7846_v7  ;;  %9791 = vmatprep.mubr.f32.mxu1 %v11353_v61  ;;  %v14707_v61 = vld [vmem:[#allocation18_spill] sm:$0xff]  ;;  %14708 = vst [vmem:[#allocation3_spill] sm:$0xff] %v11926_v19  ;;  %v11992_v7 = vld [vmem:[%s11042_s30 + $0xaa] sm:$0xff] }
 0x10c   : > { %9883 = vmatpush3.msra.mxu1 %v7809_v45  ;;  %9853 = vmatprep.mubr.f32.mxu0 %v11582_v2  ;;  %v7839_v45 = vld [vmem:[%s14645_s1 + $0x510] sm:$0xff] }
 0x10d   : > { %9792 = vmatmul.mubr.f32.gmra.mxu1 %v14706_v23  ;;  %9884 = vmatprep.subr.mxu1 %v7808_v49  ;;  %v11920_v42 = vpop.f32.mrf.mxu0 }
 0x10e   : > { %9944 = vmatprep.subr.mxu0 %v7845_v55  ;;  %9854 = vmatmul.mubr.f32.gmra.mxu0 %v14707_v61 }
 0x10f   : > { %9885 = vmatpush3.msra.mxu1 %v7808_v49  ;;  %9945 = vmatpush3.msra.mxu0 %v7845_v55  ;;  %v11928_v2 = vpop.f32.mrf.mxu0  ;;  %v7763_v49 = vld [vmem:[%s11042_s30 + $0xa3] sm:$0xff] }
 0x110   : > { %14709 = vst [vmem:[#allocation18_spill] sm:$0xff] %v11928_v2  ;;  %9946 = vmatprep.subr.mxu0 %v7844_v17  ;;  %9794 = vmatprep.mubr.f32.mxu1 %v14710_v48  ;;  %v11937_v54 = vpop.f32.mrf.mxu1  ;;  %v7837_v48 = vld [vmem:[%s14645_s1 + $0x500] sm:$0xff]  ;;  %v8064_v2 = vld [vmem:[%s14645_s1 + $0x858] sm:$0xff] }
 0x111   : > { %9886 = vmatprep.subr.mxu1 %v7807_v44  ;;  %9947 = vmatpush3.msra.mxu0 %v7844_v17  ;;  %v7838_v17 = vld [vmem:[%s14645_s1 + $0x508] sm:$0xff] }
 0x112   : > { %9795 = vmatmul.mubr.f32.gmra.mxu1 %v14711_v56  ;;  %9856 = vmatprep.mubr.f32.mxu0 %v14712_v28  ;;  %v11950_v3 = vpop.f32.mrf.mxu1  ;;  %v7817_v28 = vld [vmem:[%s11042_s30 + $0x20] sm:$0xff] }
 0x113   : > { %9887 = vmatpush3.msra.mxu1 %v7807_v44  ;;  %9857 = vmatmul.mubr.f32.gmra.mxu0 %v14713_v62  ;;  %v11945_v47 = vpop.f32.mrf.mxu0  ;;  %14714 = vst [vmem:[#allocation4_spill] sm:$0xff] %v11950_v3 }
 0x114   : > { %9888 = vmatprep.subr.mxu1 %v7806_v50  ;;  %9948 = vmatprep.subr.mxu0 %v7843_v27 }
 0x115   : > { %9889 = vmatpush3.msra.mxu1 %v7806_v50  ;;  %9949 = vmatpush3.msra.mxu0 %v7843_v27  ;;  %v11952_v5 = vpop.f32.mrf.mxu0 }
 0x116   : > { %14715 = vst [vmem:[#allocation5_spill] sm:$0xff] %v11952_v5  ;;  %9797 = vmatprep.mubr.f32.mxu1 %v14716_v16  ;;  %9950 = vmatprep.subr.mxu0 %v7842_v0 }
 0x117   : > { %9798 = vmatmul.mubr.f32.gmra.mxu1 %v14717_v43  ;;  %9859 = vmatprep.mubr.f32.mxu0 %v14718_v31  ;;  %v9406_v52 = vpop.f32.mrf.mxu1  ;;  %v14729_v43 = vld [vmem:[#allocation11_spill] sm:$0xff]  ;;  %v7924_v31 = vld [vmem:[%s14645_s1 + $0x678] sm:$0xff] }
 0x118   : > { %9890 = vmatprep.subr.mxu1 %v7805_v51  ;;  %9951 = vmatpush3.msra.mxu0 %v7842_v0  ;;  %v669_v6 = vadd.f32 %v9406_v52, %v11817_v8  ;;  %v7803_v8 = vld [vmem:[%s14645_s1 + $0x490] sm:$0xff]  ;;  %v14728_v0 = vld [vmem:[#allocation10_spill] sm:$0xff] }
 0x119   : > { %9860 = vmatmul.mubr.f32.gmra.mxu0 %v14719_v59  ;;  %9891 = vmatpush3.msra.mxu1 %v7805_v51  ;;  %v9468_v24 = vpop.f32.mrf.mxu0  ;;  %v11965_v26 = vpop.f32.mrf.mxu1  ;;  %v7818_v51 = vld [vmem:[%s11042_s30 + $0x28] sm:$0xff]  ;;  %v7819_v59 = vld [vmem:[%s11042_s30 + $0x30] sm:$0xff] }
 0x11a   : > { %14720 = vst [vmem:[#allocation19_spill] sm:$0xff] %v11965_v26  ;;  %9892 = vmatprep.subr.mxu1 %v7804_v63  ;;  %9952 = vmatprep.subr.mxu0 %v7841_v39  ;;  %v11970_v11 = vadd.f32 %v9468_v24, %v669_v6 }
 0x11b   : > { %9800 = vmatprep.mubr.f32.mxu1 %v14721_v20  ;;  %9893 = vmatpush3.msra.mxu1 %v7804_v63  ;;  %v11976_v10 = vpop.f32.mrf.mxu0  ;;  %v7820_v20 = vld [vmem:[%s11042_s30 + $0x38] sm:$0xff] }
 0x11c   : > { %14722 = vst [vmem:[#allocation20_spill] sm:$0xff] %v11976_v10  ;;  %9953 = vmatpush3.msra.mxu0 %v7841_v39  ;;  %9801 = vmatmul.mubr.f32.gmra.mxu1 %v14723_v57  ;;  %v9409_v1 = vpop.f32.mrf.mxu1  ;;  %v7887_v39 = vld [vmem:[%s14645_s1 + $0x5f0] sm:$0xff] }
 0x11d   : > { %9862 = vmatprep.mubr.f32.mxu0 %v11639_v37  ;;  %9954 = vmatprep.subr.mxu0 %v7840_v14  ;;  %v671_v53 = vadd.f32 %v9409_v1, %v11833_v30  ;;  %v9471_v41 = vpop.f32.mrf.mxu0  ;;  %v7764_v30 = vld [vmem:[%s11042_s30 + $0xab] sm:$0xff] }
 0x11e   : > { %9863 = vmatmul.mubr.f32.gmra.mxu0 %v11648_v18  ;;  %9894 = vmatprep.subr.mxu1 %v7803_v8  ;;  %v11994_v37 = vpop.f32.mrf.mxu1  ;;  %v7801_v18 = vld [vmem:[%s14645_s1 + $0x480] sm:$0xff]  ;;  %v7923_v57 = vld [vmem:[%s14645_s1 + $0x670] sm:$0xff] }
 0x11f   : > { %14724 = vst [vmem:[#allocation6_spill] sm:$0xff] %v11994_v37  ;;  %9955 = vmatpush3.msra.mxu0 %v7840_v14  ;;  %9895 = vmatpush3.msra.mxu1 %v7803_v8  ;;  %v11997_v55 = vadd.f32 %v9471_v41, %v671_v53  ;;  %v11999_v23 = vpop.f32.mrf.mxu0  ;;  %v14731_v14 = vld [vmem:[#allocation12_spill] sm:$0xff] }
 0x120   : > { %14725 = vst [vmem:[#allocation7_spill] sm:$0xff] %v11999_v23  ;;  %9803 = vmatprep.mubr.f32.mxu1 %v11981_v29  ;;  %9896 = vmatprep.subr.mxu1 %v7802_v46  ;;  %v7886_v8 = vld [vmem:[%s14645_s1 + $0x5e8] sm:$0xff] }
 0x121   : > { %9956 = vmatprep.subr.mxu0 %v7839_v45  ;;  %9804 = vmatmul.mubr.f32.gmra.mxu1 %v11992_v7  ;;  %v9412_v61 = vpop.f32.mrf.mxu1  ;;  %v7922_v41 = vld [vmem:[%s14645_s1 + $0x668] sm:$0xff] }
 0x122   : > { %9865 = vmatprep.mubr.f32.mxu0 %v7763_v49  ;;  %9897 = vmatpush3.msra.mxu1 %v7802_v46  ;;  %v673_v44 = vadd.f32 %v9412_v61, %v11851_v25  ;;  %v7888_v25 = vld [vmem:[%s14645_s1 + $0x5f8] sm:$0xff]  ;;  %v14733_v46 = vld [vmem:[#allocation13_spill] sm:$0xff]  ;;  %v7821_v49 = vld [vmem:[%s11042_s30 + $0x40] sm:$0xff] }
 0x123   : > { %9957 = vmatpush3.msra.mxu0 %v7839_v45  ;;  %9898 = vmatprep.subr.mxu1 %v7801_v18  ;;  %v9474_v50 = vpop.f32.mrf.mxu0  ;;  %v12014_v27 = vpop.f32.mrf.mxu1  ;;  %v7822_v61 = vld [vmem:[%s11042_s30 + $0x48] sm:$0xff] }
 0x124   : > { %14726 = vst [vmem:[#allocation21_spill] sm:$0xff] %v12014_v27  ;;  %9866 = vmatmul.mubr.f32.gmra.mxu0 %v7764_v30  ;;  %9958 = vmatprep.subr.mxu0 %v7838_v17  ;;  %v12016_v56 = vadd.f32 %v9474_v50, %v673_v44  ;;  %v7885_v30 = vld [vmem:[%s14645_s1 + $0x5e0] sm:$0xff]  ;;  %v7884_v50 = vld [vmem:[%s14645_s1 + $0x5d8] sm:$0xff] }
 0x125   : > { %9959 = vmatpush3.msra.mxu0 %v7838_v17  ;;  %9899 = vmatpush3.msra.mxu1 %v7801_v18  ;;  %v12022_v62 = vpop.f32.mrf.mxu0 }
 0x126   : > { %14727 = vst [vmem:[#allocation22_spill] sm:$0xff] %v12022_v62  ;;  %9900 = vmatprep.mubr.f32.mxu1 %v14728_v0  ;;  %9960 = vmatprep.subr.mxu0 %v7837_v48  ;;  %v9415_v16 = vpop.f32.mrf.mxu1 }
 0x127   : > { %9901 = vmatmul.mubr.f32.vlgmr.msra.gmra.mxu1 %v14729_v43  ;;  %9961 = vmatpush3.msra.mxu0 %v7837_v48  ;;  %v675_v63 = vadd.f32 %v9415_v16, %v11867_v32  ;;  %v14735_v48 = vld [vmem:[#allocation15_spill] sm:$0xff]  ;;  %v7823_v43 = vld [vmem:[%s11042_s30 + $0x50] sm:$0xff] }
 0x128   : > { %9962 = vmatprep.mubr.f32.mxu0 %v7817_v28  ;;  %9992 = vmatprep.subr.mxu1 %v7888_v25  ;;  %v9477_v52 = vpop.f32.mrf.mxu0  ;;  %v12034_v6 = vpop.f32.mrf.mxu1  ;;  %v7921_v28 = vld [vmem:[%s14645_s1 + $0x660] sm:$0xff] }
 0x129   : > { %14730 = vst [vmem:[#allocation8_spill] sm:$0xff] %v12034_v6  ;;  %9963 = vmatmul.mubr.f32.vlgmr.msra.gmra.mxu0 %v7818_v51  ;;  %9993 = vmatpush3.msra.mxu1 %v7888_v25  ;;  %v12037_v24 = vadd.f32 %v9477_v52, %v675_v63  ;;  %v14738_v52 = vld [vmem:[#allocation16_spill] sm:$0xff]  ;;  %v7835_v6 = vld [vmem:[%s11042_s30 + $0xb0] sm:$0xff] }
 0x12a   : > { %10054 = vmatprep.subr.mxu0 %v7924_v31  ;;  %9903 = vmatprep.mubr.f32.mxu1 %v14731_v14  ;;  %v12041_v32 = vpop.f32.mrf.mxu0  ;;  %v14739_v14 = vld [vmem:[#allocation17_spill] sm:$0xff] }
 0x12b   : > { %14732 = vst [vmem:[#allocation9_spill] sm:$0xff] %v12041_v32  ;;  %9994 = vmatprep.subr.mxu1 %v7887_v39  ;;  %10055 = vmatpush3.msra.mxu0 %v7924_v31  ;;  %v9418_v1 = vpop.f32.mrf.mxu1  ;;  %v7920_v31 = vld [vmem:[%s14645_s1 + $0x658] sm:$0xff]  ;;  %v12234_v32 = vld [vmem:[%s11042_s30 + $0xac] sm:$0xff] }
 0x12c   : > { %9904 = vmatmul.mubr.f32.gmra.mxu1 %v14733_v46  ;;  %9965 = vmatprep.mubr.f32.mxu0 %v7819_v59  ;;  %v677_v53 = vadd.f32 %v9418_v1, %v11884_v12  ;;  %v14734_v12 = vld [vmem:[#allocation14_spill] sm:$0xff]  ;;  %v7883_v59 = vld [vmem:[%s14645_s1 + $0x5d0] sm:$0xff] }
 0x12d   : > { %9995 = vmatpush3.msra.mxu1 %v7887_v39  ;;  %9966 = vmatmul.mubr.f32.gmra.mxu0 %v7820_v20  ;;  %v12054_v45 = vpop.f32.mrf.mxu1 }
 0x12e   : > { %9996 = vmatprep.subr.mxu1 %v7886_v8  ;;  %10056 = vmatprep.subr.mxu0 %v7923_v57  ;;  %v9480_v18 = vpop.f32.mrf.mxu0 }
 0x12f   : > { %9997 = vmatpush3.msra.mxu1 %v7886_v8  ;;  %10057 = vmatpush3.msra.mxu0 %v7923_v57  ;;  %v12060_v17 = vadd.f32 %v9480_v18, %v677_v53  ;;  %v12091_v8 = vld [vmem:[%s11042_s30 + $0x54] sm:$0xff]  ;;  %v7882_v57 = vld [vmem:[%s14645_s1 + $0x5c8] sm:$0xff]  ;;  %v7825_v18 = vld [vmem:[%s11042_s30 + $0x60] sm:$0xff] }
 0x130   : > { %9906 = vmatprep.mubr.f32.mxu1 %v14734_v12  ;;  %10058 = vmatprep.subr.mxu0 %v7922_v41  ;;  %v12064_v44 = vpop.f32.mrf.mxu0  ;;  %v7919_v53 = vld [vmem:[%s14645_s1 + $0x650] sm:$0xff]  ;;  %v7881_v12 = vld [vmem:[%s14645_s1 + $0x5c0] sm:$0xff] }
 0x131   : > { %9907 = vmatmul.mubr.f32.gmra.mxu1 %v14735_v48  ;;  %9968 = vmatprep.mubr.f32.mxu0 %v7821_v49  ;;  %v9421_v25 = vpop.f32.mrf.mxu1  ;;  %v7918_v48 = vld [vmem:[%s14645_s1 + $0x648] sm:$0xff] }
 0x132   : > { %9998 = vmatprep.subr.mxu1 %v7885_v30  ;;  %10059 = vmatpush3.msra.mxu0 %v7922_v41  ;;  %v679_v0 = vadd.f32 %v9421_v25, %v11901_v21  ;;  %v9483_v51 = vpop.f32.mrf.mxu0  ;;  %v7824_v21 = vld [vmem:[%s11042_s30 + $0x58] sm:$0xff] }
 0x133   : > { %9969 = vmatmul.mubr.f32.gmra.mxu0 %v7822_v61  ;;  %9999 = vmatpush3.msra.mxu1 %v7885_v30  ;;  %v12074_v16 = vpop.f32.mrf.mxu1  ;;  %v12101_v41 = vld [vmem:[%s11042_s30 + $0x5c] sm:$0xff]  ;;  %v7826_v61 = vld [vmem:[%s11042_s30 + $0x68] sm:$0xff] }
 0x134   : > { %14736 = vst [vmem:[#allocation10_spill] sm:$0xff] %v12074_v16  ;;  %10000 = vmatprep.subr.mxu1 %v7884_v50  ;;  %10060 = vmatprep.subr.mxu0 %v7921_v28  ;;  %v12080_v63 = vadd.f32 %v9483_v51, %v679_v0  ;;  %v12082_v39 = vpop.f32.mrf.mxu0  ;;  %v7827_v0 = vld [vmem:[%s11042_s30 + $0x70] sm:$0xff] }
 0x135   : > { %14737 = vst [vmem:[#allocation11_spill] sm:$0xff] %v12082_v39  ;;  %9909 = vmatprep.mubr.f32.mxu1 %v14738_v52  ;;  %10001 = vmatpush3.msra.mxu1 %v7884_v50  ;;  %v7880_v52 = vld [vmem:[%s14645_s1 + $0x5b8] sm:$0xff] }
 0x136   : > { %10061 = vmatpush3.msra.mxu0 %v7921_v28  ;;  %9910 = vmatmul.mubr.f32.gmra.mxu1 %v14739_v14  ;;  %v9424_v20 = vpop.f32.mrf.mxu1  ;;  %v12120_v28 = vld [vmem:[%s11042_s30 + $0x64] sm:$0xff] }
 0x137   : > { %9971 = vmatprep.mubr.f32.mxu0 %v7823_v43  ;;  %10062 = vmatprep.subr.mxu0 %v7920_v31  ;;  %v681_v1 = vadd.f32 %v9424_v20, %v11920_v42  ;;  %v9486_v46 = vpop.f32.mrf.mxu0 }
 0x138   : > { %9972 = vmatmul.mubr.f32.gmra.mxu0 %v7824_v21  ;;  %10002 = vmatprep.subr.mxu1 %v7883_v59  ;;  %v12103_v49 = vpop.f32.mrf.mxu1 }
 0x139   : > { %14740 = vst [vmem:[#allocation12_spill] sm:$0xff] %v12103_v49  ;;  %10063 = vmatpush3.msra.mxu0 %v7920_v31  ;;  %10003 = vmatpush3.msra.mxu1 %v7883_v59  ;;  %v12106_v30 = vadd.f32 %v9486_v46, %v681_v1  ;;  %v12108_v42 = vpop.f32.mrf.mxu0  ;;  %v12127_v31 = vld [vmem:[%s11042_s30 + $0x6c] sm:$0xff]  ;;  %v7828_v59 = vld [vmem:[%s11042_s30 + $0x78] sm:$0xff] }
 0x13a   : > { %14741 = vst [vmem:[#allocation13_spill] sm:$0xff] %v12108_v42  ;;  %9912 = vmatprep.mubr.f32.mxu1 %v12091_v8  ;;  %10004 = vmatprep.subr.mxu1 %v7882_v57  ;;  %v12146_v1 = vld [vmem:[%s11042_s30 + $0x74] sm:$0xff]  ;;  %v7926_v42 = vld [vmem:[%s11042_s30 + $0x2b] sm:$0xff] }
 0x13b   : > { %10064 = vmatprep.subr.mxu0 %v7919_v53  ;;  %9913 = vmatmul.mubr.f32.gmra.mxu1 %v12101_v41  ;;  %v9427_v50 = vpop.f32.mrf.mxu1 }
 0x13c   : > { %9974 = vmatprep.mubr.f32.mxu0 %v7825_v18  ;;  %10005 = vmatpush3.msra.mxu1 %v7882_v57  ;;  %v683_v25 = vadd.f32 %v9427_v50, %v11945_v47  ;;  %v7917_v47 = vld [vmem:[%s14645_s1 + $0x640] sm:$0xff]  ;;  %v7916_v57 = vld [vmem:[%s14645_s1 + $0x638] sm:$0xff]  ;;  %v7878_v50 = vld [vmem:[%s14645_s1 + $0x5a8] sm:$0xff] }
 0x13d   : > { %10065 = vmatpush3.msra.mxu0 %v7919_v53  ;;  %10006 = vmatprep.subr.mxu1 %v7881_v12  ;;  %v9489_v51 = vpop.f32.mrf.mxu0  ;;  %v12124_v43 = vpop.f32.mrf.mxu1  ;;  %v7879_v53 = vld [vmem:[%s14645_s1 + $0x5b0] sm:$0xff] }
 0x13e   : > { %14742 = vst [vmem:[#allocation14_spill] sm:$0xff] %v12124_v43  ;;  %9975 = vmatmul.mubr.f32.gmra.mxu0 %v7826_v61  ;;  %10066 = vmatprep.subr.mxu0 %v7918_v48  ;;  %v12132_v21 = vadd.f32 %v9489_v51, %v683_v25  ;;  %v12155_v61 = vld [vmem:[%s11042_s30 + $0x7c] sm:$0xff]  ;;  %v7915_v25 = vld [vmem:[%s14645_s1 + $0x630] sm:$0xff] }
 0x13f   : > { %10067 = vmatpush3.msra.mxu0 %v7918_v48  ;;  %9915 = vmatprep.mubr.f32.mxu1 %v12120_v28  ;;  %v12139_v14 = vpop.f32.mrf.mxu0 }
 0x140   : > { %14743 = vst [vmem:[#allocation15_spill] sm:$0xff] %v12139_v14  ;;  %10007 = vmatpush3.msra.mxu1 %v7881_v12  ;;  %9977 = vmatprep.mubr.f32.mxu0 %v7827_v0  ;;  %v9430_v20 = vpop.f32.mrf.mxu1  ;;  %v7903_v14 = vld [vmem:[%s11042_s30 + $0x92] sm:$0xff] }
 0x141   : > { %9916 = vmatmul.mubr.f32.gmra.mxu1 %v12127_v31  ;;  %10008 = vmatprep.subr.mxu1 %v7880_v52  ;;  %v685_v46 = vadd.f32 %v9430_v20, %v11913_v4  ;;  %v12181_v20 = vld [vmem:[%s11042_s30 + $0x8c] sm:$0xff] }
 0x142   : > { %10068 = vmatprep.subr.mxu0 %v7917_v47  ;;  %9978 = vmatmul.mubr.f32.gmra.mxu0 %v7828_v59  ;;  %v9492_v18 = vpop.f32.mrf.mxu0  ;;  %v12152_v12 = vpop.f32.mrf.mxu1 }
 0x143   : > { %14744 = vst [vmem:[#allocation16_spill] sm:$0xff] %v12152_v12  ;;  %10009 = vmatpush3.msra.mxu1 %v7880_v52  ;;  %10069 = vmatpush3.msra.mxu0 %v7917_v47  ;;  %v12157_v48 = vadd.f32 %v9492_v18, %v685_v46  ;;  %v12173_v52 = vld [vmem:[%s11042_s30 + $0x84] sm:$0xff]  ;;  %v7876_v46 = vld [vmem:[%s14645_s1 + $0x598] sm:$0xff] }
 0x144   : > { %10070 = vmatprep.subr.mxu0 %v7916_v57  ;;  %9918 = vmatprep.mubr.f32.mxu1 %v12146_v1  ;;  %v12160_v4 = vpop.f32.mrf.mxu0  ;;  %v7914_v47 = vld [vmem:[%s14645_s1 + $0x628] sm:$0xff] }
 0x145   : > { %14745 = vst [vmem:[#allocation17_spill] sm:$0xff] %v12160_v4  ;;  %10010 = vmatprep.subr.mxu1 %v7879_v53  ;;  %10071 = vmatpush3.msra.mxu0 %v7916_v57  ;;  %v9433_v0 = vpop.f32.mrf.mxu1  ;;  %v7899_v4 = vld [vmem:[%s11042_s30 + $0x72] sm:$0xff]  ;;  %v7901_v12 = vld [vmem:[%s11042_s30 + $0x82] sm:$0xff] }
 0x146   : > { %9919 = vmatmul.mubr.f32.gmra.mxu1 %v12155_v61  ;;  %9980 = vmatprep.mubr.f32.mxu0 %v11755_v35  ;;  %v687_v51 = vadd.f32 %v9433_v0, %v11937_v54  ;;  %v7877_v35 = vld [vmem:[%s14645_s1 + $0x5a0] sm:$0xff] }
 0x147   : > { %10011 = vmatpush3.msra.mxu1 %v7879_v53  ;;  %9981 = vmatmul.mubr.f32.gmra.mxu0 %v11761_v40  ;;  %v12178_v59 = vpop.f32.mrf.mxu1  ;;  %v7913_v53 = vld [vmem:[%s14645_s1 + $0x620] sm:$0xff] }
 0x148   : > { %14746 = vst [vmem:[#allocation27_spill] sm:$0xff] %v12178_v59  ;;  %10012 = vmatprep.subr.mxu1 %v7878_v50  ;;  %10072 = vmatprep.subr.mxu0 %v7915_v25  ;;  %v9495_v57 = vpop.f32.mrf.mxu0  ;;  %v12205_v0 = vld [vmem:[%s11042_s30 + $0x9c] sm:$0xff] }
 0x149   : > { %10013 = vmatpush3.msra.mxu1 %v7878_v50  ;;  %10073 = vmatpush3.msra.mxu0 %v7915_v25  ;;  %v12186_v40 = vadd.f32 %v9495_v57, %v687_v51  ;;  %v12200_v50 = vld [vmem:[%s11042_s30 + $0x94] sm:$0xff]  ;;  %v7897_v59 = vld [vmem:[%s11042_s30 + $0x62] sm:$0xff] }
 0x14a   : > { %9921 = vmatprep.mubr.f32.mxu1 %v12173_v52  ;;  %10074 = vmatprep.subr.mxu0 %v7914_v47  ;;  %v12189_v54 = vpop.f32.mrf.mxu0  ;;  %v7912_v57 = vld [vmem:[%s14645_s1 + $0x618] sm:$0xff] }
 0x14b   : > { %14747 = vst [vmem:[#allocation28_spill] sm:$0xff] %v12189_v54  ;;  %9922 = vmatmul.mubr.f32.gmra.mxu1 %v12181_v20  ;;  %9983 = vmatprep.mubr.f32.mxu0 %v11776_v58  ;;  %v9530_v18 = vpop.f32.mrf.mxu1  ;;  %v7895_v54 = vld [vmem:[%s11042_s30 + $0x52] sm:$0xff] }
 0x14c   : > { %10014 = vmatprep.subr.mxu1 %v7877_v35  ;;  %10075 = vmatpush3.msra.mxu0 %v7914_v47  ;;  %v1197_v25 = vadd.f32 %v9530_v18, %v11970_v11  ;;  %v12223_v18 = vld [vmem:[%s11042_s30 + $0xa4] sm:$0xff] }
 0x14d   : > { %9984 = vmatmul.mubr.f32.gmra.mxu0 %v11780_v60  ;;  %10015 = vmatpush3.msra.mxu1 %v7877_v35  ;;  %v9592_v58 = vpop.f32.mrf.mxu0  ;;  %v12207_v51 = vpop.f32.mrf.mxu1  ;;  %v7875_v60 = vld [vmem:[%s14645_s1 + $0x590] sm:$0xff] }
 0x14e   : > { %14748 = vst [vmem:[#allocation29_spill] sm:$0xff] %v12207_v51  ;;  %10016 = vmatprep.subr.mxu1 %v7876_v46  ;;  %10076 = vmatprep.subr.mxu0 %v7913_v53  ;;  %v12212_v47 = vadd.f32 %v9592_v58, %v1197_v25 }
 0x14f   : > { %9924 = vmatprep.mubr.f32.mxu1 %v12200_v50  ;;  %10017 = vmatpush3.msra.mxu1 %v7876_v46  ;;  %v12218_v11 = vpop.f32.mrf.mxu0  ;;  %v7874_v46 = vld [vmem:[%s14645_s1 + $0x588] sm:$0xff] }
 0x150   : > { %14749 = vst [vmem:[#allocation30_spill] sm:$0xff] %v12218_v11  ;;  %10077 = vmatpush3.msra.mxu0 %v7913_v53  ;;  %9925 = vmatmul.mubr.f32.gmra.mxu1 %v12205_v0  ;;  %v9533_v35 = vpop.f32.mrf.mxu1  ;;  %v7911_v53 = vld [vmem:[%s14645_s1 + $0x610] sm:$0xff] }
 0x151   : > { %9986 = vmatprep.mubr.f32.mxu0 %v11792_v15  ;;  %10078 = vmatprep.subr.mxu0 %v7912_v57  ;;  %v1199_v25 = vadd.f32 %v9533_v35, %v11997_v55  ;;  %v9595_v58 = vpop.f32.mrf.mxu0  ;;  %v7836_v35 = vld [vmem:[%s11042_s30 + $0xb8] sm:$0xff]  ;;  %v7854_v11 = vld [vmem:[%s11042_s30 + $0x29] sm:$0xff] }
 0x152   : > { %9987 = vmatmul.mubr.f32.gmra.mxu0 %v11802_v9  ;;  %10018 = vmatprep.subr.mxu1 %v7875_v60  ;;  %v12236_v15 = vpop.f32.mrf.mxu1  ;;  %v7873_v9 = vld [vmem:[%s14645_s1 + $0x580] sm:$0xff] }
 0x153   : > { %14750 = vst [vmem:[#allocation31_spill] sm:$0xff] %v12236_v15  ;;  %10079 = vmatpush3.msra.mxu0 %v7912_v57  ;;  %10019 = vmatpush3.msra.mxu1 %v7875_v60  ;;  %v12239_v33 = vadd.f32 %v9595_v58, %v1199_v25  ;;  %v12241_v55 = vpop.f32.mrf.mxu0  ;;  %v7910_v57 = vld [vmem:[%s14645_s1 + $0x608] sm:$0xff] }
 0x154   : > { %14751 = vst [vmem:[#allocation32_spill] sm:$0xff] %v12241_v55  ;;  %9927 = vmatprep.mubr.f32.mxu1 %v12223_v18  ;;  %10020 = vmatprep.subr.mxu1 %v7874_v46  ;;  %v7853_v58 = vld [vmem:[%s11042_s30 + $0x21] sm:$0xff] }
 0x155   : > { %10080 = vmatprep.subr.mxu0 %v7911_v53  ;;  %9928 = vmatmul.mubr.f32.gmra.mxu1 %v12234_v32  ;;  %v9536_v60 = vpop.f32.mrf.mxu1  ;;  %v7909_v55 = vld [vmem:[%s14645_s1 + $0x600] sm:$0xff] }
 0x156   : > { %9989 = vmatprep.mubr.f32.mxu0 %v7835_v6  ;;  %10021 = vmatpush3.msra.mxu1 %v7874_v46  ;;  %v1201_v25 = vadd.f32 %v9536_v60, %v12016_v56  ;;  %v7889_v56 = vld [vmem:[%s11042_s30 + $0x22] sm:$0xff]  ;;  %v7960_v6 = vld [vmem:[%s14645_s1 + $0x6f8] sm:$0xff]  ;;  %v7959_v60 = vld [vmem:[%s14645_s1 + $0x6f0] sm:$0xff] }
 0x157   : > { %10081 = vmatpush3.msra.mxu0 %v7911_v53  ;;  %10022 = vmatprep.subr.mxu1 %v7873_v9  ;;  %v9598_v62 = vpop.f32.mrf.mxu0  ;;  %v12257_v15 = vpop.f32.mrf.mxu1  ;;  %v7890_v53 = vld [vmem:[%s11042_s30 + $0x2a] sm:$0xff] }
 0x158   : > { %14752 = vst [vmem:[#allocation33_spill] sm:$0xff] %v12257_v15  ;;  %9990 = vmatmul.mubr.f32.gmra.mxu0 %v7836_v35  ;;  %10082 = vmatprep.subr.mxu0 %v7910_v57  ;;  %v12260_v27 = vadd.f32 %v9598_v62, %v1201_v25  ;;  %v7996_v62 = vld [vmem:[%s14645_s1 + $0x778] sm:$0xff]  ;;  %v7893_v15 = vld [vmem:[%s11042_s30 + $0x42] sm:$0xff] }
 0x159   : > { %10083 = vmatpush3.msra.mxu0 %v7910_v57  ;;  %10023 = vmatpush3.msra.mxu1 %v7873_v9  ;;  %v12266_v46 = vpop.f32.mrf.mxu0  ;;  %v12273_v9 = vld [vmem:[%s11042_s30 + $0x31] sm:$0xff] }
 0x15a   : > { %14753 = vst [vmem:[#allocation34_spill] sm:$0xff] %v12266_v46  ;;  %10024 = vmatprep.mubr.f32.mxu1 %v7853_v58  ;;  %10084 = vmatprep.subr.mxu0 %v7909_v55  ;;  %v9539_v35 = vpop.f32.mrf.mxu1 }
 0x15b   : > { %10025 = vmatmul.mubr.f32.vlgmr.msra.gmra.mxu1 %v7854_v11  ;;  %10085 = vmatpush3.msra.mxu0 %v7909_v55  ;;  %v1203_v57 = vadd.f32 %v9539_v35, %v12037_v24  ;;  %v12282_v11 = vld [vmem:[%s11042_s30 + $0x39] sm:$0xff] }
 0x15c   : > { %10086 = vmatprep.mubr.f32.mxu0 %v7889_v56  ;;  %10116 = vmatprep.subr.mxu1 %v7960_v6  ;;  %v9601_v25 = vpop.f32.mrf.mxu0  ;;  %v12279_v58 = vpop.f32.mrf.mxu1  ;;  %v7891_v55 = vld [vmem:[%s11042_s30 + $0x32] sm:$0xff]  ;;  %v7892_v24 = vld [vmem:[%s11042_s30 + $0x3a] sm:$0xff] }
 0x15d   : > { %14754 = vst [vmem:[#allocation35_spill] sm:$0xff] %v12279_v58  ;;  %10087 = vmatmul.mubr.f32.vlgmr.msra.gmra.mxu0 %v7890_v53  ;;  %10117 = vmatpush3.msra.mxu1 %v7960_v6  ;;  %v12285_v46 = vadd.f32 %v9601_v25, %v1203_v57  ;;  %v7958_v6 = vld [vmem:[%s14645_s1 + $0x6e8] sm:$0xff]  ;;  %v7995_v53 = vld [vmem:[%s14645_s1 + $0x770] sm:$0xff] }
 0x15e   : > { %10178 = vmatprep.subr.mxu0 %v7996_v62  ;;  %10027 = vmatprep.mubr.f32.mxu1 %v12273_v9  ;;  %v12289_v56 = vpop.f32.mrf.mxu0  ;;  %v12300_v25 = vld [vmem:[%s11042_s30 + $0x41] sm:$0xff]  ;;  %v12308_v58 = vld [vmem:[%s11042_s30 + $0x49] sm:$0xff] }
 0x15f   : > { %14755 = vst [vmem:[#allocation36_spill] sm:$0xff] %v12289_v56  ;;  %10118 = vmatprep.subr.mxu1 %v7959_v60  ;;  %10179 = vmatpush3.msra.mxu0 %v7996_v62  ;;  %v9542_v35 = vpop.f32.mrf.mxu1  ;;  %v7994_v62 = vld [vmem:[%s14645_s1 + $0x768] sm:$0xff] }
 0x160   : > { %10028 = vmatmul.mubr.f32.gmra.mxu1 %v12282_v11  ;;  %10089 = vmatprep.mubr.f32.mxu0 %v7891_v55  ;;  %v1205_v57 = vadd.f32 %v9542_v35, %v12060_v17  ;;  %v7957_v17 = vld [vmem:[%s14645_s1 + $0x6e0] sm:$0xff]  ;;  %v7894_v55 = vld [vmem:[%s11042_s30 + $0x4a] sm:$0xff] }
 0x161   : > { %10119 = vmatpush3.msra.mxu1 %v7959_v60  ;;  %10090 = vmatmul.mubr.f32.gmra.mxu0 %v7892_v24  ;;  %v12305_v56 = vpop.f32.mrf.mxu1  ;;  %v12328_v35 = vld [vmem:[%s11042_s30 + $0x51] sm:$0xff] }
 0x162   : > { %14756 = vst [vmem:[#allocation37_spill] sm:$0xff] %v12305_v56  ;;  %10120 = vmatprep.subr.mxu1 %v7958_v6  ;;  %10180 = vmatprep.subr.mxu0 %v7995_v53  ;;  %v9604_v22 = vpop.f32.mrf.mxu0  ;;  %v7998_v56 = vld [vmem:[%s11042_s30 + $0x38] sm:$0xff] }
 0x163   : > { %10121 = vmatpush3.msra.mxu1 %v7958_v6  ;;  %10181 = vmatpush3.msra.mxu0 %v7995_v53  ;;  %v12314_v60 = vadd.f32 %v9604_v22, %v1205_v57  ;;  %v7956_v6 = vld [vmem:[%s14645_s1 + $0x6d8] sm:$0xff]  ;;  %v7993_v22 = vld [vmem:[%s14645_s1 + $0x760] sm:$0xff] }
 0x164   : > { %10030 = vmatprep.mubr.f32.mxu1 %v12300_v25  ;;  %10182 = vmatprep.subr.mxu0 %v7994_v62  ;;  %v12318_v24 = vpop.f32.mrf.mxu0 }
 0x165   : > { %14757 = vst [vmem:[#allocation38_spill] sm:$0xff] %v12318_v24  ;;  %10031 = vmatmul.mubr.f32.gmra.mxu1 %v12308_v58  ;;  %10092 = vmatprep.mubr.f32.mxu0 %v7893_v15  ;;  %v9545_v53 = vpop.f32.mrf.mxu1  ;;  %v12332_v15 = vld [vmem:[%s11042_s30 + $0x59] sm:$0xff] }
 0x166   : > { %10122 = vmatprep.subr.mxu1 %v7957_v17  ;;  %10183 = vmatpush3.msra.mxu0 %v7994_v62  ;;  %v1207_v57 = vadd.f32 %v9545_v53, %v12080_v63  ;;  %v9607_v51 = vpop.f32.mrf.mxu0  ;;  %v7992_v62 = vld [vmem:[%s14645_s1 + $0x758] sm:$0xff]  ;;  %v7954_v53 = vld [vmem:[%s14645_s1 + $0x6c8] sm:$0xff] }
 0x167   : > { %10093 = vmatmul.mubr.f32.gmra.mxu0 %v7894_v55  ;;  %10123 = vmatpush3.msra.mxu1 %v7957_v17  ;;  %v12334_v23 = vpop.f32.mrf.mxu1  ;;  %v7896_v63 = vld [vmem:[%s11042_s30 + $0x5a] sm:$0xff]  ;;  %v7955_v17 = vld [vmem:[%s14645_s1 + $0x6d0] sm:$0xff] }
 0x168   : > { %14758 = vst [vmem:[#allocation39_spill] sm:$0xff] %v12334_v23  ;;  %10124 = vmatprep.subr.mxu1 %v7956_v6  ;;  %10184 = vmatprep.subr.mxu0 %v7993_v22  ;;  %v12340_v10 = vadd.f32 %v9607_v51, %v1207_v57  ;;  %v12342_v37 = vpop.f32.mrf.mxu0  ;;  %v12351_v51 = vld [vmem:[%s11042_s30 + $0x61] sm:$0xff] }
 0x169   : > { %14759 = vst [vmem:[#allocation40_spill] sm:$0xff] %v12342_v37  ;;  %10033 = vmatprep.mubr.f32.mxu1 %v12328_v35  ;;  %10125 = vmatpush3.msra.mxu1 %v7956_v6  ;;  %v7984_v37 = vld [vmem:[%s14645_s1 + $0x718] sm:$0xff] }
 0x16a   : > { %10185 = vmatpush3.msra.mxu0 %v7993_v22  ;;  %10034 = vmatmul.mubr.f32.gmra.mxu1 %v12332_v15  ;;  %v9548_v55 = vpop.f32.mrf.mxu1  ;;  %v7991_v22 = vld [vmem:[%s14645_s1 + $0x750] sm:$0xff] }
 0x16b   : > { %10095 = vmatprep.mubr.f32.mxu0 %v7895_v54  ;;  %10186 = vmatprep.subr.mxu0 %v7992_v62  ;;  %v1209_v6 = vadd.f32 %v9548_v55, %v12106_v30  ;;  %v9610_v57 = vpop.f32.mrf.mxu0  ;;  %v7898_v55 = vld [vmem:[%s11042_s30 + $0x6a] sm:$0xff] }
 0x16c   : > { %10096 = vmatmul.mubr.f32.gmra.mxu0 %v7896_v63  ;;  %10126 = vmatprep.subr.mxu1 %v7955_v17  ;;  %v12363_v54 = vpop.f32.mrf.mxu1  ;;  %v7953_v63 = vld [vmem:[%s14645_s1 + $0x6c0] sm:$0xff] }
 0x16d   : > { %14760 = vst [vmem:[#allocation41_spill] sm:$0xff] %v12363_v54  ;;  %10187 = vmatpush3.msra.mxu0 %v7992_v62  ;;  %10127 = vmatpush3.msra.mxu1 %v7955_v17  ;;  %v12366_v3 = vadd.f32 %v9610_v57, %v1209_v6  ;;  %v12368_v30 = vpop.f32.mrf.mxu0  ;;  %v7990_v62 = vld [vmem:[%s14645_s1 + $0x748] sm:$0xff]  ;;  %v12380_v6 = vld [vmem:[%s11042_s30 + $0x71] sm:$0xff] }
 0x16e   : > { %14761 = vst [vmem:[#allocation42_spill] sm:$0xff] %v12368_v30  ;;  %10036 = vmatprep.mubr.f32.mxu1 %v12351_v51  ;;  %10128 = vmatprep.subr.mxu1 %v7954_v53  ;;  %v12387_v30 = vld [vmem:[%s11042_s30 + $0x79] sm:$0xff] }
 0x16f   : > { %10188 = vmatprep.subr.mxu0 %v7991_v22  ;;  %10037 = vmatmul.mubr.f32.gmra.mxu1 %v12361_v13  ;;  %v9551_v17 = vpop.f32.mrf.mxu1 }
 0x170   : > { %10098 = vmatprep.mubr.f32.mxu0 %v7897_v59  ;;  %10129 = vmatpush3.msra.mxu1 %v7954_v53  ;;  %v1211_v57 = vadd.f32 %v9551_v17, %v12132_v21  ;;  %v7952_v59 = vld [vmem:[%s14645_s1 + $0x6b8] sm:$0xff]  ;;  %v7989_v21 = vld [vmem:[%s14645_s1 + $0x740] sm:$0xff] }
 0x171   : > { %10189 = vmatpush3.msra.mxu0 %v7991_v22  ;;  %10130 = vmatprep.subr.mxu1 %v7953_v63  ;;  %v9613_v26 = vpop.f32.mrf.mxu0  ;;  %v12384_v34 = vpop.f32.mrf.mxu1  ;;  %v7900_v22 = vld [vmem:[%s11042_s30 + $0x7a] sm:$0xff] }
 0x172   : > { %14762 = vst [vmem:[#allocation43_spill] sm:$0xff] %v12384_v34  ;;  %10099 = vmatmul.mubr.f32.gmra.mxu0 %v7898_v55  ;;  %10190 = vmatprep.subr.mxu0 %v7990_v62  ;;  %v12392_v53 = vadd.f32 %v9613_v26, %v1211_v57  ;;  %v7988_v26 = vld [vmem:[%s14645_s1 + $0x738] sm:$0xff]  ;;  %v12415_v34 = vld [vmem:[%s11042_s30 + $0x89] sm:$0xff] }
 0x173   : > { %10191 = vmatpush3.msra.mxu0 %v7990_v62  ;;  %10039 = vmatprep.mubr.f32.mxu1 %v12380_v6  ;;  %v12399_v17 = vpop.f32.mrf.mxu0  ;;  %v12406_v62 = vld [vmem:[%s11042_s30 + $0x81] sm:$0xff] }
 0x174   : > { %14763 = vst [vmem:[#allocation44_spill] sm:$0xff] %v12399_v17  ;;  %10131 = vmatpush3.msra.mxu1 %v7953_v63  ;;  %10101 = vmatprep.mubr.f32.mxu0 %v7899_v4  ;;  %v9554_v55 = vpop.f32.mrf.mxu1  ;;  %v7951_v63 = vld [vmem:[%s14645_s1 + $0x6b0] sm:$0xff] }
 0x175   : > { %10040 = vmatmul.mubr.f32.gmra.mxu1 %v12387_v30  ;;  %10132 = vmatprep.subr.mxu1 %v7952_v59  ;;  %v1213_v57 = vadd.f32 %v9554_v55, %v12157_v48  ;;  %v7902_v48 = vld [vmem:[%s11042_s30 + $0x8a] sm:$0xff] }
 0x176   : > { %10192 = vmatprep.subr.mxu0 %v7989_v21  ;;  %10102 = vmatmul.mubr.f32.gmra.mxu0 %v7900_v22  ;;  %v9616_v4 = vpop.f32.mrf.mxu0  ;;  %v12412_v17 = vpop.f32.mrf.mxu1 }
 0x177   : > { %14764 = vst [vmem:[#allocation45_spill] sm:$0xff] %v12412_v17  ;;  %10133 = vmatpush3.msra.mxu1 %v7952_v59  ;;  %10193 = vmatpush3.msra.mxu0 %v7989_v21  ;;  %v12418_v19 = vadd.f32 %v9616_v4, %v1213_v57  ;;  %v7950_v59 = vld [vmem:[%s14645_s1 + $0x6a8] sm:$0xff]  ;;  %v7987_v21 = vld [vmem:[%s14645_s1 + $0x730] sm:$0xff]  ;;  %v12441_v17 = vld [vmem:[%s11042_s30 + $0x99] sm:$0xff] }
 0x178   : > { %10194 = vmatprep.subr.mxu0 %v7988_v26  ;;  %10042 = vmatprep.mubr.f32.mxu1 %v12406_v62  ;;  %v12422_v22 = vpop.f32.mrf.mxu0  ;;  %v12433_v4 = vld [vmem:[%s11042_s30 + $0x91] sm:$0xff] }
 0x179   : > { %14765 = vst [vmem:[#allocation46_spill] sm:$0xff] %v12422_v22  ;;  %10134 = vmatprep.subr.mxu1 %v7951_v63  ;;  %10195 = vmatpush3.msra.mxu0 %v7988_v26  ;;  %v9557_v55 = vpop.f32.mrf.mxu1  ;;  %v7986_v26 = vld [vmem:[%s14645_s1 + $0x728] sm:$0xff] }
 0x17a   : > { %10043 = vmatmul.mubr.f32.gmra.mxu1 %v12415_v34  ;;  %10104 = vmatprep.mubr.f32.mxu0 %v7901_v12  ;;  %v1215_v57 = vadd.f32 %v9557_v55, %v12186_v40  ;;  %v7949_v12 = vld [vmem:[%s14645_s1 + $0x6a0] sm:$0xff] }
 0x17b   : > { %10135 = vmatpush3.msra.mxu1 %v7951_v63  ;;  %10105 = vmatmul.mubr.f32.gmra.mxu0 %v7902_v48  ;;  %v12438_v22 = vpop.f32.mrf.mxu1  ;;  %v7904_v63 = vld [vmem:[%s11042_s30 + $0x9a] sm:$0xff] }
 0x17c   : > { %14766 = vst [vmem:[#allocation47_spill] sm:$0xff] %v12438_v22  ;;  %10136 = vmatprep.subr.mxu1 %v7950_v59  ;;  %10196 = vmatprep.subr.mxu0 %v7987_v21  ;;  %v9619_v54 = vpop.f32.mrf.mxu0  ;;  %v12461_v55 = vld [vmem:[%s11042_s30 + $0xa1] sm:$0xff] }
 0x17d   : > { %10137 = vmatpush3.msra.mxu1 %v7950_v59  ;;  %10197 = vmatpush3.msra.mxu0 %v7987_v21  ;;  %v12447_v40 = vadd.f32 %v9619_v54, %v1215_v57  ;;  %v7948_v59 = vld [vmem:[%s14645_s1 + $0x698] sm:$0xff]  ;;  %v7985_v21 = vld [vmem:[%s14645_s1 + $0x720] sm:$0xff] }
 0x17e   : > { %10045 = vmatprep.mubr.f32.mxu1 %v12433_v4  ;;  %10198 = vmatprep.subr.mxu0 %v7986_v26  ;;  %v12451_v48 = vpop.f32.mrf.mxu0 }
 0x17f   : > { %14767 = vst [vmem:[#allocation48_spill] sm:$0xff] %v12451_v48  ;;  %10046 = vmatmul.mubr.f32.gmra.mxu1 %v12441_v17  ;;  %10107 = vmatprep.mubr.f32.mxu0 %v7903_v14  ;;  %v9654_v54 = vpop.f32.mrf.mxu1  ;;  %v12465_v48 = vld [vmem:[%s11042_s30 + $0xa9] sm:$0xff] }
 0x180   : > { %10138 = vmatprep.subr.mxu1 %v7949_v12  ;;  %10199 = vmatpush3.msra.mxu0 %v7986_v26  ;;  %v1725_v57 = vadd.f32 %v9654_v54, %v12212_v47  ;;  %v7947_v47 = vld [vmem:[%s14645_s1 + $0x690] sm:$0xff] }
 0x181   : > { %10108 = vmatmul.mubr.f32.gmra.mxu0 %v7904_v63  ;;  %10139 = vmatpush3.msra.mxu1 %v7949_v12  ;;  %v9716_v14 = vpop.f32.mrf.mxu0  ;;  %v12467_v22 = vpop.f32.mrf.mxu1  ;;  %v12483_v63 = vld [vmem:[%s11042_s30 + $0xb1] sm:$0xff] }
 0x182   : > { %14768 = vst [vmem:[#allocation49_spill] sm:$0xff] %v12467_v22  ;;  %10140 = vmatprep.subr.mxu1 %v7948_v59  ;;  %10200 = vmatprep.subr.mxu0 %v7985_v21  ;;  %v12472_v43 = vadd.f32 %v9716_v14, %v1725_v57  ;;  %v12494_v14 = vld [vmem:[%s11042_s30 + $0xb9] sm:$0xff] }
 0x183   : > { %10048 = vmatprep.mubr.f32.mxu1 %v12461_v55  ;;  %10141 = vmatpush3.msra.mxu1 %v7948_v59  ;;  %v12478_v26 = vpop.f32.mrf.mxu0  ;;  %v7946_v59 = vld [vmem:[%s14645_s1 + $0x688] sm:$0xff] }
 0x184   : > { %14769 = vst [vmem:[#allocation50_spill] sm:$0xff] %v12478_v26  ;;  %10201 = vmatpush3.msra.mxu0 %v7985_v21  ;;  %10049 = vmatmul.mubr.f32.gmra.mxu1 %v12465_v48  ;;  %v9657_v12 = vpop.f32.mrf.mxu1  ;;  %v7983_v21 = vld [vmem:[%s14645_s1 + $0x710] sm:$0xff] }
 0x185   : > { %10110 = vmatprep.mubr.f32.mxu0 %v11981_v29  ;;  %10202 = vmatprep.subr.mxu0 %v7984_v37  ;;  %v1727_v54 = vadd.f32 %v9657_v12, %v12239_v33  ;;  %v9719_v57 = vpop.f32.mrf.mxu0  ;;  %v7907_v26 = vld [vmem:[%s11042_s30 + $0xb2] sm:$0xff]  ;;  %v7908_v12 = vld [vmem:[%s11042_s30 + $0xba] sm:$0xff] }
 0x186   : > { %10111 = vmatmul.mubr.f32.gmra.mxu0 %v11992_v7  ;;  %10142 = vmatprep.subr.mxu1 %v7947_v47  ;;  %v12496_v29 = vpop.f32.mrf.mxu1  ;;  %v7945_v7 = vld [vmem:[%s14645_s1 + $0x680] sm:$0xff] }
 0x187   : > { %14770 = vst [vmem:[#allocation51_spill] sm:$0xff] %v12496_v29  ;;  %10203 = vmatpush3.msra.mxu0 %v7984_v37  ;;  %10143 = vmatpush3.msra.mxu1 %v7947_v47  ;;  %v12499_v22 = vadd.f32 %v9719_v57, %v1727_v54  ;;  %v12501_v33 = vpop.f32.mrf.mxu0  ;;  %v7982_v37 = vld [vmem:[%s14645_s1 + $0x708] sm:$0xff] }
 0x188   : > { %14771 = vst [vmem:[#allocation52_spill] sm:$0xff] %v12501_v33  ;;  %10051 = vmatprep.mubr.f32.mxu1 %v12483_v63  ;;  %10144 = vmatprep.subr.mxu1 %v7946_v59  ;;  %v7925_v57 = vld [vmem:[%s11042_s30 + $0x23] sm:$0xff] }
 0x189   : > { %10204 = vmatprep.subr.mxu0 %v7983_v21  ;;  %10052 = vmatmul.mubr.f32.gmra.mxu1 %v12494_v14  ;;  %v9660_v47 = vpop.f32.mrf.mxu1  ;;  %v7981_v33 = vld [vmem:[%s14645_s1 + $0x700] sm:$0xff] }
 0x18a   : > { %10113 = vmatprep.mubr.f32.mxu0 %v7907_v26  ;;  %10145 = vmatpush3.msra.mxu1 %v7946_v59  ;;  %v1729_v54 = vadd.f32 %v9660_v47, %v12260_v27  ;;  %v7961_v27 = vld [vmem:[%s11042_s30 + $0x24] sm:$0xff]  ;;  %v8032_v26 = vld [vmem:[%s14645_s1 + $0x7f8] sm:$0xff]  ;;  %v8031_v47 = vld [vmem:[%s14645_s1 + $0x7f0] sm:$0xff] }
 0x18b   : > { %10205 = vmatpush3.msra.mxu0 %v7983_v21  ;;  %10146 = vmatprep.subr.mxu1 %v7945_v7  ;;  %v9722_v29 = vpop.f32.mrf.mxu0  ;;  %v12517_v5 = vpop.f32.mrf.mxu1  ;;  %v7962_v21 = vld [vmem:[%s11042_s30 + $0x2c] sm:$0xff] }
 0x18c   : > { %14772 = vst [vmem:[#allocation53_spill] sm:$0xff] %v12517_v5  ;;  %10114 = vmatmul.mubr.f32.gmra.mxu0 %v7908_v12  ;;  %10206 = vmatprep.subr.mxu0 %v7982_v37  ;;  %v12520_v23 = vadd.f32 %v9722_v29, %v1729_v54  ;;  %v8068_v29 = vld [vmem:[%s14645_s1 + $0x878] sm:$0xff]  ;;  %v7965_v5 = vld [vmem:[%s11042_s30 + $0x44] sm:$0xff] }
 0x18d   : > { %10207 = vmatpush3.msra.mxu0 %v7982_v37  ;;  %10147 = vmatpush3.msra.mxu1 %v7945_v7  ;;  %v12526_v59 = vpop.f32.mrf.mxu0  ;;  %v12533_v7 = vld [vmem:[%s11042_s30 + $0x33] sm:$0xff] }
 0x18e   : > { %14773 = vst [vmem:[#allocation54_spill] sm:$0xff] %v12526_v59  ;;  %10148 = vmatprep.mubr.f32.mxu1 %v7925_v57  ;;  %10208 = vmatprep.subr.mxu0 %v7981_v33  ;;  %v9663_v12 = vpop.f32.mrf.mxu1 }
 0x18f   : > { %10149 = vmatmul.mubr.f32.vlgmr.msra.gmra.mxu1 %v7926_v42  ;;  %10209 = vmatpush3.msra.mxu0 %v7981_v33  ;;  %v1731_v37 = vadd.f32 %v9663_v12, %v12285_v46  ;;  %v12542_v42 = vld [vmem:[%s11042_s30 + $0x3b] sm:$0xff] }
 0x190   : > { %10210 = vmatprep.mubr.f32.mxu0 %v7961_v27  ;;  %10240 = vmatprep.subr.mxu1 %v8032_v26  ;;  %v9725_v54 = vpop.f32.mrf.mxu0  ;;  %v12539_v57 = vpop.f32.mrf.mxu1  ;;  %v7963_v33 = vld [vmem:[%s11042_s30 + $0x34] sm:$0xff]  ;;  %v7964_v46 = vld [vmem:[%s11042_s30 + $0x3c] sm:$0xff] }
 0x191   : > { %14774 = vst [vmem:[#allocation55_spill] sm:$0xff] %v12539_v57  ;;  %10211 = vmatmul.mubr.f32.vlgmr.msra.gmra.mxu0 %v7962_v21  ;;  %10241 = vmatpush3.msra.mxu1 %v8032_v26  ;;  %v12545_v59 = vadd.f32 %v9725_v54, %v1731_v37  ;;  %v8030_v26 = vld [vmem:[%s14645_s1 + $0x7e8] sm:$0xff]  ;;  %v8067_v21 = vld [vmem:[%s14645_s1 + $0x870] sm:$0xff] }
 0x192   : > { %10302 = vmatprep.subr.mxu0 %v8068_v29  ;;  %10151 = vmatprep.mubr.f32.mxu1 %v12533_v7  ;;  %v12549_v27 = vpop.f32.mrf.mxu0  ;;  %v12560_v54 = vld [vmem:[%s11042_s30 + $0x43] sm:$0xff]  ;;  %v12568_v57 = vld [vmem:[%s11042_s30 + $0x4b] sm:$0xff] }
 0x193   : > { %14775 = vst [vmem:[#allocation56_spill] sm:$0xff] %v12549_v27  ;;  %10242 = vmatprep.subr.mxu1 %v8031_v47  ;;  %10303 = vmatpush3.msra.mxu0 %v8068_v29  ;;  %v9666_v12 = vpop.f32.mrf.mxu1  ;;  %v8066_v29 = vld [vmem:[%s14645_s1 + $0x868] sm:$0xff] }
 0x194   : > { %10152 = vmatmul.mubr.f32.gmra.mxu1 %v12542_v42  ;;  %10213 = vmatprep.mubr.f32.mxu0 %v7963_v33  ;;  %v1733_v37 = vadd.f32 %v9666_v12, %v12314_v60  ;;  %v8029_v60 = vld [vmem:[%s14645_s1 + $0x7e0] sm:$0xff]  ;;  %v7966_v33 = vld [vmem:[%s11042_s30 + $0x4c] sm:$0xff] }
 0x195   : > { %10243 = vmatpush3.msra.mxu1 %v8031_v47  ;;  %10214 = vmatmul.mubr.f32.gmra.mxu0 %v7964_v46  ;;  %v12565_v27 = vpop.f32.mrf.mxu1  ;;  %v12588_v12 = vld [vmem:[%s11042_s30 + $0x53] sm:$0xff] }
 0x196   : > { %14776 = vst [vmem:[#allocation57_spill] sm:$0xff] %v12565_v27  ;;  %10244 = vmatprep.subr.mxu1 %v8030_v26  ;;  %10304 = vmatprep.subr.mxu0 %v8067_v21  ;;  %v9728_v49 = vpop.f32.mrf.mxu0 }
 0x197   : > { %10245 = vmatpush3.msra.mxu1 %v8030_v26  ;;  %10305 = vmatpush3.msra.mxu0 %v8067_v21  ;;  %v12574_v47 = vadd.f32 %v9728_v49, %v1733_v37  ;;  %v8028_v26 = vld [vmem:[%s14645_s1 + $0x7d8] sm:$0xff]  ;;  %v8065_v21 = vld [vmem:[%s14645_s1 + $0x860] sm:$0xff] }
 0x198   : > { %10154 = vmatprep.mubr.f32.mxu1 %v12560_v54  ;;  %10306 = vmatprep.subr.mxu0 %v8066_v29  ;;  %v12578_v46 = vpop.f32.mrf.mxu0 }
 0x199   : > { %14777 = vst [vmem:[#allocation58_spill] sm:$0xff] %v12578_v46  ;;  %10155 = vmatmul.mubr.f32.gmra.mxu1 %v12568_v57  ;;  %10216 = vmatprep.mubr.f32.mxu0 %v7965_v5  ;;  %v9669_v49 = vpop.f32.mrf.mxu1  ;;  %v12592_v5 = vld [vmem:[%s11042_s30 + $0x5b] sm:$0xff] }
 0x19a   : > { %10246 = vmatprep.subr.mxu1 %v8029_v60  ;;  %10307 = vmatpush3.msra.mxu0 %v8066_v29  ;;  %v1735_v37 = vadd.f32 %v9669_v49, %v12340_v10  ;;  %v9731_v27 = vpop.f32.mrf.mxu0  ;;  %v8027_v10 = vld [vmem:[%s14645_s1 + $0x7d0] sm:$0xff] }
 0x19b   : > { %10217 = vmatmul.mubr.f32.gmra.mxu0 %v7966_v33  ;;  %10247 = vmatpush3.msra.mxu1 %v8029_v60  ;;  %v12594_v46 = vpop.f32.mrf.mxu1  ;;  %v12610_v33 = vld [vmem:[%s11042_s30 + $0x63] sm:$0xff] }
 0x19c   : > { %14778 = vst [vmem:[#allocation59_spill] sm:$0xff] %v12594_v46  ;;  %10248 = vmatprep.subr.mxu1 %v8028_v26  ;;  %10308 = vmatprep.subr.mxu0 %v8065_v21  ;;  %v12599_v24 = vadd.f32 %v9731_v27, %v1735_v37  ;;  %v12601_v29 = vpop.f32.mrf.mxu0  ;;  %v8026_v27 = vld [vmem:[%s14645_s1 + $0x7c8] sm:$0xff] }
 0x19d   : > { %14779 = vst [vmem:[#allocation60_spill] sm:$0xff] %v12601_v29  ;;  %10157 = vmatprep.mubr.f32.mxu1 %v12588_v12  ;;  %10249 = vmatpush3.msra.mxu1 %v8028_v26  ;;  %v12621_v37 = vld [vmem:[%s11042_s30 + $0x6b] sm:$0xff] }
 0x19e   : > { %10309 = vmatpush3.msra.mxu0 %v8065_v21  ;;  %10158 = vmatmul.mubr.f32.gmra.mxu1 %v12592_v5  ;;  %v9672_v60 = vpop.f32.mrf.mxu1  ;;  %v8063_v21 = vld [vmem:[%s14645_s1 + $0x850] sm:$0xff] }
 0x19f   : > { %10219 = vmatprep.mubr.f32.mxu0 %v12091_v8  ;;  %10310 = vmatprep.subr.mxu0 %v8064_v2  ;;  %v1737_v49 = vadd.f32 %v9672_v60, %v12366_v3  ;;  %v9734_v26 = vpop.f32.mrf.mxu0  ;;  %v8025_v3 = vld [vmem:[%s14645_s1 + $0x7c0] sm:$0xff] }
 0x1a0   : > { %10220 = vmatmul.mubr.f32.gmra.mxu0 %v12101_v41  ;;  %10250 = vmatprep.subr.mxu1 %v8027_v10  ;;  %v12623_v8 = vpop.f32.mrf.mxu1 }
 0x1a1   : > { %14780 = vst [vmem:[#allocation61_spill] sm:$0xff] %v12623_v8  ;;  %10311 = vmatpush3.msra.mxu0 %v8064_v2  ;;  %10251 = vmatpush3.msra.mxu1 %v8027_v10  ;;  %v12625_v29 = vadd.f32 %v9734_v26, %v1737_v49  ;;  %v12627_v46 = vpop.f32.mrf.mxu0  ;;  %v8062_v2 = vld [vmem:[%s14645_s1 + $0x848] sm:$0xff]  ;;  %v12639_v10 = vld [vmem:[%s11042_s30 + $0x73] sm:$0xff] }
 0x1a2   : > { %14781 = vst [vmem:[#allocation62_spill] sm:$0xff] %v12627_v46  ;;  %10160 = vmatprep.mubr.f32.mxu1 %v12610_v33  ;;  %10252 = vmatprep.subr.mxu1 %v8026_v27  ;;  %v12646_v46 = vld [vmem:[%s11042_s30 + $0x7b] sm:$0xff] }
 0x1a3   : > { %10312 = vmatprep.subr.mxu0 %v8063_v21  ;;  %10161 = vmatmul.mubr.f32.gmra.mxu1 %v12621_v37  ;;  %v9675_v41 = vpop.f32.mrf.mxu1 }
 0x1a4   : > { %10222 = vmatprep.mubr.f32.mxu0 %v12120_v28  ;;  %10253 = vmatpush3.msra.mxu1 %v8026_v27  ;;  %v1739_v60 = vadd.f32 %v9675_v41, %v12392_v53  ;;  %v8024_v28 = vld [vmem:[%s14645_s1 + $0x7b8] sm:$0xff]  ;;  %v8061_v53 = vld [vmem:[%s14645_s1 + $0x840] sm:$0xff] }
 0x1a5   : > { %10313 = vmatpush3.msra.mxu0 %v8063_v21  ;;  %10254 = vmatprep.subr.mxu1 %v8025_v3  ;;  %v9737_v49 = vpop.f32.mrf.mxu0  ;;  %v12642_v26 = vpop.f32.mrf.mxu1  ;;  %v12665_v41 = vld [vmem:[%s11042_s30 + $0x83] sm:$0xff] }
 0x1a6   : > { %14782 = vst [vmem:[#allocation63_spill] sm:$0xff] %v12642_v26  ;;  %10223 = vmatmul.mubr.f32.gmra.mxu0 %v12127_v31  ;;  %10314 = vmatprep.subr.mxu0 %v8062_v2  ;;  %v12651_v27 = vadd.f32 %v9737_v49, %v1739_v60 }
 0x1a7   : > { %10315 = vmatpush3.msra.mxu0 %v8062_v2  ;;  %10163 = vmatprep.mubr.f32.mxu1 %v12639_v10  ;;  %v12657_v21 = vpop.f32.mrf.mxu0  ;;  %v8060_v2 = vld [vmem:[%s14645_s1 + $0x838] sm:$0xff] }
 0x1a8   : > { %14783 = vst [vmem:[#allocation64_spill] sm:$0xff] %v12657_v21  ;;  %10255 = vmatpush3.msra.mxu1 %v8025_v3  ;;  %10225 = vmatprep.mubr.f32.mxu0 %v12146_v1  ;;  %v9678_v31 = vpop.f32.mrf.mxu1  ;;  %v8023_v3 = vld [vmem:[%s14645_s1 + $0x7b0] sm:$0xff] }
 0x1a9   : > { %10164 = vmatmul.mubr.f32.gmra.mxu1 %v12646_v46  ;;  %10256 = vmatprep.subr.mxu1 %v8024_v28  ;;  %v1741_v60 = vadd.f32 %v9678_v31, %v12418_v19  ;;  %v12675_v21 = vld [vmem:[%s11042_s30 + $0x8b] sm:$0xff] }
 0x1aa   : > { %10316 = vmatprep.subr.mxu0 %v8061_v53  ;;  %10226 = vmatmul.mubr.f32.gmra.mxu0 %v12155_v61  ;;  %v9740_v1 = vpop.f32.mrf.mxu0  ;;  %v12672_v49 = vpop.f32.mrf.mxu1  ;;  %v8022_v61 = vld [vmem:[%s14645_s1 + $0x7a8] sm:$0xff] }
 0x1ab   : > { %14784 = vst [vmem:[#allocation65_spill] sm:$0xff] %v12672_v49  ;;  %10257 = vmatpush3.msra.mxu1 %v8024_v28  ;;  %10317 = vmatpush3.msra.mxu0 %v8061_v53  ;;  %v12677_v26 = vadd.f32 %v9740_v1, %v1741_v60  ;;  %v8059_v28 = vld [vmem:[%s14645_s1 + $0x830] sm:$0xff] }
 0x1ac   : > { %10318 = vmatprep.subr.mxu0 %v8060_v2  ;;  %10166 = vmatprep.mubr.f32.mxu1 %v12665_v41  ;;  %v12680_v19 = vpop.f32.mrf.mxu0  ;;  %v12693_v60 = vld [vmem:[%s11042_s30 + $0x93] sm:$0xff] }
 0x1ad   : > { %14785 = vst [vmem:[#allocation66_spill] sm:$0xff] %v12680_v19  ;;  %10258 = vmatprep.subr.mxu1 %v8023_v3  ;;  %10319 = vmatpush3.msra.mxu0 %v8060_v2  ;;  %v9681_v53 = vpop.f32.mrf.mxu1  ;;  %v8058_v2 = vld [vmem:[%s14645_s1 + $0x828] sm:$0xff]  ;;  %v12701_v19 = vld [vmem:[%s11042_s30 + $0x9b] sm:$0xff] }
 0x1ae   : > { %10167 = vmatmul.mubr.f32.gmra.mxu1 %v12675_v21  ;;  %10228 = vmatprep.mubr.f32.mxu0 %v12173_v52  ;;  %v1743_v31 = vadd.f32 %v9681_v53, %v12447_v40  ;;  %v8021_v52 = vld [vmem:[%s14645_s1 + $0x7a0] sm:$0xff] }
 0x1af   : > { %10259 = vmatpush3.msra.mxu1 %v8023_v3  ;;  %10229 = vmatmul.mubr.f32.gmra.mxu0 %v12181_v20  ;;  %v12698_v1 = vpop.f32.mrf.mxu1  ;;  %v8020_v3 = vld [vmem:[%s14645_s1 + $0x798] sm:$0xff] }
 0x1b0   : > { %14786 = vst [vmem:[#allocation67_spill] sm:$0xff] %v12698_v1  ;;  %10260 = vmatprep.subr.mxu1 %v8022_v61  ;;  %10320 = vmatprep.subr.mxu0 %v8059_v28  ;;  %v9743_v49 = vpop.f32.mrf.mxu0  ;;  %v8056_v1 = vld [vmem:[%s14645_s1 + $0x818] sm:$0xff] }
 0x1b1   : > { %10261 = vmatpush3.msra.mxu1 %v8022_v61  ;;  %10321 = vmatpush3.msra.mxu0 %v8059_v28  ;;  %v12706_v20 = vadd.f32 %v9743_v49, %v1743_v31  ;;  %v8057_v61 = vld [vmem:[%s14645_s1 + $0x820] sm:$0xff]  ;;  %v12725_v31 = vld [vmem:[%s11042_s30 + $0xab] sm:$0xff] }
 0x1b2   : > { %10169 = vmatprep.mubr.f32.mxu1 %v12693_v60  ;;  %10322 = vmatprep.subr.mxu0 %v8058_v2  ;;  %v12709_v40 = vpop.f32.mrf.mxu0  ;;  %v12720_v49 = vld [vmem:[%s11042_s30 + $0xa3] sm:$0xff] }
 0x1b3   : > { %14787 = vst [vmem:[#allocation68_spill] sm:$0xff] %v12709_v40  ;;  %10170 = vmatmul.mubr.f32.gmra.mxu1 %v12701_v19  ;;  %10231 = vmatprep.mubr.f32.mxu0 %v12200_v50  ;;  %v9778_v28 = vpop.f32.mrf.mxu1 }
 0x1b4   : > { %10262 = vmatprep.subr.mxu1 %v8021_v52  ;;  %10323 = vmatpush3.msra.mxu0 %v8058_v2  ;;  %v2253_v53 = vadd.f32 %v9778_v28, %v12472_v43  ;;  %v8019_v43 = vld [vmem:[%s14645_s1 + $0x790] sm:$0xff] }
 0x1b5   : > { %10232 = vmatmul.mubr.f32.gmra.mxu0 %v12205_v0  ;;  %10263 = vmatpush3.msra.mxu1 %v8021_v52  ;;  %v9840_v50 = vpop.f32.mrf.mxu0  ;;  %v12727_v40 = vpop.f32.mrf.mxu1  ;;  %v12743_v28 = vld [vmem:[%s11042_s30 + $0xb3] sm:$0xff] }
 0x1b6   : > { %14788 = vst [vmem:[#allocation69_spill] sm:$0xff] %v12727_v40  ;;  %10264 = vmatprep.subr.mxu1 %v8020_v3  ;;  %10324 = vmatprep.subr.mxu0 %v8057_v61  ;;  %v12732_v2 = vadd.f32 %v9840_v50, %v2253_v53  ;;  %v7979_v40 = vld [vmem:[%s11042_s30 + $0xb4] sm:$0xff] }
 0x1b7   : > { %10172 = vmatprep.mubr.f32.mxu1 %v12720_v49  ;;  %10265 = vmatpush3.msra.mxu1 %v8020_v3  ;;  %v12738_v0 = vpop.f32.mrf.mxu0  ;;  %v8018_v3 = vld [vmem:[%s14645_s1 + $0x788] sm:$0xff] }
 0x1b8   : > { %14789 = vst [vmem:[#allocation70_spill] sm:$0xff] %v12738_v0  ;;  %10325 = vmatpush3.msra.mxu0 %v8057_v61  ;;  %10173 = vmatmul.mubr.f32.gmra.mxu1 %v12725_v31  ;;  %v9781_v52 = vpop.f32.mrf.mxu1  ;;  %v8055_v61 = vld [vmem:[%s14645_s1 + $0x810] sm:$0xff]  ;;  %v12754_v0 = vld [vmem:[%s11042_s30 + $0xbb] sm:$0xff] }
 0x1b9   : > { %10234 = vmatprep.mubr.f32.mxu0 %v12223_v18  ;;  %10326 = vmatprep.subr.mxu0 %v8056_v1  ;;  %v2255_v53 = vadd.f32 %v9781_v52, %v12499_v22  ;;  %v9843_v50 = vpop.f32.mrf.mxu0  ;;  %v7980_v52 = vld [vmem:[%s11042_s30 + $0xbc] sm:$0xff] }
 0x1ba   : > { %10235 = vmatmul.mubr.f32.gmra.mxu0 %v12234_v32  ;;  %10266 = vmatprep.subr.mxu1 %v8019_v43  ;;  %v12756_v18 = vpop.f32.mrf.mxu1  ;;  %v8017_v32 = vld [vmem:[%s14645_s1 + $0x780] sm:$0xff] }
 0x1bb   : > { %14790 = vst [vmem:[#allocation71_spill] sm:$0xff] %v12756_v18  ;;  %10327 = vmatpush3.msra.mxu0 %v8056_v1  ;;  %10267 = vmatpush3.msra.mxu1 %v8019_v43  ;;  %v12759_v8 = vadd.f32 %v9843_v50, %v2255_v53  ;;  %v12761_v22 = vpop.f32.mrf.mxu0  ;;  %v8054_v1 = vld [vmem:[%s14645_s1 + $0x808] sm:$0xff]  ;;  %v7997_v50 = vld [vmem:[%s11042_s30 + $0x30] sm:$0xff] }
 0x1bc   : > { %14791 = vst [vmem:[#allocation72_spill] sm:$0xff] %v12761_v22  ;;  %10175 = vmatprep.mubr.f32.mxu1 %v12743_v28  ;;  %10268 = vmatprep.subr.mxu1 %v8018_v3  ;;  %v8053_v22 = vld [vmem:[%s14645_s1 + $0x800] sm:$0xff] }
 0x1bd   : > { %10328 = vmatprep.subr.mxu0 %v8055_v61  ;;  %10176 = vmatmul.mubr.f32.gmra.mxu1 %v12754_v0  ;;  %v9784_v43 = vpop.f32.mrf.mxu1 }
 0x1be   : > { %10237 = vmatprep.mubr.f32.mxu0 %v7979_v40  ;;  %10269 = vmatpush3.msra.mxu1 %v8018_v3  ;;  %v2257_v53 = vadd.f32 %v9784_v43, %v12520_v23  ;;  %v8104_v23 = vld [vmem:[%s14645_s1 + $0x8f8] sm:$0xff] }
 0x1bf   : > { %10329 = vmatpush3.msra.mxu0 %v8055_v61  ;;  %10270 = vmatprep.subr.mxu1 %v8017_v32  ;;  %v9846_v18 = vpop.f32.mrf.mxu0  ;;  %v12777_v39 = vpop.f32.mrf.mxu1  ;;  %v8140_v61 = vld [vmem:[%s14645_s1 + $0x978] sm:$0xff] }
 0x1c0   : > { %14792 = vst [vmem:[#allocation73_spill] sm:$0xff] %v12777_v39  ;;  %10238 = vmatmul.mubr.f32.gmra.mxu0 %v7980_v52  ;;  %10330 = vmatprep.subr.mxu0 %v8054_v1  ;;  %v12780_v16 = vadd.f32 %v9846_v18, %v2257_v53  ;;  %v12791_v18 = vld [vmem:[%s11042_s30 + $0x40] sm:$0xff]  ;;  %v8103_v52 = vld [vmem:[%s14645_s1 + $0x8f0] sm:$0xff] }
 0x1c1   : > { %10331 = vmatpush3.msra.mxu0 %v8054_v1  ;;  %10271 = vmatpush3.msra.mxu1 %v8017_v32  ;;  %v12785_v40 = vpop.f32.mrf.mxu0 }
 0x1c2   : > { %14793 = vst [vmem:[#allocation74_spill] sm:$0xff] %v12785_v40  ;;  %10272 = vmatprep.mubr.f32.mxu1 %v7997_v50  ;;  %10332 = vmatprep.subr.mxu0 %v8053_v22  ;;  %v9787_v3 = vpop.f32.mrf.mxu1 }
 0x1c3   : > { %10273 = vmatmul.mubr.f32.vlgmr.msra.gmra.mxu1 %v7998_v56  ;;  %10333 = vmatpush3.msra.mxu0 %v8053_v22  ;;  %v2259_v32 = vadd.f32 %v9787_v3, %v12545_v59  ;;  %v12802_v56 = vld [vmem:[%s11042_s30 + $0x48] sm:$0xff] }
 0x1c4   : > { %10334 = vmatprep.mubr.f32.mxu0 %v12273_v9  ;;  %10364 = vmatprep.subr.mxu1 %v8104_v23  ;;  %v9849_v1 = vpop.f32.mrf.mxu0  ;;  %v12798_v43 = vpop.f32.mrf.mxu1  ;;  %v8102_v59 = vld [vmem:[%s14645_s1 + $0x8e8] sm:$0xff] }
 0x1c5   : > { %14794 = vst [vmem:[#allocation75_spill] sm:$0xff] %v12798_v43  ;;  %10335 = vmatmul.mubr.f32.vlgmr.msra.gmra.mxu0 %v12282_v11  ;;  %10365 = vmatpush3.msra.mxu1 %v8104_v23  ;;  %v12804_v22 = vadd.f32 %v9849_v1, %v2259_v32  ;;  %v8139_v11 = vld [vmem:[%s14645_s1 + $0x970] sm:$0xff]  ;;  %v8138_v3 = vld [vmem:[%s14645_s1 + $0x968] sm:$0xff]  ;;  %v12828_v32 = vld [vmem:[%s11042_s30 + $0x58] sm:$0xff] }
 0x1c6   : > { %10426 = vmatprep.subr.mxu0 %v8140_v61  ;;  %10275 = vmatprep.mubr.f32.mxu1 %v12791_v18  ;;  %v12807_v9 = vpop.f32.mrf.mxu0  ;;  %v12820_v23 = vld [vmem:[%s11042_s30 + $0x50] sm:$0xff]  ;;  %v8136_v43 = vld [vmem:[%s14645_s1 + $0x958] sm:$0xff] }
 0x1c7   : > { %14795 = vst [vmem:[#allocation76_spill] sm:$0xff] %v12807_v9  ;;  %10366 = vmatprep.subr.mxu1 %v8103_v52  ;;  %10427 = vmatpush3.msra.mxu0 %v8140_v61  ;;  %v9790_v53 = vpop.f32.mrf.mxu1 }
 0x1c8   : > { %10276 = vmatmul.mubr.f32.gmra.mxu1 %v12802_v56  ;;  %10337 = vmatprep.mubr.f32.mxu0 %v12300_v25  ;;  %v2261_v50 = vadd.f32 %v9790_v53, %v12574_v47  ;;  %v12847_v53 = vld [vmem:[%s11042_s30 + $0x60] sm:$0xff] }
 0x1c9   : > { %10367 = vmatpush3.msra.mxu1 %v8103_v52  ;;  %10338 = vmatmul.mubr.f32.gmra.mxu0 %v12308_v58  ;;  %v12825_v61 = vpop.f32.mrf.mxu1  ;;  %v8101_v58 = vld [vmem:[%s14645_s1 + $0x8e0] sm:$0xff]  ;;  %v8100_v52 = vld [vmem:[%s14645_s1 + $0x8d8] sm:$0xff] }
 0x1ca   : > { %14796 = vst [vmem:[#allocation77_spill] sm:$0xff] %v12825_v61  ;;  %10368 = vmatprep.subr.mxu1 %v8102_v59  ;;  %10428 = vmatprep.subr.mxu0 %v8139_v11  ;;  %v9852_v1 = vpop.f32.mrf.mxu0 }
 0x1cb   : > { %10369 = vmatpush3.msra.mxu1 %v8102_v59  ;;  %10429 = vmatpush3.msra.mxu0 %v8139_v11  ;;  %v12833_v25 = vadd.f32 %v9852_v1, %v2261_v50  ;;  %v8137_v59 = vld [vmem:[%s14645_s1 + $0x960] sm:$0xff] }
 0x1cc   : > { %10278 = vmatprep.mubr.f32.mxu1 %v12820_v23  ;;  %10430 = vmatprep.subr.mxu0 %v8138_v3  ;;  %v12836_v47 = vpop.f32.mrf.mxu0 }
 0x1cd   : > { %14797 = vst [vmem:[#allocation78_spill] sm:$0xff] %v12836_v47  ;;  %10279 = vmatmul.mubr.f32.gmra.mxu1 %v12828_v32  ;;  %10340 = vmatprep.mubr.f32.mxu0 %v12328_v35  ;;  %v9793_v11 = vpop.f32.mrf.mxu1  ;;  %v12852_v35 = vld [vmem:[%s11042_s30 + $0x68] sm:$0xff]  ;;  %v8070_v47 = vld [vmem:[%s11042_s30 + $0x3a] sm:$0xff] }
 0x1ce   : > { %10370 = vmatprep.subr.mxu1 %v8101_v58  ;;  %10431 = vmatpush3.msra.mxu0 %v8138_v3  ;;  %v2263_v50 = vadd.f32 %v9793_v11, %v12599_v24  ;;  %v9855_v1 = vpop.f32.mrf.mxu0  ;;  %v8099_v24 = vld [vmem:[%s14645_s1 + $0x8d0] sm:$0xff]  ;;  %v8098_v11 = vld [vmem:[%s14645_s1 + $0x8c8] sm:$0xff] }
 0x1cf   : > { %10341 = vmatmul.mubr.f32.gmra.mxu0 %v12332_v15  ;;  %10371 = vmatpush3.msra.mxu1 %v8101_v58  ;;  %v12854_v9 = vpop.f32.mrf.mxu1  ;;  %v12870_v58 = vld [vmem:[%s11042_s30 + $0x70] sm:$0xff] }
 0x1d0   : > { %14798 = vst [vmem:[#allocation79_spill] sm:$0xff] %v12854_v9  ;;  %10372 = vmatprep.subr.mxu1 %v8100_v52  ;;  %10432 = vmatprep.subr.mxu0 %v8137_v59  ;;  %v12859_v3 = vadd.f32 %v9855_v1, %v2263_v50  ;;  %v12861_v40 = vpop.f32.mrf.mxu0  ;;  %v12881_v1 = vld [vmem:[%s11042_s30 + $0x78] sm:$0xff] }
 0x1d1   : > { %14799 = vst [vmem:[#allocation80_spill] sm:$0xff] %v12861_v40  ;;  %10281 = vmatprep.mubr.f32.mxu1 %v12847_v53  ;;  %10373 = vmatpush3.msra.mxu1 %v8100_v52 }
 0x1d2   : > { %10433 = vmatpush3.msra.mxu0 %v8137_v59  ;;  %10282 = vmatmul.mubr.f32.gmra.mxu1 %v12852_v35  ;;  %v9796_v15 = vpop.f32.mrf.mxu1  ;;  %v8135_v59 = vld [vmem:[%s14645_s1 + $0x950] sm:$0xff] }
 0x1d3   : > { %10343 = vmatprep.mubr.f32.mxu0 %v12351_v51  ;;  %10434 = vmatprep.subr.mxu0 %v8136_v43  ;;  %v2265_v50 = vadd.f32 %v9796_v15, %v12625_v29  ;;  %v9858_v52 = vpop.f32.mrf.mxu0  ;;  %v8134_v29 = vld [vmem:[%s14645_s1 + $0x948] sm:$0xff] }
 0x1d4   : > { %10344 = vmatmul.mubr.f32.gmra.mxu0 %v12361_v13  ;;  %10374 = vmatprep.subr.mxu1 %v8099_v24  ;;  %v12883_v51 = vpop.f32.mrf.mxu1  ;;  %v8097_v13 = vld [vmem:[%s14645_s1 + $0x8c0] sm:$0xff] }
 0x1d5   : > { %14800 = vst [vmem:[#allocation81_spill] sm:$0xff] %v12883_v51  ;;  %10435 = vmatpush3.msra.mxu0 %v8136_v43  ;;  %10375 = vmatpush3.msra.mxu1 %v8099_v24  ;;  %v12885_v39 = vadd.f32 %v9858_v52, %v2265_v50  ;;  %v12887_v40 = vpop.f32.mrf.mxu0  ;;  %v12899_v24 = vld [vmem:[%s11042_s30 + $0x80] sm:$0xff] }
 0x1d6   : > { %14801 = vst [vmem:[#allocation82_spill] sm:$0xff] %v12887_v40  ;;  %10284 = vmatprep.mubr.f32.mxu1 %v12870_v58  ;;  %10376 = vmatprep.subr.mxu1 %v8098_v11  ;;  %v12906_v40 = vld [vmem:[%s11042_s30 + $0x88] sm:$0xff] }
 0x1d7   : > { %10436 = vmatprep.subr.mxu0 %v8135_v59  ;;  %10285 = vmatmul.mubr.f32.gmra.mxu1 %v12881_v1  ;;  %v9799_v43 = vpop.f32.mrf.mxu1 }
 0x1d8   : > { %10346 = vmatprep.mubr.f32.mxu0 %v12380_v6  ;;  %10377 = vmatpush3.msra.mxu1 %v8098_v11  ;;  %v2267_v15 = vadd.f32 %v9799_v43, %v12651_v27  ;;  %v8096_v6 = vld [vmem:[%s14645_s1 + $0x8b8] sm:$0xff]  ;;  %v8133_v27 = vld [vmem:[%s14645_s1 + $0x940] sm:$0xff]  ;;  %v12925_v43 = vld [vmem:[%s11042_s30 + $0x90] sm:$0xff] }
 0x1d9   : > { %10437 = vmatpush3.msra.mxu0 %v8135_v59  ;;  %10378 = vmatprep.subr.mxu1 %v8097_v13  ;;  %v9861_v50 = vpop.f32.mrf.mxu0  ;;  %v12902_v52 = vpop.f32.mrf.mxu1 }
 0x1da   : > { %14802 = vst [vmem:[#allocation83_spill] sm:$0xff] %v12902_v52  ;;  %10347 = vmatmul.mubr.f32.gmra.mxu0 %v12387_v30  ;;  %10438 = vmatprep.subr.mxu0 %v8134_v29  ;;  %v12911_v11 = vadd.f32 %v9861_v50, %v2267_v15 }
 0x1db   : > { %10439 = vmatpush3.msra.mxu0 %v8134_v29  ;;  %10287 = vmatprep.mubr.f32.mxu1 %v12899_v24  ;;  %v12917_v59 = vpop.f32.mrf.mxu0  ;;  %v8132_v29 = vld [vmem:[%s14645_s1 + $0x938] sm:$0xff] }
 0x1dc   : > { %14803 = vst [vmem:[#allocation84_spill] sm:$0xff] %v12917_v59  ;;  %10379 = vmatpush3.msra.mxu1 %v8097_v13  ;;  %10349 = vmatprep.mubr.f32.mxu0 %v12406_v62  ;;  %v9802_v30 = vpop.f32.mrf.mxu1  ;;  %v8095_v13 = vld [vmem:[%s14645_s1 + $0x8b0] sm:$0xff]  ;;  %v12935_v59 = vld [vmem:[%s11042_s30 + $0x98] sm:$0xff] }
 0x1dd   : > { %10288 = vmatmul.mubr.f32.gmra.mxu1 %v12906_v40  ;;  %10380 = vmatprep.subr.mxu1 %v8096_v6  ;;  %v2269_v15 = vadd.f32 %v9802_v30, %v12677_v26 }
 0x1de   : > { %10440 = vmatprep.subr.mxu0 %v8133_v27  ;;  %10350 = vmatmul.mubr.f32.gmra.mxu0 %v12415_v34  ;;  %v9864_v62 = vpop.f32.mrf.mxu0  ;;  %v12932_v50 = vpop.f32.mrf.mxu1  ;;  %v8094_v34 = vld [vmem:[%s14645_s1 + $0x8a8] sm:$0xff] }
 0x1df   : > { %14804 = vst [vmem:[#allocation85_spill] sm:$0xff] %v12932_v50  ;;  %10381 = vmatpush3.msra.mxu1 %v8096_v6  ;;  %10441 = vmatpush3.msra.mxu0 %v8133_v27  ;;  %v12937_v52 = vadd.f32 %v9864_v62, %v2269_v15  ;;  %v8131_v6 = vld [vmem:[%s14645_s1 + $0x930] sm:$0xff]  ;;  %v12953_v15 = vld [vmem:[%s11042_s30 + $0xa0] sm:$0xff] }
 0x1e0   : > { %10442 = vmatprep.subr.mxu0 %v8132_v29  ;;  %10290 = vmatprep.mubr.f32.mxu1 %v12925_v43  ;;  %v12940_v26 = vpop.f32.mrf.mxu0 }
 0x1e1   : > { %14805 = vst [vmem:[#allocation86_spill] sm:$0xff] %v12940_v26  ;;  %10382 = vmatprep.subr.mxu1 %v8095_v13  ;;  %10443 = vmatpush3.msra.mxu0 %v8132_v29  ;;  %v9805_v27 = vpop.f32.mrf.mxu1  ;;  %v8130_v29 = vld [vmem:[%s14645_s1 + $0x928] sm:$0xff] }
 0x1e2   : > { %10291 = vmatmul.mubr.f32.gmra.mxu1 %v12935_v59  ;;  %10352 = vmatprep.mubr.f32.mxu0 %v12433_v4  ;;  %v2271_v30 = vadd.f32 %v9805_v27, %v12706_v20  ;;  %v12961_v26 = vld [vmem:[%s11042_s30 + $0xa8] sm:$0xff] }
 0x1e3   : > { %10383 = vmatpush3.msra.mxu1 %v8095_v13  ;;  %10353 = vmatmul.mubr.f32.gmra.mxu0 %v12441_v17  ;;  %v12958_v62 = vpop.f32.mrf.mxu1  ;;  %v8093_v17 = vld [vmem:[%s14645_s1 + $0x8a0] sm:$0xff]  ;;  %v8092_v13 = vld [vmem:[%s14645_s1 + $0x898] sm:$0xff] }
 0x1e4   : > { %14806 = vst [vmem:[#allocation87_spill] sm:$0xff] %v12958_v62  ;;  %10384 = vmatprep.subr.mxu1 %v8094_v34  ;;  %10444 = vmatprep.subr.mxu0 %v8131_v6  ;;  %v9867_v50 = vpop.f32.mrf.mxu0  ;;  %v8128_v62 = vld [vmem:[%s14645_s1 + $0x918] sm:$0xff] }
 0x1e5   : > { %10385 = vmatpush3.msra.mxu1 %v8094_v34  ;;  %10445 = vmatpush3.msra.mxu0 %v8131_v6  ;;  %v12966_v4 = vadd.f32 %v9867_v50, %v2271_v30  ;;  %v8129_v34 = vld [vmem:[%s14645_s1 + $0x920] sm:$0xff]  ;;  %v12980_v50 = vld [vmem:[%s11042_s30 + $0xb0] sm:$0xff]  ;;  %v12985_v30 = vld [vmem:[%s11042_s30 + $0xb8] sm:$0xff] }
 0x1e6   : > { %10293 = vmatprep.mubr.f32.mxu1 %v12953_v15  ;;  %10446 = vmatprep.subr.mxu0 %v8130_v29  ;;  %v12969_v20 = vpop.f32.mrf.mxu0 }
 0x1e7   : > { %14807 = vst [vmem:[#allocation88_spill] sm:$0xff] %v12969_v20  ;;  %10294 = vmatmul.mubr.f32.gmra.mxu1 %v12961_v26  ;;  %10355 = vmatprep.mubr.f32.mxu0 %v12461_v55  ;;  %v9902_v6 = vpop.f32.mrf.mxu1 }
 0x1e8   : > { %10386 = vmatprep.subr.mxu1 %v8093_v17  ;;  %10447 = vmatpush3.msra.mxu0 %v8130_v29  ;;  %v2781_v27 = vadd.f32 %v9902_v6, %v12732_v2  ;;  %v13003_v6 = vld [vmem:[%s11042_s30 + $0xc0] sm:$0xff] }
 0x1e9   : > { %10356 = vmatmul.mubr.f32.gmra.mxu0 %v12465_v48  ;;  %10387 = vmatpush3.msra.mxu1 %v8093_v17  ;;  %v9964_v55 = vpop.f32.mrf.mxu0  ;;  %v12987_v20 = vpop.f32.mrf.mxu1  ;;  %v8091_v48 = vld [vmem:[%s14645_s1 + $0x890] sm:$0xff] }
 0x1ea   : > { %14808 = vst [vmem:[#allocation89_spill] sm:$0xff] %v12987_v20  ;;  %10388 = vmatprep.subr.mxu1 %v8092_v13  ;;  %10448 = vmatprep.subr.mxu0 %v8129_v34  ;;  %v12992_v29 = vadd.f32 %v9964_v55, %v2781_v27  ;;  %v8051_v20 = vld [vmem:[%s11042_s30 + $0xc1] sm:$0xff] }
 0x1eb   : > { %10296 = vmatprep.mubr.f32.mxu1 %v12980_v50  ;;  %10389 = vmatpush3.msra.mxu1 %v8092_v13  ;;  %v12998_v2 = vpop.f32.mrf.mxu0  ;;  %v8090_v13 = vld [vmem:[%s14645_s1 + $0x888] sm:$0xff] }
 0x1ec   : > { %14809 = vst [vmem:[#allocation90_spill] sm:$0xff] %v12998_v2  ;;  %10449 = vmatpush3.msra.mxu0 %v8129_v34  ;;  %10297 = vmatmul.mubr.f32.gmra.mxu1 %v12985_v30  ;;  %v9905_v17 = vpop.f32.mrf.mxu1  ;;  %v8127_v34 = vld [vmem:[%s14645_s1 + $0x910] sm:$0xff]  ;;  %v13014_v2 = vld [vmem:[%s11042_s30 + $0xc8] sm:$0xff] }
 0x1ed   : > { %10358 = vmatprep.mubr.f32.mxu0 %v12483_v63  ;;  %10450 = vmatprep.subr.mxu0 %v8128_v62  ;;  %v2783_v27 = vadd.f32 %v9905_v17, %v12759_v8  ;;  %v9967_v55 = vpop.f32.mrf.mxu0  ;;  %v8052_v17 = vld [vmem:[%s11042_s30 + $0xc9] sm:$0xff] }
 0x1ee   : > { %10359 = vmatmul.mubr.f32.gmra.mxu0 %v12494_v14  ;;  %10390 = vmatprep.subr.mxu1 %v8091_v48  ;;  %v13016_v63 = vpop.f32.mrf.mxu1  ;;  %v8089_v14 = vld [vmem:[%s14645_s1 + $0x880] sm:$0xff] }
 0x1ef   : > { %14810 = vst [vmem:[#allocation91_spill] sm:$0xff] %v13016_v63  ;;  %10451 = vmatpush3.msra.mxu0 %v8128_v62  ;;  %10391 = vmatpush3.msra.mxu1 %v8091_v48  ;;  %v13019_v51 = vadd.f32 %v9967_v55, %v2783_v27  ;;  %v13021_v8 = vpop.f32.mrf.mxu0  ;;  %v8126_v62 = vld [vmem:[%s14645_s1 + $0x908] sm:$0xff]  ;;  %v8069_v55 = vld [vmem:[%s11042_s30 + $0x32] sm:$0xff] }
 0x1f0   : > { %14811 = vst [vmem:[#allocation92_spill] sm:$0xff] %v13021_v8  ;;  %10299 = vmatprep.mubr.f32.mxu1 %v13003_v6  ;;  %10392 = vmatprep.subr.mxu1 %v8090_v13  ;;  %v8125_v8 = vld [vmem:[%s14645_s1 + $0x900] sm:$0xff] }
 0x1f1   : > { %10452 = vmatprep.subr.mxu0 %v8127_v34  ;;  %10300 = vmatmul.mubr.f32.gmra.mxu1 %v13014_v2  ;;  %v9908_v48 = vpop.f32.mrf.mxu1 }
 0x1f2   : > { %10361 = vmatprep.mubr.f32.mxu0 %v8051_v20  ;;  %10393 = vmatpush3.msra.mxu1 %v8090_v13  ;;  %v2785_v27 = vadd.f32 %v9908_v48, %v12780_v16  ;;  %v8176_v16 = vld [vmem:[%s14645_s1 + $0x9f8] sm:$0xff] }
 0x1f3   : > { %10453 = vmatpush3.msra.mxu0 %v8127_v34  ;;  %10394 = vmatprep.subr.mxu1 %v8089_v14  ;;  %v9970_v63 = vpop.f32.mrf.mxu0  ;;  %v13037_v9 = vpop.f32.mrf.mxu1  ;;  %v8212_v34 = vld [vmem:[%s14645_s1 + $0xa78] sm:$0xff] }
 0x1f4   : > { %14812 = vst [vmem:[#allocation93_spill] sm:$0xff] %v13037_v9  ;;  %10362 = vmatmul.mubr.f32.gmra.mxu0 %v8052_v17  ;;  %10454 = vmatprep.subr.mxu0 %v8126_v62  ;;  %v13040_v61 = vadd.f32 %v9970_v63, %v2785_v27  ;;  %v13051_v63 = vld [vmem:[%s11042_s30 + $0x42] sm:$0xff]  ;;  %v8175_v17 = vld [vmem:[%s14645_s1 + $0x9f0] sm:$0xff] }
 0x1f5   : > { %10455 = vmatpush3.msra.mxu0 %v8126_v62  ;;  %10395 = vmatpush3.msra.mxu1 %v8089_v14  ;;  %v13045_v20 = vpop.f32.mrf.mxu0 }
 0x1f6   : > { %14813 = vst [vmem:[#allocation94_spill] sm:$0xff] %v13045_v20  ;;  %10396 = vmatprep.mubr.f32.mxu1 %v8069_v55  ;;  %10456 = vmatprep.subr.mxu0 %v8125_v8  ;;  %v9911_v13 = vpop.f32.mrf.mxu1 }
 0x1f7   : > { %10397 = vmatmul.mubr.f32.vlgmr.msra.gmra.mxu1 %v8070_v47  ;;  %10457 = vmatpush3.msra.mxu0 %v8125_v8  ;;  %v2787_v14 = vadd.f32 %v9911_v13, %v12804_v22  ;;  %v13062_v47 = vld [vmem:[%s11042_s30 + $0x4a] sm:$0xff] }
 0x1f8   : > { %10458 = vmatprep.mubr.f32.mxu0 %v12533_v7  ;;  %10488 = vmatprep.subr.mxu1 %v8176_v16  ;;  %v9973_v62 = vpop.f32.mrf.mxu0  ;;  %v13058_v48 = vpop.f32.mrf.mxu1  ;;  %v8174_v22 = vld [vmem:[%s14645_s1 + $0x9e8] sm:$0xff] }
 0x1f9   : > { %14814 = vst [vmem:[#allocation95_spill] sm:$0xff] %v13058_v48  ;;  %10459 = vmatmul.mubr.f32.vlgmr.msra.gmra.mxu0 %v12542_v42  ;;  %10489 = vmatpush3.msra.mxu1 %v8176_v16  ;;  %v13064_v8 = vadd.f32 %v9973_v62, %v2787_v14  ;;  %v8211_v42 = vld [vmem:[%s14645_s1 + $0xa70] sm:$0xff]  ;;  %v8210_v13 = vld [vmem:[%s14645_s1 + $0xa68] sm:$0xff]  ;;  %v13088_v14 = vld [vmem:[%s11042_s30 + $0x5a] sm:$0xff] }
 0x1fa   : > { %10550 = vmatprep.subr.mxu0 %v8212_v34  ;;  %10399 = vmatprep.mubr.f32.mxu1 %v13051_v63  ;;  %v13067_v7 = vpop.f32.mrf.mxu0  ;;  %v13080_v16 = vld [vmem:[%s11042_s30 + $0x52] sm:$0xff] }
 0x1fb   : > { %14815 = vst [vmem:[#allocation96_spill] sm:$0xff] %v13067_v7  ;;  %10490 = vmatprep.subr.mxu1 %v8175_v17  ;;  %10551 = vmatpush3.msra.mxu0 %v8212_v34  ;;  %v9914_v27 = vpop.f32.mrf.mxu1  ;;  %v8208_v48 = vld [vmem:[%s14645_s1 + $0xa58] sm:$0xff] }
 0x1fc   : > { %10400 = vmatmul.mubr.f32.gmra.mxu1 %v13062_v47  ;;  %10461 = vmatprep.mubr.f32.mxu0 %v12560_v54  ;;  %v2789_v55 = vadd.f32 %v9914_v27, %v12833_v25  ;;  %v13107_v27 = vld [vmem:[%s11042_s30 + $0x62] sm:$0xff] }
 0x1fd   : > { %10491 = vmatpush3.msra.mxu1 %v8175_v17  ;;  %10462 = vmatmul.mubr.f32.gmra.mxu0 %v12568_v57  ;;  %v13085_v34 = vpop.f32.mrf.mxu1  ;;  %v8173_v57 = vld [vmem:[%s14645_s1 + $0x9e0] sm:$0xff]  ;;  %v8172_v17 = vld [vmem:[%s14645_s1 + $0x9d8] sm:$0xff] }
 0x1fe   : > { %10492 = vmatprep.subr.mxu1 %v8174_v22  ;;  %10552 = vmatprep.subr.mxu0 %v8211_v42  ;;  %v9976_v62 = vpop.f32.mrf.mxu0 }
 0x1ff   : > { %10493 = vmatpush3.msra.mxu1 %v8174_v22  ;;  %10553 = vmatpush3.msra.mxu0 %v8211_v42  ;;  %v13093_v54 = vadd.f32 %v9976_v62, %v2789_v55  ;;  %v8209_v22 = vld [vmem:[%s14645_s1 + $0xa60] sm:$0xff] }
 0x200   : > { %10402 = vmatprep.mubr.f32.mxu1 %v13080_v16  ;;  %10554 = vmatprep.subr.mxu0 %v8210_v13  ;;  %v13096_v25 = vpop.f32.mrf.mxu0 }
 0x201   : > { %14816 = vst [vmem:[#allocation97_spill] sm:$0xff] %v13096_v25  ;;  %10403 = vmatmul.mubr.f32.gmra.mxu1 %v13088_v14  ;;  %10464 = vmatprep.mubr.f32.mxu0 %v12588_v12  ;;  %v9917_v42 = vpop.f32.mrf.mxu1  ;;  %v13112_v12 = vld [vmem:[%s11042_s30 + $0x6a] sm:$0xff]  ;;  %v8142_v25 = vld [vmem:[%s11042_s30 + $0x3c] sm:$0xff] }
 0x202   : > { %10494 = vmatprep.subr.mxu1 %v8173_v57  ;;  %10555 = vmatpush3.msra.mxu0 %v8210_v13  ;;  %v2791_v55 = vadd.f32 %v9917_v42, %v12859_v3  ;;  %v9979_v62 = vpop.f32.mrf.mxu0  ;;  %v8170_v42 = vld [vmem:[%s14645_s1 + $0x9c8] sm:$0xff] }
 0x203   : > { %10465 = vmatmul.mubr.f32.gmra.mxu0 %v12592_v5  ;;  %10495 = vmatpush3.msra.mxu1 %v8173_v57  ;;  %v13114_v7 = vpop.f32.mrf.mxu1  ;;  %v8171_v5 = vld [vmem:[%s14645_s1 + $0x9d0] sm:$0xff] }
 0x204   : > { %14817 = vst [vmem:[#allocation98_spill] sm:$0xff] %v13114_v7  ;;  %10496 = vmatprep.subr.mxu1 %v8172_v17  ;;  %10556 = vmatprep.subr.mxu0 %v8209_v22  ;;  %v13119_v13 = vadd.f32 %v9979_v62, %v2791_v55  ;;  %v13121_v20 = vpop.f32.mrf.mxu0  ;;  %v13130_v57 = vld [vmem:[%s11042_s30 + $0x72] sm:$0xff]  ;;  %v13141_v62 = vld [vmem:[%s11042_s30 + $0x7a] sm:$0xff] }
 0x205   : > { %14818 = vst [vmem:[#allocation99_spill] sm:$0xff] %v13121_v20  ;;  %10405 = vmatprep.mubr.f32.mxu1 %v13107_v27  ;;  %10497 = vmatpush3.msra.mxu1 %v8172_v17 }
 0x206   : > { %10557 = vmatpush3.msra.mxu0 %v8209_v22  ;;  %10406 = vmatmul.mubr.f32.gmra.mxu1 %v13112_v12  ;;  %v9920_v3 = vpop.f32.mrf.mxu1  ;;  %v8207_v22 = vld [vmem:[%s14645_s1 + $0xa50] sm:$0xff] }
 0x207   : > { %10467 = vmatprep.mubr.f32.mxu0 %v12610_v33  ;;  %10558 = vmatprep.subr.mxu0 %v8208_v48  ;;  %v2793_v55 = vadd.f32 %v9920_v3, %v12885_v39  ;;  %v9982_v17 = vpop.f32.mrf.mxu0  ;;  %v8169_v39 = vld [vmem:[%s14645_s1 + $0x9c0] sm:$0xff] }
 0x208   : > { %10468 = vmatmul.mubr.f32.gmra.mxu0 %v12621_v37  ;;  %10498 = vmatprep.subr.mxu1 %v8171_v5  ;;  %v13143_v33 = vpop.f32.mrf.mxu1  ;;  %v8206_v37 = vld [vmem:[%s14645_s1 + $0xa48] sm:$0xff] }
 0x209   : > { %14819 = vst [vmem:[#allocation100_spill] sm:$0xff] %v13143_v33  ;;  %10559 = vmatpush3.msra.mxu0 %v8208_v48  ;;  %10499 = vmatpush3.msra.mxu1 %v8171_v5  ;;  %v13145_v9 = vadd.f32 %v9982_v17, %v2793_v55  ;;  %v13147_v20 = vpop.f32.mrf.mxu0  ;;  %v13159_v5 = vld [vmem:[%s11042_s30 + $0x82] sm:$0xff] }
 0x20a   : > { %14820 = vst [vmem:[#allocation101_spill] sm:$0xff] %v13147_v20  ;;  %10408 = vmatprep.mubr.f32.mxu1 %v13130_v57  ;;  %10500 = vmatprep.subr.mxu1 %v8170_v42  ;;  %v13166_v20 = vld [vmem:[%s11042_s30 + $0x8a] sm:$0xff] }
 0x20b   : > { %10560 = vmatprep.subr.mxu0 %v8207_v22  ;;  %10409 = vmatmul.mubr.f32.gmra.mxu1 %v13141_v62  ;;  %v9923_v48 = vpop.f32.mrf.mxu1 }
 0x20c   : > { %10470 = vmatprep.mubr.f32.mxu0 %v12639_v10  ;;  %10501 = vmatpush3.msra.mxu1 %v8170_v42  ;;  %v2795_v3 = vadd.f32 %v9923_v48, %v12911_v11  ;;  %v8168_v10 = vld [vmem:[%s14645_s1 + $0x9b8] sm:$0xff]  ;;  %v8205_v11 = vld [vmem:[%s14645_s1 + $0xa40] sm:$0xff] }
 0x20d   : > { %10561 = vmatpush3.msra.mxu0 %v8207_v22  ;;  %10502 = vmatprep.subr.mxu1 %v8169_v39  ;;  %v9985_v55 = vpop.f32.mrf.mxu0  ;;  %v13162_v17 = vpop.f32.mrf.mxu1  ;;  %v13185_v48 = vld [vmem:[%s11042_s30 + $0x92] sm:$0xff] }
 0x20e   : > { %14821 = vst [vmem:[#allocation102_spill] sm:$0xff] %v13162_v17  ;;  %10471 = vmatmul.mubr.f32.gmra.mxu0 %v12646_v46  ;;  %10562 = vmatprep.subr.mxu0 %v8206_v37  ;;  %v13171_v42 = vadd.f32 %v9985_v55, %v2795_v3 }
 0x20f   : > { %10563 = vmatpush3.msra.mxu0 %v8206_v37  ;;  %10411 = vmatprep.mubr.f32.mxu1 %v13159_v5  ;;  %v13177_v22 = vpop.f32.mrf.mxu0  ;;  %v8204_v37 = vld [vmem:[%s14645_s1 + $0xa38] sm:$0xff] }
 0x210   : > { %14822 = vst [vmem:[#allocation103_spill] sm:$0xff] %v13177_v22  ;;  %10503 = vmatpush3.msra.mxu1 %v8169_v39  ;;  %10473 = vmatprep.mubr.f32.mxu0 %v12665_v41  ;;  %v9926_v46 = vpop.f32.mrf.mxu1  ;;  %v8167_v39 = vld [vmem:[%s14645_s1 + $0x9b0] sm:$0xff]  ;;  %v13195_v22 = vld [vmem:[%s11042_s30 + $0x9a] sm:$0xff] }
 0x211   : > { %10412 = vmatmul.mubr.f32.gmra.mxu1 %v13166_v20  ;;  %10504 = vmatprep.subr.mxu1 %v8168_v10  ;;  %v2797_v3 = vadd.f32 %v9926_v46, %v12937_v52 }
 0x212   : > { %10564 = vmatprep.subr.mxu0 %v8205_v11  ;;  %10474 = vmatmul.mubr.f32.gmra.mxu0 %v12675_v21  ;;  %v9988_v41 = vpop.f32.mrf.mxu0  ;;  %v13192_v55 = vpop.f32.mrf.mxu1  ;;  %v8166_v21 = vld [vmem:[%s14645_s1 + $0x9a8] sm:$0xff] }
 0x213   : > { %14823 = vst [vmem:[#allocation104_spill] sm:$0xff] %v13192_v55  ;;  %10505 = vmatpush3.msra.mxu1 %v8168_v10  ;;  %10565 = vmatpush3.msra.mxu0 %v8205_v11  ;;  %v13197_v17 = vadd.f32 %v9988_v41, %v2797_v3  ;;  %v8203_v10 = vld [vmem:[%s14645_s1 + $0xa30] sm:$0xff]  ;;  %v13213_v3 = vld [vmem:[%s11042_s30 + $0xa2] sm:$0xff] }
 0x214   : > { %10566 = vmatprep.subr.mxu0 %v8204_v37  ;;  %10414 = vmatprep.mubr.f32.mxu1 %v13185_v48  ;;  %v13200_v52 = vpop.f32.mrf.mxu0 }
 0x215   : > { %14824 = vst [vmem:[#allocation105_spill] sm:$0xff] %v13200_v52  ;;  %10506 = vmatprep.subr.mxu1 %v8167_v39  ;;  %10567 = vmatpush3.msra.mxu0 %v8204_v37  ;;  %v9929_v11 = vpop.f32.mrf.mxu1  ;;  %v8202_v37 = vld [vmem:[%s14645_s1 + $0xa28] sm:$0xff] }
 0x216   : > { %10415 = vmatmul.mubr.f32.gmra.mxu1 %v13195_v22  ;;  %10476 = vmatprep.mubr.f32.mxu0 %v12693_v60  ;;  %v2799_v46 = vadd.f32 %v9929_v11, %v12966_v4  ;;  %v13221_v52 = vld [vmem:[%s11042_s30 + $0xaa] sm:$0xff] }
 0x217   : > { %10507 = vmatpush3.msra.mxu1 %v8167_v39  ;;  %10477 = vmatmul.mubr.f32.gmra.mxu0 %v12701_v19  ;;  %v13218_v41 = vpop.f32.mrf.mxu1  ;;  %v8165_v19 = vld [vmem:[%s14645_s1 + $0x9a0] sm:$0xff]  ;;  %v8164_v39 = vld [vmem:[%s14645_s1 + $0x998] sm:$0xff] }
 0x218   : > { %14825 = vst [vmem:[#allocation106_spill] sm:$0xff] %v13218_v41  ;;  %10508 = vmatprep.subr.mxu1 %v8166_v21  ;;  %10568 = vmatprep.subr.mxu0 %v8203_v10  ;;  %v9991_v55 = vpop.f32.mrf.mxu0  ;;  %v8200_v41 = vld [vmem:[%s14645_s1 + $0xa18] sm:$0xff] }
 0x219   : > { %10509 = vmatpush3.msra.mxu1 %v8166_v21  ;;  %10569 = vmatpush3.msra.mxu0 %v8203_v10  ;;  %v13226_v60 = vadd.f32 %v9991_v55, %v2799_v46  ;;  %v8201_v21 = vld [vmem:[%s14645_s1 + $0xa20] sm:$0xff]  ;;  %v13240_v55 = vld [vmem:[%s11042_s30 + $0xb2] sm:$0xff] }
 0x21a   : > { %10417 = vmatprep.mubr.f32.mxu1 %v13213_v3  ;;  %10570 = vmatprep.subr.mxu0 %v8202_v37  ;;  %v13229_v4 = vpop.f32.mrf.mxu0  ;;  %v13245_v46 = vld [vmem:[%s11042_s30 + $0xba] sm:$0xff] }
 0x21b   : > { %14826 = vst [vmem:[#allocation107_spill] sm:$0xff] %v13229_v4  ;;  %10418 = vmatmul.mubr.f32.gmra.mxu1 %v13221_v52  ;;  %10479 = vmatprep.mubr.f32.mxu0 %v12720_v49  ;;  %v10026_v10 = vpop.f32.mrf.mxu1 }
 0x21c   : > { %10510 = vmatprep.subr.mxu1 %v8165_v19  ;;  %10571 = vmatpush3.msra.mxu0 %v8202_v37  ;;  %v3309_v11 = vadd.f32 %v10026_v10, %v12992_v29  ;;  %v13263_v10 = vld [vmem:[%s11042_s30 + $0xc2] sm:$0xff] }
 0x21d   : > { %10480 = vmatmul.mubr.f32.gmra.mxu0 %v12725_v31  ;;  %10511 = vmatpush3.msra.mxu1 %v8165_v19  ;;  %v10088_v49 = vpop.f32.mrf.mxu0  ;;  %v13247_v4 = vpop.f32.mrf.mxu1  ;;  %v8163_v31 = vld [vmem:[%s14645_s1 + $0x990] sm:$0xff] }
 0x21e   : > { %14827 = vst [vmem:[#allocation108_spill] sm:$0xff] %v13247_v4  ;;  %10512 = vmatprep.subr.mxu1 %v8164_v39  ;;  %10572 = vmatprep.subr.mxu0 %v8201_v21  ;;  %v13252_v37 = vadd.f32 %v10088_v49, %v3309_v11  ;;  %v8123_v4 = vld [vmem:[%s11042_s30 + $0xc3] sm:$0xff] }
 0x21f   : > { %10420 = vmatprep.mubr.f32.mxu1 %v13240_v55  ;;  %10513 = vmatpush3.msra.mxu1 %v8164_v39  ;;  %v13258_v29 = vpop.f32.mrf.mxu0  ;;  %v8162_v39 = vld [vmem:[%s14645_s1 + $0x988] sm:$0xff] }
 0x220   : > { %14828 = vst [vmem:[#allocation109_spill] sm:$0xff] %v13258_v29  ;;  %10573 = vmatpush3.msra.mxu0 %v8201_v21  ;;  %10421 = vmatmul.mubr.f32.gmra.mxu1 %v13245_v46  ;;  %v10029_v19 = vpop.f32.mrf.mxu1  ;;  %v8199_v21 = vld [vmem:[%s14645_s1 + $0xa10] sm:$0xff] }
 0x221   : > { %10482 = vmatprep.mubr.f32.mxu0 %v12743_v28  ;;  %10574 = vmatprep.subr.mxu0 %v8200_v41  ;;  %v3311_v11 = vadd.f32 %v10029_v19, %v13019_v51  ;;  %v10091_v49 = vpop.f32.mrf.mxu0  ;;  %v13274_v29 = vld [vmem:[%s11042_s30 + $0xca] sm:$0xff] }
 0x222   : > { %10483 = vmatmul.mubr.f32.gmra.mxu0 %v12754_v0  ;;  %10514 = vmatprep.subr.mxu1 %v8163_v31  ;;  %14829 = vst [vmem:[#allocation110_spill] sm:$0xff] %v13274_v29  ;;  %v13276_v28 = vpop.f32.mrf.mxu1  ;;  %v8161_v0 = vld [vmem:[%s14645_s1 + $0x980] sm:$0xff]  ;;  %v8124_v19 = vld [vmem:[%s11042_s30 + $0xcb] sm:$0xff] }
 0x223   : > { %14830 = vst [vmem:[#allocation111_spill] sm:$0xff] %v13276_v28  ;;  %10575 = vmatpush3.msra.mxu0 %v8200_v41  ;;  %10515 = vmatpush3.msra.mxu1 %v8163_v31  ;;  %v13279_v33 = vadd.f32 %v10091_v49, %v3311_v11  ;;  %v13281_v51 = vpop.f32.mrf.mxu0  ;;  %v8198_v41 = vld [vmem:[%s14645_s1 + $0xa08] sm:$0xff]  ;;  %v8141_v49 = vld [vmem:[%s11042_s30 + $0x34] sm:$0xff] }
 0x224   : > { %14831 = vst [vmem:[#allocation112_spill] sm:$0xff] %v13281_v51  ;;  %10423 = vmatprep.mubr.f32.mxu1 %v13263_v10  ;;  %10516 = vmatprep.subr.mxu1 %v8162_v39  ;;  %v8197_v51 = vld [vmem:[%s14645_s1 + $0xa00] sm:$0xff] }
 0x225   : > { %10576 = vmatprep.subr.mxu0 %v8199_v21  ;;  %10424 = vmatmul.mubr.f32.gmra.mxu1 %v13274_v29  ;;  %v10032_v31 = vpop.f32.mrf.mxu1 }
 0x226   : > { %10485 = vmatprep.mubr.f32.mxu0 %v8123_v4  ;;  %10517 = vmatpush3.msra.mxu1 %v8162_v39  ;;  %v3313_v11 = vadd.f32 %v10032_v31, %v13040_v61  ;;  %v8248_v61 = vld [vmem:[%s14645_s1 + $0xaf8] sm:$0xff] }
 0x227   : > { %10577 = vmatpush3.msra.mxu0 %v8199_v21  ;;  %10518 = vmatprep.subr.mxu1 %v8161_v0  ;;  %v10094_v28 = vpop.f32.mrf.mxu0  ;;  %v13297_v7 = vpop.f32.mrf.mxu1  ;;  %v8284_v21 = vld [vmem:[%s14645_s1 + $0xb78] sm:$0xff] }
 0x228   : > { %14832 = vst [vmem:[#allocation113_spill] sm:$0xff] %v13297_v7  ;;  %10486 = vmatmul.mubr.f32.gmra.mxu0 %v8124_v19  ;;  %10578 = vmatprep.subr.mxu0 %v8198_v41  ;;  %v13300_v29 = vadd.f32 %v10094_v28, %v3313_v11  ;;  %v13311_v28 = vld [vmem:[%s11042_s30 + $0x44] sm:$0xff]  ;;  %v8247_v19 = vld [vmem:[%s14645_s1 + $0xaf0] sm:$0xff] }
 0x229   : > { %10579 = vmatpush3.msra.mxu0 %v8198_v41  ;;  %10519 = vmatpush3.msra.mxu1 %v8161_v0  ;;  %v13305_v4 = vpop.f32.mrf.mxu0 }
 0x22a   : > { %14833 = vst [vmem:[#allocation114_spill] sm:$0xff] %v13305_v4  ;;  %10520 = vmatprep.mubr.f32.mxu1 %v8141_v49  ;;  %10580 = vmatprep.subr.mxu0 %v8197_v51  ;;  %v10035_v39 = vpop.f32.mrf.mxu1 }
 0x22b   : > { %10521 = vmatmul.mubr.f32.vlgmr.msra.gmra.mxu1 %v8142_v25  ;;  %10581 = vmatpush3.msra.mxu0 %v8197_v51  ;;  %v3315_v0 = vadd.f32 %v10035_v39, %v13064_v8  ;;  %v13322_v25 = vld [vmem:[%s11042_s30 + $0x4c] sm:$0xff] }
 0x22c   : > { %10582 = vmatprep.mubr.f32.mxu0 %v12791_v18  ;;  %10612 = vmatprep.subr.mxu1 %v8248_v61  ;;  %v10097_v41 = vpop.f32.mrf.mxu0  ;;  %v13318_v31 = vpop.f32.mrf.mxu1  ;;  %v8246_v8 = vld [vmem:[%s14645_s1 + $0xae8] sm:$0xff] }
 0x22d   : > { %14834 = vst [vmem:[#allocation115_spill] sm:$0xff] %v13318_v31  ;;  %10583 = vmatmul.mubr.f32.vlgmr.msra.gmra.mxu0 %v12802_v56  ;;  %10613 = vmatpush3.msra.mxu1 %v8248_v61  ;;  %v13324_v51 = vadd.f32 %v10097_v41, %v3315_v0  ;;  %v8283_v56 = vld [vmem:[%s14645_s1 + $0xb70] sm:$0xff]  ;;  %v8282_v39 = vld [vmem:[%s14645_s1 + $0xb68] sm:$0xff]  ;;  %v13348_v0 = vld [vmem:[%s11042_s30 + $0x5c] sm:$0xff] }
 0x22e   : > { %10674 = vmatprep.subr.mxu0 %v8284_v21  ;;  %10523 = vmatprep.mubr.f32.mxu1 %v13311_v28  ;;  %v13327_v18 = vpop.f32.mrf.mxu0  ;;  %v13340_v61 = vld [vmem:[%s11042_s30 + $0x54] sm:$0xff] }
 0x22f   : > { %14835 = vst [vmem:[#allocation116_spill] sm:$0xff] %v13327_v18  ;;  %10614 = vmatprep.subr.mxu1 %v8247_v19  ;;  %10675 = vmatpush3.msra.mxu0 %v8284_v21  ;;  %v10038_v11 = vpop.f32.mrf.mxu1  ;;  %v8280_v31 = vld [vmem:[%s14645_s1 + $0xb58] sm:$0xff] }
 0x230   : > { %10524 = vmatmul.mubr.f32.gmra.mxu1 %v13322_v25  ;;  %10585 = vmatprep.mubr.f32.mxu0 %v12820_v23  ;;  %v3317_v49 = vadd.f32 %v10038_v11, %v13093_v54  ;;  %v8245_v23 = vld [vmem:[%s14645_s1 + $0xae0] sm:$0xff] }
 0x231   : > { %10615 = vmatpush3.msra.mxu1 %v8247_v19  ;;  %10586 = vmatmul.mubr.f32.gmra.mxu0 %v12828_v32  ;;  %v13345_v21 = vpop.f32.mrf.mxu1  ;;  %v8244_v19 = vld [vmem:[%s14645_s1 + $0xad8] sm:$0xff]  ;;  %v13367_v11 = vld [vmem:[%s11042_s30 + $0x64] sm:$0xff] }
 0x232   : > { %10616 = vmatprep.subr.mxu1 %v8246_v8  ;;  %10676 = vmatprep.subr.mxu0 %v8283_v56  ;;  %v10100_v41 = vpop.f32.mrf.mxu0 }
 0x233   : > { %10617 = vmatpush3.msra.mxu1 %v8246_v8  ;;  %10677 = vmatpush3.msra.mxu0 %v8283_v56  ;;  %v13353_v32 = vadd.f32 %v10100_v41, %v3317_v49  ;;  %v8281_v8 = vld [vmem:[%s14645_s1 + $0xb60] sm:$0xff] }
 0x234   : > { %10526 = vmatprep.mubr.f32.mxu1 %v13340_v61  ;;  %10678 = vmatprep.subr.mxu0 %v8282_v39  ;;  %v13356_v54 = vpop.f32.mrf.mxu0 }
 0x235   : > { %10527 = vmatmul.mubr.f32.gmra.mxu1 %v13348_v0  ;;  %10588 = vmatprep.mubr.f32.mxu0 %v12847_v53  ;;  %v10041_v56 = vpop.f32.mrf.mxu1  ;;  %v13372_v53 = vld [vmem:[%s11042_s30 + $0x6c] sm:$0xff] }
 0x236   : > { %10618 = vmatprep.subr.mxu1 %v8245_v23  ;;  %10679 = vmatpush3.msra.mxu0 %v8282_v39  ;;  %v3319_v49 = vadd.f32 %v10041_v56, %v13119_v13  ;;  %v10103_v41 = vpop.f32.mrf.mxu0  ;;  %14836 = vst [vmem:[#allocation117_spill] sm:$0xff] %v13372_v53  ;;  %v8242_v56 = vld [vmem:[%s14645_s1 + $0xac8] sm:$0xff] }
 0x237   : > { %10589 = vmatmul.mubr.f32.gmra.mxu0 %v12852_v35  ;;  %10619 = vmatpush3.msra.mxu1 %v8245_v23  ;;  %v13374_v18 = vpop.f32.mrf.mxu1  ;;  %v8243_v35 = vld [vmem:[%s14645_s1 + $0xad0] sm:$0xff] }
 0x238   : > { %10620 = vmatprep.subr.mxu1 %v8244_v19  ;;  %10680 = vmatprep.subr.mxu0 %v8281_v8  ;;  %v13379_v39 = vadd.f32 %v10103_v41, %v3319_v49  ;;  %v13381_v4 = vpop.f32.mrf.mxu0  ;;  %v13390_v23 = vld [vmem:[%s11042_s30 + $0x74] sm:$0xff]  ;;  %v13401_v41 = vld [vmem:[%s11042_s30 + $0x7c] sm:$0xff] }
 0x239   : > { %10529 = vmatprep.mubr.f32.mxu1 %v13367_v11  ;;  %10621 = vmatpush3.msra.mxu1 %v8244_v19  ;;  %14837 = vst [vmem:[#allocation118_spill] sm:$0xff] %v13401_v41 }
 0x23a   : > { %10681 = vmatpush3.msra.mxu0 %v8281_v8  ;;  %10530 = vmatmul.mubr.f32.gmra.mxu1 %v13372_v53  ;;  %v10044_v13 = vpop.f32.mrf.mxu1  ;;  %v8279_v8 = vld [vmem:[%s14645_s1 + $0xb50] sm:$0xff] }
 0x23b   : > { %10591 = vmatprep.mubr.f32.mxu0 %v12870_v58  ;;  %10682 = vmatprep.subr.mxu0 %v8280_v31  ;;  %v3321_v49 = vadd.f32 %v10044_v13, %v13145_v9  ;;  %v10106_v19 = vpop.f32.mrf.mxu0  ;;  %v8241_v9 = vld [vmem:[%s14645_s1 + $0xac0] sm:$0xff] }
 0x23c   : > { %10592 = vmatmul.mubr.f32.gmra.mxu0 %v12881_v1  ;;  %10622 = vmatprep.subr.mxu1 %v8243_v35  ;;  %v13403_v58 = vpop.f32.mrf.mxu1  ;;  %v8278_v1 = vld [vmem:[%s14645_s1 + $0xb48] sm:$0xff] }
 0x23d   : > { %10683 = vmatpush3.msra.mxu0 %v8280_v31  ;;  %10623 = vmatpush3.msra.mxu1 %v8243_v35  ;;  %v13405_v7 = vadd.f32 %v10106_v19, %v3321_v49  ;;  %v13407_v53 = vpop.f32.mrf.mxu0  ;;  %v13419_v35 = vld [vmem:[%s11042_s30 + $0x84] sm:$0xff] }
 0x23e   : > { %10532 = vmatprep.mubr.f32.mxu1 %v13390_v23  ;;  %10624 = vmatprep.subr.mxu1 %v8242_v56  ;;  %14838 = vst [vmem:[#allocation119_spill] sm:$0xff] %v13419_v35 }
 0x23f   : > { %10684 = vmatprep.subr.mxu0 %v8279_v8  ;;  %10533 = vmatmul.mubr.f32.gmra.mxu1 %v13401_v41  ;;  %v10047_v31 = vpop.f32.mrf.mxu1  ;;  %v13426_v41 = vld [vmem:[%s11042_s30 + $0x8c] sm:$0xff] }
 0x240   : > { %10594 = vmatprep.mubr.f32.mxu0 %v12899_v24  ;;  %10625 = vmatpush3.msra.mxu1 %v8242_v56  ;;  %v3323_v13 = vadd.f32 %v10047_v31, %v13171_v42  ;;  %14839 = vst [vmem:[#allocation120_spill] sm:$0xff] %v13426_v41  ;;  %v8240_v24 = vld [vmem:[%s14645_s1 + $0xab8] sm:$0xff]  ;;  %v8277_v42 = vld [vmem:[%s14645_s1 + $0xb40] sm:$0xff] }
 0x241   : > { %10685 = vmatpush3.msra.mxu0 %v8279_v8  ;;  %10626 = vmatprep.subr.mxu1 %v8241_v9  ;;  %v10109_v49 = vpop.f32.mrf.mxu0  ;;  %v13422_v19 = vpop.f32.mrf.mxu1  ;;  %v13445_v31 = vld [vmem:[%s11042_s30 + $0x94] sm:$0xff] }
 0x242   : > { %10595 = vmatmul.mubr.f32.gmra.mxu0 %v12906_v40  ;;  %10686 = vmatprep.subr.mxu0 %v8278_v1  ;;  %v13431_v56 = vadd.f32 %v10109_v49, %v3323_v13 }
 0x243   : > { %10687 = vmatpush3.msra.mxu0 %v8278_v1  ;;  %10535 = vmatprep.mubr.f32.mxu1 %v13419_v35  ;;  %v13437_v8 = vpop.f32.mrf.mxu0  ;;  %v8276_v1 = vld [vmem:[%s14645_s1 + $0xb38] sm:$0xff] }
 0x244   : > { %10627 = vmatpush3.msra.mxu1 %v8241_v9  ;;  %10597 = vmatprep.mubr.f32.mxu0 %v12925_v43  ;;  %v10050_v40 = vpop.f32.mrf.mxu1  ;;  %v8239_v9 = vld [vmem:[%s14645_s1 + $0xab0] sm:$0xff] }
 0x245   : > { %10536 = vmatmul.mubr.f32.gmra.mxu1 %v13426_v41  ;;  %10628 = vmatprep.subr.mxu1 %v8240_v24  ;;  %v3325_v13 = vadd.f32 %v10050_v40, %v13197_v17  ;;  %v13455_v41 = vld [vmem:[%s11042_s30 + $0x9c] sm:$0xff] }
 0x246   : > { %10688 = vmatprep.subr.mxu0 %v8277_v42  ;;  %10598 = vmatmul.mubr.f32.gmra.mxu0 %v12935_v59  ;;  %v10112_v43 = vpop.f32.mrf.mxu0  ;;  %v13452_v49 = vpop.f32.mrf.mxu1  ;;  %14840 = vst [vmem:[#allocation121_spill] sm:$0xff] %v13455_v41  ;;  %v8238_v59 = vld [vmem:[%s14645_s1 + $0xaa8] sm:$0xff] }
 0x247   : > { %10629 = vmatpush3.msra.mxu1 %v8240_v24  ;;  %10689 = vmatpush3.msra.mxu0 %v8277_v42  ;;  %v13457_v35 = vadd.f32 %v10112_v43, %v3325_v13  ;;  %v8275_v24 = vld [vmem:[%s14645_s1 + $0xb30] sm:$0xff]  ;;  %v13473_v13 = vld [vmem:[%s11042_s30 + $0xa4] sm:$0xff] }
 0x248   : > { %10690 = vmatprep.subr.mxu0 %v8276_v1  ;;  %10538 = vmatprep.mubr.f32.mxu1 %v13445_v31  ;;  %v13460_v17 = vpop.f32.mrf.mxu0 }
 0x249   : > { %14841 = vst [vmem:[#allocation122_spill] sm:$0xff] %v13460_v17  ;;  %10630 = vmatprep.subr.mxu1 %v8239_v9  ;;  %10691 = vmatpush3.msra.mxu0 %v8276_v1  ;;  %v10053_v42 = vpop.f32.mrf.mxu1  ;;  %v8274_v1 = vld [vmem:[%s14645_s1 + $0xb28] sm:$0xff] }
 0x24a   : > { %10539 = vmatmul.mubr.f32.gmra.mxu1 %v13455_v41  ;;  %10600 = vmatprep.mubr.f32.mxu0 %v12953_v15  ;;  %v3327_v40 = vadd.f32 %v10053_v42, %v13226_v60  ;;  %v13481_v17 = vld [vmem:[%s11042_s30 + $0xac] sm:$0xff] }
 0x24b   : > { %10631 = vmatpush3.msra.mxu1 %v8239_v9  ;;  %10601 = vmatmul.mubr.f32.gmra.mxu0 %v12961_v26  ;;  %v13478_v43 = vpop.f32.mrf.mxu1  ;;  %14842 = vst [vmem:[#allocation123_spill] sm:$0xff] %v13481_v17  ;;  %v8237_v26 = vld [vmem:[%s14645_s1 + $0xaa0] sm:$0xff]  ;;  %v8236_v9 = vld [vmem:[%s14645_s1 + $0xa98] sm:$0xff] }
 0x24c   : > { %10632 = vmatprep.subr.mxu1 %v8238_v59  ;;  %10692 = vmatprep.subr.mxu0 %v8275_v24  ;;  %v10115_v41 = vpop.f32.mrf.mxu0 }
 0x24d   : > { %10633 = vmatpush3.msra.mxu1 %v8238_v59  ;;  %10693 = vmatpush3.msra.mxu0 %v8275_v24  ;;  %v13486_v15 = vadd.f32 %v10115_v41, %v3327_v40  ;;  %v8273_v59 = vld [vmem:[%s14645_s1 + $0xb20] sm:$0xff]  ;;  %v13500_v41 = vld [vmem:[%s11042_s30 + $0xb4] sm:$0xff] }
 0x24e   : > { %10541 = vmatprep.mubr.f32.mxu1 %v13473_v13  ;;  %10694 = vmatprep.subr.mxu0 %v8274_v1  ;;  %v13489_v60 = vpop.f32.mrf.mxu0  ;;  %14844 = vst [vmem:[#allocation125_spill] sm:$0xff] %v13500_v41  ;;  %v13505_v40 = vld [vmem:[%s11042_s30 + $0xbc] sm:$0xff] }
 0x24f   : > { %14843 = vst [vmem:[#allocation124_spill] sm:$0xff] %v13489_v60  ;;  %10542 = vmatmul.mubr.f32.gmra.mxu1 %v13481_v17  ;;  %10603 = vmatprep.mubr.f32.mxu0 %v12980_v50  ;;  %v10150_v24 = vpop.f32.mrf.mxu1  ;;  %14845 = vst [vmem:[#allocation126_spill] sm:$0xff] %v13505_v40  ;;  %v8272_v60 = vld [vmem:[%s14645_s1 + $0xb18] sm:$0xff] }
 0x250   : > { %10634 = vmatprep.subr.mxu1 %v8237_v26  ;;  %10695 = vmatpush3.msra.mxu0 %v8274_v1  ;;  %v3837_v42 = vadd.f32 %v10150_v24, %v13252_v37  ;;  %v13523_v24 = vld [vmem:[%s11042_s30 + $0xc4] sm:$0xff] }
 0x251   : > { %10604 = vmatmul.mubr.f32.gmra.mxu0 %v12985_v30  ;;  %10635 = vmatpush3.msra.mxu1 %v8237_v26  ;;  %v10212_v50 = vpop.f32.mrf.mxu0  ;;  %v13507_v17 = vpop.f32.mrf.mxu1  ;;  %v8235_v30 = vld [vmem:[%s14645_s1 + $0xa90] sm:$0xff]  ;;  %14848 = vst [vmem:[#allocation129_spill] sm:$0xff] %v13523_v24 }
 0x252   : > { %14846 = vst [vmem:[#allocation127_spill] sm:$0xff] %v13507_v17  ;;  %10636 = vmatprep.subr.mxu1 %v8236_v9  ;;  %10696 = vmatprep.subr.mxu0 %v8273_v59  ;;  %v13512_v1 = vadd.f32 %v10212_v50, %v3837_v42 }
 0x253   : > { %10544 = vmatprep.mubr.f32.mxu1 %v13500_v41  ;;  %10637 = vmatpush3.msra.mxu1 %v8236_v9  ;;  %v13518_v37 = vpop.f32.mrf.mxu0  ;;  %v8234_v9 = vld [vmem:[%s14645_s1 + $0xa88] sm:$0xff] }
 0x254   : > { %14847 = vst [vmem:[#allocation128_spill] sm:$0xff] %v13518_v37  ;;  %10697 = vmatpush3.msra.mxu0 %v8273_v59  ;;  %10545 = vmatmul.mubr.f32.gmra.mxu1 %v13505_v40  ;;  %v10153_v26 = vpop.f32.mrf.mxu1  ;;  %v8271_v59 = vld [vmem:[%s14645_s1 + $0xb10] sm:$0xff] }
 0x255   : > { %10606 = vmatprep.mubr.f32.mxu0 %v13003_v6  ;;  %10698 = vmatprep.subr.mxu0 %v8272_v60  ;;  %v3839_v42 = vadd.f32 %v10153_v26, %v13279_v33  ;;  %v10215_v50 = vpop.f32.mrf.mxu0  ;;  %v13534_v37 = vld [vmem:[%s11042_s30 + $0xcc] sm:$0xff]  ;;  %v8196_v26 = vld [vmem:[%s11042_s30 + $0xd8] sm:$0xff] }
 0x256   : > { %10607 = vmatmul.mubr.f32.gmra.mxu0 %v13014_v2  ;;  %10638 = vmatprep.subr.mxu1 %v8235_v30  ;;  %14849 = vst [vmem:[#allocation130_spill] sm:$0xff] %v13534_v37  ;;  %v13536_v6 = vpop.f32.mrf.mxu1  ;;  %v8195_v40 = vld [vmem:[%s11042_s30 + $0xd0] sm:$0xff]  ;;  %v8233_v2 = vld [vmem:[%s14645_s1 + $0xa80] sm:$0xff] }
 0x257   : > { %14850 = vst [vmem:[#allocation131_spill] sm:$0xff] %v13536_v6  ;;  %10699 = vmatpush3.msra.mxu0 %v8272_v60  ;;  %10639 = vmatpush3.msra.mxu1 %v8235_v30  ;;  %v13539_v41 = vadd.f32 %v10215_v50, %v3839_v42  ;;  %v13541_v33 = vpop.f32.mrf.mxu0  ;;  %v8270_v60 = vld [vmem:[%s14645_s1 + $0xb08] sm:$0xff] }
 0x258   : > { %14851 = vst [vmem:[#allocation132_spill] sm:$0xff] %v13541_v33  ;;  %10547 = vmatprep.mubr.f32.mxu1 %v13523_v24  ;;  %10640 = vmatprep.subr.mxu1 %v8234_v9  ;;  %v8213_v50 = vld [vmem:[%s11042_s30 + $0x41] sm:$0xff]  ;;  %v8214_v24 = vld [vmem:[%s11042_s30 + $0x49] sm:$0xff] }
 0x259   : > { %10700 = vmatprep.subr.mxu0 %v8271_v59  ;;  %10548 = vmatmul.mubr.f32.gmra.mxu1 %v13534_v37  ;;  %v10156_v30 = vpop.f32.mrf.mxu1  ;;  %v8269_v33 = vld [vmem:[%s14645_s1 + $0xb00] sm:$0xff] }
 0x25a   : > { %10609 = vmatprep.mubr.f32.mxu0 %v8195_v40  ;;  %10641 = vmatpush3.msra.mxu1 %v8234_v9  ;;  %v3841_v42 = vadd.f32 %v10156_v30, %v13300_v29  ;;  %v8320_v29 = vld [vmem:[%s14645_s1 + $0xbf8] sm:$0xff] }
 0x25b   : > { %10701 = vmatpush3.msra.mxu0 %v8271_v59  ;;  %10642 = vmatprep.subr.mxu1 %v8233_v2  ;;  %v10218_v6 = vpop.f32.mrf.mxu0  ;;  %v13557_v37 = vpop.f32.mrf.mxu1  ;;  %v8356_v59 = vld [vmem:[%s14645_s1 + $0xc78] sm:$0xff] }
 0x25c   : > { %14852 = vst [vmem:[#allocation133_spill] sm:$0xff] %v13557_v37  ;;  %10610 = vmatmul.mubr.f32.gmra.mxu0 %v8196_v26  ;;  %10702 = vmatprep.subr.mxu0 %v8270_v60  ;;  %v13560_v17 = vadd.f32 %v10218_v6, %v3841_v42  ;;  %v8215_v6 = vld [vmem:[%s11042_s30 + $0x51] sm:$0xff] }
 0x25d   : > { %10703 = vmatpush3.msra.mxu0 %v8270_v60  ;;  %10643 = vmatpush3.msra.mxu1 %v8233_v2  ;;  %v13565_v40 = vpop.f32.mrf.mxu0  ;;  %v8319_v2 = vld [vmem:[%s14645_s1 + $0xbf0] sm:$0xff] }
 0x25e   : > { %14853 = vst [vmem:[#allocation134_spill] sm:$0xff] %v13565_v40  ;;  %10644 = vmatprep.mubr.f32.mxu1 %v8213_v50  ;;  %10704 = vmatprep.subr.mxu0 %v8269_v33  ;;  %v10159_v9 = vpop.f32.mrf.mxu1 }
 0x25f   : > { %10645 = vmatmul.mubr.f32.vlgmr.msra.gmra.mxu1 %v8214_v24  ;;  %10705 = vmatpush3.msra.mxu0 %v8269_v33  ;;  %v3843_v26 = vadd.f32 %v10159_v9, %v13324_v51  ;;  %v8216_v24 = vld [vmem:[%s11042_s30 + $0x59] sm:$0xff]  ;;  %v8354_v9 = vld [vmem:[%s14645_s1 + $0xc68] sm:$0xff] }
 0x260   : > { %10706 = vmatprep.mubr.f32.mxu0 %v13051_v63  ;;  %10736 = vmatprep.subr.mxu1 %v8320_v29  ;;  %v10221_v60 = vpop.f32.mrf.mxu0  ;;  %v13576_v30 = vpop.f32.mrf.mxu1  ;;  %v8318_v63 = vld [vmem:[%s14645_s1 + $0xbe8] sm:$0xff] }
 0x261   : > { %14854 = vst [vmem:[#allocation135_spill] sm:$0xff] %v13576_v30  ;;  %10707 = vmatmul.mubr.f32.vlgmr.msra.gmra.mxu0 %v13062_v47  ;;  %10737 = vmatpush3.msra.mxu1 %v8320_v29  ;;  %v13580_v33 = vadd.f32 %v10221_v60, %v3843_v26  ;;  %v8355_v47 = vld [vmem:[%s14645_s1 + $0xc70] sm:$0xff]  ;;  %v8217_v29 = vld [vmem:[%s11042_s30 + $0x61] sm:$0xff] }
 0x262   : > { %10798 = vmatprep.subr.mxu0 %v8356_v59  ;;  %10647 = vmatprep.mubr.f32.mxu1 %v8215_v6  ;;  %v13582_v51 = vpop.f32.mrf.mxu0  ;;  %v8218_v6 = vld [vmem:[%s11042_s30 + $0x69] sm:$0xff]  ;;  %v8353_v60 = vld [vmem:[%s14645_s1 + $0xc60] sm:$0xff] }
 0x263   : > { %14855 = vst [vmem:[#allocation136_spill] sm:$0xff] %v13582_v51  ;;  %10738 = vmatprep.subr.mxu1 %v8319_v2  ;;  %10799 = vmatpush3.msra.mxu0 %v8356_v59  ;;  %v10162_v42 = vpop.f32.mrf.mxu1 }
 0x264   : > { %10648 = vmatmul.mubr.f32.gmra.mxu1 %v8216_v24  ;;  %10709 = vmatprep.mubr.f32.mxu0 %v13080_v16  ;;  %v3845_v50 = vadd.f32 %v10162_v42, %v13353_v32  ;;  %v8317_v16 = vld [vmem:[%s14645_s1 + $0xbe0] sm:$0xff] }
 0x265   : > { %10739 = vmatpush3.msra.mxu1 %v8319_v2  ;;  %10710 = vmatmul.mubr.f32.gmra.mxu0 %v13088_v14  ;;  %v13597_v59 = vpop.f32.mrf.mxu1  ;;  %v8316_v2 = vld [vmem:[%s14645_s1 + $0xbd8] sm:$0xff] }
 0x266   : > { %10740 = vmatprep.subr.mxu1 %v8318_v63  ;;  %10800 = vmatprep.subr.mxu0 %v8355_v47  ;;  %v10224_v26 = vpop.f32.mrf.mxu0 }
 0x267   : > { %10741 = vmatpush3.msra.mxu1 %v8318_v63  ;;  %10801 = vmatpush3.msra.mxu0 %v8355_v47  ;;  %v13603_v32 = vadd.f32 %v10224_v26, %v3845_v50  ;;  %v8219_v63 = vld [vmem:[%s11042_s30 + $0x71] sm:$0xff]  ;;  %v8221_v26 = vld [vmem:[%s11042_s30 + $0x81] sm:$0xff] }
 0x268   : > { %10650 = vmatprep.mubr.f32.mxu1 %v8217_v29  ;;  %10802 = vmatprep.subr.mxu0 %v8354_v9  ;;  %v13605_v14 = vpop.f32.mrf.mxu0  ;;  %v8352_v29 = vld [vmem:[%s14645_s1 + $0xc58] sm:$0xff] }
 0x269   : > { %10651 = vmatmul.mubr.f32.gmra.mxu1 %v8218_v6  ;;  %10712 = vmatprep.mubr.f32.mxu0 %v13107_v27  ;;  %v10165_v24 = vpop.f32.mrf.mxu1  ;;  %v8220_v27 = vld [vmem:[%s11042_s30 + $0x79] sm:$0xff] }
 0x26a   : > { %10742 = vmatprep.subr.mxu1 %v8317_v16  ;;  %10803 = vmatpush3.msra.mxu0 %v8354_v9  ;;  %v3847_v47 = vadd.f32 %v10165_v24, %v13379_v39  ;;  %v10227_v42 = vpop.f32.mrf.mxu0 }
 0x26b   : > { %10713 = vmatmul.mubr.f32.gmra.mxu0 %v13112_v12  ;;  %10743 = vmatpush3.msra.mxu1 %v8317_v16  ;;  %v13618_v50 = vpop.f32.mrf.mxu1  ;;  %v8315_v12 = vld [vmem:[%s14645_s1 + $0xbd0] sm:$0xff]  ;;  %v8314_v16 = vld [vmem:[%s14645_s1 + $0xbc8] sm:$0xff] }
 0x26c   : > { %10744 = vmatprep.subr.mxu1 %v8316_v2  ;;  %10804 = vmatprep.subr.mxu0 %v8353_v60  ;;  %v13623_v6 = vadd.f32 %v10227_v42, %v3847_v47  ;;  %v13625_v9 = vpop.f32.mrf.mxu0 }
 0x26d   : > { %10653 = vmatprep.mubr.f32.mxu1 %v8219_v63  ;;  %10745 = vmatpush3.msra.mxu1 %v8316_v2  ;;  %v676_v2 = vadd.f32 %v12054_v45, %v11890_v36  ;;  %v8313_v36 = vld [vmem:[%s14645_s1 + $0xbc0] sm:$0xff]  ;;  %v8350_v45 = vld [vmem:[%s14645_s1 + $0xc48] sm:$0xff] }
 0x26e   : > { %10805 = vmatpush3.msra.mxu0 %v8353_v60  ;;  %10654 = vmatmul.mubr.f32.gmra.mxu1 %v8220_v27  ;;  %v10168_v39 = vpop.f32.mrf.mxu1  ;;  %v8351_v60 = vld [vmem:[%s14645_s1 + $0xc50] sm:$0xff] }
 0x26f   : > { %10715 = vmatprep.mubr.f32.mxu0 %v13130_v57  ;;  %10806 = vmatprep.subr.mxu0 %v8352_v29  ;;  %v3849_v24 = vadd.f32 %v10168_v39, %v13405_v7  ;;  %v10230_v63 = vpop.f32.mrf.mxu0  ;;  %v8222_v57 = vld [vmem:[%s11042_s30 + $0x89] sm:$0xff]  ;;  %v940_v27 = vadd.f32 %v12064_v44, %v676_v2  ;;  %v8224_v44 = vld [vmem:[%s11042_s30 + $0x99] sm:$0xff] }
 0x270   : > { %10716 = vmatmul.mubr.f32.gmra.mxu0 %v13141_v62  ;;  %10746 = vmatprep.subr.mxu1 %v8315_v12  ;;  %v13643_v47 = vpop.f32.mrf.mxu1  ;;  %v8348_v2 = vld [vmem:[%s14645_s1 + $0xc38] sm:$0xff] }
 0x271   : > { %10807 = vmatpush3.msra.mxu0 %v8352_v29  ;;  %10747 = vmatpush3.msra.mxu1 %v8315_v12  ;;  %v13645_v42 = vadd.f32 %v10230_v63, %v3849_v24  ;;  %v13647_v7 = vpop.f32.mrf.mxu0  ;;  %v8223_v29 = vld [vmem:[%s11042_s30 + $0x91] sm:$0xff] }
 0x272   : > { %10656 = vmatprep.mubr.f32.mxu1 %v8221_v26  ;;  %10748 = vmatprep.subr.mxu1 %v8314_v16  ;;  %v14856_v24 = vld [vmem:[#allocation10_spill] sm:$0xff] }
 0x273   : > { %10808 = vmatprep.subr.mxu0 %v8351_v60  ;;  %10657 = vmatmul.mubr.f32.gmra.mxu1 %v8222_v57  ;;  %v10171_v62 = vpop.f32.mrf.mxu1  ;;  %v678_v63 = vadd.f32 %v14856_v24, %v11907_v38  ;;  %v14857_v57 = vld [vmem:[#allocation37_spill] sm:$0xff]  ;;  %v14860_v24 = vld [vmem:[#allocation18_spill] sm:$0xff] }
 0x274   : > { %10718 = vmatprep.mubr.f32.mxu0 %v13159_v5  ;;  %10749 = vmatpush3.msra.mxu1 %v8314_v16  ;;  %v3851_v12 = vadd.f32 %v10171_v62, %v13431_v56  ;;  %v1204_v51 = vadd.f32 %v14857_v57, %v940_v27  ;;  %v8312_v5 = vld [vmem:[%s14645_s1 + $0xbb8] sm:$0xff]  ;;  %v8349_v16 = vld [vmem:[%s14645_s1 + $0xc40] sm:$0xff]  ;;  %v14861_v57 = vld [vmem:[#allocation12_spill] sm:$0xff] }
 0x275   : > { %10809 = vmatpush3.msra.mxu0 %v8351_v60  ;;  %10750 = vmatprep.subr.mxu1 %v8313_v36  ;;  %v10233_v39 = vpop.f32.mrf.mxu0  ;;  %v13659_v26 = vpop.f32.mrf.mxu1  ;;  %v8225_v60 = vld [vmem:[%s11042_s30 + $0xa1] sm:$0xff] }
 0x276   : > { %10719 = vmatmul.mubr.f32.gmra.mxu0 %v13166_v20  ;;  %10810 = vmatprep.subr.mxu0 %v8350_v45  ;;  %v13669_v56 = vadd.f32 %v10233_v39, %v3851_v12  ;;  %v14858_v62 = vld [vmem:[#allocation11_spill] sm:$0xff] }
 0x277   : > { %10811 = vmatpush3.msra.mxu0 %v8350_v45  ;;  %10659 = vmatprep.mubr.f32.mxu1 %v8223_v29  ;;  %v13674_v38 = vpop.f32.mrf.mxu0  ;;  %v942_v27 = vadd.f32 %v14858_v62, %v678_v63  ;;  %v14859_v29 = vld [vmem:[#allocation38_spill] sm:$0xff]  ;;  %v14863_v63 = vld [vmem:[#allocation39_spill] sm:$0xff]  ;;  %v14864_v62 = vld [vmem:[#allocation57_spill] sm:$0xff] }
 0x278   : > { %10751 = vmatpush3.msra.mxu1 %v8313_v36  ;;  %10721 = vmatprep.mubr.f32.mxu0 %v13185_v48  ;;  %v10174_v20 = vpop.f32.mrf.mxu1  ;;  %v1468_v12 = vadd.f32 %v14859_v29, %v1204_v51  ;;  %v8311_v48 = vld [vmem:[%s14645_s1 + $0xbb0] sm:$0xff] }
 0x279   : > { %10660 = vmatmul.mubr.f32.gmra.mxu1 %v8224_v44  ;;  %10752 = vmatprep.subr.mxu1 %v8312_v5  ;;  %v3853_v45 = vadd.f32 %v10174_v20, %v13457_v35  ;;  %v680_v44 = vadd.f32 %v14861_v57, %v14860_v24  ;;  %v8226_v35 = vld [vmem:[%s11042_s30 + $0xa9] sm:$0xff]  ;;  %v1206_v51 = vadd.f32 %v14863_v63, %v942_v27  ;;  %v8227_v57 = vld [vmem:[%s11042_s30 + $0xb1] sm:$0xff] }
 0x27a   : > { %10812 = vmatprep.subr.mxu0 %v8349_v16  ;;  %10722 = vmatmul.mubr.f32.gmra.mxu0 %v13195_v22  ;;  %v10236_v36 = vpop.f32.mrf.mxu0  ;;  %v13688_v39 = vpop.f32.mrf.mxu1  ;;  %v1732_v29 = vadd.f32 %v14864_v62, %v1468_v12  ;;  %v8310_v24 = vld [vmem:[%s14645_s1 + $0xba8] sm:$0xff]  ;;  %v14866_v12 = vld [vmem:[#allocation5_spill] sm:$0xff] }
 0x27b   : > { %10753 = vmatpush3.msra.mxu1 %v8312_v5  ;;  %10813 = vmatpush3.msra.mxu0 %v8349_v16  ;;  %v13693_v20 = vadd.f32 %v10236_v36, %v3853_v45  ;;  %v8347_v5 = vld [vmem:[%s14645_s1 + $0xc30] sm:$0xff]  ;;  %v14867_v36 = vld [vmem:[#allocation14_spill] sm:$0xff]  ;;  %v8346_v63 = vld [vmem:[%s14645_s1 + $0xc28] sm:$0xff] }
 0x27c   : > { %10814 = vmatprep.subr.mxu0 %v8348_v2  ;;  %10662 = vmatprep.mubr.f32.mxu1 %v8225_v60  ;;  %v13697_v22 = vpop.f32.mrf.mxu0  ;;  %v14865_v60 = vld [vmem:[#allocation13_spill] sm:$0xff] }
 0x27d   : > { %14862 = vst [vmem:[#allocation10_spill] sm:$0xff] %v13693_v20  ;;  %10754 = vmatprep.subr.mxu1 %v8311_v48  ;;  %10815 = vmatpush3.msra.mxu0 %v8348_v2  ;;  %v10177_v16 = vpop.f32.mrf.mxu1  ;;  %v944_v27 = vadd.f32 %v14865_v60, %v680_v44  ;;  %v682_v2 = vadd.f32 %v14867_v36, %v14866_v12  ;;  %v14873_v12 = vld [vmem:[#allocation59_spill] sm:$0xff] }
 0x27e   : > { %10663 = vmatmul.mubr.f32.gmra.mxu1 %v8226_v35  ;;  %10724 = vmatprep.mubr.f32.mxu0 %v13213_v3  ;;  %v3855_v45 = vadd.f32 %v10177_v16, %v13486_v15  ;;  %v14869_v35 = vld [vmem:[#allocation40_spill] sm:$0xff]  ;;  %v14870_v3 = vld [vmem:[#allocation58_spill] sm:$0xff]  ;;  %v14871_v16 = vld [vmem:[#allocation41_spill] sm:$0xff] }
 0x27f   : > { %10755 = vmatpush3.msra.mxu1 %v8311_v48  ;;  %10725 = vmatmul.mubr.f32.gmra.mxu0 %v13221_v52  ;;  %v13715_v62 = vpop.f32.mrf.mxu1  ;;  %v1470_v30 = vadd.f32 %v14869_v35, %v1206_v51  ;;  %v1996_v40 = vadd.f32 %v14870_v3, %v1732_v29  ;;  %v8228_v15 = vld [vmem:[%s11042_s30 + $0xb9] sm:$0xff]  ;;  %v1208_v60 = vadd.f32 %v14871_v16, %v944_v27  ;;  %v14874_v51 = vld [vmem:[#allocation77_spill] sm:$0xff] }
 0x280   : > { %14868 = vst [vmem:[#allocation37_spill] sm:$0xff] %v13715_v62  ;;  %10756 = vmatprep.subr.mxu1 %v8310_v24  ;;  %10816 = vmatprep.subr.mxu0 %v8347_v5  ;;  %v10239_v44 = vpop.f32.mrf.mxu0  ;;  %v8309_v52 = vld [vmem:[%s14645_s1 + $0xba0] sm:$0xff] }
 0x281   : > { %10757 = vmatpush3.msra.mxu1 %v8310_v24  ;;  %10817 = vmatpush3.msra.mxu0 %v8347_v5  ;;  %v13724_v48 = vadd.f32 %v10239_v44, %v3855_v45  ;;  %v1734_v36 = vadd.f32 %v14873_v12, %v1470_v30  ;;  %v2260_v35 = vadd.f32 %v14874_v51, %v1996_v40  ;;  %v14876_v3 = vld [vmem:[#allocation15_spill] sm:$0xff]  ;;  %v8308_v24 = vld [vmem:[%s14645_s1 + $0xb98] sm:$0xff]  ;;  %v14878_v44 = vld [vmem:[#allocation16_spill] sm:$0xff] }
 0x282   : > { %10665 = vmatprep.mubr.f32.mxu1 %v8227_v57  ;;  %10818 = vmatprep.subr.mxu0 %v8346_v63  ;;  %v13728_v29 = vpop.f32.mrf.mxu0  ;;  %v946_v27 = vadd.f32 %v14876_v3, %v682_v2  ;;  %v8345_v30 = vld [vmem:[%s14645_s1 + $0xc20] sm:$0xff]  ;;  %v8230_v51 = vld [vmem:[%s11042_s30 + $0xc9] sm:$0xff] }
 0x283   : > { %14872 = vst [vmem:[#allocation11_spill] sm:$0xff] %v13724_v48  ;;  %14875 = vst [vmem:[#allocation38_spill] sm:$0xff] %v13728_v29  ;;  %10666 = vmatmul.mubr.f32.gmra.mxu1 %v8228_v15  ;;  %10727 = vmatprep.mubr.f32.mxu0 %v13240_v55  ;;  %v10274_v5 = vpop.f32.mrf.mxu1  ;;  %v8229_v40 = vld [vmem:[%s11042_s30 + $0xc1] sm:$0xff]  ;;  %v14879_v15 = vld [vmem:[#allocation42_spill] sm:$0xff] }
 0x284   : > { %10758 = vmatprep.subr.mxu1 %v8309_v52  ;;  %10819 = vmatpush3.msra.mxu0 %v8346_v63  ;;  %v4365_v45 = vadd.f32 %v10274_v5, %v13512_v1  ;;  %v14877_v57 = vld [vmem:[#allocation3_spill] sm:$0xff]  ;;  %v1472_v16 = vadd.f32 %v14879_v15, %v1208_v60  ;;  %v14882_v48 = vld [vmem:[#allocation60_spill] sm:$0xff]  ;;  %v14883_v63 = vld [vmem:[#allocation78_spill] sm:$0xff] }
 0x285   : > { %v684_v2 = vadd.f32 %v14878_v44, %v14877_v57  ;;  %v14880_v55 = vld [vmem:[#allocation43_spill] sm:$0xff]  ;;  %10728 = vmatmul.mubr.f32.gmra.mxu0 %v13245_v46  ;;  %10759 = vmatpush3.msra.mxu1 %v8309_v52  ;;  %v10336_v3 = vpop.f32.mrf.mxu0  ;;  %v13746_v37 = vpop.f32.mrf.mxu1  ;;  %v1998_v29 = vadd.f32 %v14882_v48, %v1734_v36  ;;  %v2524_v62 = vadd.f32 %v14883_v63, %v2260_v35  ;;  %v8344_v1 = vld [vmem:[%s14645_s1 + $0xc18] sm:$0xff]  ;;  %v8307_v52 = vld [vmem:[%s14645_s1 + $0xb90] sm:$0xff] }
 0x286   : > { %v1210_v12 = vadd.f32 %v14880_v55, %v946_v27  ;;  %14881 = vst [vmem:[#allocation18_spill] sm:$0xff] %v13746_v37  ;;  %10760 = vmatprep.subr.mxu1 %v8308_v24  ;;  %10820 = vmatprep.subr.mxu0 %v8345_v30  ;;  %v13753_v60 = vadd.f32 %v10336_v3, %v4365_v45  ;;  %v14885_v27 = vld [vmem:[#allocation61_spill] sm:$0xff]  ;;  %v14887_v36 = vld [vmem:[#allocation23_spill] sm:$0xff] }
 0x287   : > { %v1736_v46 = vadd.f32 %v14885_v27, %v1472_v16  ;;  %10668 = vmatprep.mubr.f32.mxu1 %v8229_v40  ;;  %10761 = vmatpush3.msra.mxu1 %v8308_v24  ;;  %v13759_v48 = vpop.f32.mrf.mxu0  ;;  %v14888_v35 = vld [vmem:[#allocation19_spill] sm:$0xff]  ;;  %v2788_v15 = vadd.f32 %v13085_v34, %v2524_v62  ;;  %v14890_v16 = vld [vmem:[#allocation17_spill] sm:$0xff]  ;;  %v14891_v24 = vld [vmem:[#allocation4_spill] sm:$0xff] }
 0x288   : > { %14884 = vst [vmem:[#allocation12_spill] sm:$0xff] %v13753_v60  ;;  %14886 = vst [vmem:[#allocation39_spill] sm:$0xff] %v13759_v48  ;;  %v668_v5 = vadd.f32 %v14888_v35, %v14887_v36  ;;  %v14889_v57 = vld [vmem:[#allocation79_spill] sm:$0xff]  ;;  %10821 = vmatpush3.msra.mxu0 %v8345_v30  ;;  %10669 = vmatmul.mubr.f32.gmra.mxu1 %v8230_v51  ;;  %v10277_v45 = vpop.f32.mrf.mxu1  ;;  %v948_v40 = vadd.f32 %v14890_v16, %v684_v2  ;;  %v8231_v63 = vld [vmem:[%s11042_s30 + $0xd1] sm:$0xff] }
 0x289   : > { %v2262_v44 = vadd.f32 %v14889_v57, %v1998_v29  ;;  %v14892_v55 = vld [vmem:[#allocation27_spill] sm:$0xff]  ;;  %10730 = vmatprep.mubr.f32.mxu0 %v13263_v10  ;;  %10822 = vmatprep.subr.mxu0 %v8344_v1  ;;  %v8306_v29 = vld [vmem:[%s14645_s1 + $0xb88] sm:$0xff]  ;;  %v4367_v34 = vadd.f32 %v10277_v45, %v13539_v41  ;;  %v10339_v62 = vpop.f32.mrf.mxu0  ;;  %v14894_v51 = vld [vmem:[#allocation6_spill] sm:$0xff] }
 0x28a   : > { %v686_v3 = vadd.f32 %v14892_v55, %v14891_v24  ;;  %v14893_v30 = vld [vmem:[#allocation24_spill] sm:$0xff]  ;;  %v14896_v35 = vld [vmem:[#allocation110_spill] sm:$0xff]  ;;  %10762 = vmatprep.subr.mxu1 %v8307_v52  ;;  %v8343_v10 = vld [vmem:[%s14645_s1 + $0xc10] sm:$0xff]  ;;  %v13782_v16 = vpop.f32.mrf.mxu1  ;;  %10823 = vmatpush3.msra.mxu0 %v8344_v1 }
 0x28b   : > { %v670_v27 = vadd.f32 %v14894_v51, %v14893_v30  ;;  %v14895_v36 = vld [vmem:[#allocation44_spill] sm:$0xff]  ;;  %10731 = vmatmul.mubr.f32.gmra.mxu0 %v14896_v35  ;;  %v8232_v57 = vld [vmem:[%s11042_s30 + $0xd9] sm:$0xff]  ;;  %v14897_v24 = vld [vmem:[#allocation45_spill] sm:$0xff]  ;;  %10763 = vmatpush3.msra.mxu1 %v8307_v52  ;;  %v13787_v30 = vadd.f32 %v10339_v62, %v4367_v34 }
 0x28c   : > { %v1474_v2 = vadd.f32 %v14895_v36, %v1210_v12  ;;  %v1212_v55 = vadd.f32 %v14897_v24, %v948_v40  ;;  %v14898_v60 = vld [vmem:[#allocation62_spill] sm:$0xff]  ;;  %v13789_v12 = vpop.f32.mrf.mxu0  ;;  %v14900_v51 = vld [vmem:[#allocation63_spill] sm:$0xff]  ;;  %v14901_v35 = vld [vmem:[#allocation80_spill] sm:$0xff]  ;;  %10671 = vmatprep.mubr.f32.mxu1 %v8231_v63  ;;  %10764 = vmatprep.subr.mxu1 %v8306_v29 }
 0x28d   : > { %v2000_v41 = vadd.f32 %v14898_v60, %v1736_v46  ;;  %v8267_v45 = vld [vmem:[%s11042_s30 + $0xd2] sm:$0xff]  ;;  %14899 = vst [vmem:[#allocation57_spill] sm:$0xff] %v13787_v30  ;;  %v2526_v48 = vadd.f32 %v14901_v35, %v2262_v44  ;;  %v8305_v60 = vld [vmem:[%s14645_s1 + $0xb80] sm:$0xff]  ;;  %v14903_v1 = vld [vmem:[#allocation20_spill] sm:$0xff]  ;;  %10824 = vmatprep.subr.mxu0 %v8343_v10  ;;  %10672 = vmatmul.mubr.f32.gmra.mxu1 %v8232_v57  ;;  %v10280_v44 = vpop.f32.mrf.mxu1 }
 0x28e   : > { %v1738_v36 = vadd.f32 %v14900_v51, %v1474_v2  ;;  %v14902_v37 = vld [vmem:[#allocation97_spill] sm:$0xff]  ;;  %v932_v46 = vadd.f32 %v14903_v1, %v668_v5  ;;  %v14904_v52 = vld [vmem:[#allocation28_spill] sm:$0xff]  ;;  %v8268_v2 = vld [vmem:[%s11042_s30 + $0xda] sm:$0xff]  ;;  %10733 = vmatprep.mubr.f32.mxu0 %v8267_v45  ;;  %10765 = vmatpush3.msra.mxu1 %v8306_v29  ;;  %v4369_v5 = vadd.f32 %v10280_v44, %v13560_v17 }
 0x28f   : > { %v3052_v20 = vadd.f32 %v14902_v37, %v2788_v15  ;;  %v950_v40 = vadd.f32 %v14904_v52, %v686_v3  ;;  %v14905_v34 = vld [vmem:[#allocation81_spill] sm:$0xff]  ;;  %v8342_v37 = vld [vmem:[%s14645_s1 + $0xc08] sm:$0xff]  ;;  %v14906_v15 = vld [vmem:[#allocation98_spill] sm:$0xff]  ;;  %10825 = vmatpush3.msra.mxu0 %v8343_v10  ;;  %10766 = vmatprep.subr.mxu1 %v8305_v60 }
 0x290   : > { %v2264_v62 = vadd.f32 %v14905_v34, %v2000_v41  ;;  %v2790_v63 = vadd.f32 %v14906_v15, %v2526_v48  ;;  %v14907_v3 = vld [vmem:[#allocation7_spill] sm:$0xff]  ;;  %v14908_v51 = vld [vmem:[#allocation29_spill] sm:$0xff]  ;;  %v14909_v57 = vld [vmem:[#allocation46_spill] sm:$0xff]  ;;  %10734 = vmatmul.mubr.f32.gmra.mxu0 %v8268_v2  ;;  %10826 = vmatprep.subr.mxu0 %v8342_v37 }
 0x291   : > { %v3316_v24 = vadd.f32 %v13345_v21, %v3052_v20  ;;  %v934_v41 = vadd.f32 %v14907_v3, %v670_v27  ;;  %v1196_v35 = vadd.f32 %v14908_v51, %v932_v46  ;;  %v1476_v1 = vadd.f32 %v14909_v57, %v1212_v55  ;;  %v8285_v52 = vld [vmem:[%s11042_s30 + $0x43] sm:$0xff]  ;;  %v10342_v21 = vpop.f32.mrf.mxu0  ;;  %v13814_v20 = vpop.f32.mrf.mxu1  ;;  %v8286_v27 = vld [vmem:[%s11042_s30 + $0x4b] sm:$0xff]  ;;  %v14916_v51 = vld [vmem:[#allocation82_spill] sm:$0xff]  ;;  %10827 = vmatpush3.msra.mxu0 %v8342_v37 }
 0x292   : > { %v8341_v48 = vld [vmem:[%s14645_s1 + $0xc00] sm:$0xff]  ;;  %14910 = vst [vmem:[#allocation13_spill] sm:$0xff] %v13814_v20  ;;  %v14912_v17 = vld [vmem:[#allocation64_spill] sm:$0xff]  ;;  %v13819_v46 = vadd.f32 %v10342_v21, %v4369_v5  ;;  %v14913_v10 = vld [vmem:[#allocation25_spill] sm:$0xff]  ;;  %v2528_v57 = vadd.f32 %v14916_v51, %v2264_v62  ;;  %10767 = vmatpush3.msra.mxu1 %v8305_v60  ;;  %10768 = vmatprep.mubr.f32.mxu1 %v8285_v52 }
 0x293   : > { %v14911_v29 = vld [vmem:[#allocation47_spill] sm:$0xff]  ;;  %v2002_v34 = vadd.f32 %v14912_v17, %v1738_v36  ;;  %v14914_v55 = vld [vmem:[#allocation21_spill] sm:$0xff]  ;;  %v13826_v20 = vpop.f32.mrf.mxu0  ;;  %v3580_v5 = vadd.f32 %v13356_v54, %v3316_v24  ;;  %10828 = vmatprep.subr.mxu0 %v8341_v48  ;;  %v10283_v21 = vpop.f32.mrf.mxu1  ;;  %v14919_v17 = vld [vmem:[#allocation30_spill] sm:$0xff]  ;;  %10769 = vmatmul.mubr.f32.vlgmr.msra.gmra.mxu1 %v8286_v27 }
 0x294   : > { %v1214_v45 = vadd.f32 %v14911_v29, %v950_v40  ;;  %v672_v44 = vadd.f32 %v14914_v55, %v14913_v10  ;;  %v14915_v15 = vld [vmem:[#allocation65_spill] sm:$0xff]  ;;  %v14917_v40 = vld [vmem:[#allocation83_spill] sm:$0xff]  ;;  %v1460_v10 = vadd.f32 %v14919_v17, %v1196_v35  ;;  %10829 = vmatpush3.msra.mxu0 %v8341_v48  ;;  %v4371_v60 = vadd.f32 %v10283_v21, %v13580_v33  ;;  %v14921_v37 = vld [vmem:[#allocation48_spill] sm:$0xff] }
 0x295   : > { %v1740_v3 = vadd.f32 %v14915_v15, %v1476_v1  ;;  %v8287_v30 = vld [vmem:[%s11042_s30 + $0x53] sm:$0xff]  ;;  %v2266_v36 = vadd.f32 %v14917_v40, %v2002_v34  ;;  %v14918_v2 = vld [vmem:[#allocation99_spill] sm:$0xff]  ;;  %v14920_v1 = vld [vmem:[#allocation100_spill] sm:$0xff]  ;;  %10830 = vmatprep.mubr.f32.mxu0 %v13311_v28  ;;  %v10345_v24 = vpop.f32.mrf.mxu0  ;;  %v13839_v52 = vpop.f32.mrf.mxu1 }
 0x296   : > { %v3054_v29 = vadd.f32 %v14918_v2, %v2790_v63  ;;  %v2792_v62 = vadd.f32 %v14920_v1, %v2528_v57  ;;  %v1478_v55 = vadd.f32 %v14921_v37, %v1214_v45  ;;  %10771 = vmatprep.mubr.f32.mxu1 %v8287_v30  ;;  %v8288_v54 = vld [vmem:[%s11042_s30 + $0x5b] sm:$0xff]  ;;  %v3844_v63 = vadd.f32 %v13597_v59, %v3580_v5  ;;  %v8289_v33 = vld [vmem:[%s11042_s30 + $0x63] sm:$0xff]  ;;  %v14930_v5 = vld [vmem:[#allocation85_spill] sm:$0xff] }
 0x297   : > { %v14922_v35 = vld [vmem:[#allocation31_spill] sm:$0xff]  ;;  %v14923_v51 = vld [vmem:[#allocation66_spill] sm:$0xff]  ;;  %10831 = vmatmul.mubr.f32.vlgmr.msra.gmra.mxu0 %v13322_v25  ;;  %v13845_v48 = vadd.f32 %v10345_v24, %v4371_v60  ;;  %v14926_v57 = vld [vmem:[#allocation84_spill] sm:$0xff]  ;;  %v13851_v59 = vpop.f32.mrf.mxu0  ;;  %10772 = vmatmul.mubr.f32.gmra.mxu1 %v8288_v54 }
 0x298   : > { %v3318_v34 = vadd.f32 %v13374_v18, %v3054_v29  ;;  %v1198_v15 = vadd.f32 %v14922_v35, %v934_v41  ;;  %v2004_v27 = vadd.f32 %v14923_v51, %v1740_v3  ;;  %v14924_v18 = vld [vmem:[#allocation49_spill] sm:$0xff]  ;;  %v14925_v28 = vld [vmem:[#allocation67_spill] sm:$0xff]  ;;  %v2530_v40 = vadd.f32 %v14926_v57, %v2266_v36  ;;  %10833 = vmatprep.mubr.f32.mxu0 %v13340_v61  ;;  %v14927_v2 = vld [vmem:[#allocation22_spill] sm:$0xff] }
 0x299   : > { %v1724_v45 = vadd.f32 %v14924_v18, %v1460_v10  ;;  %v1742_v30 = vadd.f32 %v14925_v28, %v1478_v55  ;;  %v936_v41 = vadd.f32 %v14927_v2, %v672_v44  ;;  %v14928_v29 = vld [vmem:[#allocation26_spill] sm:$0xff]  ;;  %v14929_v3 = vld [vmem:[#allocation8_spill] sm:$0xff]  ;;  %v14931_v17 = vld [vmem:[#allocation101_spill] sm:$0xff]  ;;  %v10286_v10 = vpop.f32.mrf.mxu1  ;;  %10774 = vmatprep.mubr.f32.mxu1 %v8289_v33  ;;  %v4108_v55 = vadd.f32 %v13605_v14, %v3844_v63 }
 0x29a   : > { %v674_v25 = vadd.f32 %v14929_v3, %v14928_v29  ;;  %v2268_v21 = vadd.f32 %v14930_v5, %v2004_v27  ;;  %v3056_v1 = vadd.f32 %v14931_v17, %v2792_v62  ;;  %v14932_v60 = vld [vmem:[#allocation102_spill] sm:$0xff]  ;;  %v3582_v36 = vadd.f32 %v13381_v4, %v3318_v34  ;;  %v8290_v61 = vld [vmem:[%s11042_s30 + $0x6b] sm:$0xff]  ;;  %v14941_v3 = vld [vmem:[#allocation87_spill] sm:$0xff] }
 0x29b   : > { %v2794_v37 = vadd.f32 %v14932_v60, %v2530_v40  ;;  %v4373_v44 = vadd.f32 %v10286_v10, %v13603_v32  ;;  %v14933_v24 = vld [vmem:[#allocation32_spill] sm:$0xff]  ;;  %v14934_v51 = vld [vmem:[#allocation33_spill] sm:$0xff]  ;;  %10834 = vmatmul.mubr.f32.gmra.mxu0 %v13348_v0  ;;  %v4285_v54 = vpop.f32.mrf.mxu1  ;;  %v14935_v28 = vld [vmem:[#allocation50_spill] sm:$0xff]  ;;  %v10348_v32 = vpop.f32.mrf.mxu0  ;;  %10775 = vmatmul.mubr.f32.gmra.mxu1 %v8290_v61 }
 0x29c   : > { %v1462_v35 = vadd.f32 %v14933_v24, %v1198_v15  ;;  %v1200_v18 = vadd.f32 %v14934_v51, %v936_v41  ;;  %v3320_v27 = vadd.f32 %v13403_v58, %v3056_v1  ;;  %v8291_v62 = vld [vmem:[%s11042_s30 + $0x73] sm:$0xff]  ;;  %v1988_v57 = vadd.f32 %v14935_v28, %v1724_v45  ;;  %v14936_v4 = vld [vmem:[#allocation68_spill] sm:$0xff]  ;;  %10836 = vmatprep.mubr.f32.mxu0 %v13367_v11  ;;  %v14937_v15 = vld [vmem:[#allocation51_spill] sm:$0xff] }
 0x29d   : > { %v2006_v34 = vadd.f32 %v14936_v4, %v1742_v30  ;;  %v3846_v14 = vadd.f32 %v13618_v50, %v3582_v36  ;;  %v4372_v63 = vadd.f32 %v4285_v54, %v4108_v55  ;;  %v14938_v40 = vld [vmem:[#allocation86_spill] sm:$0xff]  ;;  %v13874_v0 = vadd.f32 %v10348_v32, %v4373_v44  ;;  %v14939_v2 = vld [vmem:[#allocation9_spill] sm:$0xff]  ;;  %v14942_v5 = vld [vmem:[#allocation103_spill] sm:$0xff]  ;;  %10777 = vmatprep.mubr.f32.mxu1 %v8291_v62  ;;  %v4549_v17 = vpop.f32.mrf.mxu0 }
 0x29e   : > { %v1726_v33 = vadd.f32 %v14937_v15, %v1462_v35  ;;  %v2532_v58 = vadd.f32 %v14938_v40, %v2268_v21  ;;  %v938_v41 = vadd.f32 %v14939_v2, %v674_v25  ;;  %v14940_v29 = vld [vmem:[#allocation69_spill] sm:$0xff]  ;;  %v3058_v11 = vadd.f32 %v14942_v5, %v2794_v37  ;;  %v8292_v50 = vld [vmem:[%s11042_s30 + $0x7b] sm:$0xff]  ;;  %v14944_v60 = vld [vmem:[#allocation104_spill] sm:$0xff]  ;;  %v10289_v25 = vpop.f32.mrf.mxu1 }
 0x29f   : > { %v2252_v45 = vadd.f32 %v14940_v29, %v1988_v57  ;;  %v2270_v30 = vadd.f32 %v14941_v3, %v2006_v34  ;;  %v14943_v1 = vld [vmem:[#allocation34_spill] sm:$0xff]  ;;  %v3584_v21 = vadd.f32 %v13407_v53, %v3320_v27  ;;  %v14945_v61 = vld [vmem:[#allocation117_spill] sm:$0xff]  ;;  %v8293_v55 = vld [vmem:[%s11042_s30 + $0x83] sm:$0xff]  ;;  %v13886_v44 = vadd.f32 %v4549_v17, %v4372_v63  ;;  %v10351_v51 = vpop.f32.mrf.mxu0  ;;  %10778 = vmatmul.mubr.f32.gmra.mxu1 %v8292_v50 }
 0x2a0   : > { %v1464_v10 = vadd.f32 %v14943_v1, %v1200_v18  ;;  %v2796_v36 = vadd.f32 %v14944_v60, %v2532_v58  ;;  %10837 = vmatmul.mubr.f32.gmra.mxu0 %v14945_v61  ;;  %v3322_v24 = vadd.f32 %v13422_v19, %v3058_v11  ;;  %v4110_v37 = vadd.f32 %v13625_v9, %v3846_v14  ;;  %v14946_v18 = vld [vmem:[#allocation35_spill] sm:$0xff]  ;;  %v14947_v54 = vld [vmem:[#allocation52_spill] sm:$0xff]  ;;  %v14948_v27 = vld [vmem:[#allocation53_spill] sm:$0xff]  ;;  %v4295_v4 = vpop.f32.mrf.mxu1 }
 0x2a1   : > { %10839 = vmatprep.mubr.f32.mxu0 %v13390_v23  ;;  %v4375_v35 = vadd.f32 %v10289_v25, %v13623_v6  ;;  %v1202_v62 = vadd.f32 %v14946_v18, %v938_v41  ;;  %v1990_v53 = vadd.f32 %v14947_v54, %v1726_v33  ;;  %v3848_v57 = vadd.f32 %v13643_v47, %v3584_v21  ;;  %v14949_v34 = vld [vmem:[#allocation70_spill] sm:$0xff]  ;;  %v14950_v32 = vld [vmem:[#allocation88_spill] sm:$0xff]  ;;  %v4559_v63 = vpop.f32.mrf.mxu0  ;;  %v14951_v15 = vld [vmem:[#allocation71_spill] sm:$0xff] }
 0x2a2   : > { %v1728_v28 = vadd.f32 %v14948_v27, %v1464_v10  ;;  %v2516_v19 = vadd.f32 %v14949_v34, %v2252_v45  ;;  %v2534_v23 = vadd.f32 %v14950_v32, %v2270_v30  ;;  %10780 = vmatprep.mubr.f32.mxu1 %v8293_v55  ;;  %v8294_v9 = vld [vmem:[%s11042_s30 + $0x8b] sm:$0xff]  ;;  %v4374_v6 = vadd.f32 %v4295_v4, %v4110_v37  ;;  %v14953_v2 = vld [vmem:[#allocation118_spill] sm:$0xff]  ;;  %v14956_v5 = vld [vmem:[#allocation119_spill] sm:$0xff]  ;;  %v10292_v50 = vpop.f32.mrf.mxu1 }
 0x2a3   : > { %v13899_v14 = vadd.f32 %v10351_v51, %v4375_v35  ;;  %v2254_v40 = vadd.f32 %v14951_v15, %v1990_v53  ;;  %v14952_v58 = vld [vmem:[#allocation105_spill] sm:$0xff]  ;;  %v14955_v3 = vld [vmem:[#allocation106_spill] sm:$0xff]  ;;  %v3586_v30 = vadd.f32 %v13437_v8, %v3322_v24  ;;  %v14957_v17 = vld [vmem:[#allocation36_spill] sm:$0xff]  ;;  %10781 = vmatmul.mubr.f32.gmra.mxu1 %v8294_v9  ;;  %v4112_v60 = vadd.f32 %v13647_v7, %v3848_v57  ;;  %v10354_v21 = vpop.f32.mrf.mxu0 }
 0x2a4   : > { %v3060_v33 = vadd.f32 %v14952_v58, %v2796_v36  ;;  %10840 = vmatmul.mubr.f32.gmra.mxu0 %v14953_v2  ;;  %v8295_v41 = vld [vmem:[%s11042_s30 + $0x93] sm:$0xff]  ;;  %v2798_v45 = vadd.f32 %v14955_v3, %v2534_v23  ;;  %v13909_v11 = vadd.f32 %v4559_v63, %v4374_v6  ;;  %v1466_v1 = vadd.f32 %v14957_v17, %v1202_v62  ;;  %v8296_v8 = vld [vmem:[%s11042_s30 + $0x9b] sm:$0xff]  ;;  %v4305_v24 = vpop.f32.mrf.mxu1  ;;  %v14960_v51 = vld [vmem:[#allocation72_spill] sm:$0xff] }
 0x2a5   : > { %v14954_v47 = vld [vmem:[#allocation89_spill] sm:$0xff]  ;;  %10842 = vmatprep.mubr.f32.mxu0 %v14956_v5  ;;  %v4377_v36 = vadd.f32 %v10292_v50, %v13645_v42  ;;  %v14958_v61 = vld [vmem:[#allocation54_spill] sm:$0xff]  ;;  %10783 = vmatprep.mubr.f32.mxu1 %v8295_v41  ;;  %v3850_v25 = vadd.f32 %v13659_v26, %v3586_v30  ;;  %v14959_v37 = vld [vmem:[#allocation55_spill] sm:$0xff]  ;;  %v2518_v18 = vadd.f32 %v14960_v51, %v2254_v40  ;;  %v4569_v42 = vpop.f32.mrf.mxu0 }
 0x2a6   : > { %v2780_v29 = vadd.f32 %v14954_v47, %v2516_v19  ;;  %v3324_v10 = vadd.f32 %v13452_v49, %v3060_v33  ;;  %v1992_v55 = vadd.f32 %v14958_v61, %v1728_v28  ;;  %v1730_v35 = vadd.f32 %v14959_v37, %v1466_v1  ;;  %v14961_v62 = vld [vmem:[#allocation120_spill] sm:$0xff]  ;;  %v14962_v53 = vld [vmem:[#allocation73_spill] sm:$0xff]  ;;  %v14963_v28 = vld [vmem:[#allocation90_spill] sm:$0xff] }
 0x2a7   : > { %v8297_v49 = vld [vmem:[%s11042_s30 + $0xa3] sm:$0xff]  ;;  %v13922_v54 = vadd.f32 %v10354_v21, %v4377_v36  ;;  %v4376_v7 = vadd.f32 %v4305_v24, %v4112_v60  ;;  %v14966_v32 = vld [vmem:[#allocation122_spill] sm:$0xff]  ;;  %10784 = vmatmul.mubr.f32.gmra.mxu1 %v8296_v8  ;;  %v10295_v6 = vpop.f32.mrf.mxu1  ;;  %v4114_v58 = vadd.f32 %v13674_v38, %v3850_v25  ;;  %v8298_v33 = vld [vmem:[%s11042_s30 + $0xab] sm:$0xff] }
 0x2a8   : > { %10843 = vmatmul.mubr.f32.gmra.mxu0 %v14961_v62  ;;  %v2256_v27 = vadd.f32 %v14962_v53, %v1992_v55  ;;  %v3044_v57 = vadd.f32 %v14963_v28, %v2780_v29  ;;  %v14964_v4 = vld [vmem:[#allocation107_spill] sm:$0xff]  ;;  %v3588_v23 = vadd.f32 %v14966_v32, %v3324_v10  ;;  %v14967_v63 = vld [vmem:[#allocation108_spill] sm:$0xff]  ;;  %10786 = vmatprep.mubr.f32.mxu1 %v8297_v49  ;;  %v14969_v47 = vld [vmem:[#allocation121_spill] sm:$0xff] }
 0x2a9   : > { %v3062_v34 = vadd.f32 %v14964_v4, %v2798_v45  ;;  %10845 = vmatprep.mubr.f32.mxu0 %v13445_v31  ;;  %v14965_v26 = vld [vmem:[#allocation91_spill] sm:$0xff]  ;;  %v13930_v9 = vadd.f32 %v4569_v42, %v4376_v7  ;;  %v4379_v2 = vadd.f32 %v10295_v6, %v13669_v56  ;;  %v14968_v41 = vld [vmem:[#allocation56_spill] sm:$0xff]  ;;  %v8299_v3 = vld [vmem:[%s11042_s30 + $0xb3] sm:$0xff]  ;;  %v10357_v45 = vpop.f32.mrf.mxu0  ;;  %v4315_v30 = vpop.f32.mrf.mxu1 }
 0x2aa   : > { %v2782_v19 = vadd.f32 %v14965_v26, %v2518_v18  ;;  %v3308_v15 = vadd.f32 %v14967_v63, %v3044_v57  ;;  %v1994_v31 = vadd.f32 %v14968_v41, %v1730_v35  ;;  %v3852_v29 = vadd.f32 %v13688_v39, %v3588_v23  ;;  %v14970_v5 = vld [vmem:[#allocation74_spill] sm:$0xff]  ;;  %v14971_v17 = vld [vmem:[#allocation75_spill] sm:$0xff]  ;;  %v14972_v1 = vld [vmem:[#allocation92_spill] sm:$0xff] }
 0x2ab   : > { %v3326_v40 = vadd.f32 %v13478_v43, %v3062_v34  ;;  %v2520_v50 = vadd.f32 %v14970_v5, %v2256_v27  ;;  %v13943_v43 = vadd.f32 %v10357_v45, %v4379_v2  ;;  %v4378_v38 = vadd.f32 %v4315_v30, %v4114_v58  ;;  %10787 = vmatmul.mubr.f32.gmra.mxu1 %v8298_v33  ;;  %v4579_v60 = vpop.f32.mrf.mxu0  ;;  %v14973_v36 = vld [vmem:[#allocation93_spill] sm:$0xff]  ;;  %v14975_v55 = vld [vmem:[#allocation124_spill] sm:$0xff]  ;;  %v8300_v25 = vld [vmem:[%s11042_s30 + $0xbb] sm:$0xff] }
 0x2ac   : > { %10846 = vmatmul.mubr.f32.gmra.mxu0 %v14969_v47  ;;  %v2258_v56 = vadd.f32 %v14971_v17, %v1994_v31  ;;  %v3046_v10 = vadd.f32 %v14972_v1, %v2782_v19  ;;  %v14974_v21 = vld [vmem:[#allocation109_spill] sm:$0xff]  ;;  %10789 = vmatprep.mubr.f32.mxu1 %v8299_v3  ;;  %v14976_v37 = vld [vmem:[#allocation111_spill] sm:$0xff]  ;;  %v4116_v18 = vadd.f32 %v13697_v22, %v3852_v29  ;;  %v14978_v49 = vld [vmem:[#allocation10_spill] sm:$0xff] }
 0x2ad   : > { %10848 = vmatprep.mubr.f32.mxu0 %v13473_v13  ;;  %v2784_v39 = vadd.f32 %v14973_v36, %v2520_v50  ;;  %v3572_v61 = vadd.f32 %v14974_v21, %v3308_v15  ;;  %v3590_v8 = vadd.f32 %v14975_v55, %v3326_v40  ;;  %v13951_v24 = vadd.f32 %v4579_v60, %v4378_v38  ;;  %v10298_v13 = vpop.f32.mrf.mxu1  ;;  %v14977_v51 = vld [vmem:[#allocation123_spill] sm:$0xff]  ;;  %v14980_v27 = vld [vmem:[#allocation125_spill] sm:$0xff]  ;;  %v14982_v26 = vld [vmem:[#allocation76_spill] sm:$0xff] }
 0x2ae   : > { %v3310_v35 = vadd.f32 %v14976_v37, %v3046_v10  ;;  %v8301_v62 = vld [vmem:[%s11042_s30 + $0xc3] sm:$0xff]  ;;  %v4381_v7 = vadd.f32 %v10298_v13, %v14978_v49  ;;  %v14981_v28 = vld [vmem:[#allocation37_spill] sm:$0xff]  ;;  %v10360_v4 = vpop.f32.mrf.mxu0  ;;  %v2522_v19 = vadd.f32 %v14982_v26, %v2258_v56  ;;  %v14983_v6 = vld [vmem:[#allocation94_spill] sm:$0xff] }
 0x2af   : > { %v14979_v42 = vld [vmem:[#allocation127_spill] sm:$0xff]  ;;  %v3854_v57 = vadd.f32 %v14981_v28, %v3590_v8  ;;  %v4325_v34 = vpop.f32.mrf.mxu1  ;;  %10790 = vmatmul.mubr.f32.gmra.mxu1 %v8300_v25  ;;  %v3048_v22 = vadd.f32 %v14983_v6, %v2784_v39  ;;  %v8302_v63 = vld [vmem:[%s11042_s30 + $0xcb] sm:$0xff]  ;;  %v14986_v41 = vld [vmem:[#allocation126_spill] sm:$0xff] }
 0x2b0   : > { %10849 = vmatmul.mubr.f32.gmra.mxu0 %v14977_v51  ;;  %v3836_v53 = vadd.f32 %v14979_v42, %v3572_v61  ;;  %v13962_v32 = vadd.f32 %v10360_v4, %v4381_v7  ;;  %v4380_v23 = vadd.f32 %v4325_v34, %v4116_v18  ;;  %10792 = vmatprep.mubr.f32.mxu1 %v8301_v62  ;;  %v4589_v15 = vpop.f32.mrf.mxu0  ;;  %v14984_v40 = vld [vmem:[#allocation95_spill] sm:$0xff]  ;;  %v14985_v33 = vld [vmem:[#allocation112_spill] sm:$0xff]  ;;  %v8303_v31 = vld [vmem:[%s11042_s30 + $0xd3] sm:$0xff] }
 0x2b1   : > { %10851 = vmatprep.mubr.f32.mxu0 %v14980_v27  ;;  %v2786_v58 = vadd.f32 %v14984_v40, %v2522_v19  ;;  %v3574_v2 = vadd.f32 %v14985_v33, %v3310_v35  ;;  %v10301_v29 = vpop.f32.mrf.mxu1  ;;  %v14987_v3 = vld [vmem:[#allocation113_spill] sm:$0xff]  ;;  %v14988_v30 = vld [vmem:[#allocation128_spill] sm:$0xff]  ;;  %v14989_v50 = vld [vmem:[#allocation38_spill] sm:$0xff] }
 0x2b2   : > { %v13970_v47 = vadd.f32 %v4589_v15, %v4380_v23  ;;  %v3312_v45 = vadd.f32 %v14987_v3, %v3048_v22  ;;  %v4100_v5 = vadd.f32 %v14988_v30, %v3836_v53  ;;  %v4118_v38 = vadd.f32 %v14989_v50, %v3854_v57  ;;  %v14990_v17 = vld [vmem:[#allocation129_spill] sm:$0xff]  ;;  %v14991_v56 = vld [vmem:[#allocation11_spill] sm:$0xff]  ;;  %v14993_v21 = vld [vmem:[#allocation18_spill] sm:$0xff] }
 0x2b3   : > { %v4383_v1 = vadd.f32 %v10301_v29, %v14991_v56  ;;  %v14992_v10 = vld [vmem:[#allocation131_spill] sm:$0xff]  ;;  %10793 = vmatmul.mubr.f32.gmra.mxu1 %v8302_v63  ;;  %v8339_v36 = vld [vmem:[%s11042_s30 + $0xd4] sm:$0xff]  ;;  %v4335_v39 = vpop.f32.mrf.mxu1  ;;  %v14994_v13 = vld [vmem:[#allocation96_spill] sm:$0xff] }
 0x2b4   : > { %10852 = vmatmul.mubr.f32.gmra.mxu0 %v14986_v41  ;;  %v3838_v60 = vadd.f32 %v14992_v10, %v3574_v2  ;;  %v4364_v61 = vadd.f32 %v14993_v21, %v4100_v5  ;;  %10795 = vmatprep.mubr.f32.mxu1 %v8303_v31  ;;  %v8304_v55 = vld [vmem:[%s11042_s30 + $0xdb] sm:$0xff]  ;;  %v10363_v8 = vpop.f32.mrf.mxu0  ;;  %v4382_v25 = vadd.f32 %v4335_v39, %v4118_v38  ;;  %v14998_v27 = vld [vmem:[#allocation132_spill] sm:$0xff]  ;;  %v14999_v34 = vld [vmem:[#allocation133_spill] sm:$0xff] }
 0x2b5   : > { %10854 = vmatprep.mubr.f32.mxu0 %v14990_v17  ;;  %v3050_v37 = vadd.f32 %v14994_v13, %v2786_v58  ;;  %v14995_v35 = vld [vmem:[#allocation130_spill] sm:$0xff]  ;;  %v13983_v51 = vadd.f32 %v10363_v8, %v4383_v1  ;;  %v14997_v42 = vld [vmem:[#allocation115_spill] sm:$0xff]  ;;  %v15001_v6 = vld [vmem:[#allocation12_spill] sm:$0xff] }
 0x2b6   : > { %v14996_v18 = vld [vmem:[#allocation114_spill] sm:$0xff]  ;;  %v4599_v7 = vpop.f32.mrf.mxu0  ;;  %v4102_v28 = vadd.f32 %v14998_v27, %v3838_v60  ;;  %v15000_v19 = vld [vmem:[#allocation39_spill] sm:$0xff]  ;;  %v15002_v2 = vld [vmem:[#allocation116_spill] sm:$0xff] }
 0x2b7   : > { %v3576_v62 = vadd.f32 %v14996_v18, %v3312_v45  ;;  %v8340_v49 = vld [vmem:[%s11042_s30 + $0xdc] sm:$0xff]  ;;  %v3314_v53 = vadd.f32 %v14997_v42, %v3050_v37  ;;  %10796 = vmatmul.mubr.f32.gmra.mxu1 %v8304_v55  ;;  %v13989_v57 = vadd.f32 %v4599_v7, %v4382_v25  ;;  %v10398_v4 = vpop.f32.mrf.mxu1  ;;  %v4628_v23 = vadd.f32 %v15000_v19, %v4364_v61  ;;  %v15005_v17 = vld [vmem:[#allocation57_spill] sm:$0xff]  ;;  %v15007_v61 = vld [vmem:[#allocation136_spill] sm:$0xff] }
 0x2b8   : > { %10855 = vmatmul.mubr.f32.gmra.mxu0 %v14995_v35  ;;  %v4893_v22 = vadd.f32 %v10398_v4, %v15001_v6  ;;  %v4366_v63 = vadd.f32 %v13782_v16, %v4102_v28  ;;  %v15003_v29 = vld [vmem:[#allocation134_spill] sm:$0xff]  ;;  %v15004_v5 = vld [vmem:[#allocation135_spill] sm:$0xff]  ;;  %v15006_v1 = vld [vmem:[#allocation13_spill] sm:$0xff] }
 0x2b9   : > { %10857 = vmatprep.mubr.f32.mxu0 %v8339_v36  ;;  %v3840_v26 = vadd.f32 %v14999_v34, %v3576_v62  ;;  %v10460_v15 = vpop.f32.mrf.mxu0  ;;  %v4773_v40 = vpop.f32.mrf.mxu1  ;;  %v3578_v41 = vadd.f32 %v15002_v2, %v3314_v53 }
 0x2ba   : > { %v13995_v58 = vadd.f32 %v10460_v15, %v4893_v22  ;;  %v4892_v33 = vadd.f32 %v4773_v40, %v4628_v23  ;;  %v4630_v38 = vadd.f32 %v13789_v12, %v4366_v63 }
 0x2bb   : > { %v5037_v31 = vpop.f32.mrf.mxu0  ;;  %v4104_v3 = vadd.f32 %v15003_v29, %v3840_v26  ;;  %v3842_v50 = vadd.f32 %v15004_v5, %v3578_v41 }
 0x2bc   : > { %10858 = vmatmul.mubr.f32.gmra.mxu0 %v8340_v49  ;;  %v13999_v45 = vadd.f32 %v5037_v31, %v4892_v33  ;;  %v10401_v30 = vpop.f32.mrf.mxu1 }
 0x2bd   : > { %v4895_v16 = vadd.f32 %v10401_v30, %v15005_v17  ;;  %v10463_v56 = vpop.f32.mrf.mxu0  ;;  %v4368_v10 = vadd.f32 %v15006_v1, %v4104_v3  ;;  %v4106_v55 = vadd.f32 %v15007_v61, %v3842_v50 }
 0x2be   : > { %v4783_v60 = vpop.f32.mrf.mxu1 }
 0x2bf   : > { %v14005_v36 = vadd.f32 %v10463_v56, %v4895_v16  ;;  %v4894_v39 = vadd.f32 %v4783_v60, %v4630_v38  ;;  %v5047_v21 = vpop.f32.mrf.mxu0  ;;  %v4632_v13 = vadd.f32 %v13826_v20, %v4368_v10  ;;  %v4370_v12 = vadd.f32 %v13839_v52, %v4106_v55 }
 0x2c1   : > { %v14008_v8 = vadd.f32 %v5047_v21, %v4894_v39  ;;  %v10404_v25 = vpop.f32.mrf.mxu1  ;;  %v4634_v27 = vadd.f32 %v13851_v59, %v4370_v12 }
 0x2c2   : > { %v4897_v37 = vadd.f32 %v10404_v25, %v13819_v46 }
 0x2c3   : > { %v10466_v35 = vpop.f32.mrf.mxu0  ;;  %v4793_v18 = vpop.f32.mrf.mxu1 }
 0x2c4   : > { %v14013_v62 = vadd.f32 %v10466_v35, %v4897_v37  ;;  %v4896_v49 = vadd.f32 %v4793_v18, %v4632_v13 }
 0x2c5   : > { %v5057_v7 = vpop.f32.mrf.mxu0 }
 0x2c6   : > { %v14015_v42 = vadd.f32 %v5057_v7, %v4896_v49  ;;  %v10407_v53 = vpop.f32.mrf.mxu1 }
 0x2c7   : > { %v4899_v28 = vadd.f32 %v10407_v53, %v13845_v48 }
 0x2c8   : > { %v10469_v4 = vpop.f32.mrf.mxu0  ;;  %v4803_v34 = vpop.f32.mrf.mxu1 }
 0x2c9   : > { %v14019_v20 = vadd.f32 %v10469_v4, %v4899_v28  ;;  %v4898_v46 = vadd.f32 %v4803_v34, %v4634_v27 }
 0x2ca   : > { %v5067_v26 = vpop.f32.mrf.mxu0 }
 0x2cb   : > { %v14021_v52 = vadd.f32 %v5067_v26, %v4898_v46  ;;  %v10410_v19 = vpop.f32.mrf.mxu1 }
 0x2cc   : > { %v4901_v23 = vadd.f32 %v10410_v19, %v13874_v0 }
 0x2cd   : > { %v4813_v6 = vpop.f32.mrf.mxu1 }
 0x2ce   : > { %v10472_v22 = vpop.f32.mrf.mxu0  ;;  %v4900_v63 = vadd.f32 %v4813_v6, %v13886_v44 }
 0x2cf   : > { %v14025_v15 = vadd.f32 %v10472_v22, %v4901_v23 }
 0x2d0   : > { %v5077_v59 = vpop.f32.mrf.mxu0 }
 0x2d1   : > { %v14027_v40 = vadd.f32 %v5077_v59, %v4900_v63  ;;  %v10413_v48 = vpop.f32.mrf.mxu1 }
 0x2d2   : > { %v4903_v33 = vadd.f32 %v10413_v48, %v13899_v14  ;;  %v10475_v2 = vpop.f32.mrf.mxu0 }
 0x2d3   : > { %v4823_v41 = vpop.f32.mrf.mxu1 }
 0x2d4   : > { %v14030_v31 = vadd.f32 %v10475_v2, %v4903_v33  ;;  %v4902_v29 = vadd.f32 %v4823_v41, %v13909_v11  ;;  %v5087_v3 = vpop.f32.mrf.mxu0 }
 0x2d6   : > { %v14033_v0 = vadd.f32 %v5087_v3, %v4902_v29  ;;  %v10416_v30 = vpop.f32.mrf.mxu1 }
 0x2d7   : > { %v4905_v44 = vadd.f32 %v10416_v30, %v13922_v54  ;;  %v10478_v5 = vpop.f32.mrf.mxu0 }
 0x2d8   : > { %v4833_v50 = vpop.f32.mrf.mxu1 }
 0x2d9   : > { %v14036_v38 = vadd.f32 %v10478_v5, %v4905_v44  ;;  %v4904_v17 = vadd.f32 %v4833_v50, %v13930_v9  ;;  %v5097_v16 = vpop.f32.mrf.mxu0 }
 0x2db   : > { %v14039_v14 = vadd.f32 %v5097_v16, %v4904_v17  ;;  %v10419_v56 = vpop.f32.mrf.mxu1 }
 0x2dc   : > { %v4907_v1 = vadd.f32 %v10419_v56, %v13943_v43 }
 0x2dd   : > { %v10481_v10 = vpop.f32.mrf.mxu0  ;;  %v4843_v11 = vpop.f32.mrf.mxu1 }
 0x2de   : > { %v14042_v60 = vadd.f32 %v10481_v10, %v4907_v1  ;;  %v4906_v39 = vadd.f32 %v4843_v11, %v13951_v24 }
 0x2df   : > { %v5107_v21 = vpop.f32.mrf.mxu0 }
 0x2e0   : > { %v14045_v54 = vadd.f32 %v5107_v21, %v4906_v39  ;;  %v10422_v61 = vpop.f32.mrf.mxu1 }
 0x2e1   : > { %v4909_v55 = vadd.f32 %v10422_v61, %v13962_v32 }
 0x2e2   : > { %v10484_v25 = vpop.f32.mrf.mxu0  ;;  %v4853_v9 = vpop.f32.mrf.mxu1 }
 0x2e3   : > { %v14048_v13 = vadd.f32 %v10484_v25, %v4909_v55  ;;  %v4908_v37 = vadd.f32 %v4853_v9, %v13970_v47 }
 0x2e4   : > { %v5117_v12 = vpop.f32.mrf.mxu0 }
 0x2e5   : > { %v14051_v43 = vadd.f32 %v5117_v12, %v4908_v37  ;;  %v10425_v35 = vpop.f32.mrf.mxu1 }
 0x2e6   : > { %v4911_v18 = vadd.f32 %v10425_v35, %v13983_v51 }
 0x2e7   : > { %v4863_v49 = vpop.f32.mrf.mxu1 }
 0x2e8   : > { %v10487_v24 = vpop.f32.mrf.mxu0  ;;  %v4910_v7 = vadd.f32 %v4863_v49, %v13989_v57 }
 0x2e9   : > { %v14055_v53 = vadd.f32 %v10487_v24, %v4911_v18 }
 0x2ea   : > { %v5127_v27 = vpop.f32.mrf.mxu0 }
 0x2eb   : > { %v14057_v32 = vadd.f32 %v5127_v27, %v4910_v7  ;;  %v10522_v28 = vpop.f32.mrf.mxu1 }
 0x2ec   : > { %v5421_v4 = vadd.f32 %v10522_v28, %v13995_v58 }
 0x2ed   : > { %v10584_v34 = vpop.f32.mrf.mxu0  ;;  %v5301_v47 = vpop.f32.mrf.mxu1 }
 0x2ee   : > { %v14060_v46 = vadd.f32 %v10584_v34, %v5421_v4  ;;  %v5420_v26 = vadd.f32 %v5301_v47, %v13999_v45 }
 0x2ef   : > { %v5565_v19 = vpop.f32.mrf.mxu0 }
 0x2f0   : > { %v14063_v51 = vadd.f32 %v5565_v19, %v5420_v26  ;;  %v10525_v23 = vpop.f32.mrf.mxu1 }
 0x2f1   : > { %v5423_v57 = vadd.f32 %v10525_v23, %v14005_v36  ;;  %v10587_v6 = vpop.f32.mrf.mxu0  ;;  %v14680_v36 = vmov 0.0  }
 0x2f2   : > { %v5311_v22 = vpop.f32.mrf.mxu1  ;;  %6873 = vmatprep.subr.mxu1 %v14680_v36  ;;  %6989 = vmatprep.subr.mxu0 %v14680_v36 }
 0x2f3   : > { %v14066_v63 = vadd.f32 %v10587_v6, %v5423_v57  ;;  %v5422_v59 = vadd.f32 %v5311_v22, %v14008_v8  ;;  %v5575_v48 = vpop.f32.mrf.mxu0 }
 0x2f5   : > { %v14069_v58 = vadd.f32 %v5575_v48, %v5422_v59  ;;  %v10528_v33 = vpop.f32.mrf.mxu1 }
 0x2f6   : > { %v5425_v2 = vadd.f32 %v10528_v33, %v14013_v62 }
 0x2f7   : > { %v10590_v41 = vpop.f32.mrf.mxu0  ;;  %v5321_v45 = vpop.f32.mrf.mxu1 }
 0x2f8   : > { %v14072_v29 = vadd.f32 %v10590_v41, %v5425_v2  ;;  %v5424_v3 = vadd.f32 %v5321_v45, %v14015_v42 }
 0x2f9   : > { %v5585_v30 = vpop.f32.mrf.mxu0 }
 0x2fa   : > { %v14077_v44 = vadd.f32 %v5585_v30, %v5424_v3  ;;  %v10531_v8 = vpop.f32.mrf.mxu1 }
 0x2fb   : > { %v5427_v5 = vadd.f32 %v10531_v8, %v14019_v20 }
 0x2fc   : > { %v10593_v50 = vpop.f32.mrf.mxu0  ;;  %v5331_v17 = vpop.f32.mrf.mxu1 }
 0x2fd   : > { %v14080_v62 = vadd.f32 %v10593_v50, %v5427_v5  ;;  %v5426_v16 = vadd.f32 %v5331_v17, %v14021_v52 }
 0x2fe   : > { %v5595_v56 = vpop.f32.mrf.mxu0 }
 0x2ff   : > { %v14083_v1 = vadd.f32 %v5595_v56, %v5426_v16  ;;  %v10534_v42 = vpop.f32.mrf.mxu1 }
 0x300   : > { %v5429_v10 = vadd.f32 %v10534_v42, %v14025_v15 }
 0x301   : > { %v5341_v11 = vpop.f32.mrf.mxu1 }
 0x302   : > { %v10596_v39 = vpop.f32.mrf.mxu0  ;;  %v5428_v21 = vadd.f32 %v5341_v11, %v14027_v40 }
 0x303   : > { %v14087_v61 = vadd.f32 %v10596_v39, %v5429_v10 }
 0x304   : > { %v5605_v55 = vpop.f32.mrf.mxu0 }
 0x305   : > { %v14089_v20 = vadd.f32 %v5605_v55, %v5428_v21  ;;  %v10537_v25 = vpop.f32.mrf.mxu1 }
 0x306   : > { %v5431_v9 = vadd.f32 %v10537_v25, %v14030_v31  ;;  %v10599_v37 = vpop.f32.mrf.mxu0 }
 0x307   : > { %v5351_v52 = vpop.f32.mrf.mxu1 }
 0x308   : > { %v14092_v12 = vadd.f32 %v10599_v37, %v5431_v9  ;;  %v5430_v35 = vadd.f32 %v5351_v52, %v14033_v0  ;;  %v5615_v18 = vpop.f32.mrf.mxu0 }
 0x30a   : > { %v14095_v15 = vadd.f32 %v5615_v18, %v5430_v35  ;;  %v10540_v49 = vpop.f32.mrf.mxu1 }
 0x30b   : > { %v5433_v40 = vadd.f32 %v10540_v49, %v14036_v38  ;;  %v10602_v24 = vpop.f32.mrf.mxu0 }
 0x30c   : > { %v5361_v7 = vpop.f32.mrf.mxu1 }
 0x30d   : > { %v14098_v27 = vadd.f32 %v10602_v24, %v5433_v40  ;;  %v5432_v28 = vadd.f32 %v5361_v7, %v14039_v14  ;;  %v5625_v4 = vpop.f32.mrf.mxu0 }
 0x30f   : > { %v14101_v31 = vadd.f32 %v5625_v4, %v5432_v28  ;;  %v10543_v34 = vpop.f32.mrf.mxu1 }
 0x310   : > { %v5435_v47 = vadd.f32 %v10543_v34, %v14042_v60 }
 0x311   : > { %v10605_v26 = vpop.f32.mrf.mxu0  ;;  %v5371_v0 = vpop.f32.mrf.mxu1 }
 0x312   : > { %v14104_v19 = vadd.f32 %v10605_v26, %v5435_v47  ;;  %v5434_v23 = vadd.f32 %v5371_v0, %v14045_v54 }
 0x313   : > { %v5635_v57 = vpop.f32.mrf.mxu0 }
 0x314   : > { %v14107_v38 = vadd.f32 %v5635_v57, %v5434_v23  ;;  %v10546_v6 = vpop.f32.mrf.mxu1 }
 0x315   : > { %v5437_v22 = vadd.f32 %v10546_v6, %v14048_v13  ;;  %v6848_v13 = vld [vmem:[%s14647_s3 + $0x8] sm:$0xff] }
 0x316   : > { %v10608_v59 = vpop.f32.mrf.mxu0  ;;  %v5381_v14 = vpop.f32.mrf.mxu1  ;;  %8358 = vmatprep.mubr.msk.f32.mxu1 %vm6857_vm0, %v6848_v13 }
 0x317   : > { %v14110_v48 = vadd.f32 %v10608_v59, %v5437_v22  ;;  %v5436_v33 = vadd.f32 %v5381_v14, %v14051_v43  ;;  %v8364_v43 = vld [vmem:[%s14647_s3 + $0x58] sm:$0xff] }
 0x318   : > { %v5645_v2 = vpop.f32.mrf.mxu0  ;;  %8373 = vmatprep.mubr.msk.f32.mxu0 %vm6857_vm0, %v8364_v43 }
 0x319   : > { %v14113_v60 = vadd.f32 %v5645_v2, %v5436_v33  ;;  %v10549_v41 = vpop.f32.mrf.mxu1 }
 0x31a   : > { %v5439_v45 = vadd.f32 %v10549_v41, %v14055_v53 }
 0x31b   : > { %v5391_v3 = vpop.f32.mrf.mxu1 }
 0x31c   : > { %v10611_v54 = vpop.f32.mrf.mxu0  ;;  %v5438_v30 = vadd.f32 %v5391_v3, %v14057_v32 }
 0x31d   : > { %v14117_v8 = vadd.f32 %v10611_v54, %v5439_v45 }
 0x31e   : > { %v5655_v5 = vpop.f32.mrf.mxu0 }
 0x31f   : > { %v14125_v50 = vadd.f32 %v5655_v5, %v5438_v30  ;;  %v10646_v17 = vpop.f32.mrf.mxu1 }
 0x320   : > { %v5949_v53 = vadd.f32 %v10646_v17, %v14060_v46 }
 0x321   : > { %v10708_v32 = vpop.f32.mrf.mxu0  ;;  %v5829_v16 = vpop.f32.mrf.mxu1 }
 0x322   : > { %v14130_v56 = vadd.f32 %v10708_v32, %v5949_v53  ;;  %v5948_v42 = vadd.f32 %v5829_v16, %v14063_v51 }
 0x323   : > { %v6093_v10 = vpop.f32.mrf.mxu0 }
 0x324   : > { %15008 = vst [vmem:[#allocation5_spill] sm:$0xff] %v14130_v56  ;;  %v14133_v11 = vadd.f32 %v6093_v10, %v5948_v42  ;;  %v10649_v39 = vpop.f32.mrf.mxu1 }
 0x325   : > { %v5951_v21 = vadd.f32 %v10649_v39, %v14066_v63  ;;  %v10711_v55 = vpop.f32.mrf.mxu0 }
 0x326   : > { %15009 = vst [vmem:[#allocation14_spill] sm:$0xff] %v14133_v11  ;;  %v5839_v25 = vpop.f32.mrf.mxu1 }
 0x327   : > { %v14136_v9 = vadd.f32 %v10711_v55, %v5951_v21  ;;  %v5950_v37 = vadd.f32 %v5839_v25, %v14069_v58  ;;  %v6103_v52 = vpop.f32.mrf.mxu0 }
 0x329   : > { %v14139_v46 = vadd.f32 %v6103_v52, %v5950_v37  ;;  %v10652_v35 = vpop.f32.mrf.mxu1 }
 0x32a   : > { %v5953_v18 = vadd.f32 %v10652_v35, %v14072_v29 }
 0x32b   : > { %v10714_v49 = vpop.f32.mrf.mxu0  ;;  %v5849_v51 = vpop.f32.mrf.mxu1 }
 0x32c   : > { %v14142_v40 = vadd.f32 %v10714_v49, %v5953_v18  ;;  %v5952_v24 = vadd.f32 %v5849_v51, %v14077_v44 }
 0x32d   : > { %v6113_v7 = vpop.f32.mrf.mxu0 }
 0x32e   : > { %v14145_v63 = vadd.f32 %v6113_v7, %v5952_v24  ;;  %v10655_v28 = vpop.f32.mrf.mxu1 }
 0x32f   : > { %v5955_v4 = vadd.f32 %v10655_v28, %v14080_v62 }
 0x330   : > { %v10717_v34 = vpop.f32.mrf.mxu0  ;;  %v5859_v58 = vpop.f32.mrf.mxu1 }
 0x331   : > { %v14148_v47 = vadd.f32 %v10717_v34, %v5955_v4  ;;  %v5954_v26 = vadd.f32 %v5859_v58, %v14083_v1 }
 0x332   : > { %v6123_v0 = vpop.f32.mrf.mxu0 }
 0x333   : > { %v14151_v29 = vadd.f32 %v6123_v0, %v5954_v26  ;;  %v14153_v23 = vpop.f32.mrf.mxu1 }
 0x335   : > { %v14155_v57 = vpop.f32.mrf.mxu1 }
 0x336   : > { %v14157_v44 = vpop.f32.mrf.mxu0 }
 0x338   : > { %v14159_v6 = vpop.f32.mrf.mxu0 }
 0x339   : > { %v10661_v22 = vpop.f32.mrf.mxu1 }
 0x33a   : > { %v14161_v59 = vpop.f32.mrf.mxu0 }
 0x33b   : > { %v5879_v62 = vpop.f32.mrf.mxu1 }
 0x33c   : > { %v14163_v14 = vpop.f32.mrf.mxu0  ;;  %v5958_v11 = vadd.f32 %v5879_v62, %v14095_v15 }
 0x33e   : > { %v10664_v33 = vpop.f32.mrf.mxu1  ;;  %v6222_v15 = vadd.f32 %v14163_v14, %v5958_v11 }
 0x33f   : > { %v10726_v2 = vpop.f32.mrf.mxu0 }
 0x340   : > { %v5889_v1 = vpop.f32.mrf.mxu1 }
 0x341   : > { %v6153_v41 = vpop.f32.mrf.mxu0 }
 0x343   : > { %v10667_v45 = vpop.f32.mrf.mxu1 }
 0x345   : > { %v10729_v3 = vpop.f32.mrf.mxu0  ;;  %v5899_v54 = vpop.f32.mrf.mxu1 }
 0x347   : > { %v6163_v30 = vpop.f32.mrf.mxu0 }
 0x348   : > { %v10670_v5 = vpop.f32.mrf.mxu1 }
 0x349   : > { %v5965_v13 = vadd.f32 %v10670_v5, %v14110_v48 }
 0x34a   : > { %v5909_v17 = vpop.f32.mrf.mxu1 }
 0x34b   : > { %v10732_v43 = vpop.f32.mrf.mxu0  ;;  %v5964_v32 = vadd.f32 %v5909_v17, %v14113_v60 }
 0x34c   : > { %v14166_v53 = vadd.f32 %v10732_v43, %v5965_v13 }
 0x34d   : > { %v6173_v16 = vpop.f32.mrf.mxu0  ;;  %v14171_v10 = vpop.f32.mrf.mxu1 }
 0x34e   : > { %15010 = vst [vmem:[#allocation40_spill] sm:$0xff] %v14166_v53  ;;  %v14169_v42 = vadd.f32 %v6173_v16, %v5964_v32  ;;  %v5961_v32 = vadd.f32 %v10664_v33, %v14098_v27  ;;  %v5963_v53 = vadd.f32 %v10667_v45, %v14104_v19  ;;  %v5957_v33 = vadd.f32 %v14153_v23, %v14087_v61  ;;  %v14227_v23 = vld [vmem:[%s14646_s2] ss:$0 sm:$0xff] }
 0x34f   : > { %v14173_v39 = vpop.f32.mrf.mxu1 }
 0x350   : > { %15011 = vst [vmem:[#allocation58_spill] sm:$0xff] %v14169_v42  ;;  %15012 = vst [vmem:[#allocation41_spill] sm:$0xff] %v14173_v39  ;;  %v14175_v21 = vpop.f32.mrf.mxu0  ;;  %v5960_v42 = vadd.f32 %v5889_v1, %v14101_v31  ;;  %v6227_v56 = vadd.f32 %v10729_v3, %v5963_v53  ;;  %v6221_v61 = vadd.f32 %v14157_v44, %v5957_v33 }
 0x351   : > { %15013 = vst [vmem:[#allocation59_spill] sm:$0xff] %v14175_v21  ;;  %v5967_v33 = vadd.f32 %v14171_v10, %v14117_v8 }
 0x352   : > { %v14177_v55 = vpop.f32.mrf.mxu0 }
 0x353   : > { %15014 = vst [vmem:[#allocation77_spill] sm:$0xff] %v14177_v55  ;;  %v14179_v25 = vpop.f32.mrf.mxu1  ;;  %v5959_v55 = vadd.f32 %v10661_v22, %v14092_v12 }
 0x354   : > { %15015 = vst [vmem:[#allocation15_spill] sm:$0xff] %v14179_v25  ;;  %v6224_v25 = vadd.f32 %v6153_v41, %v5960_v42 }
 0x355   : > { %v14183_v37 = vpop.f32.mrf.mxu1  ;;  %v6223_v19 = vadd.f32 %v14161_v59, %v5959_v55 }
 0x356   : > { %15017 = vst [vmem:[#allocation16_spill] sm:$0xff] %v14183_v37  ;;  %v5962_v37 = vadd.f32 %v5899_v54, %v14107_v38  ;;  %v5956_v38 = vadd.f32 %v14155_v57, %v14089_v20 }
 0x357   : > { %v14181_v48 = vpop.f32.mrf.mxu0  ;;  %v14187_v60 = vpop.f32.mrf.mxu1 }
 0x358   : > { %15016 = vst [vmem:[#allocation3_spill] sm:$0xff] %v14181_v48  ;;  %v6226_v45 = vadd.f32 %v6163_v30, %v5962_v37  ;;  %v6220_v11 = vadd.f32 %v14159_v6, %v5956_v38 }
 0x359   : > { %v14185_v52 = vpop.f32.mrf.mxu0  ;;  %v14191_v18 = vpop.f32.mrf.mxu1 }
 0x35a   : > { %15018 = vst [vmem:[#allocation42_spill] sm:$0xff] %v14185_v52 }
 0x35b   : > { %v14189_v35 = vpop.f32.mrf.mxu0  ;;  %v14195_v51 = vpop.f32.mrf.mxu1 }
 0x35c   : > { %15019 = vst [vmem:[#allocation43_spill] sm:$0xff] %v14189_v35 }
 0x35d   : > { %v14193_v49 = vpop.f32.mrf.mxu0  ;;  %v14199_v7 = vpop.f32.mrf.mxu1 }
 0x35e   : > { %15020 = vst [vmem:[#allocation60_spill] sm:$0xff] %v14193_v49  ;;  %v6225_v49 = vadd.f32 %v10726_v2, %v5961_v32 }
 0x35f   : > { %v10779_v4 = vpop.f32.mrf.mxu1 }
 0x360   : > { %v14197_v24 = vpop.f32.mrf.mxu0  ;;  %v6483_v6 = vadd.f32 %v10779_v4, %v14148_v47 }
 0x361   : > { %v14205_v58 = vpop.f32.mrf.mxu1 }
 0x362   : > { %v14201_v28 = vpop.f32.mrf.mxu0 }
 0x363   : > { %v10782_v0 = vpop.f32.mrf.mxu1 }
 0x364   : > { %v14203_v34 = vpop.f32.mrf.mxu0  ;;  %v6485_v14 = vadd.f32 %v10782_v0, %v6221_v61 }
 0x365   : > { %v6397_v13 = vpop.f32.mrf.mxu1 }
 0x366   : > { %v14207_v26 = vpop.f32.mrf.mxu0  ;;  %v6484_v55 = vadd.f32 %v6397_v13, %v6220_v11  ;;  %v6481_v13 = vadd.f32 %v14195_v51, %v14142_v40  ;;  %v15031_v11 = vld [vmem:[#allocation3_spill] sm:$0xff] }
 0x367   : > { %v10785_v17 = vpop.f32.mrf.mxu1 }
 0x368   : > { %v10844_v5 = vpop.f32.mrf.mxu0  ;;  %v6487_v2 = vadd.f32 %v10785_v17, %v6223_v19  ;;  %v6480_v17 = vadd.f32 %v14199_v7, %v14145_v63  ;;  %v6479_v63 = vadd.f32 %v14187_v60, %v14136_v9  ;;  %v6745_v7 = vadd.f32 %v14197_v24, %v6481_v13 }
 0x369   : > { %v6407_v36 = vpop.f32.mrf.mxu1  ;;  %v6478_v9 = vadd.f32 %v14191_v18, %v14139_v46  ;;  %v15023_v46 = vld [vmem:[#allocation5_spill] sm:$0xff]  ;;  %v15024_v18 = vld [vmem:[#allocation15_spill] sm:$0xff] }
 0x36a   : > { %v14209_v43 = vpop.f32.mrf.mxu0  ;;  %v6744_v60 = vadd.f32 %v14201_v28, %v6480_v17  ;;  %v6477_v28 = vadd.f32 %v15024_v18, %v15023_v46  ;;  %v6812_v38 = vadd.f32 %v14227_v23, %v6745_v7  ;;  %v6854_v46 = vld [vmem:[%s14647_s3 + $0x38] sm:$0xff]  ;;  %v8370_v18 = vld [vmem:[%s14647_s3 + $0x88] sm:$0xff] }
 0x36b   : > { %v10788_v48 = vpop.f32.mrf.mxu1  ;;  %v6748_v0 = vadd.f32 %v14209_v43, %v6484_v55  ;;  %v15032_v55 = vld [vmem:[#allocation42_spill] sm:$0xff] }
 0x36c   : > { %v10847_v16 = vpop.f32.mrf.mxu0  ;;  %v6489_v27 = vadd.f32 %v10788_v48, %v6225_v49  ;;  %v6811_v61 = vadd.f32 %v14227_v23, %v6744_v60 }
 0x36d   : > { %v6417_v35 = vpop.f32.mrf.mxu1  ;;  %v6751_v53 = vadd.f32 %v10847_v16, %v6487_v2  ;;  %v6815_v40 = vadd.f32 %v14227_v23, %v6748_v0  ;;  %v15028_v2 = vld [vmem:[#allocation16_spill] sm:$0xff] }
 0x36e   : > { %v6671_v52 = vpop.f32.mrf.mxu0  ;;  %v6488_v39 = vadd.f32 %v6417_v35, %v6224_v25 }
 0x36f   : > { %v10791_v1 = vpop.f32.mrf.mxu1  ;;  %v6818_v35 = vadd.f32 %v14227_v23, %v6751_v53 }
 0x370   : > { %v10850_v21 = vpop.f32.mrf.mxu0  ;;  %v6491_v12 = vadd.f32 %v10791_v1, %v6227_v56  ;;  %v6486_v56 = vadd.f32 %v6407_v36, %v6222_v15  ;;  %v15021_v36 = vmov 0.0   ;;  %v15022_v1 = vld [vmem:[#allocation41_spill] sm:$0xff] }
 0x371   : > { %v6427_v62 = vpop.f32.mrf.mxu1  ;;  %v6753_v41 = vadd.f32 %v10850_v21, %v6489_v27  ;;  %v14266_v43 = vmax.f32 %v6818_v35, 0.0  ;;  %v5966_v8 = vadd.f32 %v15022_v1, %v14125_v50  ;;  %v15026_v50 = vld [vmem:[#allocation59_spill] sm:$0xff] }
 0x372   : > { %v6681_v31 = vpop.f32.mrf.mxu0  ;;  %v6490_v54 = vadd.f32 %v6427_v62, %v6226_v45  ;;  %v6750_v25 = vadd.f32 %v6671_v52, %v6486_v56  ;;  %v6482_v52 = vadd.f32 %v14205_v58, %v14151_v29  ;;  %v6747_v29 = vadd.f32 %v14203_v34, %v6483_v6  ;;  %v15025_v45 = vld [vmem:[#allocation43_spill] sm:$0xff]  ;;  %v15027_v62 = vld [vmem:[#allocation14_spill] sm:$0xff]  ;;  %v15030_v56 = vld [vmem:[#allocation77_spill] sm:$0xff] }
 0x373   : > { %v6752_v30 = vadd.f32 %v6681_v31, %v6488_v39  ;;  %v6820_v42 = vadd.f32 %v14227_v23, %v6753_v41  ;;  %v6749_v39 = vadd.f32 %v10844_v5, %v6485_v14  ;;  %v14258_v5 = vpop.f32.mrf.mxu1  ;;  %v14302_v31 = vmax.f32 %v6815_v40, 0.0 }
 0x374   : > { %v10853_v22 = vpop.f32.mrf.mxu0  ;;  %v6817_v47 = vadd.f32 %v14227_v23, %v6750_v25  ;;  %v6746_v32 = vadd.f32 %v14207_v26, %v6482_v52  ;;  %v6814_v26 = vadd.f32 %v14227_v23, %v6747_v29  ;;  %v6476_v41 = vadd.f32 %v15028_v2, %v15027_v62  ;;  %v8394_v62 = vld [vmem:[%s14647_s3 + $0xf8] sm:$0xff]  ;;  %v8378_v2 = vld [vmem:[%s14647_s3 + $0xa0] sm:$0xff] }
 0x375   : > { %v6755_v3 = vadd.f32 %v10853_v22, %v6491_v12  ;;  %v6819_v48 = vadd.f32 %v14227_v23, %v6752_v30  ;;  %v14244_v49 = vmax.f32 %v6820_v42, 0.0  ;;  %v6816_v58 = vadd.f32 %v14227_v23, %v6749_v39  ;;  %v14280_v34 = vpop.f32.mrf.mxu1 }
 0x376   : > { %v6691_v59 = vpop.f32.mrf.mxu0  ;;  %v14276_v51 = vmax.f32 %v6817_v47, 0.0  ;;  %v6813_v24 = vadd.f32 %v14227_v23, %v6746_v32  ;;  %v6743_v12 = vadd.f32 %v15025_v45, %v6479_v63  ;;  %v14316_v15 = vmax.f32 %v6814_v26, 0.0  ;;  %v15033_v47 = vld [vmem:[#allocation40_spill] sm:$0xff]  ;;  %v15034_v32 = vld [vmem:[#allocation58_spill] sm:$0xff]  ;;  %v8369_v45 = vld [vmem:[%s14647_s3 + $0x80] sm:$0xff] }
 0x377   : > { %v6822_v20 = vadd.f32 %v14227_v23, %v6755_v3  ;;  %v6754_v57 = vadd.f32 %v6691_v59, %v6490_v54  ;;  %v14254_v4 = vmax.f32 %v6819_v48, 0.0  ;;  %v14290_v27 = vmax.f32 %v6816_v58, 0.0  ;;  %v10797_v10 = vpop.f32.mrf.mxu1  ;;  %v15029_v3 = vld [vmem:[#allocation60_spill] sm:$0xff] }
 0x378   : > { %v14282_v16 = vpop.f32.mrf.mxu0  ;;  %v6231_v22 = vadd.f32 %v15026_v50, %v5967_v33  ;;  %v6742_v54 = vadd.f32 %v15029_v3, %v6478_v9  ;;  %v14327_v59 = vmax.f32 %v6813_v24, 0.0  ;;  %v6230_v30 = vadd.f32 %v15030_v56, %v5966_v8  ;;  %v8371_v50 = vld [vmem:[%s14647_s3 + $0x90] sm:$0xff]  ;;  %v8381_v3 = vld [vmem:[%s14647_s3 + $0xb8] sm:$0xff] }
 0x379   : > { %v14232_v21 = vmax.f32 %v6822_v20, 0.0  ;;  %v6821_v44 = vadd.f32 %v14227_v23, %v6754_v57  ;;  %v6447_v20 = vpop.f32.mrf.mxu1  ;;  %v6741_v14 = vadd.f32 %v15031_v11, %v6477_v28  ;;  %v6810_v53 = vadd.f32 %v14227_v23, %v6743_v12  ;;  %v6853_v28 = vld [vmem:[%s14647_s3 + $0x30] sm:$0xff]  ;;  %v6856_v12 = vld [vmem:[%s14647_s3 + $0x48] sm:$0xff]  ;;  %v8398_v56 = vld [vmem:[%s14647_s3 + $0x118] sm:$0xff] }
 0x37a   : > { %v14308_v19 = vpop.f32.mrf.mxu0  ;;  %v14336_v42 = vmax.f32 %v6812_v38, 0.0  ;;  %v6740_v25 = vadd.f32 %v15032_v55, %v6476_v41  ;;  %v6809_v48 = vadd.f32 %v14227_v23, %v6742_v54  ;;  %v14344_v6 = vmax.f32 %v6811_v61, 0.0  ;;  %v8372_v38 = vld [vmem:[%s14647_s3 + $0x98] sm:$0xff]  ;;  %v8393_v41 = vld [vmem:[%s14647_s3 + $0xf0] sm:$0xff]  ;;  %v8395_v61 = vld [vmem:[%s14647_s3 + $0x100] sm:$0xff] }
 0x37b   : > { %v14236_v37 = vmax.f32 %v6821_v44, 0.0  ;;  %6874 = vmatpush1.msra.mxu1 %v14232_v21  ;;  %6990 = vmatpush1.msra.mxu0 %v14232_v21  ;;  %v6495_v44 = vadd.f32 %v10797_v10, %v6231_v22  ;;  %v6494_v39 = vadd.f32 %v6447_v20, %v6230_v30  ;;  %v6808_v52 = vadd.f32 %v14227_v23, %v6741_v14  ;;  %v6847_v10 = vld [vmem:[%s14647_s3] sm:$0xff]  ;;  %v8379_v22 = vld [vmem:[%s14647_s3 + $0xa8] sm:$0xff]  ;;  %v8380_v54 = vld [vmem:[%s14647_s3 + $0xb0] sm:$0xff] }
 0x37c   : > { %6875 = vmatprep.subr.mxu1 %v15021_v36  ;;  %6991 = vmatprep.subr.mxu0 %v15021_v36  ;;  %v10859_v57 = vpop.f32.mrf.mxu0  ;;  %v14351_v0 = vmax.f32 %v6810_v53, 0.0  ;;  %v6493_v13 = vadd.f32 %v14258_v5, %v15033_v47  ;;  %v6807_v58 = vadd.f32 %v14227_v23, %v6740_v25  ;;  %v14360_v17 = vmax.f32 %v6809_v48, 0.0  ;;  %v8382_v30 = vld [vmem:[%s14647_s3 + $0xc0] sm:$0xff]  ;;  %v8397_v20 = vld [vmem:[%s14647_s3 + $0x110] sm:$0xff]  ;;  %v8400_v11 = vld [vmem:[%s14647_s3 + $0x128] sm:$0xff] }
 0x37d   : > { %6876 = vmatpush1.msra.mxu1 %v14236_v37  ;;  %6992 = vmatpush1.msra.mxu0 %v14236_v37  ;;  %v6759_v29 = vadd.f32 %v10859_v57, %v6495_v44  ;;  %v6492_v40 = vadd.f32 %v14280_v34, %v15034_v32  ;;  %v14368_v5 = vmax.f32 %v6808_v52, 0.0  ;;  %v8385_v57 = vld [vmem:[%s14647_s3 + $0xd8] sm:$0xff]  ;;  %v8384_v14 = vld [vmem:[%s14647_s3 + $0xd0] sm:$0xff]  ;;  %v8399_v53 = vld [vmem:[%s14647_s3 + $0x120] sm:$0xff] }
 0x37e   : > { %6877 = vmatprep.subr.mxu1 %v15021_v36  ;;  %6993 = vmatprep.subr.mxu0 %v15021_v36  ;;  %v6711_v35 = vpop.f32.mrf.mxu0  ;;  %v6757_v7 = vadd.f32 %v14282_v16, %v6493_v13  ;;  %v14376_v34 = vmax.f32 %v6807_v58, 0.0  ;;  %v8402_v44 = vld [vmem:[%s14647_s3 + $0x138] sm:$0xff]  ;;  %v8386_v55 = vld [vmem:[%s14647_s3 + $0xe0] sm:$0xff]  ;;  %v8401_v25 = vld [vmem:[%s14647_s3 + $0x130] sm:$0xff] }
 0x37f   : > { %6878 = vmatpush1.msra.mxu1 %v14244_v49  ;;  %6994 = vmatpush1.msra.mxu0 %v14244_v49  ;;  %v6758_v63 = vadd.f32 %v6711_v35, %v6494_v39  ;;  %v6826_v26 = vadd.f32 %v14227_v23, %v6759_v29  ;;  %v6756_v33 = vadd.f32 %v14308_v19, %v6492_v40  ;;  %v8363_v19 = vld [vmem:[%s14647_s3 + $0x50] sm:$0xff] }
 0x380   : > { %6879 = vmatprep.subr.mxu1 %v15021_v36  ;;  %6995 = vmatprep.subr.mxu0 %v15021_v36  ;;  %v6824_v16 = vadd.f32 %v14227_v23, %v6757_v7 }
 0x381   : > { %6880 = vmatpush1.msra.mxu1 %v14254_v4  ;;  %6996 = vmatpush1.msra.mxu0 %v14254_v4  ;;  %v6825_v9 = vadd.f32 %v14227_v23, %v6758_v63  ;;  %v14385_v60 = vmax.f32 %v6826_v26, 0.0  ;;  %v6823_v24 = vadd.f32 %v14227_v23, %v6756_v33 }
 0x382   : > { %6881 = vmatprep.subr.mxu1 %v15021_v36  ;;  %6997 = vmatprep.subr.mxu0 %v15021_v36  ;;  %v14398_v8 = vmax.f32 %v6824_v16, 0.0 }
 0x383   : > { %6882 = vmatpush1.msra.mxu1 %v14266_v43  ;;  %6998 = vmatpush1.msra.mxu0 %v14266_v43  ;;  %v14392_v1 = vmax.f32 %v6825_v9, 0.0  ;;  %v14404_v23 = vmax.f32 %v6823_v24, 0.0 }
 0x384   : > { %6883 = vmatprep.subr.mxu1 %v15021_v36  ;;  %6999 = vmatprep.subr.mxu0 %v15021_v36 }
 0x385   : > { %6884 = vmatpush1.msra.mxu1 %v14276_v51  ;;  %7000 = vmatpush1.msra.mxu0 %v14276_v51 }
 0x386   : > { %6885 = vmatprep.subr.mxu1 %v15021_v36  ;;  %7001 = vmatprep.subr.mxu0 %v15021_v36 }
 0x387   : > { %6886 = vmatpush1.msra.mxu1 %v14290_v27  ;;  %7002 = vmatpush1.msra.mxu0 %v14290_v27 }
 0x388   : > { %6887 = vmatprep.subr.mxu1 %v15021_v36  ;;  %7003 = vmatprep.subr.mxu0 %v15021_v36 }
 0x389   : > { %6888 = vmatpush1.msra.mxu1 %v14302_v31  ;;  %7004 = vmatpush1.msra.mxu0 %v14302_v31 }
 0x38a   : > { %6889 = vmatprep.subr.mxu1 %v15021_v36  ;;  %7005 = vmatprep.subr.mxu0 %v15021_v36 }
 0x38b   : > { %6890 = vmatpush1.msra.mxu1 %v14316_v15  ;;  %7006 = vmatpush1.msra.mxu0 %v14316_v15 }
 0x38c   : > { %6891 = vmatprep.subr.mxu1 %v15021_v36  ;;  %7007 = vmatprep.subr.mxu0 %v15021_v36 }
 0x38d   : > { %6892 = vmatpush1.msra.mxu1 %v14327_v59  ;;  %7008 = vmatpush1.msra.mxu0 %v14327_v59 }
 0x38e   : > { %6893 = vmatprep.subr.mxu1 %v15021_v36  ;;  %7009 = vmatprep.subr.mxu0 %v15021_v36 }
 0x38f   : > { %6894 = vmatpush1.msra.mxu1 %v14336_v42  ;;  %7010 = vmatpush1.msra.mxu0 %v14336_v42 }
 0x390   : > { %6895 = vmatprep.subr.mxu1 %v15021_v36  ;;  %7011 = vmatprep.subr.mxu0 %v15021_v36 }
 0x391   : > { %6896 = vmatpush1.msra.mxu1 %v14344_v6  ;;  %7012 = vmatpush1.msra.mxu0 %v14344_v6 }
 0x392   : > { %6897 = vmatprep.subr.mxu1 %v15021_v36  ;;  %7013 = vmatprep.subr.mxu0 %v15021_v36 }
 0x393   : > { %6898 = vmatpush1.msra.mxu1 %v14351_v0  ;;  %7014 = vmatpush1.msra.mxu0 %v14351_v0 }
 0x394   : > { %6899 = vmatprep.subr.mxu1 %v15021_v36  ;;  %7015 = vmatprep.subr.mxu0 %v15021_v36 }
 0x395   : > { %6900 = vmatpush1.msra.mxu1 %v14360_v17  ;;  %7016 = vmatpush1.msra.mxu0 %v14360_v17 }
 0x396   : > { %6901 = vmatprep.subr.mxu1 %v15021_v36  ;;  %7017 = vmatprep.subr.mxu0 %v15021_v36 }
 0x397   : > { %6902 = vmatpush1.msra.mxu1 %v14368_v5  ;;  %7018 = vmatpush1.msra.mxu0 %v14368_v5 }
 0x398   : > { %6903 = vmatprep.subr.mxu1 %v15021_v36  ;;  %7019 = vmatprep.subr.mxu0 %v15021_v36 }
 0x399   : > { %6904 = vmatpush1.msra.mxu1 %v14376_v34  ;;  %7020 = vmatpush1.msra.mxu0 %v14376_v34 }
 0x39a   : > { %6929 = vmatprep.subr.mxu1 %v15021_v36  ;;  %7045 = vmatprep.subr.mxu0 %v15021_v36 }
 0x39b   : > { %6930 = vmatpush2.msra.mxu1 %v14385_v60  ;;  %7046 = vmatpush2.msra.mxu0 %v14385_v60 }
 0x39c   : > { %6931 = vmatprep.subr.mxu1 %v15021_v36  ;;  %7047 = vmatprep.subr.mxu0 %v15021_v36 }
 0x39d   : > { %6932 = vmatpush2.msra.mxu1 %v14392_v1  ;;  %7048 = vmatpush2.msra.mxu0 %v14392_v1 }
 0x39e   : > { %6933 = vmatprep.subr.mxu1 %v15021_v36  ;;  %7049 = vmatprep.subr.mxu0 %v15021_v36 }
 0x39f   : > { %6934 = vmatpush2.msra.mxu1 %v14398_v8  ;;  %7050 = vmatpush2.msra.mxu0 %v14398_v8 }
 0x3a0   : > { %6935 = vmatprep.subr.mxu1 %v15021_v36  ;;  %7051 = vmatprep.subr.mxu0 %v15021_v36 }
 0x3a1   : > { %6936 = vmatpush2.msra.mxu1 %v14404_v23  ;;  %7052 = vmatpush2.msra.mxu0 %v14404_v23 }
 0x3a2   : > { %6938 = vmatmul.mubr.f32.vlgmr.msra.gmra.mxu1 %v6847_v10  ;;  %7054 = vmatmul.mubr.f32.vlgmr.msra.gmra.mxu0 %v8363_v19 }
 0x3a3   : > { %7110 = vmatprep.subr.mxu1 %v15021_v36  ;;  %7226 = vmatprep.subr.mxu0 %v15021_v36 }
 0x3a4   : > { %7111 = vmatpush1.msra.mxu1 %v14232_v21  ;;  %7227 = vmatpush1.msra.mxu0 %v14232_v21  ;;  %v6850_v21 = vld [vmem:[%s14647_s3 + $0x18] sm:$0xff] }
 0x3a5   : > { %7112 = vmatprep.subr.mxu1 %v15021_v36  ;;  %7228 = vmatprep.subr.mxu0 %v15021_v36 }
 0x3a6   : > { %7113 = vmatpush1.msra.mxu1 %v14236_v37  ;;  %7229 = vmatpush1.msra.mxu0 %v14236_v37  ;;  %v8366_v37 = vld [vmem:[%s14647_s3 + $0x68] sm:$0xff] }
 0x3a7   : > { %7114 = vmatprep.subr.mxu1 %v15021_v36  ;;  %7230 = vmatprep.subr.mxu0 %v15021_v36 }
 0x3a8   : > { %7115 = vmatpush1.msra.mxu1 %v14244_v49  ;;  %7231 = vmatpush1.msra.mxu0 %v14244_v49  ;;  %v6849_v49 = vld [vmem:[%s14647_s3 + $0x10] sm:$0xff] }
 0x3a9   : > { %7116 = vmatprep.subr.mxu1 %v15021_v36  ;;  %7232 = vmatprep.subr.mxu0 %v15021_v36 }
 0x3aa   : > { %7117 = vmatpush1.msra.mxu1 %v14254_v4  ;;  %7233 = vmatpush1.msra.mxu0 %v14254_v4  ;;  %v8365_v4 = vld [vmem:[%s14647_s3 + $0x60] sm:$0xff] }
 0x3ab   : > { %7118 = vmatprep.subr.mxu1 %v15021_v36  ;;  %7234 = vmatprep.subr.mxu0 %v15021_v36 }
 0x3ac   : > { %7119 = vmatpush1.msra.mxu1 %v14266_v43  ;;  %7235 = vmatpush1.msra.mxu0 %v14266_v43  ;;  %v6852_v43 = vld [vmem:[%s14647_s3 + $0x28] sm:$0xff] }
 0x3ad   : > { %7120 = vmatprep.subr.mxu1 %v15021_v36  ;;  %7236 = vmatprep.subr.mxu0 %v15021_v36 }
 0x3ae   : > { %7121 = vmatpush1.msra.mxu1 %v14276_v51  ;;  %7237 = vmatpush1.msra.mxu0 %v14276_v51  ;;  %v8368_v51 = vld [vmem:[%s14647_s3 + $0x78] sm:$0xff] }
 0x3af   : > { %7122 = vmatprep.subr.mxu1 %v15021_v36  ;;  %7238 = vmatprep.subr.mxu0 %v15021_v36 }
 0x3b0   : > { %7123 = vmatpush1.msra.mxu1 %v14290_v27  ;;  %7239 = vmatpush1.msra.mxu0 %v14290_v27  ;;  %v6851_v27 = vld [vmem:[%s14647_s3 + $0x20] sm:$0xff] }
 0x3b1   : > { %7124 = vmatprep.subr.mxu1 %v15021_v36  ;;  %7240 = vmatprep.subr.mxu0 %v15021_v36 }
 0x3b2   : > { %7125 = vmatpush1.msra.mxu1 %v14302_v31  ;;  %7241 = vmatpush1.msra.mxu0 %v14302_v31  ;;  %v8367_v31 = vld [vmem:[%s14647_s3 + $0x70] sm:$0xff] }
 0x3b3   : > { %7126 = vmatprep.subr.mxu1 %v15021_v36  ;;  %7242 = vmatprep.subr.mxu0 %v15021_v36 }
 0x3b4   : > { %7127 = vmatpush1.msra.mxu1 %v14316_v15  ;;  %7243 = vmatpush1.msra.mxu0 %v14316_v15  ;;  %v6855_v15 = vld [vmem:[%s14647_s3 + $0x40] sm:$0xff] }
 0x3b5   : > { %7128 = vmatprep.subr.mxu1 %v15021_v36  ;;  %7244 = vmatprep.subr.mxu0 %v15021_v36 }
 0x3b6   : > { %7129 = vmatpush1.msra.mxu1 %v14327_v59  ;;  %7245 = vmatpush1.msra.mxu0 %v14327_v59  ;;  %v8383_v59 = vld [vmem:[%s14647_s3 + $0xc8] sm:$0xff] }
 0x3b7   : > { %7130 = vmatprep.subr.mxu1 %v15021_v36  ;;  %7246 = vmatprep.subr.mxu0 %v15021_v36 }
 0x3b8   : > { %7131 = vmatpush1.msra.mxu1 %v14336_v42  ;;  %7247 = vmatpush1.msra.mxu0 %v14336_v42  ;;  %v8387_v42 = vld [vmem:[%s14647_s3 + $0xe8] sm:$0xff] }
 0x3b9   : > { %8359 = vmatprep.mubr.msk.f32.mxu1 %vm6857_vm0, %v6850_v21  ;;  %8374 = vmatprep.mubr.msk.f32.mxu0 %vm6857_vm0, %v8366_v37 }
 0x3ba   : > { %7132 = vmatprep.subr.mxu1 %v15021_v36  ;;  %7248 = vmatprep.subr.mxu0 %v15021_v36 }
 0x3bb   : > { %6943 = vmatmul.mubr.f32.gmra.mxu1 %v6849_v49  ;;  %7059 = vmatmul.mubr.f32.gmra.mxu0 %v8365_v4 }
 0x3bc   : > { %7133 = vmatpush1.msra.mxu1 %v14344_v6  ;;  %7249 = vmatpush1.msra.mxu0 %v14344_v6 }
 0x3bd   : > { %7134 = vmatprep.subr.mxu1 %v15021_v36  ;;  %7250 = vmatprep.subr.mxu0 %v15021_v36 }
 0x3be   : > { %7135 = vmatpush1.msra.mxu1 %v14351_v0  ;;  %7251 = vmatpush1.msra.mxu0 %v14351_v0 }
 0x3bf   : > { %8360 = vmatprep.mubr.msk.f32.mxu1 %vm6857_vm0, %v6852_v43  ;;  %8375 = vmatprep.mubr.msk.f32.mxu0 %vm6857_vm0, %v8368_v51 }
 0x3c0   : > { %7136 = vmatprep.subr.mxu1 %v15021_v36  ;;  %7252 = vmatprep.subr.mxu0 %v15021_v36 }
 0x3c1   : > { %6948 = vmatmul.mubr.f32.gmra.mxu1 %v6851_v27  ;;  %7064 = vmatmul.mubr.f32.gmra.mxu0 %v8367_v31 }
 0x3c2   : > { %7137 = vmatpush1.msra.mxu1 %v14360_v17  ;;  %7253 = vmatpush1.msra.mxu0 %v14360_v17 }
 0x3c3   : > { %7138 = vmatprep.subr.mxu1 %v15021_v36  ;;  %7254 = vmatprep.subr.mxu0 %v15021_v36 }
 0x3c4   : > { %7139 = vmatpush1.msra.mxu1 %v14368_v5  ;;  %7255 = vmatpush1.msra.mxu0 %v14368_v5 }
 0x3c5   : > { %8361 = vmatprep.mubr.msk.f32.mxu1 %vm6857_vm0, %v6854_v46  ;;  %8376 = vmatprep.mubr.msk.f32.mxu0 %vm6857_vm0, %v8370_v18 }
 0x3c6   : > { %7140 = vmatprep.subr.mxu1 %v15021_v36  ;;  %7256 = vmatprep.subr.mxu0 %v15021_v36 }
 0x3c7   : > { %6953 = vmatmul.mubr.f32.gmra.mxu1 %v6853_v28  ;;  %7069 = vmatmul.mubr.f32.gmra.mxu0 %v8369_v45 }
 0x3c8   : > { %7141 = vmatpush1.msra.mxu1 %v14376_v34  ;;  %7257 = vmatpush1.msra.mxu0 %v14376_v34 }
 0x3c9   : > { %7166 = vmatprep.subr.mxu1 %v15021_v36  ;;  %7282 = vmatprep.subr.mxu0 %v15021_v36 }
 0x3ca   : > { %7167 = vmatpush2.msra.mxu1 %v14385_v60  ;;  %7283 = vmatpush2.msra.mxu0 %v14385_v60 }
 0x3cb   : > { %8362 = vmatprep.mubr.msk.f32.mxu1 %vm6857_vm0, %v6856_v12  ;;  %8377 = vmatprep.mubr.msk.f32.mxu0 %vm6857_vm0, %v8372_v38 }
 0x3cc   : > { %7168 = vmatprep.subr.mxu1 %v15021_v36  ;;  %7284 = vmatprep.subr.mxu0 %v15021_v36 }
 0x3cd   : > { %6958 = vmatmul.mubr.f32.gmra.mxu1 %v6855_v15  ;;  %7074 = vmatmul.mubr.f32.gmra.mxu0 %v8371_v50 }
 0x3ce   : > { %7169 = vmatpush2.msra.mxu1 %v14392_v1  ;;  %7285 = vmatpush2.msra.mxu0 %v14392_v1 }
 0x3cf   : > { %7170 = vmatprep.subr.mxu1 %v15021_v36  ;;  %7286 = vmatprep.subr.mxu0 %v15021_v36 }
 0x3d0   : > { %7171 = vmatpush2.msra.mxu1 %v14398_v8  ;;  %7287 = vmatpush2.msra.mxu0 %v14398_v8 }
 0x3d1   : > { %7172 = vmatprep.subr.mxu1 %v15021_v36  ;;  %7288 = vmatprep.subr.mxu0 %v15021_v36  ;;  %v8396_v36 = vld [vmem:[%s14647_s3 + $0x108] sm:$0xff] }
 0x3d2   : > { %7173 = vmatpush2.msra.mxu1 %v14404_v23  ;;  %8388 = vmatprep.mubr.msk.f32.mxu1 %vm6857_vm0, %v8379_v22 }
 0x3d3   : > { %7289 = vmatpush2.msra.mxu0 %v14404_v23  ;;  %8403 = vmatprep.mubr.msk.f32.mxu0 %vm6857_vm0, %v8394_v62 }
 0x3d4   : > { %7175 = vmatmul.mubr.f32.vlgmr.msra.gmra.mxu1 %v8378_v2  ;;  %7291 = vmatmul.mubr.f32.vlgmr.msra.gmra.mxu0 %v8393_v41 }
 0x3d5   : > { %8389 = vmatprep.mubr.msk.f32.mxu1 %vm6857_vm0, %v8381_v3  ;;  %8404 = vmatprep.mubr.msk.f32.mxu0 %vm6857_vm0, %v8396_v36 }
 0x3d8   : > { %7180 = vmatmul.mubr.f32.gmra.mxu1 %v8380_v54  ;;  %7296 = vmatmul.mubr.f32.gmra.mxu0 %v8395_v61 }
 0x3d9   : > { %8390 = vmatprep.mubr.msk.f32.mxu1 %vm6857_vm0, %v8383_v59  ;;  %8405 = vmatprep.mubr.msk.f32.mxu0 %vm6857_vm0, %v8398_v56 }
 0x3dc   : > { %7185 = vmatmul.mubr.f32.gmra.mxu1 %v8382_v30  ;;  %7301 = vmatmul.mubr.f32.gmra.mxu0 %v8397_v20 }
 0x3dd   : > { %8391 = vmatprep.mubr.msk.f32.mxu1 %vm6857_vm0, %v8385_v57  ;;  %8406 = vmatprep.mubr.msk.f32.mxu0 %vm6857_vm0, %v8400_v11 }
 0x3e0   : > { %7190 = vmatmul.mubr.f32.gmra.mxu1 %v8384_v14  ;;  %7306 = vmatmul.mubr.f32.gmra.mxu0 %v8399_v53 }
 0x3e1   : > { %8392 = vmatprep.mubr.msk.f32.mxu1 %vm6857_vm0, %v8387_v42  ;;  %8407 = vmatprep.mubr.msk.f32.mxu0 %vm6857_vm0, %v8402_v44 }
 0x3e4   : > { %7195 = vmatmul.mubr.f32.gmra.mxu1 %v8386_v55  ;;  %7311 = vmatmul.mubr.f32.gmra.mxu0 %v8401_v25 }
 0x462   : > { %v6939_v48 = vpop.f32.mrf.mxu1  ;;  %v7055_v6 = vpop.f32.mrf.mxu0 }
 0x463   : > { %v7079_v24 = vmax.f32 %v6939_v48, %v7055_v6 }
 0x464   : > { %v6941_v39 = vpop.f32.mrf.mxu1  ;;  %v7057_v35 = vpop.f32.mrf.mxu0 }
 0x47b   : > { %v6944_v52 = vpop.f32.mrf.mxu1  ;;  %v7060_v0 = vpop.f32.mrf.mxu0 }
 0x47c   : > { %v7080_v37 = vmax.f32 %v6944_v52, %v7060_v0 }
 0x47d   : > { %v6946_v47 = vpop.f32.mrf.mxu1  ;;  %v7062_v13 = vpop.f32.mrf.mxu0 }
 0x481   : > { %v6949_v29 = vpop.f32.mrf.mxu1  ;;  %v7065_v58 = vpop.f32.mrf.mxu0 }
 0x482   : > { %v7081_v46 = vmax.f32 %v6949_v29, %v7065_v58 }
 0x483   : > { %v6951_v17 = vpop.f32.mrf.mxu1  ;;  %v7067_v32 = vpop.f32.mrf.mxu0 }
 0x487   : > { %v6954_v40 = vpop.f32.mrf.mxu1  ;;  %v7070_v63 = vpop.f32.mrf.mxu0 }
 0x488   : > { %v7082_v50 = vmax.f32 %v6954_v40, %v7070_v63 }
 0x489   : > { %v6956_v5 = vpop.f32.mrf.mxu1  ;;  %v7072_v7 = vpop.f32.mrf.mxu0 }
 0x48d   : > { %v6959_v26 = vpop.f32.mrf.mxu1  ;;  %v7075_v34 = vpop.f32.mrf.mxu0 }
 0x48e   : > { %v7083_v54 = vmax.f32 %v6959_v26, %v7075_v34 }
 0x48f   : > { %v6961_v33 = vpop.f32.mrf.mxu1  ;;  %v7077_v9 = vpop.f32.mrf.mxu0 }
 0x494   : > { %v7176_v16 = vpop.f32.mrf.mxu1  ;;  %v7292_v60 = vpop.f32.mrf.mxu0 }
 0x495   : > { %v7316_v1 = vmax.f32 %v7176_v16, %v7292_v60 }
 0x496   : > { %v7178_v8 = vpop.f32.mrf.mxu1  ;;  %v7294_v23 = vpop.f32.mrf.mxu0 }
 0x497   : > { %v7321_v10 = vmax.f32 %v7079_v24, %v7316_v1 }
 0x498   : > { %v7181_v19 = vpop.f32.mrf.mxu1  ;;  %v7297_v21 = vpop.f32.mrf.mxu0 }
 0x499   : > { %7326 = vst [vmem:[%s14628_s20] sm:$0xff] %v7321_v10  ;;  %v7317_v49 = vmax.f32 %v7181_v19, %v7297_v21 }
 0x49a   : > { %v7183_v4 = vpop.f32.mrf.mxu1  ;;  %v7299_v43 = vpop.f32.mrf.mxu0 }
 0x49b   : > { %v7322_v51 = vmax.f32 %v7080_v37, %v7317_v49 }
 0x49c   : > { %v7186_v27 = vpop.f32.mrf.mxu1  ;;  %v7302_v31 = vpop.f32.mrf.mxu0 }
 0x49d   : > { %7327 = vst [vmem:[%s14628_s20 + $0x8] sm:$0xff] %v7322_v51  ;;  %v7318_v18 = vmax.f32 %v7186_v27, %v7302_v31 }
 0x49e   : > { %v7188_v28 = vpop.f32.mrf.mxu1  ;;  %v7304_v45 = vpop.f32.mrf.mxu0 }
 0x49f   : > { %v7323_v12 = vmax.f32 %v7081_v46, %v7318_v18 }
 0x4a0   : > { %v7191_v38 = vpop.f32.mrf.mxu1  ;;  %v7307_v15 = vpop.f32.mrf.mxu0 }
 0x4a1   : > { %7328 = vst [vmem:[%s14628_s20 + $0x10] sm:$0xff] %v7323_v12  ;;  %v7319_v22 = vmax.f32 %v7191_v38, %v7307_v15 }
 0x4a2   : > { %v7193_v62 = vpop.f32.mrf.mxu1  ;;  %v7309_v2 = vpop.f32.mrf.mxu0 }
 0x4a3   : > { %v7324_v41 = vmax.f32 %v7082_v50, %v7319_v22 }
 0x4a4   : > { %v7196_v3 = vpop.f32.mrf.mxu1  ;;  %v7312_v36 = vpop.f32.mrf.mxu0 }
 0x4a5   : > { %7329 = vst [vmem:[%s14628_s20 + $0x18] sm:$0xff] %v7324_v41  ;;  %v7320_v61 = vmax.f32 %v7196_v3, %v7312_v36 }
 0x4a6   : > { %v7198_v59 = vpop.f32.mrf.mxu1  ;;  %v7314_v56 = vpop.f32.mrf.mxu0 }
 0x4a7   : > { %v7325_v30 = vmax.f32 %v7083_v54, %v7320_v61 }
 0x4a9   : > { %7330 = vst [vmem:[%s14628_s20 + $0x20] sm:$0xff] %v7325_v30 }
 0x4aa PF: > { %s14_s17 = sadd.s32 1, %s10941_s17   ;;  %s15035_s15 = smov %s10937_s16 }
 0x4ab   : > { %p11_p5 = scmp.ge.s32.totalorder %s14_s17, 4   ;;  %s15036_s16 = smov %s15038_s18 }
 0x4ad   :  { %13 = sbr.rel (!%p11_p5) target bundleno = 2 (0x2), region = 118 }

</bundles_post_ra>
